<compile_context>
chip_gen: v5e
topology: v5e:2x2
jax: 0.10.0
libtpu: 0.0.40
codegen_flags: <defaults>
</compile_context>

<pallas_src>
import functools

import jax
import jax.numpy as jnp
from jax import lax
from jax.experimental import pallas as pl
from jax.experimental.pallas import tpu as pltpu


def _mlp_kernel(x_ref,
                w1_ref, b1_ref,
                w2_ref, b2_ref,
                w3_ref, b3_ref,
                w4_ref, b4_ref,
                o_ref):
    """Fused 4-layer MLP: relu(x@W+b) x3 (BN pre-folded), then sigmoid(x@W+b)."""
    f32 = jnp.float32
    cdt = w1_ref.dtype  # MXU input dtype (bf16 in production, f32 optional)

    # Layer 1: Linear(768->512) [+ folded BatchNorm1d] + ReLU  (Dropout = identity, eval)
    h = jnp.dot(x_ref[...], w1_ref[...], preferred_element_type=f32) + b1_ref[...]
    h = jnp.maximum(h, 0.0).astype(cdt)

    # Layer 2: Linear(512->256) [+ folded BatchNorm1d] + ReLU
    h = jnp.dot(h, w2_ref[...], preferred_element_type=f32) + b2_ref[...]
    h = jnp.maximum(h, 0.0).astype(cdt)

    # Layer 3: Linear(256->128) [+ folded BatchNorm1d] + ReLU
    h = jnp.dot(h, w3_ref[...], preferred_element_type=f32) + b3_ref[...]
    h = jnp.maximum(h, 0.0).astype(cdt)

    # Layer 4: Linear(128->1) + Sigmoid, computed transposed so the batch lands on the
    # lane axis of the output (no 128x-padded writeback).
    # w4_ref is (8, H3): row 0 = w4^T, rows 1..7 zero (sublane-aligned slab).
    # Contract last dims of both operands -> (8, batch_tile); keep row 0.
    z8 = lax.dot_general(w4_ref[...], h,
                         dimension_numbers=(((1,), (1,)), ((), ())),
                         preferred_element_type=f32)
    z = z8[0:1, :] + b4_ref[...]                      # (1, batch_tile) logits, f32
    p = pl.reciprocal(1.0 + jnp.exp(-z), approx=True)  # sigmoid: exp + rcp, both on EUP
    o_ref[...] = p[None].astype(o_ref.dtype)          # (1, 1, batch_tile)


def _pick_batch_tile(B, requested):
    """Tile rows per grid step: multiple of 256 (fills the 256-row MXU), clamped so the
    grid has >= ~4 steps (>= 2 per TensorCore on dual-core chips) when B allows."""
    if B <= 256:
        return B                      # single full-dim block (legal for any B)
    requested = max(256, (requested // 256) * 256)
    tile = min(requested, max(256, (B // 4) // 256 * 256))
    return tile


def prepare_params(raw_params, *, use_bf16=True):
    """One-time parameter prep (call at model-load time, NOT per forward call).

    Folds eval-mode BatchNorm into the preceding Linear, repacks the final (H3, 1)
    layer as an (8, H3) sublane-aligned slab (row 0 real, rows 1..7 zero), and casts
    weights to bf16 (f32 biases)."""
    (w1, b1, s1, t1, w2, b2, s2, t2, w3, b3, s3, t3, w4, b4) = raw_params

    def fold(w, b, s, t):
        return w * s, b * s + t

    w1f, b1f = fold(w1, b1, s1, t1)
    w2f, b2f = fold(w2, b2, s2, t2)
    w3f, b3f = fold(w3, b3, s3, t3)

    w4r = jnp.pad(w4.T, ((0, 7), (0, 0)))        # (8, H3)
    b4r = b4.reshape(1, 1).astype(jnp.float32)   # scalar bias as (1, 1)

    wdt = jnp.bfloat16 if use_bf16 else jnp.float32
    w1f, w2f, w3f, w4r = (w.astype(wdt) for w in (w1f, w2f, w3f, w4r))
    # Biases stay f32: bias add / ReLU / sigmoid run in the f32 accumulator path.
    return (w1f, b1f.astype(jnp.float32),
            w2f, b2f.astype(jnp.float32),
            w3f, b3f.astype(jnp.float32),
            w4r, b4r)


@functools.partial(jax.jit, static_argnames=("batch_tile",))
def three_layer_regressor(x, prepared_params, *, batch_tile=512):
    """x: (B, input_dim) float32.  prepared_params: output of prepare_params().
    Returns (B, 1) float32 probabilities."""
    (w1, b1, w2, b2, w3, b3, w4r, b4r) = prepared_params

    B, D_in = x.shape
    H1, H2, H3 = w1.shape[1], w2.shape[1], w3.shape[1]

    tile = _pick_batch_tile(B, batch_tile)
    num_tiles = pl.cdiv(B, tile)
    Bp = num_tiles * tile

    x_in = x.astype(w1.dtype)
    if Bp != B:
        # Zero-pad ragged tail so no block ever reads out of bounds; the padded rows
        # produce sigmoid(bias)-like values in output lanes that are sliced away below.
        x_in = jnp.pad(x_in, ((0, Bp - B), (0, 0)))

    def const(shape):
        # whole-array block, same block every grid step (weights stay VMEM-resident)
        return pl.BlockSpec(shape, lambda i: (0,) * len(shape))

    in_specs = [
        pl.BlockSpec((tile, D_in), lambda i: (i, 0)),   # x tile (batch axis gridded)
        const((D_in, H1)), const((1, H1)),
        const((H1, H2)),   const((1, H2)),
        const((H2, H3)),   const((1, H3)),
        const((8, H3)),    const((1, 1)),
    ]
    # Output stored transposed: (num_tiles, 1, tile) with batch on the lane axis.
    out_spec = pl.BlockSpec((1, 1, tile), lambda i: (i, 0, 0))

    out = pl.pallas_call(
        _mlp_kernel,
        out_shape=jax.ShapeDtypeStruct((num_tiles, 1, tile), jnp.float32),
        grid_spec=pltpu.PrefetchScalarGridSpec(
            num_scalar_prefetch=0,
            grid=(num_tiles,),
            in_specs=in_specs,
            out_specs=out_spec,
        ),
        compiler_params=pltpu.CompilerParams(
            dimension_semantics=("parallel",),   # batch axis shards across TCs (v7x)
        ),
    )(x_in, w1, b1, w2, b2, w3, b3, w4r, b4r)

    return out.reshape(Bp, 1)[:B]


def init_params(key,
                input_dim=768, hidden_1_dim=512, hidden_2_dim=256,
                hidden_3_dim=128, out_dim=1, eps=1e-5):
    """Deterministic parameter init mirroring a freshly-constructed PyTorch module.

    Linear: uniform(-1/sqrt(fan_in), 1/sqrt(fan_in)); weights stored as (in, out).
    BatchNorm1d defaults (gamma=1, beta=0, running_mean=0, running_var=1) expressed as
    the eval-mode per-feature affine (scale, shift)."""
    dims = [(input_dim, hidden_1_dim),
            (hidden_1_dim, hidden_2_dim),
            (hidden_2_dim, hidden_3_dim),
            (hidden_3_dim, out_dim)]
    keys = jax.random.split(key, 2 * len(dims))
    params = []
    for idx, (fan_in, fan_out) in enumerate(dims):
        bound = 1.0 / jnp.sqrt(fan_in)
        w = jax.random.uniform(keys[2 * idx], (fan_in, fan_out),
                               minval=-bound, maxval=bound, dtype=jnp.float32)
        b = jax.random.uniform(keys[2 * idx + 1], (1, fan_out),
                               minval=-bound, maxval=bound, dtype=jnp.float32)
        params.append(w)
        params.append(b)
        if idx < 3:  # BatchNorm1d after the first three linears
            gamma = jnp.ones((1, fan_out), jnp.float32)
            beta = jnp.zeros((1, fan_out), jnp.float32)
            running_mean = jnp.zeros((1, fan_out), jnp.float32)
            running_var = jnp.ones((1, fan_out), jnp.float32)
            scale = gamma / jnp.sqrt(running_var + eps)
            shift = beta - running_mean * scale
            params.append(scale)
            params.append(shift)
    return tuple(params)


def _reference(x, raw_params):
    (w1, b1, s1, t1, w2, b2, s2, t2, w3, b3, s3, t3, w4, b4) = raw_params
    h = jnp.maximum((x @ w1 + b1) * s1 + t1, 0.0)
    h = jnp.maximum((h @ w2 + b2) * s2 + t2, 0.0)
    h = jnp.maximum((h @ w3 + b3) * s3 + t3, 0.0)
    return jax.nn.sigmoid(h @ w4 + b4)


if __name__ == "__main__":
    key = jax.random.PRNGKey(0)
    k_x, k_p = jax.random.split(key)

    batch = 512          # 2 grid steps at tile=256 (one per TensorCore on v7x)
    input_dim = 768      # fixed by the module
    x = jax.random.normal(k_x, (batch, input_dim), dtype=jnp.float32)
    raw_params = init_params(k_p, input_dim=input_dim)

    # One-time prep (BN fold, repack, bf16 cast) -- hoisted out of the serving path.
    prepared = prepare_params(raw_params, use_bf16=True)
    prepared = jax.block_until_ready(prepared)

    out = three_layer_regressor(x, prepared, batch_tile=512)
    out = jax.block_until_ready(out)

    ref = _reference(x, raw_params)
    assert out.shape == (batch, 1), out.shape
    max_err = float(jnp.max(jnp.abs(out - ref)))
    # bf16 weights/activations with f32 accumulation + approx reciprocal -> loose tol.
    assert max_err < 2e-2, f"mismatch: max err {max_err}"

    print("KERNEL_OK")
</pallas_src>

<mosaic_0001>
module attributes {stable_mosaic.version = 11 : i64} {
  func.func @_mlp_kernel(%arg0: i32, %arg1: memref<256x768xbf16, #tpu.memory_space<vmem>>, %arg2: memref<768x512xbf16, #tpu.memory_space<vmem>>, %arg3: memref<1x512xf32, #tpu.memory_space<vmem>>, %arg4: memref<512x256xbf16, #tpu.memory_space<vmem>>, %arg5: memref<1x256xf32, #tpu.memory_space<vmem>>, %arg6: memref<256x128xbf16, #tpu.memory_space<vmem>>, %arg7: memref<1x128xf32, #tpu.memory_space<vmem>>, %arg8: memref<8x128xbf16, #tpu.memory_space<vmem>>, %arg9: memref<1x1xf32, #tpu.memory_space<vmem>>, %arg10: memref<1x1x256xf32, #tpu.memory_space<vmem>>) attributes {dimension_semantics = [#tpu.dimension_semantics<parallel>], iteration_bounds = array<i64: 2>, scalar_prefetch = 0 : i64, scratch_operands = 0 : i64, tpu.core_type = #tpu.core_type<tc>, window_params = [{transform_indices = @transform_0, window_bounds = array<i64: 256, 768>}, {pipeline_mode = #tpu.pipeline_mode<synchronous>, transform_indices = @transform_1, window_bounds = array<i64: 768, 512>}, {pipeline_mode = #tpu.pipeline_mode<synchronous>, transform_indices = @transform_2, window_bounds = array<i64: 1, 512>}, {pipeline_mode = #tpu.pipeline_mode<synchronous>, transform_indices = @transform_3, window_bounds = array<i64: 512, 256>}, {pipeline_mode = #tpu.pipeline_mode<synchronous>, transform_indices = @transform_4, window_bounds = array<i64: 1, 256>}, {pipeline_mode = #tpu.pipeline_mode<synchronous>, transform_indices = @transform_5, window_bounds = array<i64: 256, 128>}, {pipeline_mode = #tpu.pipeline_mode<synchronous>, transform_indices = @transform_6, window_bounds = array<i64: 1, 128>}, {pipeline_mode = #tpu.pipeline_mode<synchronous>, transform_indices = @transform_7, window_bounds = array<i64: 8, 128>}, {pipeline_mode = #tpu.pipeline_mode<synchronous>, transform_indices = @transform_8, window_bounds = array<i64: 1, 1>}, {transform_indices = @transform_9, window_bounds = array<i64: 1, 1, 256>}]} {
    %c0 = arith.constant 0 : index
    %c0_0 = arith.constant 0 : index
    %0 = vector.load %arg1[%c0, %c0_0] : memref<256x768xbf16, #tpu.memory_space<vmem>>, vector<256x768xbf16>
    %c0_1 = arith.constant 0 : index
    %c0_2 = arith.constant 0 : index
    %1 = vector.load %arg2[%c0_1, %c0_2] : memref<768x512xbf16, #tpu.memory_space<vmem>>, vector<768x512xbf16>
    %cst = arith.constant dense<0.000000e+00> : vector<256x512xf32>
    %2 = tpu.matmul %0, %1, %cst {dimension_numbers = #tpu.dot_dimension_numbers<[1], [0], [0], [1], [0, 0, 1, 1], [], []>} : vector<256x768xbf16>, vector<768x512xbf16>, vector<256x512xf32> -> vector<256x512xf32>
    %c0_3 = arith.constant 0 : index
    %c0_4 = arith.constant 0 : index
    %3 = vector.load %arg3[%c0_3, %c0_4] : memref<1x512xf32, #tpu.memory_space<vmem>>, vector<1x512xf32>
    %4 = vector.broadcast %3 : vector<1x512xf32> to vector<256x512xf32>
    %5 = arith.addf %2, %4 : vector<256x512xf32>
    %cst_5 = arith.constant 0.000000e+00 : f32
    %6 = vector.broadcast %cst_5 : f32 to vector<256x512xf32>
    %7 = arith.maximumf %5, %6 : vector<256x512xf32>
    %8 = arith.truncf %7 : vector<256x512xf32> to vector<256x512xbf16>
    %c0_6 = arith.constant 0 : index
    %c0_7 = arith.constant 0 : index
    %9 = vector.load %arg4[%c0_6, %c0_7] : memref<512x256xbf16, #tpu.memory_space<vmem>>, vector<512x256xbf16>
    %cst_8 = arith.constant dense<0.000000e+00> : vector<256x256xf32>
    %10 = tpu.matmul %8, %9, %cst_8 {dimension_numbers = #tpu.dot_dimension_numbers<[1], [0], [0], [1], [0, 0, 1, 1], [], []>} : vector<256x512xbf16>, vector<512x256xbf16>, vector<256x256xf32> -> vector<256x256xf32>
    %c0_9 = arith.constant 0 : index
    %c0_10 = arith.constant 0 : index
    %11 = vector.load %arg5[%c0_9, %c0_10] : memref<1x256xf32, #tpu.memory_space<vmem>>, vector<1x256xf32>
    %12 = vector.broadcast %11 : vector<1x256xf32> to vector<256x256xf32>
    %13 = arith.addf %10, %12 : vector<256x256xf32>
    %cst_11 = arith.constant 0.000000e+00 : f32
    %14 = vector.broadcast %cst_11 : f32 to vector<256x256xf32>
    %15 = arith.maximumf %13, %14 : vector<256x256xf32>
    %16 = arith.truncf %15 : vector<256x256xf32> to vector<256x256xbf16>
    %c0_12 = arith.constant 0 : index
    %c0_13 = arith.constant 0 : index
    %17 = vector.load %arg6[%c0_12, %c0_13] : memref<256x128xbf16, #tpu.memory_space<vmem>>, vector<256x128xbf16>
    %cst_14 = arith.constant dense<0.000000e+00> : vector<256x128xf32>
    %18 = tpu.matmul %16, %17, %cst_14 {dimension_numbers = #tpu.dot_dimension_numbers<[1], [0], [0], [1], [0, 0, 1, 1], [], []>} : vector<256x256xbf16>, vector<256x128xbf16>, vector<256x128xf32> -> vector<256x128xf32>
    %c0_15 = arith.constant 0 : index
    %c0_16 = arith.constant 0 : index
    %19 = vector.load %arg7[%c0_15, %c0_16] : memref<1x128xf32, #tpu.memory_space<vmem>>, vector<1x128xf32>
    %20 = vector.broadcast %19 : vector<1x128xf32> to vector<256x128xf32>
    %21 = arith.addf %18, %20 : vector<256x128xf32>
    %cst_17 = arith.constant 0.000000e+00 : f32
    %22 = vector.broadcast %cst_17 : f32 to vector<256x128xf32>
    %23 = arith.maximumf %21, %22 : vector<256x128xf32>
    %24 = arith.truncf %23 : vector<256x128xf32> to vector<256x128xbf16>
    %c0_18 = arith.constant 0 : index
    %c0_19 = arith.constant 0 : index
    %25 = vector.load %arg8[%c0_18, %c0_19] : memref<8x128xbf16, #tpu.memory_space<vmem>>, vector<8x128xbf16>
    %cst_20 = arith.constant dense<0.000000e+00> : vector<8x256xf32>
    %26 = tpu.matmul %25, %24, %cst_20 {dimension_numbers = #tpu.dot_dimension_numbers<[1], [1], [0], [0], [0, 0, 1, 0], [], []>} : vector<8x128xbf16>, vector<256x128xbf16>, vector<8x256xf32> -> vector<8x256xf32>
    %27 = vector.extract_strided_slice %26 {offsets = [0, 0], sizes = [1, 256], strides = [1, 1]} : vector<8x256xf32> to vector<1x256xf32>
    %c0_21 = arith.constant 0 : index
    %c0_22 = arith.constant 0 : index
    %28 = vector.load %arg9[%c0_21, %c0_22] : memref<1x1xf32, #tpu.memory_space<vmem>>, vector<1x1xf32>
    %29 = vector.broadcast %28 : vector<1x1xf32> to vector<1x256xf32>
    %30 = arith.addf %27, %29 : vector<1x256xf32>
    %cst_23 = arith.constant 0.000000e+00 : f32
    %31 = vector.broadcast %cst_23 : f32 to vector<1x256xf32>
    %32 = arith.subf %31, %30 : vector<1x256xf32>
    %33 = math.exp %32 : vector<1x256xf32>
    %cst_24 = arith.constant 1.000000e+00 : f32
    %34 = vector.broadcast %cst_24 : f32 to vector<1x256xf32>
    %35 = arith.addf %34, %33 : vector<1x256xf32>
    %36 = tpu.reciprocal %35 {approx = true} : vector<1x256xf32> -> vector<1x256xf32>
    %37 = vector.shape_cast %36 : vector<1x256xf32> to vector<1x1x256xf32>
    %c0_25 = arith.constant 0 : index
    %c0_26 = arith.constant 0 : index
    %c0_27 = arith.constant 0 : index
    %38 = vector.load %arg10[%c0_25, %c0_26, %c0_27] : memref<1x1x256xf32, #tpu.memory_space<vmem>>, vector<1x1x256xf32>
    tpu.vector_store %arg10[%c0_25, %c0_26, %c0_27], %37 {strides = array<i32>} : memref<1x1x256xf32, #tpu.memory_space<vmem>>, vector<1x1x256xf32>,
    return
  }
  func.func @transform_0(%arg0: i32) -> (i32, i32) {
    %c0_i32 = arith.constant 0 : i32
    %c0_i32_0 = arith.constant 0 : i32
    return %arg0, %c0_i32 : i32, i32
  }
  func.func @transform_1(%arg0: i32) -> (i32, i32) {
    %c0_i32 = arith.constant 0 : i32
    %c0_i32_0 = arith.constant 0 : i32
    %c0_i32_1 = arith.constant 0 : i32
    return %c0_i32, %c0_i32_0 : i32, i32
  }
  func.func @transform_2(%arg0: i32) -> (i32, i32) {
    %c0_i32 = arith.constant 0 : i32
    %c0_i32_0 = arith.constant 0 : i32
    %c0_i32_1 = arith.constant 0 : i32
    return %c0_i32, %c0_i32_0 : i32, i32
  }
  func.func @transform_3(%arg0: i32) -> (i32, i32) {
    %c0_i32 = arith.constant 0 : i32
    %c0_i32_0 = arith.constant 0 : i32
    %c0_i32_1 = arith.constant 0 : i32
    return %c0_i32, %c0_i32_0 : i32, i32
  }
  func.func @transform_4(%arg0: i32) -> (i32, i32) {
    %c0_i32 = arith.constant 0 : i32
    %c0_i32_0 = arith.constant 0 : i32
    %c0_i32_1 = arith.constant 0 : i32
    return %c0_i32, %c0_i32_0 : i32, i32
  }
  func.func @transform_5(%arg0: i32) -> (i32, i32) {
    %c0_i32 = arith.constant 0 : i32
    %c0_i32_0 = arith.constant 0 : i32
    %c0_i32_1 = arith.constant 0 : i32
    return %c0_i32, %c0_i32_0 : i32, i32
  }
  func.func @transform_6(%arg0: i32) -> (i32, i32) {
    %c0_i32 = arith.constant 0 : i32
    %c0_i32_0 = arith.constant 0 : i32
    %c0_i32_1 = arith.constant 0 : i32
    return %c0_i32, %c0_i32_0 : i32, i32
  }
  func.func @transform_7(%arg0: i32) -> (i32, i32) {
    %c0_i32 = arith.constant 0 : i32
    %c0_i32_0 = arith.constant 0 : i32
    %c0_i32_1 = arith.constant 0 : i32
    return %c0_i32, %c0_i32_0 : i32, i32
  }
  func.func @transform_8(%arg0: i32) -> (i32, i32) {
    %c0_i32 = arith.constant 0 : i32
    %c0_i32_0 = arith.constant 0 : i32
    %c0_i32_1 = arith.constant 0 : i32
    return %c0_i32, %c0_i32_0 : i32, i32
  }
  func.func @transform_9(%arg0: i32) -> (i32, i32, i32) {
    %c0_i32 = arith.constant 0 : i32
    %c0_i32_0 = arith.constant 0 : i32
    %c0_i32_1 = arith.constant 0 : i32
    return %arg0, %c0_i32, %c0_i32_0 : i32, i32, i32
  }
}

</mosaic_0001>

<bundles_post_ra>
// kernel: three_layer_regressor.1
= control target key start
LH: loop header
LB: loop body
LE: loop exit
PB: predicated region body
PF: predicated region fallthrough
CT: control target
= control target key end

     0   :  { %s11913_s0 = inlined_call_operand.vmem [shape: bf16[512,768], index: 0, kind: input, shape index: {}]   ;;  %s11914_s1 = inlined_call_operand.vmem [shape: bf16[768,512], index: 1, kind: input, shape index: {}]   ;;  %s11915_s2 = inlined_call_operand.vmem [shape: f32[1,512], index: 2, kind: input, shape index: {}]   ;;  %s11916_s3 = inlined_call_operand.vmem [shape: bf16[512,256], index: 3, kind: input, shape index: {}]   ;;  %s11917_s4 = inlined_call_operand.vmem [shape: f32[1,256], index: 4, kind: input, shape index: {}]   ;;  %s11918_s5 = inlined_call_operand.vmem [shape: bf16[256,128], index: 5, kind: input, shape index: {}]   ;;  %s11919_s6 = inlined_call_operand.vmem [shape: f32[1,128], index: 6, kind: input, shape index: {}]   ;;  %s11920_s7 = inlined_call_operand.vmem [shape: bf16[8,128], index: 7, kind: input, shape index: {}]   ;;  %s11921_s8 = inlined_call_operand.<no memory space> [shape: f32[1,1], index: 8, kind: input, shape index: {}]   ;;  %s11922_s9 = inlined_call_operand.hbm [shape: f32[2,1,256], index: 9, kind: output, shape index: {}]  }
   0x1   :  { %v14_v0 = vstv %s11921_s8 }
   0x2   :  { %15 = vst [vmem:[#allocation2] sm:$0x1] %v14_v0 }
   0x3   :  { %16 = vsyncpa [#allocation4], 0 }
   0x4   :  { %18 = vsyncpa [#allocation4 + $0x1], 0  ;;  %s8130_s11 = smov 0   ;;  %s8132_s12 = smov 0  }
   0x5   :  { %s8134_s13 = smov 0   ;;  %s8136_s14 = smov 0  }
   0x6 LB: > { %s8151_s8 = sadd.s32 4294967295, %s8074_s14   ;;  %s6092_s15 = sadd.s32 4294967294, %s8074_s14   ;;  %s8074_s14 = sphi %s8136_s14, %s12661_s14   ;;  %s8070_s13 = sphi %s8134_s13, %s12660_s13   ;;  %s8066_s12 = sphi %s8132_s12, %s12659_s12   ;;  %s8062_s11 = sphi %s8130_s11, %s12658_s11  }
   0x7   : > { %s8155_s16 = sadd.s32 1, %s8074_s14   ;;  %s225_s17 = sadd.s32 1, %s8070_s13 }
   0x8   : > { %s222_s18 = ssub.s32 %s8074_s14, %s8155_s16  ;;  %p235_p0 = scmp.ne.s32.totalorder %s8070_s13, %s8066_s12 }
   0x9   : > { %p223_p1 = scmp.eq.s32.totalorder %s222_s18, 0  ;;  %p236_p2 = scmp.eq.s32.totalorder %s8151_s8, 1 }
   0xa   : > { %p241_p3 = scmp.ne.s32.totalorder %s8066_s12, %s8062_s11  ;;  %p242_p4 = scmp.eq.s32.totalorder %s6092_s15, 1 }
   0xb   : > { %s8166_s19 = scalar_select %p223_p1, %s8070_s13, %s225_s17  }
   0xc   : > { %p8168_p5 = por %p236_p2, %p235_p0  ;;  %p8172_p6 = por %p242_p4, %p241_p3 }
   0xd   : > { %p6095_p7 = scmp.ge.s32.totalorder %s8074_s14, 1  ;;  %p294_p8 = scmp.lt.s32.totalorder %s8074_s14, 3 }
   0xf   : > { %p295_p9 = pnand %p6095_p7, %p294_p8 }
  0x11   : > { %298 = sbr.rel (%p295_p9) target bundleno = 2711 (0xa97), region = 56 }
  0x16   : > { %v6597_v1 = vld [vmem:[%s11914_s1 + $0xe0] sm:$0xf]  ;;  %v7701_v2 = vld [vmem:[%s11914_s1 + $0xec] sm:$0xf0]  ;;  %s6097_s28 = sshll.u32 %s8151_s8, 5  ;;  %s328_s25 = sand.u32 1, %s8066_s12  }
  0x17   : > { %v6725_v3 = vld [vmem:[%s11914_s1 + $0x1e0] sm:$0xf]  ;;  %v6598_v4 = vor.u32 %v7701_v2, %v6597_v1  ;;  %v7733_v5 = vld [vmem:[%s11914_s1 + $0x1ec] sm:$0xf0]  ;;  %p332_p10 = scmp.lt.s32.totalorder %s6097_s28, 63  ;;  %s6096_s26 = sshll.u32 %s328_s25, 1 }
  0x18   : > { %v6581_v6 = vld [vmem:[%s11914_s1 + $0xc0] sm:$0xf]  ;;  %v7697_v7 = vld [vmem:[%s11914_s1 + $0xcc] sm:$0xf0]  ;;  %v6726_v8 = vor.u32 %v7733_v5, %v6725_v3  ;;  %s7572_s27 = sshll.u32 %s8151_s8, 1  ;;  %s330_s15 = scalar_lea.vmem [#allocation3], %s6096_s26 }
  0x19   : > { %v6709_v9 = vld [vmem:[%s11914_s1 + $0x1c0] sm:$0xf]  ;;  %v7729_v10 = vld [vmem:[%s11914_s1 + $0x1cc] sm:$0xf0]  ;;  %2076 = vmatpush.bf16.msra.mxu0 %v6598_v4  ;;  %7943 = vmatpush.bf16.msra.mxu2 %v6598_v4  ;;  %v6582_v11 = vor.u32 %v7697_v7, %v6581_v6  ;;  %s12663_s28 = smov (!%p332_p10, %s6097_s28), 63  ;;  %s6028_s30 = scalar_lea.hbm %s11922_s9, %s7572_s27  ;;  %vm6009_vm0 = vcmask 1040384  }
  0x1a   : > { %2165 = vmatpush.bf16.msra.mxu1 %v6726_v8  ;;  %7951 = vmatpush.bf16.msra.mxu3 %v6726_v8  ;;  %v6710_v12 = vor.u32 %v7729_v10, %v6709_v9  ;;  %v6565_v13 = vld [vmem:[%s11914_s1 + $0xa0] sm:$0xf]  ;;  %v7693_v14 = vld [vmem:[%s11914_s1 + $0xac] sm:$0xf0]  ;;  %s7959_s17 = smul.u32 24, %s12663_s28  ;;  %s6030_s18 = sshll.u32 %s330_s15, 4  ;;  %s6031_s18 = int_to_ptr.vmem [resolvable:$true] %s6030_s18 }
  0x1b   : > { %v6693_v15 = vld [vmem:[%s11914_s1 + $0x1a0] sm:$0xf]  ;;  %v7725_v16 = vld [vmem:[%s11914_s1 + $0x1ac] sm:$0xf0]  ;;  %v6566_v17 = vor.u32 %v7693_v14, %v6565_v13  ;;  %s6018_s8 = scalar_lea.sflag [#allocation4], %s328_s25  ;;  %s8032_s26 = scalar_lea.hbm %s11922_s9, 4 }
  0x1c   : > { %v6694_v18 = vor.u32 %v7725_v16, %v6693_v15  ;;  %v6549_v19 = vld [vmem:[%s11914_s1 + $0x80] sm:$0xf]  ;;  %v7689_v20 = vld [vmem:[%s11914_s1 + $0x8c] sm:$0xf0]  ;;  %s8266_s10 = scalar_lea.vmem %s11913_s0, %s7959_s17 }
  0x1d   : > { %2077 = vmatpush.bf16.msra.mxu0 %v6582_v11  ;;  %7944 = vmatpush.bf16.msra.mxu2 %v6582_v11  ;;  %v6677_v21 = vld [vmem:[%s11914_s1 + $0x180] sm:$0xf]  ;;  %v7721_v22 = vld [vmem:[%s11914_s1 + $0x18c] sm:$0xf0]  ;;  %v6550_v23 = vor.u32 %v7689_v20, %v6549_v19  ;;  %v7578_v48 = vld [vmem:[%s8266_s10 + $0x14] sm:$0xf0] }
  0x1e   : > { %2166 = vmatpush.bf16.msra.mxu1 %v6710_v12  ;;  %7952 = vmatpush.bf16.msra.mxu3 %v6710_v12  ;;  %v6678_v24 = vor.u32 %v7721_v22, %v6677_v21  ;;  %v6533_v25 = vld [vmem:[%s11914_s1 + $0x60] sm:$0xf]  ;;  %v7685_v26 = vld [vmem:[%s11914_s1 + $0x6c] sm:$0xf0]  ;;  %v7632_v51 = vld [vmem:[%s8266_s10 + $0x1c4] sm:$0xf0] }
  0x1f   : > { %v6661_v27 = vld [vmem:[%s11914_s1 + $0x160] sm:$0xf]  ;;  %v7717_v28 = vld [vmem:[%s11914_s1 + $0x16c] sm:$0xf0]  ;;  %v6534_v29 = vor.u32 %v7685_v26, %v6533_v25  ;;  %v7575_v52 = vld [vmem:[%s8266_s10 + $0x4] sm:$0xf] }
  0x20   : > { %v6662_v30 = vor.u32 %v7717_v28, %v6661_v27  ;;  %v6517_v31 = vld [vmem:[%s11914_s1 + $0x40] sm:$0xf]  ;;  %v7681_v32 = vld [vmem:[%s11914_s1 + $0x4c] sm:$0xf0]  ;;  %v6103_v54 = vld [vmem:[%s8266_s10 + $0x18] sm:$0xf0] }
  0x21   : > { %2078 = vmatpush.bf16.msra.mxu0 %v6566_v17  ;;  %7945 = vmatpush.bf16.msra.mxu2 %v6566_v17  ;;  %v6645_v33 = vld [vmem:[%s11914_s1 + $0x140] sm:$0xf]  ;;  %v7713_v34 = vld [vmem:[%s11914_s1 + $0x14c] sm:$0xf0]  ;;  %v6518_v35 = vor.u32 %v7681_v32, %v6517_v31  ;;  %v7629_v55 = vld [vmem:[%s8266_s10 + $0x1b4] sm:$0xf]  ;;  %v8292_v59 = vor.u32 %v7575_v52, %v6103_v54 }
  0x22   : > { %2167 = vmatpush.bf16.msra.mxu1 %v6694_v18  ;;  %7953 = vmatpush.bf16.msra.mxu3 %v6694_v18  ;;  %v6646_v36 = vor.u32 %v7713_v34, %v6645_v33  ;;  %v6501_v37 = vld [vmem:[%s11914_s1 + $0x20] sm:$0xf]  ;;  %v7677_v38 = vld [vmem:[%s11914_s1 + $0x2c] sm:$0xf0]  ;;  %v6319_v56 = vld [vmem:[%s8266_s10 + $0x1c8] sm:$0xf0] }
  0x23   : > { %v6629_v39 = vld [vmem:[%s11914_s1 + $0x120] sm:$0xf]  ;;  %v7709_v40 = vld [vmem:[%s11914_s1 + $0x12c] sm:$0xf0]  ;;  %v6502_v41 = vor.u32 %v7677_v38, %v6501_v37  ;;  %12176 = vst [vmem:[#allocation8_spill] sm:$0xff] %v8292_v59  ;;  %v8294_v60 = vor.u32 %v7629_v55, %v6319_v56 }
  0x24   : > { %v6630_v42 = vor.u32 %v7709_v40, %v6629_v39  ;;  %v6485_v43 = vld [vmem:[%s11914_s1] sm:$0xf]  ;;  %v7673_v44 = vld [vmem:[%s11914_s1 + $0xc] sm:$0xf0]  ;;  %v7584_v62 = vld [vmem:[%s8266_s10 + $0x44] sm:$0xf0] }
  0x25   : > { %2079 = vmatpush.bf16.msra.mxu0 %v6550_v23  ;;  %7946 = vmatpush.bf16.msra.mxu2 %v6550_v23  ;;  %v6613_v45 = vld [vmem:[%s11914_s1 + $0x100] sm:$0xf]  ;;  %v7705_v46 = vld [vmem:[%s11914_s1 + $0x10c] sm:$0xf0]  ;;  %v6486_v49 = vor.u32 %v7673_v44, %v6485_v43  ;;  %12177 = vst [vmem:[#allocation9_spill] sm:$0xff] %v8294_v60 }
  0x26   : > { %2168 = vmatpush.bf16.msra.mxu1 %v6678_v24  ;;  %7954 = vmatpush.bf16.msra.mxu3 %v6678_v24  ;;  %v6101_v47 = vld [vmem:[%s8266_s10] sm:$0xf]  ;;  %v6317_v50 = vld [vmem:[%s8266_s10 + $0x1b0] sm:$0xf]  ;;  %v6614_v53 = vor.u32 %v7705_v46, %v6613_v45  ;;  %v7638_v0 = vld [vmem:[%s8266_s10 + $0x1f4] sm:$0xf0] }
  0x27   : > { %v8288_v57 = vor.u32 %v7578_v48, %v6101_v47  ;;  %v8290_v58 = vor.u32 %v7632_v51, %v6317_v50  ;;  %v6125_v61 = vld [vmem:[%s8266_s10 + $0x30] sm:$0xf]  ;;  %v6341_v63 = vld [vmem:[%s8266_s10 + $0x1e0] sm:$0xf]  ;;  %v7581_v1 = vld [vmem:[%s8266_s10 + $0x34] sm:$0xf] }
  0x28   : > { %v6127_v2 = vld [vmem:[%s8266_s10 + $0x48] sm:$0xf0]  ;;  %v7635_v3 = vld [vmem:[%s8266_s10 + $0x1e4] sm:$0xf]  ;;  %v6343_v4 = vld [vmem:[%s8266_s10 + $0x1f8] sm:$0xf0]  ;;  %v8308_v5 = vor.u32 %v7584_v62, %v6125_v61  ;;  %v8310_v6 = vor.u32 %v7638_v0, %v6341_v63 }
  0x29   : > { %2080 = vmatpush.bf16.msra.mxu0 %v6534_v29  ;;  %7947 = vmatpush.bf16.msra.mxu2 %v6534_v29  ;;  %12174 = vst [vmem:[#allocation6_spill] sm:$0xff] %v8288_v57  ;;  %v8312_v7 = vor.u32 %v7581_v1, %v6127_v2  ;;  %v8314_v8 = vor.u32 %v7635_v3, %v6343_v4  ;;  %v6149_v9 = vld [vmem:[%s8266_s10 + $0x60] sm:$0xf]  ;;  %v7590_v10 = vld [vmem:[%s8266_s10 + $0x74] sm:$0xf0] }
  0x2a   : > { %2169 = vmatpush.bf16.msra.mxu1 %v6662_v30  ;;  %7955 = vmatpush.bf16.msra.mxu3 %v6662_v30  ;;  %12175 = vst [vmem:[#allocation7_spill] sm:$0xff] %v8290_v58  ;;  %v6365_v11 = vld [vmem:[%s8266_s10 + $0x210] sm:$0xf]  ;;  %v7644_v12 = vld [vmem:[%s8266_s10 + $0x224] sm:$0xf0]  ;;  %v8328_v17 = vor.u32 %v7590_v10, %v6149_v9 }
  0x2b   : > { %12178 = vst [vmem:[#allocation10_spill] sm:$0xff] %v8308_v5  ;;  %v7587_v13 = vld [vmem:[%s8266_s10 + $0x64] sm:$0xf]  ;;  %v6151_v14 = vld [vmem:[%s8266_s10 + $0x78] sm:$0xf0]  ;;  %v8330_v18 = vor.u32 %v7644_v12, %v6365_v11 }
  0x2c   : > { %12179 = vst [vmem:[#allocation11_spill] sm:$0xff] %v8310_v6  ;;  %v7641_v15 = vld [vmem:[%s8266_s10 + $0x214] sm:$0xf]  ;;  %v6367_v16 = vld [vmem:[%s8266_s10 + $0x228] sm:$0xf0]  ;;  %v8332_v19 = vor.u32 %v7587_v13, %v6151_v14 }
  0x2d   : > { %2081 = vmatpush.bf16.msra.mxu0 %v6518_v35  ;;  %7948 = vmatpush.bf16.msra.mxu2 %v6518_v35  ;;  %12180 = vst [vmem:[#allocation12_spill] sm:$0xff] %v8312_v7  ;;  %v8334_v20 = vor.u32 %v7641_v15, %v6367_v16  ;;  %v6173_v21 = vld [vmem:[%s8266_s10 + $0x90] sm:$0xf]  ;;  %v7596_v22 = vld [vmem:[%s8266_s10 + $0xa4] sm:$0xf0] }
  0x2e   : > { %2170 = vmatpush.bf16.msra.mxu1 %v6646_v36  ;;  %7956 = vmatpush.bf16.msra.mxu3 %v6646_v36  ;;  %12181 = vst [vmem:[#allocation13_spill] sm:$0xff] %v8314_v8  ;;  %v6389_v23 = vld [vmem:[%s8266_s10 + $0x240] sm:$0xf]  ;;  %v7650_v24 = vld [vmem:[%s8266_s10 + $0x254] sm:$0xf0]  ;;  %v8348_v29 = vor.u32 %v7596_v22, %v6173_v21 }
  0x2f   : > { %12182 = vst [vmem:[#allocation14_spill] sm:$0xff] %v8328_v17  ;;  %v7593_v25 = vld [vmem:[%s8266_s10 + $0x94] sm:$0xf]  ;;  %v6175_v26 = vld [vmem:[%s8266_s10 + $0xa8] sm:$0xf0]  ;;  %v8350_v30 = vor.u32 %v7650_v24, %v6389_v23 }
  0x30   : > { %12183 = vst [vmem:[#allocation15_spill] sm:$0xff] %v8330_v18  ;;  %v7647_v27 = vld [vmem:[%s8266_s10 + $0x244] sm:$0xf]  ;;  %v6391_v28 = vld [vmem:[%s8266_s10 + $0x258] sm:$0xf0]  ;;  %v8352_v31 = vor.u32 %v7593_v25, %v6175_v26 }
  0x31   : > { %2082 = vmatpush.bf16.msra.mxu0 %v6502_v41  ;;  %7949 = vmatpush.bf16.msra.mxu2 %v6502_v41  ;;  %12184 = vst [vmem:[#allocation16_spill] sm:$0xff] %v8332_v19  ;;  %v8354_v32 = vor.u32 %v7647_v27, %v6391_v28  ;;  %v6853_v33 = vld [vmem:[%s11914_s1 + $0x2e0] sm:$0xf]  ;;  %v7765_v34 = vld [vmem:[%s11914_s1 + $0x2ec] sm:$0xf0] }
  0x32   : > { %2171 = vmatpush.bf16.msra.mxu1 %v6630_v42  ;;  %7957 = vmatpush.bf16.msra.mxu3 %v6630_v42  ;;  %12185 = vst [vmem:[#allocation17_spill] sm:$0xff] %v8334_v20  ;;  %v6981_v35 = vld [vmem:[%s11914_s1 + $0x3e0] sm:$0xf]  ;;  %v6854_v36 = vor.u32 %v7765_v34, %v6853_v33  ;;  %v7797_v37 = vld [vmem:[%s11914_s1 + $0x3ec] sm:$0xf0] }
  0x33   : > { %12186 = vst [vmem:[#allocation18_spill] sm:$0xff] %v8348_v29  ;;  %v6837_v38 = vld [vmem:[%s11914_s1 + $0x2c0] sm:$0xf]  ;;  %v7761_v39 = vld [vmem:[%s11914_s1 + $0x2cc] sm:$0xf0]  ;;  %v6982_v40 = vor.u32 %v7797_v37, %v6981_v35 }
  0x34   : > { %12187 = vst [vmem:[#allocation19_spill] sm:$0xff] %v8350_v30  ;;  %v6965_v41 = vld [vmem:[%s11914_s1 + $0x3c0] sm:$0xf]  ;;  %v7793_v42 = vld [vmem:[%s11914_s1 + $0x3cc] sm:$0xf0]  ;;  %v6838_v43 = vor.u32 %v7761_v39, %v6837_v38 }
  0x35   : > { %2083 = vmatpush.bf16.msra.mxu0 %v6486_v49  ;;  %7950 = vmatpush.bf16.msra.mxu2 %v6486_v49  ;;  %12188 = vst [vmem:[#allocation20_spill] sm:$0xff] %v8352_v31  ;;  %v6966_v44 = vor.u32 %v7793_v42, %v6965_v41  ;;  %v6821_v45 = vld [vmem:[%s11914_s1 + $0x2a0] sm:$0xf]  ;;  %v7757_v46 = vld [vmem:[%s11914_s1 + $0x2ac] sm:$0xf0] }
  0x36   : > { %2172 = vmatpush.bf16.msra.mxu1 %v6614_v53  ;;  %7958 = vmatpush.bf16.msra.mxu3 %v6614_v53  ;;  %12189 = vst [vmem:[#allocation21_spill] sm:$0xff] %v8354_v32  ;;  %v6949_v47 = vld [vmem:[%s11914_s1 + $0x3a0] sm:$0xf]  ;;  %v7789_v48 = vld [vmem:[%s11914_s1 + $0x3ac] sm:$0xf0]  ;;  %v6822_v50 = vor.u32 %v7757_v46, %v6821_v45 }
  0x37   : > { %v6197_v49 = vld [vmem:[%s8266_s10 + $0xc0] sm:$0xf]  ;;  %v7602_v51 = vld [vmem:[%s8266_s10 + $0xd4] sm:$0xf0]  ;;  %v6950_v52 = vor.u32 %v7789_v48, %v6949_v47  ;;  %v7753_v54 = vld [vmem:[%s11914_s1 + $0x28c] sm:$0xf0] }
  0x38   : > { %2084 = vmatmul.bf16.vlgmr.msra.gmra.mxu0 %v8288_v57  ;;  %2129 = vmatmul.bf16.vlgmr.msra.gmra.mxu2 %v8290_v58  ;;  %v6805_v53 = vld [vmem:[%s11914_s1 + $0x280] sm:$0xf]  ;;  %v6413_v55 = vld [vmem:[%s8266_s10 + $0x270] sm:$0xf]  ;;  %v7656_v56 = vld [vmem:[%s8266_s10 + $0x284] sm:$0xf0]  ;;  %v8416_v4 = vor.u32 %v7602_v51, %v6197_v49 }
  0x39   : > { %2173 = vmatmul.bf16.vlgmr.msra.gmra.mxu1 %v8292_v59  ;;  %2218 = vmatmul.bf16.vlgmr.msra.gmra.mxu3 %v8294_v60  ;;  %v7599_v61 = vld [vmem:[%s8266_s10 + $0xc4] sm:$0xf]  ;;  %v6199_v62 = vld [vmem:[%s8266_s10 + $0xd8] sm:$0xf0]  ;;  %v7653_v63 = vld [vmem:[%s8266_s10 + $0x274] sm:$0xf]  ;;  %v6806_v1 = vor.u32 %v7753_v54, %v6805_v53  ;;  %v8418_v9 = vor.u32 %v7656_v56, %v6413_v55 }
  0x3a   : > { %2254 = vmatpush.bf16.msrb.mxu2 %v6854_v36  ;;  %2343 = vmatpush.bf16.msrb.mxu3 %v6982_v40  ;;  %v6415_v0 = vld [vmem:[%s8266_s10 + $0x288] sm:$0xf0]  ;;  %v6933_v2 = vld [vmem:[%s11914_s1 + $0x380] sm:$0xf]  ;;  %v7785_v3 = vld [vmem:[%s11914_s1 + $0x38c] sm:$0xf0]  ;;  %v8420_v10 = vor.u32 %v7599_v61, %v6199_v62 }
  0x3b   : > { %12190 = vst [vmem:[#allocation22_spill] sm:$0xff] %v8416_v4  ;;  %v8422_v11 = vor.u32 %v7653_v63, %v6415_v0  ;;  %v6934_v12 = vor.u32 %v7785_v3, %v6933_v2  ;;  %v6789_v13 = vld [vmem:[%s11914_s1 + $0x260] sm:$0xf]  ;;  %v7749_v14 = vld [vmem:[%s11914_s1 + $0x26c] sm:$0xf0] }
  0x3c   : > { %12191 = vst [vmem:[#allocation23_spill] sm:$0xff] %v8418_v9  ;;  %v6917_v15 = vld [vmem:[%s11914_s1 + $0x360] sm:$0xf]  ;;  %v6790_v16 = vor.u32 %v7749_v14, %v6789_v13  ;;  %v7781_v21 = vld [vmem:[%s11914_s1 + $0x36c] sm:$0xf0] }
  0x3d   : > { %12192 = vst [vmem:[#allocation24_spill] sm:$0xff] %v8420_v10  ;;  %v6773_v22 = vld [vmem:[%s11914_s1 + $0x240] sm:$0xf]  ;;  %v7745_v23 = vld [vmem:[%s11914_s1 + $0x24c] sm:$0xf0]  ;;  %v6918_v24 = vor.u32 %v7781_v21, %v6917_v15 }
  0x3e   : > { %2255 = vmatpush.bf16.msrb.mxu2 %v6838_v43  ;;  %2344 = vmatpush.bf16.msrb.mxu3 %v6966_v44  ;;  %12193 = vst [vmem:[#allocation25_spill] sm:$0xff] %v8422_v11  ;;  %v6774_v25 = vor.u32 %v7745_v23, %v6773_v22  ;;  %v6901_v26 = vld [vmem:[%s11914_s1 + $0x340] sm:$0xf]  ;;  %v7777_v27 = vld [vmem:[%s11914_s1 + $0x34c] sm:$0xf0] }
  0x3f   : > { %v6757_v28 = vld [vmem:[%s11914_s1 + $0x220] sm:$0xf]  ;;  %v7741_v33 = vld [vmem:[%s11914_s1 + $0x22c] sm:$0xf0]  ;;  %v6902_v34 = vor.u32 %v7777_v27, %v6901_v26  ;;  %v7608_v39 = vld [vmem:[%s8266_s10 + $0x104] sm:$0xf0] }
  0x40   : > { %v6221_v35 = vld [vmem:[%s8266_s10 + $0xf0] sm:$0xf]  ;;  %v6758_v36 = vor.u32 %v7741_v33, %v6757_v28  ;;  %v6885_v37 = vld [vmem:[%s11914_s1 + $0x320] sm:$0xf]  ;;  %v7662_v43 = vld [vmem:[%s8266_s10 + $0x2b4] sm:$0xf0] }
  0x41   : > { %v7773_v38 = vld [vmem:[%s11914_s1 + $0x32c] sm:$0xf0]  ;;  %v6741_v40 = vld [vmem:[%s11914_s1 + $0x200] sm:$0xf]  ;;  %v7605_v44 = vld [vmem:[%s8266_s10 + $0xf4] sm:$0xf] }
  0x42   : > { %2256 = vmatpush.bf16.msrb.mxu2 %v6822_v50  ;;  %2345 = vmatpush.bf16.msrb.mxu3 %v6950_v52  ;;  %v7737_v41 = vld [vmem:[%s11914_s1 + $0x20c] sm:$0xf0]  ;;  %v6437_v42 = vld [vmem:[%s8266_s10 + $0x2a0] sm:$0xf]  ;;  %v6223_v45 = vld [vmem:[%s8266_s10 + $0x108] sm:$0xf0]  ;;  %v6886_v48 = vor.u32 %v7773_v38, %v6885_v37  ;;  %v8484_v52 = vor.u32 %v7608_v39, %v6221_v35 }
  0x43   : > { %v7659_v46 = vld [vmem:[%s8266_s10 + $0x2a4] sm:$0xf]  ;;  %v6439_v47 = vld [vmem:[%s8266_s10 + $0x2b8] sm:$0xf0]  ;;  %v6742_v49 = vor.u32 %v7737_v41, %v6741_v40  ;;  %v6869_v50 = vld [vmem:[%s11914_s1 + $0x300] sm:$0xf]  ;;  %v8486_v53 = vor.u32 %v7662_v43, %v6437_v42  ;;  %v8488_v54 = vor.u32 %v7605_v44, %v6223_v45 }
  0x44   : > { %v7769_v51 = vld [vmem:[%s11914_s1 + $0x30c] sm:$0xf0]  ;;  %12194 = vst [vmem:[#allocation26_spill] sm:$0xff] %v8484_v52  ;;  %v8490_v55 = vor.u32 %v7659_v46, %v6439_v47  ;;  %v7109_v61 = vld [vmem:[%s11914_s1 + $0x4e0] sm:$0xf] }
  0x45   : > { %12195 = vst [vmem:[#allocation27_spill] sm:$0xff] %v8486_v53  ;;  %v6870_v56 = vor.u32 %v7769_v51, %v6869_v50  ;;  %v7829_v62 = vld [vmem:[%s11914_s1 + $0x4ec] sm:$0xf0]  ;;  %v7237_v63 = vld [vmem:[%s11914_s1 + $0x5e0] sm:$0xf] }
  0x46   : > { %2257 = vmatpush.bf16.msrb.mxu2 %v6806_v1  ;;  %2346 = vmatpush.bf16.msrb.mxu3 %v6934_v12  ;;  %12196 = vst [vmem:[#allocation28_spill] sm:$0xff] %v8488_v54  ;;  %v7110_v0 = vor.u32 %v7829_v62, %v7109_v61  ;;  %v7861_v1 = vld [vmem:[%s11914_s1 + $0x5ec] sm:$0xf0]  ;;  %v7093_v2 = vld [vmem:[%s11914_s1 + $0x4c0] sm:$0xf] }
  0x47   : > { %12197 = vst [vmem:[#allocation29_spill] sm:$0xff] %v8490_v55  ;;  %v7825_v3 = vld [vmem:[%s11914_s1 + $0x4cc] sm:$0xf0]  ;;  %v7238_v12 = vor.u32 %v7861_v1, %v7237_v63  ;;  %v7221_v13 = vld [vmem:[%s11914_s1 + $0x5c0] sm:$0xf] }
  0x48   : > { %2089 = vmatmul.bf16.gmra.mxu0 %v8308_v5  ;;  %2134 = vmatmul.bf16.gmra.mxu2 %v8310_v6  ;;  %v7857_v14 = vld [vmem:[%s11914_s1 + $0x5cc] sm:$0xf0]  ;;  %v7094_v15 = vor.u32 %v7825_v3, %v7093_v2  ;;  %v7077_v21 = vld [vmem:[%s11914_s1 + $0x4a0] sm:$0xf]  ;;  %v7614_v27 = vld [vmem:[%s8266_s10 + $0x134] sm:$0xf0] }
  0x49   : > { %2178 = vmatmul.bf16.gmra.mxu1 %v8312_v7  ;;  %2223 = vmatmul.bf16.gmra.mxu3 %v8314_v8  ;;  %v7821_v22 = vld [vmem:[%s11914_s1 + $0x4ac] sm:$0xf0]  ;;  %v7205_v23 = vld [vmem:[%s11914_s1 + $0x5a0] sm:$0xf]  ;;  %v7611_v35 = vld [vmem:[%s8266_s10 + $0x124] sm:$0xf] }
  0x4a   : > { %2258 = vmatpush.bf16.msrb.mxu2 %v6790_v16  ;;  %2347 = vmatpush.bf16.msrb.mxu3 %v6918_v24  ;;  %v7222_v16 = vor.u32 %v7857_v14, %v7221_v13  ;;  %v7853_v24 = vld [vmem:[%s11914_s1 + $0x5ac] sm:$0xf0]  ;;  %v6245_v26 = vld [vmem:[%s8266_s10 + $0x120] sm:$0xf]  ;;  %v7665_v37 = vld [vmem:[%s8266_s10 + $0x2d4] sm:$0xf] }
  0x4b   : > { %2432 = vmatpush.bf16.msrb.mxu0 %v7110_v0  ;;  %2521 = vmatpush.bf16.msrb.mxu1 %v7238_v12  ;;  %v7206_v28 = vor.u32 %v7853_v24, %v7205_v23  ;;  %v6461_v33 = vld [vmem:[%s8266_s10 + $0x2d0] sm:$0xf]  ;;  %v6463_v38 = vld [vmem:[%s8266_s10 + $0x2e8] sm:$0xf0]  ;;  %v7061_v39 = vld [vmem:[%s11914_s1 + $0x480] sm:$0xf]  ;;  %v8549_v42 = vor.u32 %v7614_v27, %v6245_v26 }
  0x4c   : > { %v7817_v40 = vld [vmem:[%s11914_s1 + $0x48c] sm:$0xf0]  ;;  %v7189_v41 = vld [vmem:[%s11914_s1 + $0x580] sm:$0xf]  ;;  %v8558_v47 = vor.u32 %v7665_v37, %v6463_v38  ;;  %v7617_v24 = vld [vmem:[%s8266_s10 + $0x154] sm:$0xf] }
  0x4d   : > { %12198 = vst [vmem:[#allocation30_spill] sm:$0xff] %v8549_v42  ;;  %v7062_v44 = vor.u32 %v7817_v40, %v7061_v39  ;;  %v7849_v45 = vld [vmem:[%s11914_s1 + $0x58c] sm:$0xf0]  ;;  %v7173_v51 = vld [vmem:[%s11914_s1 + $0x560] sm:$0xf] }
  0x4e   : > { %2259 = vmatpush.bf16.msrb.mxu2 %v6774_v25  ;;  %2348 = vmatpush.bf16.msrb.mxu3 %v6902_v34  ;;  %v7078_v25 = vor.u32 %v7821_v22, %v7077_v21  ;;  %v7668_v34 = vld [vmem:[%s8266_s10 + $0x2e4] sm:$0xf0]  ;;  %12201 = vst [vmem:[#allocation33_spill] sm:$0xff] %v8558_v47  ;;  %v7813_v50 = vld [vmem:[%s11914_s1 + $0x46c] sm:$0xf0] }
  0x4f   : > { %2433 = vmatpush.bf16.msrb.mxu0 %v7094_v15  ;;  %2522 = vmatpush.bf16.msrb.mxu1 %v7222_v16  ;;  %v8551_v43 = vor.u32 %v7668_v34, %v6461_v33  ;;  %v7029_v63 = vld [vmem:[%s11914_s1 + $0x440] sm:$0xf]  ;;  %v7809_v0 = vld [vmem:[%s11914_s1 + $0x44c] sm:$0xf0]  ;;  %v7620_v21 = vld [vmem:[%s8266_s10 + $0x164] sm:$0xf0] }
  0x50   : > { %v7157_v1 = vld [vmem:[%s11914_s1 + $0x540] sm:$0xf]  ;;  %v7030_v2 = vor.u32 %v7809_v0, %v7029_v63  ;;  %v7841_v3 = vld [vmem:[%s11914_s1 + $0x54c] sm:$0xf0]  ;;  %v6271_v27 = vld [vmem:[%s8266_s10 + $0x168] sm:$0xf0] }
  0x51   : > { %12199 = vst [vmem:[#allocation31_spill] sm:$0xff] %v8551_v43  ;;  %v7158_v12 = vor.u32 %v7841_v3, %v7157_v1  ;;  %v7013_v13 = vld [vmem:[%s11914_s1 + $0x420] sm:$0xf]  ;;  %v7805_v14 = vld [vmem:[%s11914_s1 + $0x42c] sm:$0xf0] }
  0x52   : > { %2260 = vmatpush.bf16.msrb.mxu2 %v6758_v36  ;;  %2349 = vmatpush.bf16.msrb.mxu3 %v6886_v48  ;;  %v6247_v36 = vld [vmem:[%s8266_s10 + $0x138] sm:$0xf0]  ;;  %v7190_v48 = vor.u32 %v7849_v45, %v7189_v41  ;;  %v7141_v15 = vld [vmem:[%s11914_s1 + $0x520] sm:$0xf]  ;;  %v6269_v16 = vld [vmem:[%s8266_s10 + $0x150] sm:$0xf]  ;;  %v7014_v22 = vor.u32 %v7805_v14, %v7013_v13  ;;  %v8624_v41 = vor.u32 %v7617_v24, %v6271_v27 }
  0x53   : > { %2434 = vmatpush.bf16.msrb.mxu0 %v7078_v25  ;;  %2523 = vmatpush.bf16.msrb.mxu1 %v7206_v28  ;;  %v8556_v46 = vor.u32 %v7611_v35, %v6247_v36  ;;  %v7837_v23 = vld [vmem:[%s11914_s1 + $0x52c] sm:$0xf0]  ;;  %v6109_v25 = vld [vmem:[%s8266_s10 + $0x8] sm:$0xf]  ;;  %v7579_v26 = vld [vmem:[%s8266_s10 + $0x1c] sm:$0xf0]  ;;  %v8617_v38 = vor.u32 %v7620_v21, %v6269_v16 }
  0x54   : > { %v7576_v28 = vld [vmem:[%s8266_s10 + $0xc] sm:$0xf]  ;;  %v6111_v33 = vld [vmem:[%s8266_s10 + $0x20] sm:$0xf0]  ;;  %v7142_v34 = vor.u32 %v7837_v23, %v7141_v15  ;;  %v6997_v35 = vld [vmem:[%s11914_s1 + $0x400] sm:$0xf]  ;;  %v8619_v39 = vor.u32 %v7579_v26, %v6109_v25 }
  0x55   : > { %12200 = vst [vmem:[#allocation32_spill] sm:$0xff] %v8556_v46  ;;  %v7801_v36 = vld [vmem:[%s11914_s1 + $0x40c] sm:$0xf0]  ;;  %v7125_v37 = vld [vmem:[%s11914_s1 + $0x500] sm:$0xf] }
  0x56   : > { %2261 = vmatpush.bf16.msrb.mxu2 %v6742_v49  ;;  %2350 = vmatpush.bf16.msrb.mxu3 %v6870_v56  ;;  %v7045_v49 = vld [vmem:[%s11914_s1 + $0x460] sm:$0xf]  ;;  %v7845_v56 = vld [vmem:[%s11914_s1 + $0x56c] sm:$0xf0]  ;;  %12202 = vst [vmem:[#allocation34_spill] sm:$0xff] %v8617_v38  ;;  %v6998_v45 = vor.u32 %v7801_v36, %v6997_v35 }
  0x57   : > { %2435 = vmatpush.bf16.msrb.mxu0 %v7062_v44  ;;  %2524 = vmatpush.bf16.msrb.mxu1 %v7190_v48  ;;  %v7046_v61 = vor.u32 %v7813_v50, %v7045_v49  ;;  %v7174_v62 = vor.u32 %v7845_v56, %v7173_v51  ;;  %12203 = vst [vmem:[#allocation35_spill] sm:$0xff] %v8619_v39  ;;  %v7833_v40 = vld [vmem:[%s11914_s1 + $0x50c] sm:$0xf0]  ;;  %v626_v49 = vld [vmem:[%s11915_s2] sm:$0xf] }
  0x58   : > { %2094 = vmatmul.bf16.gmra.mxu0 %v8328_v17  ;;  %2139 = vmatmul.bf16.gmra.mxu2 %v8330_v18  ;;  %12204 = vst [vmem:[#allocation36_spill] sm:$0xff] %v8624_v41  ;;  %v8626_v44 = vor.u32 %v7576_v28, %v6111_v33  ;;  %v7126_v48 = vor.u32 %v7833_v40, %v7125_v37  ;;  %v6293_v50 = vld [vmem:[%s8266_s10 + $0x180] sm:$0xf]  ;;  %v7626_v51 = vld [vmem:[%s8266_s10 + $0x194] sm:$0xf0] }
  0x59   : > { %2183 = vmatmul.bf16.gmra.mxu1 %v8332_v19  ;;  %2228 = vmatmul.bf16.gmra.mxu3 %v8334_v20  ;;  %v7623_v56 = vld [vmem:[%s8266_s10 + $0x184] sm:$0xf]  ;;  %v6295_v63 = vld [vmem:[%s8266_s10 + $0x198] sm:$0xf0]  ;;  %v6135_v1 = vld [vmem:[%s8266_s10 + $0x50] sm:$0xf0]  ;;  %v8645_v3 = vor.u32 %v7626_v51, %v6293_v50 }
  0x5a   : > { %12205 = vst [vmem:[#allocation37_spill] sm:$0xff] %v8626_v44  ;;  %v7582_v0 = vld [vmem:[%s8266_s10 + $0x3c] sm:$0xf]  ;;  %v8649_v14 = vor.u32 %v7623_v56, %v6295_v63  ;;  %v6157_v35 = vld [vmem:[%s8266_s10 + $0x68] sm:$0xf] }
  0x5b   : > { %2436 = vmatpush.bf16.msrb.mxu0 %v7046_v61  ;;  %2525 = vmatpush.bf16.msrb.mxu1 %v7174_v62  ;;  %v6133_v61 = vld [vmem:[%s8266_s10 + $0x38] sm:$0xf]  ;;  %v7585_v62 = vld [vmem:[%s8266_s10 + $0x4c] sm:$0xf0]  ;;  %12206 = vst [vmem:[#allocation38_spill] sm:$0xff] %v8645_v3  ;;  %v8651_v15 = vor.u32 %v7582_v0, %v6135_v1 }
  0x5c   : > { %12208 = vst [vmem:[#allocation40_spill] sm:$0xff] %v8649_v14  ;;  %v7591_v36 = vld [vmem:[%s8266_s10 + $0x7c] sm:$0xf0]  ;;  %v7588_v37 = vld [vmem:[%s8266_s10 + $0x6c] sm:$0xf] }
  0x5d   : > { %12209 = vst [vmem:[#allocation41_spill] sm:$0xff] %v8651_v15  ;;  %v6117_v40 = vld [vmem:[%s8266_s10 + $0x10] sm:$0xf]  ;;  %v6119_v50 = vld [vmem:[%s8266_s10 + $0x28] sm:$0xf0] }
  0x5f   : > { %2437 = vmatpush.bf16.msrb.mxu0 %v7030_v2  ;;  %2526 = vmatpush.bf16.msrb.mxu1 %v7158_v12  ;;  %v8643_v2 = vperm.slane %v626_v49, 0  ;;  %v8647_v12 = vor.u32 %v7585_v62, %v6133_v61  ;;  %v7577_v49 = vld [vmem:[%s8266_s10 + $0x14] sm:$0xf]  ;;  %v8675_v62 = vor.u32 %v7591_v36, %v6157_v35 }
  0x61   : > { %12207 = vst [vmem:[#allocation39_spill] sm:$0xff] %v8647_v12 }
  0x62   : > { %12210 = vst [vmem:[#allocation42_spill] sm:$0xff] %v8675_v62 }
  0x63   : > { %2438 = vmatpush.bf16.msrb.mxu0 %v7014_v22  ;;  %2527 = vmatpush.bf16.msrb.mxu1 %v7142_v34 }
  0x67   : > { %2439 = vmatpush.bf16.msrb.mxu0 %v6998_v45  ;;  %2528 = vmatpush.bf16.msrb.mxu1 %v7126_v48  ;;  %v7580_v45 = vld [vmem:[%s8266_s10 + $0x24] sm:$0xf0]  ;;  %v6159_v48 = vld [vmem:[%s8266_s10 + $0x80] sm:$0xf0] }
  0x68   : > { %2099 = vmatmul.bf16.gmra.mxu0 %v8348_v29  ;;  %2144 = vmatmul.bf16.gmra.mxu2 %v8350_v30  ;;  %v8677_v63 = vor.u32 %v7580_v45, %v6117_v40  ;;  %v8679_v1 = vor.u32 %v7588_v37, %v6159_v48  ;;  %v6181_v45 = vld [vmem:[%s8266_s10 + $0x98] sm:$0xf]  ;;  %v7597_v48 = vld [vmem:[%s8266_s10 + $0xac] sm:$0xf0] }
  0x69   : > { %2188 = vmatmul.bf16.gmra.mxu1 %v8352_v31  ;;  %2233 = vmatmul.bf16.gmra.mxu3 %v8354_v32 }
  0x6a   : > { %12211 = vst [vmem:[#allocation43_spill] sm:$0xff] %v8677_v63 }
  0x6b   : > { %12212 = vst [vmem:[#allocation44_spill] sm:$0xff] %v8679_v1 }
  0x78   : > { %2104 = vmatmul.bf16.gmra.mxu0 %v8416_v4  ;;  %2149 = vmatmul.bf16.gmra.mxu2 %v8418_v9 }
  0x79   : > { %2193 = vmatmul.bf16.gmra.mxu1 %v8420_v10  ;;  %2238 = vmatmul.bf16.gmra.mxu3 %v8422_v11 }
  0x88   : > { %2109 = vmatmul.bf16.gmra.mxu0 %v8484_v52  ;;  %2154 = vmatmul.bf16.gmra.mxu2 %v8486_v53 }
  0x89   : > { %2198 = vmatmul.bf16.gmra.mxu1 %v8488_v54  ;;  %2243 = vmatmul.bf16.gmra.mxu3 %v8490_v55 }
  0x98   : > { %2114 = vmatmul.bf16.gmra.mxu0 %v8549_v42  ;;  %2159 = vmatmul.bf16.gmra.mxu2 %v8551_v43 }
  0x99   : > { %2203 = vmatmul.bf16.gmra.mxu1 %v8556_v46  ;;  %2248 = vmatmul.bf16.gmra.mxu3 %v8558_v47 }
  0xa8   : > { %2119 = vmatmul.bf16.gmra.mxu0 %v8617_v38  ;;  %2262 = vmatmul.bf16.vlgmr.msrb.gmra.mxu2 %v8619_v39 }
  0xa9   : > { %2208 = vmatmul.bf16.gmra.mxu1 %v8624_v41  ;;  %2351 = vmatmul.bf16.vlgmr.msrb.gmra.mxu3 %v8626_v44 }
  0xb5   : > { %v2085_v13 = vpop.f32.mrf.mxu0 }
  0xb6   : > { %v2086_v16 = vadd.f32 %v2085_v13, %v8643_v2  ;;  %v2174_v21 = vpop.f32.mrf.mxu1  ;;  %v8681_v13 = vor.u32 %v7577_v49, %v6119_v50  ;;  %v7594_v49 = vld [vmem:[%s8266_s10 + $0x9c] sm:$0xf]  ;;  %v6141_v50 = vld [vmem:[%s8266_s10 + $0x40] sm:$0xf] }
  0xb8   : > { %v8654_v22 = vadd.f32 %v2174_v21, %v2086_v16  ;;  %2124 = vmatmul.bf16.gmra.mxu0 %v8645_v3  ;;  %2267 = vmatmul.bf16.gmra.mxu2 %v8647_v12  ;;  %12213 = vst [vmem:[#allocation45_spill] sm:$0xff] %v8681_v13 }
  0xb9   : > { %2213 = vmatmul.bf16.gmra.mxu1 %v8649_v14  ;;  %2356 = vmatmul.bf16.gmra.mxu3 %v8651_v15 }
  0xbb   : > { %v2130_v23 = vpop.f32.mrf.mxu2 }
  0xbc   : > { %v2131_v24 = vadd.f32 %v2130_v23, %v8643_v2  ;;  %v2219_v25 = vpop.f32.mrf.mxu3 }
  0xbd   : > { %v2087_v26 = vpop.f32.mrf.mxu0 }
  0xbe   : > { %v8661_v27 = vadd.f32 %v2219_v25, %v2131_v24  ;;  %v2088_v28 = vadd.f32 %v2087_v26, %v8643_v2  ;;  %v2176_v33 = vpop.f32.mrf.mxu1 }
  0xc0   : > { %v8664_v34 = vadd.f32 %v2176_v33, %v2088_v28 }
  0xc3   : > { %v2132_v51 = vpop.f32.mrf.mxu2 }
  0xc4   : > { %v2133_v56 = vadd.f32 %v2132_v51, %v8643_v2  ;;  %v2221_v61 = vpop.f32.mrf.mxu3  ;;  %v7586_v51 = vld [vmem:[%s8266_s10 + $0x54] sm:$0xf0] }
  0xc5   : > { %v2090_v0 = vpop.f32.mrf.mxu0 }
  0xc6   : > { %v8683_v16 = vadd.f32 %v2221_v61, %v2133_v56  ;;  %v2091_v21 = vadd.f32 %v2090_v0, %v8643_v2  ;;  %v2179_v23 = vpop.f32.mrf.mxu1  ;;  %v6183_v56 = vld [vmem:[%s8266_s10 + $0xb0] sm:$0xf0]  ;;  %v7583_v61 = vld [vmem:[%s8266_s10 + $0x44] sm:$0xf]  ;;  %v6143_v0 = vld [vmem:[%s8266_s10 + $0x58] sm:$0xf0] }
  0xc8   : > { %v8686_v24 = vadd.f32 %v2179_v23, %v2091_v21  ;;  %2272 = vmatmul.bf16.gmra.mxu2 %v8675_v62  ;;  %2440 = vmatmul.bf16.vlgmr.msrb.gmra.mxu0 %v8677_v63 }
  0xc9   : > { %2361 = vmatmul.bf16.gmra.mxu3 %v8679_v1  ;;  %2529 = vmatmul.bf16.vlgmr.msrb.gmra.mxu1 %v8681_v13  ;;  %v8707_v13 = vor.u32 %v7597_v48, %v6181_v45 }
  0xcb   : > { %v2135_v25 = vpop.f32.mrf.mxu2  ;;  %12214 = vst [vmem:[#allocation46_spill] sm:$0xff] %v8707_v13 }
  0xcc   : > { %v2136_v26 = vadd.f32 %v2135_v25, %v8643_v2  ;;  %v2224_v28 = vpop.f32.mrf.mxu3 }
  0xcd   : > { %v2092_v33 = vpop.f32.mrf.mxu0 }
  0xce   : > { %v8693_v35 = vadd.f32 %v2224_v28, %v2136_v26  ;;  %v2093_v36 = vadd.f32 %v2092_v33, %v8643_v2  ;;  %v2181_v37 = vpop.f32.mrf.mxu1  ;;  %v8709_v26 = vor.u32 %v7586_v51, %v6141_v50  ;;  %v8711_v33 = vor.u32 %v7594_v49, %v6183_v56 }
  0xd0   : > { %v8696_v40 = vadd.f32 %v2181_v37, %v2093_v36  ;;  %12215 = vst [vmem:[#allocation47_spill] sm:$0xff] %v8709_v26  ;;  %v8713_v36 = vor.u32 %v7583_v61, %v6143_v0  ;;  %v6205_v61 = vld [vmem:[%s8266_s10 + $0xc8] sm:$0xf]  ;;  %v7603_v0 = vld [vmem:[%s8266_s10 + $0xdc] sm:$0xf0] }
  0xd1   : > { %12216 = vst [vmem:[#allocation48_spill] sm:$0xff] %v8711_v33  ;;  %v8739_v11 = vor.u32 %v7603_v0, %v6205_v61 }
  0xd2   : > { %12217 = vst [vmem:[#allocation49_spill] sm:$0xff] %v8713_v36 }
  0xd3   : > { %v2137_v21 = vpop.f32.mrf.mxu2  ;;  %12218 = vst [vmem:[#allocation50_spill] sm:$0xff] %v8739_v11 }
  0xd4   : > { %v2138_v23 = vadd.f32 %v2137_v21, %v8643_v2  ;;  %v2226_v25 = vpop.f32.mrf.mxu3  ;;  %v7600_v21 = vld [vmem:[%s8266_s10 + $0xcc] sm:$0xf] }
  0xd5   : > { %v2095_v28 = vpop.f32.mrf.mxu0 }
  0xd6   : > { %v8715_v37 = vadd.f32 %v2226_v25, %v2138_v23  ;;  %v2096_v63 = vadd.f32 %v2095_v28, %v8643_v2  ;;  %v2184_v47 = vpop.f32.mrf.mxu1  ;;  %v6165_v23 = vld [vmem:[%s8266_s10 + $0x70] sm:$0xf]  ;;  %v7592_v25 = vld [vmem:[%s8266_s10 + $0x84] sm:$0xf0]  ;;  %v6207_v28 = vld [vmem:[%s8266_s10 + $0xe0] sm:$0xf0] }
  0xd8   : > { %v8718_v43 = vadd.f32 %v2184_v47, %v2096_v63  ;;  %2277 = vmatmul.bf16.gmra.mxu2 %v8707_v13  ;;  %2445 = vmatmul.bf16.gmra.mxu0 %v8709_v26  ;;  %v6167_v26 = vld [vmem:[%s8266_s10 + $0x88] sm:$0xf0] }
  0xd9   : > { %2366 = vmatmul.bf16.gmra.mxu3 %v8711_v33  ;;  %2534 = vmatmul.bf16.gmra.mxu1 %v8713_v36  ;;  %v7589_v36 = vld [vmem:[%s8266_s10 + $0x74] sm:$0xf] }
  0xdb   : > { %v2140_v45 = vpop.f32.mrf.mxu2 }
  0xdc   : > { %v2141_v48 = vadd.f32 %v2140_v45, %v8643_v2  ;;  %v2229_v49 = vpop.f32.mrf.mxu3 }
  0xdd   : > { %v2097_v50 = vpop.f32.mrf.mxu0 }
  0xde   : > { %v8725_v47 = vadd.f32 %v2229_v49, %v2141_v48  ;;  %v2098_v63 = vadd.f32 %v2097_v50, %v8643_v2  ;;  %v2186_v51 = vpop.f32.mrf.mxu1  ;;  %v8741_v48 = vor.u32 %v7592_v25, %v6165_v23  ;;  %v8743_v50 = vor.u32 %v7600_v21, %v6207_v28  ;;  %v6229_v21 = vld [vmem:[%s8266_s10 + $0xf8] sm:$0xf]  ;;  %v7609_v23 = vld [vmem:[%s8266_s10 + $0x10c] sm:$0xf0]  ;;  %v7606_v25 = vld [vmem:[%s8266_s10 + $0xfc] sm:$0xf] }
  0xdf   : > { %v6189_v28 = vld [vmem:[%s8266_s10 + $0xa0] sm:$0xf]  ;;  %v8771_v8 = vor.u32 %v7609_v23, %v6229_v21 }
  0xe0   : > { %v8728_v56 = vadd.f32 %v2186_v51, %v2098_v63  ;;  %12219 = vst [vmem:[#allocation51_spill] sm:$0xff] %v8741_v48  ;;  %v8745_v63 = vor.u32 %v7589_v36, %v6167_v26 }
  0xe1   : > { %12220 = vst [vmem:[#allocation52_spill] sm:$0xff] %v8743_v50 }
  0xe2   : > { %12221 = vst [vmem:[#allocation53_spill] sm:$0xff] %v8745_v63 }
  0xe3   : > { %v2142_v55 = vpop.f32.mrf.mxu2  ;;  %12222 = vst [vmem:[#allocation54_spill] sm:$0xff] %v8771_v8 }
  0xe4   : > { %v2143_v45 = vadd.f32 %v2142_v55, %v8643_v2  ;;  %v2231_v53 = vpop.f32.mrf.mxu3 }
  0xe5   : > { %v2100_v49 = vpop.f32.mrf.mxu0 }
  0xe6   : > { %v8747_v51 = vadd.f32 %v2231_v53, %v2143_v45  ;;  %v2101_v9 = vadd.f32 %v2100_v49, %v8643_v2  ;;  %v2189_v32 = vpop.f32.mrf.mxu1  ;;  %v7598_v45 = vld [vmem:[%s8266_s10 + $0xb4] sm:$0xf0]  ;;  %v6231_v49 = vld [vmem:[%s8266_s10 + $0x110] sm:$0xf0] }
  0xe8   : > { %v8750_v30 = vadd.f32 %v2189_v32, %v2101_v9  ;;  %2282 = vmatmul.bf16.gmra.mxu2 %v8739_v11  ;;  %2450 = vmatmul.bf16.gmra.mxu0 %v8741_v48  ;;  %v6191_v48 = vld [vmem:[%s8266_s10 + $0xb8] sm:$0xf0] }
  0xe9   : > { %2371 = vmatmul.bf16.gmra.mxu3 %v8743_v50  ;;  %2539 = vmatmul.bf16.gmra.mxu1 %v8745_v63  ;;  %v7595_v63 = vld [vmem:[%s8266_s10 + $0xa4] sm:$0xf] }
  0xeb   : > { %v2145_v53 = vpop.f32.mrf.mxu2 }
  0xec   : > { %v2146_v55 = vadd.f32 %v2145_v53, %v8643_v2  ;;  %v2234_v26 = vpop.f32.mrf.mxu3 }
  0xed   : > { %v2102_v36 = vpop.f32.mrf.mxu0 }
  0xee   : > { %v8757_v32 = vadd.f32 %v2234_v26, %v2146_v55  ;;  %v2103_v9 = vadd.f32 %v2102_v36, %v8643_v2  ;;  %v2191_v61 = vpop.f32.mrf.mxu1  ;;  %v8773_v55 = vor.u32 %v7598_v45, %v6189_v28  ;;  %v8775_v36 = vor.u32 %v7606_v25, %v6231_v49  ;;  %v6253_v25 = vld [vmem:[%s8266_s10 + $0x128] sm:$0xf]  ;;  %v7615_v28 = vld [vmem:[%s8266_s10 + $0x13c] sm:$0xf0]  ;;  %v7612_v45 = vld [vmem:[%s8266_s10 + $0x12c] sm:$0xf] }
  0xef   : > { %v6213_v49 = vld [vmem:[%s8266_s10 + $0xd0] sm:$0xf] }
  0xf0   : > { %v8760_v0 = vadd.f32 %v2191_v61, %v2103_v9  ;;  %12223 = vst [vmem:[#allocation55_spill] sm:$0xff] %v8773_v55  ;;  %v8777_v9 = vor.u32 %v7595_v63, %v6191_v48 }
  0xf1   : > { %12224 = vst [vmem:[#allocation56_spill] sm:$0xff] %v8775_v36 }
  0xf2   : > { %12225 = vst [vmem:[#allocation57_spill] sm:$0xff] %v8777_v9 }
  0xf3   : > { %v2147_v20 = vpop.f32.mrf.mxu2 }
  0xf4   : > { %v2148_v53 = vadd.f32 %v2147_v20, %v8643_v2  ;;  %v2236_v18 = vpop.f32.mrf.mxu3 }
  0xf5   : > { %v2105_v26 = vpop.f32.mrf.mxu0 }
  0xf6   : > { %v8779_v61 = vadd.f32 %v2236_v18, %v2148_v53  ;;  %v2106_v6 = vadd.f32 %v2105_v26, %v8643_v2  ;;  %v2194_v60 = vpop.f32.mrf.mxu1  ;;  %v7604_v53 = vld [vmem:[%s8266_s10 + $0xe4] sm:$0xf0]  ;;  %v6255_v26 = vld [vmem:[%s8266_s10 + $0x140] sm:$0xf0] }
  0xf8   : > { %v8782_v58 = vadd.f32 %v2194_v60, %v2106_v6  ;;  %2287 = vmatmul.bf16.gmra.mxu2 %v8771_v8  ;;  %2455 = vmatmul.bf16.gmra.mxu0 %v8773_v55  ;;  %v6215_v55 = vld [vmem:[%s8266_s10 + $0xe8] sm:$0xf0] }
  0xf9   : > { %2376 = vmatmul.bf16.gmra.mxu3 %v8775_v36  ;;  %2544 = vmatmul.bf16.gmra.mxu1 %v8777_v9  ;;  %v7601_v9 = vld [vmem:[%s8266_s10 + $0xd4] sm:$0xf]  ;;  %v8803_v36 = vor.u32 %v7615_v28, %v6253_v25 }
  0xfb   : > { %v2150_v18 = vpop.f32.mrf.mxu2  ;;  %12227 = vst [vmem:[#allocation59_spill] sm:$0xff] %v8803_v36 }
  0xfc   : > { %v2151_v20 = vadd.f32 %v2150_v18, %v8643_v2  ;;  %v2239_v48 = vpop.f32.mrf.mxu3 }
  0xfd   : > { %v2107_v63 = vpop.f32.mrf.mxu0 }
  0xfe   : > { %v8789_v60 = vadd.f32 %v2239_v48, %v2151_v20  ;;  %v2108_v6 = vadd.f32 %v2107_v63, %v8643_v2  ;;  %v2196_v21 = vpop.f32.mrf.mxu1  ;;  %v8805_v20 = vor.u32 %v7604_v53, %v6213_v49  ;;  %v8807_v63 = vor.u32 %v7612_v45, %v6255_v26  ;;  %v6277_v45 = vld [vmem:[%s8266_s10 + $0x158] sm:$0xf]  ;;  %v7621_v49 = vld [vmem:[%s8266_s10 + $0x16c] sm:$0xf0]  ;;  %v7618_v53 = vld [vmem:[%s8266_s10 + $0x15c] sm:$0xf] }
  0xff   : > { %v6237_v26 = vld [vmem:[%s8266_s10 + $0x100] sm:$0xf]  ;;  %v8835_v50 = vor.u32 %v7621_v49, %v6277_v45 }
 0x100   : > { %12226 = vst [vmem:[#allocation58_spill] sm:$0xff] %v8789_v60  ;;  %v8792_v23 = vadd.f32 %v2196_v21, %v2108_v6  ;;  %v8809_v6 = vor.u32 %v7601_v9, %v6215_v55 }
 0x101   : > { %12228 = vst [vmem:[#allocation60_spill] sm:$0xff] %v8805_v20 }
 0x102   : > { %12229 = vst [vmem:[#allocation61_spill] sm:$0xff] %v8807_v63 }
 0x103   : > { %v2152_v14 = vpop.f32.mrf.mxu2  ;;  %12230 = vst [vmem:[#allocation62_spill] sm:$0xff] %v8809_v6 }
 0x104   : > { %v2153_v18 = vadd.f32 %v2152_v14, %v8643_v2  ;;  %v2241_v3 = vpop.f32.mrf.mxu3  ;;  %12233 = vst [vmem:[#allocation65_spill] sm:$0xff] %v8835_v50 }
 0x105   : > { %v2110_v48 = vpop.f32.mrf.mxu0 }
 0x106   : > { %v8811_v21 = vadd.f32 %v2241_v3, %v2153_v18  ;;  %v2111_v41 = vadd.f32 %v2110_v48, %v8643_v2  ;;  %v2199_v8 = vpop.f32.mrf.mxu1  ;;  %v7610_v18 = vld [vmem:[%s8266_s10 + $0x114] sm:$0xf0]  ;;  %v6279_v48 = vld [vmem:[%s8266_s10 + $0x170] sm:$0xf0] }
 0x108   : > { %12231 = vst [vmem:[#allocation63_spill] sm:$0xff] %v8811_v21  ;;  %v8814_v38 = vadd.f32 %v2199_v8, %v2111_v41  ;;  %2292 = vmatmul.bf16.gmra.mxu2 %v8803_v36  ;;  %2460 = vmatmul.bf16.gmra.mxu0 %v8805_v20  ;;  %v6239_v20 = vld [vmem:[%s8266_s10 + $0x118] sm:$0xf0] }
 0x109   : > { %2381 = vmatmul.bf16.gmra.mxu3 %v8807_v63  ;;  %2549 = vmatmul.bf16.gmra.mxu1 %v8809_v6  ;;  %v7607_v6 = vld [vmem:[%s8266_s10 + $0x104] sm:$0xf] }
 0x10b   : > { %v2155_v3 = vpop.f32.mrf.mxu2 }
 0x10c   : > { %v2156_v14 = vadd.f32 %v2155_v3, %v8643_v2  ;;  %v2244_v55 = vpop.f32.mrf.mxu3 }
 0x10d   : > { %v2112_v9 = vpop.f32.mrf.mxu0 }
 0x10e   : > { %v8821_v8 = vadd.f32 %v2244_v55, %v2156_v14  ;;  %v2113_v41 = vadd.f32 %v2112_v9, %v8643_v2  ;;  %v2201_v25 = vpop.f32.mrf.mxu1  ;;  %v8837_v14 = vor.u32 %v7610_v18, %v6237_v26  ;;  %v8839_v9 = vor.u32 %v7618_v53, %v6279_v48  ;;  %v6301_v53 = vld [vmem:[%s8266_s10 + $0x188] sm:$0xf]  ;;  %v7627_v26 = vld [vmem:[%s8266_s10 + $0x19c] sm:$0xf0]  ;;  %v7624_v18 = vld [vmem:[%s8266_s10 + $0x18c] sm:$0xf] }
 0x10f   : > { %v6261_v48 = vld [vmem:[%s8266_s10 + $0x130] sm:$0xf] }
 0x110   : > { %12232 = vst [vmem:[#allocation64_spill] sm:$0xff] %v8821_v8  ;;  %v8824_v28 = vadd.f32 %v2201_v25, %v2113_v41  ;;  %v8841_v41 = vor.u32 %v7607_v6, %v6239_v20 }
 0x111   : > { %12234 = vst [vmem:[#allocation66_spill] sm:$0xff] %v8837_v14 }
 0x112   : > { %12235 = vst [vmem:[#allocation67_spill] sm:$0xff] %v8839_v9 }
 0x113   : > { %v2157_v63 = vpop.f32.mrf.mxu2  ;;  %12236 = vst [vmem:[#allocation68_spill] sm:$0xff] %v8841_v41 }
 0x114   : > { %v2158_v3 = vadd.f32 %v2157_v63, %v8643_v2  ;;  %v2246_v36 = vpop.f32.mrf.mxu3 }
 0x115   : > { %v2115_v55 = vpop.f32.mrf.mxu0 }
 0x116   : > { %v8843_v25 = vadd.f32 %v2246_v36, %v2158_v3  ;;  %v2116_v8 = vadd.f32 %v2115_v55, %v8643_v2  ;;  %v2204_v46 = vpop.f32.mrf.mxu1  ;;  %v7616_v3 = vld [vmem:[%s8266_s10 + $0x144] sm:$0xf0]  ;;  %v6303_v55 = vld [vmem:[%s8266_s10 + $0x1a0] sm:$0xf0] }
 0x118   : > { %12237 = vst [vmem:[#allocation69_spill] sm:$0xff] %v8843_v25  ;;  %v8846_v11 = vadd.f32 %v2204_v46, %v2116_v8  ;;  %2297 = vmatmul.bf16.gmra.mxu2 %v8835_v50  ;;  %2465 = vmatmul.bf16.gmra.mxu0 %v8837_v14  ;;  %v6263_v14 = vld [vmem:[%s8266_s10 + $0x148] sm:$0xf0]  ;;  %v8867_v25 = vor.u32 %v7627_v26, %v6301_v53 }
 0x119   : > { %2386 = vmatmul.bf16.gmra.mxu3 %v8839_v9  ;;  %2554 = vmatmul.bf16.gmra.mxu1 %v8841_v41  ;;  %v7613_v41 = vld [vmem:[%s8266_s10 + $0x134] sm:$0xf] }
 0x11a   : > { %12239 = vst [vmem:[#allocation71_spill] sm:$0xff] %v8867_v25 }
 0x11b   : > { %v2160_v36 = vpop.f32.mrf.mxu2 }
 0x11c   : > { %v2161_v20 = vadd.f32 %v2160_v36, %v8643_v2  ;;  %v2249_v63 = vpop.f32.mrf.mxu3 }
 0x11d   : > { %v2117_v6 = vpop.f32.mrf.mxu0 }
 0x11e   : > { %v8853_v46 = vadd.f32 %v2249_v63, %v2161_v20  ;;  %v2118_v8 = vadd.f32 %v2117_v6, %v8643_v2  ;;  %v2206_v45 = vpop.f32.mrf.mxu1  ;;  %v8869_v20 = vor.u32 %v7616_v3, %v6261_v48  ;;  %v8871_v6 = vor.u32 %v7624_v18, %v6303_v55  ;;  %v6325_v18 = vld [vmem:[%s8266_s10 + $0x1b8] sm:$0xf]  ;;  %v7633_v48 = vld [vmem:[%s8266_s10 + $0x1cc] sm:$0xf0]  ;;  %v7630_v3 = vld [vmem:[%s8266_s10 + $0x1bc] sm:$0xf] }
 0x11f   : > { %v6285_v55 = vld [vmem:[%s8266_s10 + $0x160] sm:$0xf] }
 0x120   : > { %12238 = vst [vmem:[#allocation70_spill] sm:$0xff] %v8853_v46  ;;  %v8856_v49 = vadd.f32 %v2206_v45, %v2118_v8  ;;  %v8873_v8 = vor.u32 %v7613_v41, %v6263_v14 }
 0x121   : > { %12240 = vst [vmem:[#allocation72_spill] sm:$0xff] %v8869_v20 }
 0x122   : > { %12241 = vst [vmem:[#allocation73_spill] sm:$0xff] %v8871_v6 }
 0x123   : > { %v2162_v9 = vpop.f32.mrf.mxu2  ;;  %12242 = vst [vmem:[#allocation74_spill] sm:$0xff] %v8873_v8 }
 0x124   : > { %v2163_v36 = vadd.f32 %v2162_v9, %v8643_v2  ;;  %v2251_v50 = vpop.f32.mrf.mxu3 }
 0x125   : > { %v2120_v63 = vpop.f32.mrf.mxu0 }
 0x126   : > { %v8875_v45 = vadd.f32 %v2251_v50, %v2163_v36  ;;  %v2121_v46 = vadd.f32 %v2120_v63, %v8643_v2  ;;  %v2209_v42 = vpop.f32.mrf.mxu1  ;;  %v7622_v36 = vld [vmem:[%s8266_s10 + $0x174] sm:$0xf0]  ;;  %v6327_v63 = vld [vmem:[%s8266_s10 + $0x1d0] sm:$0xf0] }
 0x128   : > { %12243 = vst [vmem:[#allocation75_spill] sm:$0xff] %v8875_v45  ;;  %v8878_v21 = vadd.f32 %v2209_v42, %v2121_v46  ;;  %2302 = vmatmul.bf16.gmra.mxu2 %v8867_v25  ;;  %2470 = vmatmul.bf16.gmra.mxu0 %v8869_v20  ;;  %v7619_v20 = vld [vmem:[%s8266_s10 + $0x164] sm:$0xf] }
 0x129   : > { %2391 = vmatmul.bf16.gmra.mxu3 %v8871_v6  ;;  %2559 = vmatmul.bf16.gmra.mxu1 %v8873_v8  ;;  %v6287_v8 = vld [vmem:[%s8266_s10 + $0x178] sm:$0xf0] }
 0x12b   : > { %v2263_v50 = vpop.f32.mrf.mxu2 }
 0x12c   : > { %v2264_v14 = vadd.f32 %v2263_v50, %v8654_v22  ;;  %v2352_v9 = vpop.f32.mrf.mxu3  ;;  %v8897_v50 = vor.u32 %v7633_v48, %v6325_v18  ;;  %v6349_v48 = vld [vmem:[%s8266_s10 + $0x1e8] sm:$0xf] }
 0x12d   : > { %v2122_v41 = vpop.f32.mrf.mxu0 }
 0x12e   : > { %v2353_v42 = vadd.f32 %v2352_v9, %v2264_v14  ;;  %v2123_v46 = vadd.f32 %v2122_v41, %v8643_v2  ;;  %v2211_v53 = vpop.f32.mrf.mxu1  ;;  %12244 = vst [vmem:[#allocation76_spill] sm:$0xff] %v8897_v50  ;;  %v8899_v14 = vor.u32 %v7622_v36, %v6285_v55  ;;  %v8901_v41 = vor.u32 %v7630_v3, %v6327_v63  ;;  %v7639_v3 = vld [vmem:[%s8266_s10 + $0x1fc] sm:$0xf0]  ;;  %v7636_v55 = vld [vmem:[%s8266_s10 + $0x1ec] sm:$0xf] }
 0x12f   : > { %v6309_v36 = vld [vmem:[%s8266_s10 + $0x190] sm:$0xf]  ;;  %v7628_v63 = vld [vmem:[%s8266_s10 + $0x1a4] sm:$0xf0] }
 0x130   : > { %v8886_v26 = vadd.f32 %v2211_v53, %v2123_v46  ;;  %12245 = vst [vmem:[#allocation77_spill] sm:$0xff] %v8899_v14  ;;  %v8903_v46 = vor.u32 %v7619_v20, %v6287_v8 }
 0x131   : > { %12246 = vst [vmem:[#allocation78_spill] sm:$0xff] %v8901_v41 }
 0x132   : > { %12247 = vst [vmem:[#allocation79_spill] sm:$0xff] %v8903_v46 }
 0x133   : > { %v2265_v6 = vpop.f32.mrf.mxu2 }
 0x134   : > { %v2266_v25 = vadd.f32 %v2265_v6, %v8664_v34  ;;  %v2354_v22 = vpop.f32.mrf.mxu3 }
 0x135   : > { %v2125_v9 = vpop.f32.mrf.mxu0 }
 0x136   : > { %v2355_v53 = vadd.f32 %v2354_v22, %v2266_v25  ;;  %v2126_v45 = vadd.f32 %v2125_v9, %v8643_v2  ;;  %v2214_v60 = vpop.f32.mrf.mxu1  ;;  %v6351_v22 = vld [vmem:[%s8266_s10 + $0x200] sm:$0xf0]  ;;  %v7625_v9 = vld [vmem:[%s8266_s10 + $0x194] sm:$0xf] }
 0x138   : > { %v8906_v33 = vadd.f32 %v2214_v60, %v2126_v45  ;;  %2307 = vmatmul.bf16.gmra.mxu2 %v8897_v50  ;;  %2475 = vmatmul.bf16.gmra.mxu0 %v8899_v14 }
 0x139   : > { %2396 = vmatmul.bf16.gmra.mxu3 %v8901_v41  ;;  %2564 = vmatmul.bf16.gmra.mxu1 %v8903_v46  ;;  %v6311_v46 = vld [vmem:[%s8266_s10 + $0x1a8] sm:$0xf0]  ;;  %v8927_v41 = vor.u32 %v7639_v3, %v6349_v48 }
 0x13b   : > { %v2268_v34 = vpop.f32.mrf.mxu2  ;;  %12248 = vst [vmem:[#allocation80_spill] sm:$0xff] %v8927_v41 }
 0x13c   : > { %v2269_v25 = vadd.f32 %v2268_v34, %v8686_v24  ;;  %v2357_v20 = vpop.f32.mrf.mxu3 }
 0x13d   : > { %v2127_v6 = vpop.f32.mrf.mxu0 }
 0x13e   : > { %v8913_v60 = vadd.f32 %v2357_v20, %v2269_v25  ;;  %v2128_v8 = vadd.f32 %v2127_v6, %v8643_v2  ;;  %v2216_v45 = vpop.f32.mrf.mxu1  ;;  %v8929_v25 = vor.u32 %v7628_v63, %v6309_v36  ;;  %v8931_v20 = vor.u32 %v7636_v55, %v6351_v22  ;;  %v7731_v22 = vld [vmem:[%s11914_s1 + $0x1e4] sm:$0xf] }
 0x13f   : > { %v8933_v6 = vor.u32 %v7625_v9, %v6311_v46  ;;  %v6727_v9 = vld [vmem:[%s11914_s1 + $0x1f0] sm:$0xf0] }
 0x140   : > { %v8916_v18 = vadd.f32 %v2216_v45, %v2128_v8  ;;  %12249 = vst [vmem:[#allocation81_spill] sm:$0xff] %v8929_v25 }
 0x141   : > { %12250 = vst [vmem:[#allocation82_spill] sm:$0xff] %v8931_v20 }
 0x142   : > { %12251 = vst [vmem:[#allocation83_spill] sm:$0xff] %v8933_v6 }
 0x143   : > { %v2270_v14 = vpop.f32.mrf.mxu2 }
 0x144   : > { %v2271_v24 = vadd.f32 %v2270_v14, %v8696_v40  ;;  %v2359_v34 = vpop.f32.mrf.mxu3  ;;  %v7699_v40 = vld [vmem:[%s11914_s1 + $0xe4] sm:$0xf] }
 0x145   : > { %v2441_v2 = vpop.f32.mrf.mxu0 }
 0x146   : > { %v2360_v8 = vadd.f32 %v2359_v34, %v2271_v24  ;;  %v2442_v45 = vadd.f32 %v2441_v2, %v2353_v42  ;;  %v2530_v50 = vpop.f32.mrf.mxu1  ;;  %v6599_v42 = vld [vmem:[%s11914_s1 + $0xf0] sm:$0xf0]  ;;  %v6730_v24 = vor.u32 %v7731_v22, %v6727_v9  ;;  %v6373_v34 = vld [vmem:[%s8266_s10 + $0x218] sm:$0xf]  ;;  %v7645_v2 = vld [vmem:[%s8266_s10 + $0x22c] sm:$0xf0] }
 0x147   : > { %v6602_v14 = vor.u32 %v7699_v40, %v6599_v42  ;;  %v6375_v40 = vld [vmem:[%s8266_s10 + $0x230] sm:$0xf0]  ;;  %v6333_v42 = vld [vmem:[%s8266_s10 + $0x1c0] sm:$0xf] }
 0x148   : > { %v2531_v54 = vadd.f32 %v2530_v50, %v2442_v45  ;;  %2312 = vmatmul.bf16.gmra.mxu2 %v8927_v41  ;;  %2480 = vmatmul.bf16.gmra.mxu0 %v8929_v25  ;;  %v7642_v45 = vld [vmem:[%s8266_s10 + $0x21c] sm:$0xf]  ;;  %v8965_v41 = vor.u32 %v7645_v2, %v6373_v34 }
 0x149   : > { %2401 = vmatmul.bf16.gmra.mxu3 %v8931_v20  ;;  %2569 = vmatmul.bf16.gmra.mxu1 %v8933_v6  ;;  %v8969_v22 = vor.u32 %v7642_v45, %v6375_v40 }
 0x14a   : > { %2610 = vmatpush.bf16.msra.mxu2 %v6602_v14  ;;  %2699 = vmatpush.bf16.msra.mxu3 %v6730_v24  ;;  %12253 = vst [vmem:[#allocation85_spill] sm:$0xff] %v8965_v41 }
 0x14b   : > { %v2273_v50 = vpop.f32.mrf.mxu2  ;;  %12255 = vst [vmem:[#allocation87_spill] sm:$0xff] %v8969_v22 }
 0x14c   : > { %v2274_v46 = vadd.f32 %v2273_v50, %v8718_v43  ;;  %v2362_v48 = vpop.f32.mrf.mxu3  ;;  %v7634_v50 = vld [vmem:[%s8266_s10 + $0x1d4] sm:$0xf0] }
 0x14d   : > { %v2443_v3 = vpop.f32.mrf.mxu0 }
 0x14e   : > { %v8946_v55 = vadd.f32 %v2362_v48, %v2274_v46  ;;  %v2444_v36 = vadd.f32 %v2443_v3, %v2355_v53  ;;  %v2532_v63 = vpop.f32.mrf.mxu1  ;;  %v4212_v53 = vmax.f32 %v2531_v54, 0.0  ;;  %v7631_v46 = vld [vmem:[%s8266_s10 + $0x1c4] sm:$0xf]  ;;  %v6335_v48 = vld [vmem:[%s8266_s10 + $0x1d8] sm:$0xf0] }
 0x14f   : > { %v8971_v9 = vor.u32 %v7631_v46, %v6335_v48  ;;  %v6399_v46 = vld [vmem:[%s8266_s10 + $0x260] sm:$0xf0]  ;;  %v6357_v48 = vld [vmem:[%s8266_s10 + $0x1f0] sm:$0xf] }
 0x150   : > { %v2533_v43 = vadd.f32 %v2532_v63, %v2444_v36  ;;  %v8967_v36 = vor.u32 %v7634_v50, %v6333_v42  ;;  %v6397_v42 = vld [vmem:[%s8266_s10 + $0x248] sm:$0xf]  ;;  %v7651_v50 = vld [vmem:[%s8266_s10 + $0x25c] sm:$0xf0] }
 0x151   : > { %12256 = vst [vmem:[#allocation88_spill] sm:$0xff] %v8971_v9 }
 0x152   : > { %v4216_v14 = vmax.f32 %v2533_v43, 0.0  ;;  %12254 = vst [vmem:[#allocation86_spill] sm:$0xff] %v8967_v36 }
 0x153   : > { %v2275_v3 = vpop.f32.mrf.mxu2 }
 0x154   : > { %v8962_v6 = vpack.c.bf16 %v4216_v14, %v4212_v53  ;;  %v2276_v25 = vadd.f32 %v2275_v3, %v8728_v56  ;;  %v2364_v20 = vpop.f32.mrf.mxu3  ;;  %v7648_v14 = vld [vmem:[%s8266_s10 + $0x24c] sm:$0xf]  ;;  %v7640_v3 = vld [vmem:[%s8266_s10 + $0x204] sm:$0xf0] }
 0x155   : > { %v2446_v63 = vpop.f32.mrf.mxu0 }
 0x156   : > { %12252 = vst [vmem:[#allocation84_spill] sm:$0xff] %v8962_v6  ;;  %v2365_v24 = vadd.f32 %v2364_v20, %v2276_v25  ;;  %v2447_v54 = vadd.f32 %v2446_v63, %v8913_v60  ;;  %v2535_v43 = vpop.f32.mrf.mxu1  ;;  %v6359_v6 = vld [vmem:[%s8266_s10 + $0x208] sm:$0xf0] }
 0x158   : > { %v2536_v53 = vadd.f32 %v2535_v43, %v2447_v54  ;;  %2317 = vmatmul.bf16.gmra.mxu2 %v8965_v41  ;;  %2485 = vmatmul.bf16.gmra.mxu0 %v8967_v36  ;;  %v7637_v43 = vld [vmem:[%s8266_s10 + $0x1f4] sm:$0xf]  ;;  %v8990_v36 = vor.u32 %v7651_v50, %v6397_v42  ;;  %v7727_v42 = vld [vmem:[%s11914_s1 + $0x1c4] sm:$0xf] }
 0x159   : > { %2406 = vmatmul.bf16.gmra.mxu3 %v8969_v22  ;;  %2574 = vmatmul.bf16.gmra.mxu1 %v8971_v9  ;;  %v6711_v50 = vld [vmem:[%s11914_s1 + $0x1d0] sm:$0xf0] }
 0x15a   : > { %v4220_v63 = vmax.f32 %v2536_v53, 0.0  ;;  %12257 = vst [vmem:[#allocation89_spill] sm:$0xff] %v8990_v36 }
 0x15b   : > { %v2278_v56 = vpop.f32.mrf.mxu2 }
 0x15c   : > { %v2279_v25 = vadd.f32 %v2278_v56, %v8750_v30  ;;  %v2367_v60 = vpop.f32.mrf.mxu3 }
 0x15d   : > { %v2448_v20 = vpop.f32.mrf.mxu0 }
 0x15e   : > { %v8979_v34 = vadd.f32 %v2367_v60, %v2279_v25  ;;  %v2449_v2 = vadd.f32 %v2448_v20, %v2360_v8  ;;  %v2537_v45 = vpop.f32.mrf.mxu1  ;;  %v8992_v25 = vor.u32 %v7640_v3, %v6357_v48  ;;  %v8996_v20 = vor.u32 %v7648_v14, %v6399_v46 }
 0x15f   : > { %v6714_v48 = vor.u32 %v7727_v42, %v6711_v50  ;;  %v7646_v42 = vld [vmem:[%s8266_s10 + $0x234] sm:$0xf0] }
 0x160   : > { %v2538_v40 = vadd.f32 %v2537_v45, %v2449_v2  ;;  %12258 = vst [vmem:[#allocation90_spill] sm:$0xff] %v8992_v25  ;;  %v8998_v2 = vor.u32 %v7637_v43, %v6359_v6  ;;  %v6583_v6 = vld [vmem:[%s11914_s1 + $0xd0] sm:$0xf0] }
 0x161   : > { %12260 = vst [vmem:[#allocation92_spill] sm:$0xff] %v8996_v20  ;;  %2700 = vmatpush.bf16.msra.mxu3 %v6714_v48  ;;  %v7643_v48 = vld [vmem:[%s8266_s10 + $0x224] sm:$0xf] }
 0x162   : > { %v4224_v54 = vmax.f32 %v2538_v40, 0.0  ;;  %12261 = vst [vmem:[#allocation93_spill] sm:$0xff] %v8998_v2 }
 0x163   : > { %v2280_v9 = vpop.f32.mrf.mxu2 }
 0x164   : > { %v2281_v30 = vadd.f32 %v2280_v9, %v8760_v0  ;;  %v2369_v56 = vpop.f32.mrf.mxu3  ;;  %v8994_v8 = vpack.c.bf16 %v4224_v54, %v4220_v63  ;;  %v7695_v0 = vld [vmem:[%s11914_s1 + $0xc4] sm:$0xf] }
 0x165   : > { %v2451_v60 = vpop.f32.mrf.mxu0  ;;  %v6586_v9 = vor.u32 %v7695_v0, %v6583_v6  ;;  %v6695_v6 = vld [vmem:[%s11914_s1 + $0x1b0] sm:$0xf0] }
 0x166   : > { %12259 = vst [vmem:[#allocation91_spill] sm:$0xff] %v8994_v8  ;;  %v9000_v45 = vadd.f32 %v2369_v56, %v2281_v30  ;;  %v2452_v53 = vadd.f32 %v2451_v60, %v8946_v55  ;;  %v2540_v40 = vpop.f32.mrf.mxu1  ;;  %v6421_v30 = vld [vmem:[%s8266_s10 + $0x278] sm:$0xf]  ;;  %v7691_v56 = vld [vmem:[%s11914_s1 + $0xa4] sm:$0xf] }
 0x167   : > { %2611 = vmatpush.bf16.msra.mxu2 %v6586_v9  ;;  %v7723_v60 = vld [vmem:[%s11914_s1 + $0x1a4] sm:$0xf]  ;;  %v6381_v9 = vld [vmem:[%s8266_s10 + $0x220] sm:$0xf] }
 0x168   : > { %v2541_v22 = vadd.f32 %v2540_v40, %v2452_v53  ;;  %2322 = vmatmul.bf16.gmra.mxu2 %v8990_v36  ;;  %2490 = vmatmul.bf16.gmra.mxu0 %v8992_v25  ;;  %v7657_v40 = vld [vmem:[%s8266_s10 + $0x28c] sm:$0xf0]  ;;  %v6698_v50 = vor.u32 %v7723_v60, %v6695_v6  ;;  %v9054_v60 = vor.u32 %v7646_v42, %v6381_v9 }
 0x169   : > { %2411 = vmatmul.bf16.gmra.mxu3 %v8996_v20  ;;  %2579 = vmatmul.bf16.gmra.mxu1 %v8998_v2  ;;  %v9042_v2 = vor.u32 %v7657_v40, %v6421_v30 }
 0x16a   : > { %2701 = vmatpush.bf16.msra.mxu3 %v6698_v50  ;;  %12263 = vst [vmem:[#allocation95_spill] sm:$0xff] %v9054_v60 }
 0x16b   : > { %v2283_v55 = vpop.f32.mrf.mxu2  ;;  %12262 = vst [vmem:[#allocation94_spill] sm:$0xff] %v9042_v2 }
 0x16c   : > { %v2284_v14 = vadd.f32 %v2283_v55, %v8782_v58  ;;  %v2372_v46 = vpop.f32.mrf.mxu3  ;;  %v6567_v58 = vld [vmem:[%s11914_s1 + $0xb0] sm:$0xf0] }
 0x16d   : > { %v2453_v3 = vpop.f32.mrf.mxu0  ;;  %v6570_v0 = vor.u32 %v7691_v56, %v6567_v58  ;;  %v6423_v55 = vld [vmem:[%s8266_s10 + $0x290] sm:$0xf0] }
 0x16e   : > { %v9020_v63 = vadd.f32 %v2372_v46, %v2284_v14  ;;  %v2454_v54 = vadd.f32 %v2453_v3, %v2365_v24  ;;  %v2542_v43 = vpop.f32.mrf.mxu1  ;;  %v7654_v24 = vld [vmem:[%s8266_s10 + $0x27c] sm:$0xf]  ;;  %v4228_v14 = vmax.f32 %v2541_v22, 0.0  ;;  %v7719_v22 = vld [vmem:[%s11914_s1 + $0x184] sm:$0xf] }
 0x16f   : > { %v6383_v3 = vld [vmem:[%s8266_s10 + $0x238] sm:$0xf0]  ;;  %2612 = vmatpush.bf16.msra.mxu2 %v6570_v0  ;;  %v9061_v6 = vor.u32 %v7654_v24, %v6423_v55  ;;  %v7683_v24 = vld [vmem:[%s11914_s1 + $0x64] sm:$0xf]  ;;  %v6663_v55 = vld [vmem:[%s11914_s1 + $0x170] sm:$0xf0] }
 0x170   : > { %v2543_v53 = vadd.f32 %v2542_v43, %v2454_v54  ;;  %v7687_v54 = vld [vmem:[%s11914_s1 + $0x84] sm:$0xf]  ;;  %v6551_v43 = vld [vmem:[%s11914_s1 + $0x90] sm:$0xf0]  ;;  %v9063_v50 = vor.u32 %v7643_v48, %v6383_v3 }
 0x171   : > { %v6554_v30 = vor.u32 %v7687_v54, %v6551_v43  ;;  %12265 = vst [vmem:[#allocation97_spill] sm:$0xff] %v9061_v6  ;;  %v7679_v48 = vld [vmem:[%s11914_s1 + $0x44] sm:$0xf]  ;;  %v6519_v3 = vld [vmem:[%s11914_s1 + $0x50] sm:$0xf0] }
 0x172   : > { %v4232_v46 = vmax.f32 %v2543_v53, 0.0  ;;  %v6679_v53 = vld [vmem:[%s11914_s1 + $0x190] sm:$0xf0]  ;;  %12266 = vst [vmem:[#allocation98_spill] sm:$0xff] %v9063_v50  ;;  %v7711_v54 = vld [vmem:[%s11914_s1 + $0x144] sm:$0xf] }
 0x173   : > { %v2285_v8 = vpop.f32.mrf.mxu2  ;;  %v6682_v25 = vor.u32 %v7719_v22, %v6679_v53  ;;  %2613 = vmatpush.bf16.msra.mxu2 %v6554_v30 }
 0x174   : > { %v2286_v56 = vadd.f32 %v2285_v8, %v8792_v23  ;;  %v2374_v58 = vpop.f32.mrf.mxu3  ;;  %v9059_v40 = vpack.c.bf16 %v4232_v46, %v4228_v14 }
 0x175   : > { %v2456_v0 = vpop.f32.mrf.mxu0  ;;  %2702 = vmatpush.bf16.msra.mxu3 %v6682_v25  ;;  %v7715_v25 = vld [vmem:[%s11914_s1 + $0x164] sm:$0xf] }
 0x176   : > { %12264 = vst [vmem:[#allocation96_spill] sm:$0xff] %v9059_v40  ;;  %v9065_v20 = vadd.f32 %v2374_v58, %v2286_v56  ;;  %v2457_v23 = vadd.f32 %v2456_v0, %v8979_v34  ;;  %v2545_v8 = vpop.f32.mrf.mxu1  ;;  %v6535_v34 = vld [vmem:[%s11914_s1 + $0x70] sm:$0xf0]  ;;  %v6666_v14 = vor.u32 %v7715_v25, %v6663_v55  ;;  %v6522_v56 = vor.u32 %v7679_v48, %v6519_v3  ;;  %v7707_v25 = vld [vmem:[%s11914_s1 + $0x124] sm:$0xf] }
 0x177   : > { %v6538_v42 = vor.u32 %v7683_v24, %v6535_v34  ;;  %v6647_v58 = vld [vmem:[%s11914_s1 + $0x150] sm:$0xf0]  ;;  %v7675_v24 = vld [vmem:[%s11914_s1 + $0x24] sm:$0xf]  ;;  %v6405_v3 = vld [vmem:[%s8266_s10 + $0x250] sm:$0xf] }
 0x178   : > { %v2546_v9 = vadd.f32 %v2545_v8, %v2457_v23  ;;  %2327 = vmatmul.bf16.gmra.mxu2 %v9042_v2  ;;  %2495 = vmatmul.bf16.gmra.mxu0 %v9054_v60  ;;  %v6650_v53 = vor.u32 %v7711_v54, %v6647_v58  ;;  %v6445_v8 = vld [vmem:[%s8266_s10 + $0x2a8] sm:$0xf]  ;;  %v6503_v34 = vld [vmem:[%s11914_s1 + $0x30] sm:$0xf0]  ;;  %v6447_v48 = vld [vmem:[%s8266_s10 + $0x2c0] sm:$0xf0] }
 0x179   : > { %2416 = vmatmul.bf16.gmra.mxu3 %v9061_v6  ;;  %2584 = vmatmul.bf16.gmra.mxu1 %v9063_v50  ;;  %v7652_v54 = vld [vmem:[%s8266_s10 + $0x264] sm:$0xf0]  ;;  %v6407_v40 = vld [vmem:[%s8266_s10 + $0x268] sm:$0xf0] }
 0x17a   : > { %2614 = vmatpush.bf16.msra.mxu2 %v6538_v42  ;;  %2703 = vmatpush.bf16.msra.mxu3 %v6666_v14  ;;  %v7663_v42 = vld [vmem:[%s8266_s10 + $0x2bc] sm:$0xf0]  ;;  %v7660_v14 = vld [vmem:[%s8266_s10 + $0x2ac] sm:$0xf] }
 0x17b   : > { %v2288_v46 = vpop.f32.mrf.mxu2  ;;  %v9120_v60 = vor.u32 %v7663_v42, %v6445_v8  ;;  %v6615_v8 = vld [vmem:[%s11914_s1 + $0x110] sm:$0xf0] }
 0x17c   : > { %v2289_v43 = vadd.f32 %v2288_v46, %v8814_v38  ;;  %v2377_v22 = vpop.f32.mrf.mxu3  ;;  %v6631_v46 = vld [vmem:[%s11914_s1 + $0x130] sm:$0xf0] }
 0x17d   : > { %v2458_v30 = vpop.f32.mrf.mxu0  ;;  %12267 = vst [vmem:[#allocation99_spill] sm:$0xff] %v9120_v60 }
 0x17e   : > { %v9097_v0 = vadd.f32 %v2377_v22, %v2289_v43  ;;  %v2459_v23 = vadd.f32 %v2458_v30, %v9000_v45  ;;  %v2547_v38 = vpop.f32.mrf.mxu1  ;;  %2615 = vmatpush.bf16.msra.mxu2 %v6522_v56  ;;  %2704 = vmatpush.bf16.msra.mxu3 %v6650_v53  ;;  %v6506_v45 = vor.u32 %v7675_v24, %v6503_v34  ;;  %v4236_v22 = vmax.f32 %v2546_v9, 0.0  ;;  %v7649_v30 = vld [vmem:[%s8266_s10 + $0x254] sm:$0xf]  ;;  %v7671_v56 = vld [vmem:[%s11914_s1 + $0x4] sm:$0xf] }
 0x17f   : > { %v6634_v43 = vor.u32 %v7707_v25, %v6631_v46  ;;  %v6487_v53 = vld [vmem:[%s11914_s1 + $0x10] sm:$0xf0]  ;;  %v9132_v24 = vor.u32 %v7652_v54, %v6405_v3  ;;  %v9141_v42 = vor.u32 %v7649_v30, %v6407_v40  ;;  %v7759_v30 = vld [vmem:[%s11914_s1 + $0x2c4] sm:$0xf] }
 0x180   : > { %v2548_v55 = vadd.f32 %v2547_v38, %v2459_v23  ;;  %v7703_v23 = vld [vmem:[%s11914_s1 + $0x104] sm:$0xf]  ;;  %v6490_v3 = vor.u32 %v7671_v56, %v6487_v53  ;;  %v6839_v56 = vld [vmem:[%s11914_s1 + $0x2d0] sm:$0xf0] }
 0x181   : > { %12268 = vst [vmem:[#allocation100_spill] sm:$0xff] %v9132_v24  ;;  %v6618_v54 = vor.u32 %v7703_v23, %v6615_v8  ;;  %v7791_v53 = vld [vmem:[%s11914_s1 + $0x3c4] sm:$0xf]  ;;  %v6967_v8 = vld [vmem:[%s11914_s1 + $0x3d0] sm:$0xf0] }
 0x182   : > { %v4240_v58 = vmax.f32 %v2548_v55, 0.0  ;;  %2616 = vmatpush.bf16.msra.mxu2 %v6506_v45  ;;  %2705 = vmatpush.bf16.msra.mxu3 %v6634_v43  ;;  %v9139_v55 = vor.u32 %v7660_v14, %v6447_v48  ;;  %12271 = vst [vmem:[#allocation103_spill] sm:$0xff] %v9141_v42  ;;  %v7763_v45 = vld [vmem:[%s11914_s1 + $0x2e4] sm:$0xf]  ;;  %v6855_v43 = vld [vmem:[%s11914_s1 + $0x2f0] sm:$0xf0] }
 0x183   : > { %v2290_v50 = vpop.f32.mrf.mxu2  ;;  %v6858_v40 = vor.u32 %v7763_v45, %v6855_v43  ;;  %v6983_v14 = vld [vmem:[%s11914_s1 + $0x3f0] sm:$0xf0]  ;;  %v6469_v45 = vld [vmem:[%s8266_s10 + $0x2d8] sm:$0xf] }
 0x184   : > { %v2291_v9 = vadd.f32 %v2290_v50, %v8824_v28  ;;  %v2379_v38 = vpop.f32.mrf.mxu3  ;;  %v9137_v34 = vpack.c.bf16 %v4240_v58, %v4236_v22  ;;  %12270 = vst [vmem:[#allocation102_spill] sm:$0xff] %v9139_v55  ;;  %v6823_v43 = vld [vmem:[%s11914_s1 + $0x2b0] sm:$0xf0] }
 0x185   : > { %v2461_v25 = vpop.f32.mrf.mxu0  ;;  %2788 = vmatpush.bf16.msra.mxu0 %v6858_v40  ;;  %v7787_v40 = vld [vmem:[%s11914_s1 + $0x3a4] sm:$0xf] }
 0x186   : > { %12269 = vst [vmem:[#allocation101_spill] sm:$0xff] %v9137_v34  ;;  %v9143_v46 = vadd.f32 %v2379_v38, %v2291_v9  ;;  %v2462_v28 = vadd.f32 %v2461_v25, %v9020_v63  ;;  %v2550_v50 = vpop.f32.mrf.mxu1  ;;  %v7795_v63 = vld [vmem:[%s11914_s1 + $0x3e4] sm:$0xf]  ;;  %2617 = vmatpush.bf16.msra.mxu2 %v6490_v3  ;;  %2706 = vmatpush.bf16.msra.mxu3 %v6618_v54 }
 0x187   : > { %v6986_v48 = vor.u32 %v7795_v63, %v6983_v14  ;;  %v6842_v38 = vor.u32 %v7759_v30, %v6839_v56  ;;  %v7666_v14 = vld [vmem:[%s8266_s10 + $0x2dc] sm:$0xf]  ;;  %v6471_v30 = vld [vmem:[%s8266_s10 + $0x2f0] sm:$0xf0]  ;;  %v6429_v56 = vld [vmem:[%s8266_s10 + $0x280] sm:$0xf] }
 0x188   : > { %v2551_v22 = vadd.f32 %v2550_v50, %v2462_v28  ;;  %2332 = vmatmul.bf16.gmra.mxu2 %v9120_v60  ;;  %2500 = vmatmul.bf16.gmra.mxu0 %v9132_v24  ;;  %v6970_v28 = vor.u32 %v7791_v53, %v6967_v8  ;;  %v7658_v53 = vld [vmem:[%s8266_s10 + $0x294] sm:$0xf0]  ;;  %v7655_v8 = vld [vmem:[%s8266_s10 + $0x284] sm:$0xf] }
 0x189   : > { %2421 = vmatmul.bf16.gmra.mxu3 %v9139_v55  ;;  %2589 = vmatmul.bf16.gmra.mxu1 %v9141_v42 }
 0x18a   : > { %2877 = vmatpush.bf16.msra.mxu1 %v6986_v48  ;;  %2789 = vmatpush.bf16.msra.mxu0 %v6842_v38 }
 0x18b   : > { %v2293_v58 = vpop.f32.mrf.mxu2 }
 0x18c   : > { %v2294_v23 = vadd.f32 %v2293_v58, %v8846_v11  ;;  %v2382_v9 = vpop.f32.mrf.mxu3  ;;  %v7755_v11 = vld [vmem:[%s11914_s1 + $0x2a4] sm:$0xf]  ;;  %v6951_v58 = vld [vmem:[%s11914_s1 + $0x3b0] sm:$0xf0] }
 0x18d   : > { %v2463_v25 = vpop.f32.mrf.mxu0  ;;  %v6826_v48 = vor.u32 %v7755_v11, %v6823_v43 }
 0x18e   : > { %v9175_v50 = vadd.f32 %v2382_v9, %v2294_v23  ;;  %v2464_v3 = vadd.f32 %v2463_v25, %v9065_v20  ;;  %v2552_v54 = vpop.f32.mrf.mxu1  ;;  %2878 = vmatpush.bf16.msra.mxu1 %v6970_v28  ;;  %v7669_v20 = vld [vmem:[%s8266_s10 + $0x2ec] sm:$0xf0]  ;;  %v6954_v23 = vor.u32 %v7787_v40, %v6951_v58  ;;  %v4244_v9 = vmax.f32 %v2551_v22, 0.0  ;;  %v6431_v25 = vld [vmem:[%s8266_s10 + $0x298] sm:$0xf0] }
 0x18f   : > { %v9198_v34 = vor.u32 %v7669_v20, %v6469_v45  ;;  %2790 = vmatpush.bf16.msra.mxu0 %v6826_v48  ;;  %v7783_v22 = vld [vmem:[%s11914_s1 + $0x384] sm:$0xf]  ;;  %v9210_v40 = vor.u32 %v7658_v53, %v6429_v56  ;;  %v9217_v58 = vor.u32 %v7666_v14, %v6471_v30  ;;  %v6791_v53 = vld [vmem:[%s11914_s1 + $0x270] sm:$0xf0] }
 0x190   : > { %v2553_v63 = vadd.f32 %v2552_v54, %v2464_v3  ;;  %v7751_v3 = vld [vmem:[%s11914_s1 + $0x284] sm:$0xf]  ;;  %v6807_v54 = vld [vmem:[%s11914_s1 + $0x290] sm:$0xf0] }
 0x191   : > { %12272 = vst [vmem:[#allocation104_spill] sm:$0xff] %v9198_v34  ;;  %v6810_v45 = vor.u32 %v7751_v3, %v6807_v54  ;;  %v7747_v56 = vld [vmem:[%s11914_s1 + $0x264] sm:$0xf] }
 0x192   : > { %v4248_v38 = vmax.f32 %v2553_v63, 0.0  ;;  %2879 = vmatpush.bf16.msra.mxu1 %v6954_v23  ;;  %v6935_v63 = vld [vmem:[%s11914_s1 + $0x390] sm:$0xf0]  ;;  %12274 = vst [vmem:[#allocation106_spill] sm:$0xff] %v9217_v58  ;;  %v9219_v23 = vor.u32 %v7655_v8, %v6431_v25  ;;  %v6794_v30 = vor.u32 %v7747_v56, %v6791_v53  ;;  %v7743_v8 = vld [vmem:[%s11914_s1 + $0x244] sm:$0xf] }
 0x193   : > { %v2295_v28 = vpop.f32.mrf.mxu2  ;;  %v6938_v42 = vor.u32 %v7783_v22, %v6935_v63  ;;  %2791 = vmatpush.bf16.msra.mxu0 %v6810_v45  ;;  %v6775_v25 = vld [vmem:[%s11914_s1 + $0x250] sm:$0xf0]  ;;  %v7775_v3 = vld [vmem:[%s11914_s1 + $0x344] sm:$0xf] }
 0x194   : > { %v2296_v11 = vadd.f32 %v2295_v28, %v8856_v49  ;;  %v2384_v43 = vpop.f32.mrf.mxu3  ;;  %v9215_v20 = vpack.c.bf16 %v4248_v38, %v4244_v9  ;;  %v6759_v56 = vld [vmem:[%s11914_s1 + $0x230] sm:$0xf0]  ;;  %v7771_v53 = vld [vmem:[%s11914_s1 + $0x324] sm:$0xf] }
 0x195   : > { %v2466_v48 = vpop.f32.mrf.mxu0 }
 0x196   : > { %12273 = vst [vmem:[#allocation105_spill] sm:$0xff] %v9215_v20  ;;  %v9221_v24 = vadd.f32 %v2384_v43, %v2296_v11  ;;  %v2467_v49 = vadd.f32 %v2466_v48, %v9097_v0  ;;  %v2555_v28 = vpop.f32.mrf.mxu1  ;;  %2880 = vmatpush.bf16.msra.mxu1 %v6938_v42  ;;  %v7779_v0 = vld [vmem:[%s11914_s1 + $0x364] sm:$0xf]  ;;  %v6919_v42 = vld [vmem:[%s11914_s1 + $0x370] sm:$0xf0]  ;;  %v6778_v11 = vor.u32 %v7743_v8, %v6775_v25 }
 0x197   : > { %v6922_v9 = vor.u32 %v7779_v0, %v6919_v42  ;;  %2792 = vmatpush.bf16.msra.mxu0 %v6794_v30  ;;  %v6903_v43 = vld [vmem:[%s11914_s1 + $0x350] sm:$0xf0]  ;;  %v6453_v42 = vld [vmem:[%s8266_s10 + $0x2b0] sm:$0xf] }
 0x198   : > { %v2556_v14 = vadd.f32 %v2555_v28, %v2467_v49  ;;  %2337 = vmatmul.bf16.gmra.mxu2 %v9198_v34  ;;  %2505 = vmatmul.bf16.gmra.mxu0 %v9210_v40  ;;  %v6906_v63 = vor.u32 %v7775_v3, %v6903_v43  ;;  %v7661_v3 = vld [vmem:[%s8266_s10 + $0x2b4] sm:$0xf] }
 0x199   : > { %2426 = vmatmul.bf16.gmra.mxu3 %v9217_v58  ;;  %2594 = vmatmul.bf16.gmra.mxu1 %v9219_v23  ;;  %v6743_v43 = vld [vmem:[%s11914_s1 + $0x210] sm:$0xf0] }
 0x19a   : > { %2881 = vmatpush.bf16.msra.mxu1 %v6922_v9  ;;  %v7664_v9 = vld [vmem:[%s8266_s10 + $0x2c4] sm:$0xf0]  ;;  %v4252_v8 = vmax.f32 %v2556_v14, 0.0 }
 0x19b   : > { %v2298_v38 = vpop.f32.mrf.mxu2  ;;  %2793 = vmatpush.bf16.msra.mxu0 %v6778_v11  ;;  %v7735_v11 = vld [vmem:[%s11914_s1 + $0x204] sm:$0xf] }
 0x19c   : > { %v2299_v54 = vadd.f32 %v2298_v38, %v8878_v21  ;;  %v2387_v22 = vpop.f32.mrf.mxu3  ;;  %v7739_v21 = vld [vmem:[%s11914_s1 + $0x224] sm:$0xf] }
 0x19d   : > { %v2468_v45 = vpop.f32.mrf.mxu0  ;;  %v6762_v0 = vor.u32 %v7739_v21, %v6759_v56  ;;  %v6871_v21 = vld [vmem:[%s11914_s1 + $0x310] sm:$0xf0] }
 0x19e   : > { %v9253_v48 = vadd.f32 %v2387_v22, %v2299_v54  ;;  %v2469_v49 = vadd.f32 %v2468_v45, %v9143_v46  ;;  %v2557_v28 = vpop.f32.mrf.mxu1  ;;  %2882 = vmatpush.bf16.msra.mxu1 %v6906_v63  ;;  %v6887_v46 = vld [vmem:[%s11914_s1 + $0x330] sm:$0xf0]  ;;  %v6455_v54 = vld [vmem:[%s8266_s10 + $0x2c8] sm:$0xf0]  ;;  %v7767_v45 = vld [vmem:[%s11914_s1 + $0x304] sm:$0xf] }
 0x19f   : > { %v6890_v38 = vor.u32 %v7771_v53, %v6887_v46  ;;  %2794 = vmatpush.bf16.msra.mxu0 %v6762_v0  ;;  %v6874_v0 = vor.u32 %v7767_v45, %v6871_v21 }
 0x1a0   : > { %v2558_v30 = vadd.f32 %v2557_v28, %v2469_v49  ;;  %v9282_v49 = vor.u32 %v7664_v9, %v6453_v42  ;;  %v6746_v28 = vor.u32 %v7735_v11, %v6743_v43  ;;  %v7670_v11 = vld [vmem:[%s8266_s10 + $0x2f4] sm:$0xf0] }
 0x1a2   : > { %v4256_v25 = vmax.f32 %v2558_v30, 0.0  ;;  %2883 = vmatpush.bf16.msra.mxu1 %v6890_v38  ;;  %v9289_v30 = vor.u32 %v7661_v3, %v6455_v54 }
 0x1a3   : > { %v2300_v22 = vpop.f32.mrf.mxu2  ;;  %2795 = vmatpush.bf16.msra.mxu0 %v6746_v28 }
 0x1a4   : > { %v2301_v14 = vadd.f32 %v2300_v22, %v8886_v26  ;;  %v2389_v63 = vpop.f32.mrf.mxu3  ;;  %v9287_v56 = vpack.c.bf16 %v4256_v25, %v4252_v8  ;;  %12276 = vst [vmem:[#allocation108_spill] sm:$0xff] %v9289_v30  ;;  %v6477_v22 = vld [vmem:[%s8266_s10 + $0x2e0] sm:$0xf] }
 0x1a5   : > { %v2471_v53 = vpop.f32.mrf.mxu0 }
 0x1a6   : > { %12275 = vst [vmem:[#allocation107_spill] sm:$0xff] %v9287_v56  ;;  %v2390_v46 = vadd.f32 %v2389_v63, %v2301_v14  ;;  %v2472_v38 = vadd.f32 %v2471_v53, %v9175_v50  ;;  %v2560_v20 = vpop.f32.mrf.mxu1  ;;  %2884 = vmatpush.bf16.msra.mxu1 %v6874_v0  ;;  %v7667_v14 = vld [vmem:[%s8266_s10 + $0x2e4] sm:$0xf]  ;;  %v6479_v63 = vld [vmem:[%s8266_s10 + $0x2f8] sm:$0xf0]  ;;  %v9303_v0 = vor.u32 %v7670_v11, %v6477_v22  ;;  %s6032_s10 = sshll.u32 %s6028_s30, 4  ;;  %s6033_s10 = int_to_ptr.hbm [resolvable:$true] %s6032_s10 }
 0x1a7   : > { %s8026_s22 = sshra.s32 %s6033_s10, 4  ;;  %s8027_s22 = int_to_ptr.hbm [resolvable:$true] %s8026_s22 }
 0x1a8   : > { %v2561_v26 = vadd.f32 %v2560_v20, %v2472_v38  ;;  %2510 = vmatmul.bf16.gmra.mxu0 %v9282_v49  ;;  %2618 = vmatmul.bf16.vlgmr.msra.gmra.mxu2 %v8288_v57  ;;  %12277 = vst [vmem:[#allocation109_spill] sm:$0xff] %v9303_v0  ;;  %s8028_s23 = scalar_lea.hbm %s8027_s22, 2  ;;  %p8033_p0 = scmp.lt.s32.totalorder %s8027_s22, %s11922_s9 }
 0x1a9   : > { %2599 = vmatmul.bf16.gmra.mxu1 %v9289_v30  ;;  %2707 = vmatmul.bf16.vlgmr.msra.gmra.mxu3 %v8292_v59  ;;  %v12333_v30 = vld [vmem:[#allocation43_spill] sm:$0xff]  ;;  %p8029_p11 = scmp.ne.s32.totalorder %s8027_s22, %s8028_s23  ;;  %p8034_p1 = scmp.lt.s32.totalorder %s8032_s26, %s8028_s23 }
 0x1aa   : > { %v4260_v43 = vmax.f32 %v2561_v26, 0.0 }
 0x1ab   : > { %v2303_v42 = vpop.f32.mrf.mxu2  ;;  %p8030_p12 = pnand %p8029_p11, %p8168_p5  ;;  %p8035_p2 = por %p8034_p1, %p8033_p0 }
 0x1ac   : > { %v2304_v9 = vadd.f32 %v2303_v42, %v8906_v33  ;;  %v2392_v50 = vpop.f32.mrf.mxu3  ;;  %v9307_v42 = vor.u32 %v7667_v14, %v6479_v63 }
 0x1ad   : > { %v2473_v8 = vpop.f32.mrf.mxu0  ;;  %p8031_p13 = pneg %p8030_p12 }
 0x1ae   : > { %v2393_v25 = vadd.f32 %v2392_v50, %v2304_v9  ;;  %v2474_v3 = vadd.f32 %v2473_v8, %v9221_v24  ;;  %v2562_v54 = vpop.f32.mrf.mxu1  ;;  %12279 = vst [vmem:[#allocation111_spill] sm:$0xff] %v9307_v42 }
 0x1af   : > { %p8036_p3 = pnand %p8035_p2, %p8031_p13 }
 0x1b0   : > { %v2563_v20 = vadd.f32 %v2562_v54, %v2474_v3 }
 0x1b2   : > { %v4264_v45 = vmax.f32 %v2563_v20, 0.0 }
 0x1b3   : > { %v2305_v28 = vpop.f32.mrf.mxu2 }
 0x1b4   : > { %v2306_v21 = vadd.f32 %v2305_v28, %v8916_v18  ;;  %v2394_v53 = vpop.f32.mrf.mxu3  ;;  %v9305_v33 = vpack.c.bf16 %v4264_v45, %v4260_v43 }
 0x1b5   : > { %v2476_v38 = vpop.f32.mrf.mxu0 }
 0x1b6   : > { %12278 = vst [vmem:[#allocation110_spill] sm:$0xff] %v9305_v33  ;;  %v2395_v24 = vadd.f32 %v2394_v53, %v2306_v21  ;;  %v2477_v9 = vadd.f32 %v2476_v38, %v9253_v48  ;;  %v2565_v50 = vpop.f32.mrf.mxu1 }
 0x1b8   : > { %v2566_v8 = vadd.f32 %v2565_v50, %v2477_v9  ;;  %2515 = vmatmul.bf16.gmra.mxu0 %v9303_v0  ;;  %2623 = vmatmul.bf16.gmra.mxu2 %v8308_v5  ;;  %v6605_v0 = vld [vmem:[%s11914_s1 + $0xe8] sm:$0xf] }
 0x1b9   : > { %2604 = vmatmul.bf16.gmra.mxu1 %v9307_v42  ;;  %2712 = vmatmul.bf16.gmra.mxu3 %v8312_v7  ;;  %v7811_v42 = vld [vmem:[%s11914_s1 + $0x464] sm:$0xf] }
 0x1ba   : > { %v4268_v48 = vmax.f32 %v2566_v8, 0.0 }
 0x1bb   : > { %v2308_v18 = vpop.f32.mrf.mxu2 }
 0x1bc   : > { %v2309_v26 = vadd.f32 %v2308_v18, %v8661_v27  ;;  %v2397_v3 = vpop.f32.mrf.mxu3 }
 0x1bd   : > { %v2478_v54 = vpop.f32.mrf.mxu0 }
 0x1be   : > { %v2398_v20 = vadd.f32 %v2397_v3, %v2309_v26  ;;  %v2479_v22 = vadd.f32 %v2478_v54, %v2390_v46  ;;  %v2567_v11 = vpop.f32.mrf.mxu1 }
 0x1c0   : > { %v2568_v43 = vadd.f32 %v2567_v11, %v2479_v22 }
 0x1c2   : > { %v4272_v45 = vmax.f32 %v2568_v43, 0.0 }
 0x1c3   : > { %v2310_v14 = vpop.f32.mrf.mxu2 }
 0x1c4   : > { %v2311_v63 = vadd.f32 %v2310_v14, %v8683_v16  ;;  %v2399_v28 = vpop.f32.mrf.mxu3  ;;  %v9316_v21 = vpack.c.bf16 %v4272_v45, %v4268_v48 }
 0x1c5   : > { %v2481_v53 = vpop.f32.mrf.mxu0 }
 0x1c6   : > { %12280 = vst [vmem:[#allocation112_spill] sm:$0xff] %v9316_v21  ;;  %v2400_v38 = vadd.f32 %v2399_v28, %v2311_v63  ;;  %v2482_v9 = vadd.f32 %v2481_v53, %v2393_v25  ;;  %v2570_v50 = vpop.f32.mrf.mxu1 }
 0x1c8   : > { %v2571_v33 = vadd.f32 %v2570_v50, %v2482_v9  ;;  %2628 = vmatmul.bf16.gmra.mxu2 %v8328_v17  ;;  %2796 = vmatmul.bf16.vlgmr.msra.gmra.mxu0 %v8619_v39 }
 0x1c9   : > { %2717 = vmatmul.bf16.gmra.mxu3 %v8332_v19  ;;  %2885 = vmatmul.bf16.vlgmr.msra.gmra.mxu1 %v8626_v44  ;;  %v12321_v44 = vld [vmem:[#allocation19_spill] sm:$0xff] }
 0x1ca   : > { %v4276_v25 = vmax.f32 %v2571_v33, 0.0 }
 0x1cb   : > { %v2313_v27 = vpop.f32.mrf.mxu2 }
 0x1cc   : > { %v2314_v46 = vadd.f32 %v2313_v27, %v8693_v35  ;;  %v2402_v16 = vpop.f32.mrf.mxu3 }
 0x1cd   : > { %v2483_v8 = vpop.f32.mrf.mxu0 }
 0x1ce   : > { %v2403_v18 = vadd.f32 %v2402_v16, %v2314_v46  ;;  %v2484_v26 = vadd.f32 %v2483_v8, %v2395_v24  ;;  %v2572_v3 = vpop.f32.mrf.mxu1 }
 0x1d0   : > { %v2573_v54 = vadd.f32 %v2572_v3, %v2484_v26 }
 0x1d2   : > { %v4280_v22 = vmax.f32 %v2573_v54, 0.0 }
 0x1d3   : > { %v2315_v11 = vpop.f32.mrf.mxu2 }
 0x1d4   : > { %v2316_v43 = vadd.f32 %v2315_v11, %v8715_v37  ;;  %v2404_v48 = vpop.f32.mrf.mxu3  ;;  %v9324_v45 = vpack.c.bf16 %v4280_v22, %v4276_v25 }
 0x1d5   : > { %v2486_v14 = vpop.f32.mrf.mxu0 }
 0x1d6   : > { %12281 = vst [vmem:[#allocation113_spill] sm:$0xff] %v9324_v45  ;;  %v2405_v63 = vadd.f32 %v2404_v48, %v2316_v43  ;;  %v2487_v28 = vadd.f32 %v2486_v14, %v2398_v20  ;;  %v2575_v53 = vpop.f32.mrf.mxu1 }
 0x1d8   : > { %v2576_v9 = vadd.f32 %v2575_v53, %v2487_v28  ;;  %2633 = vmatmul.bf16.gmra.mxu2 %v8348_v29  ;;  %2801 = vmatmul.bf16.gmra.mxu0 %v8647_v12 }
 0x1d9   : > { %2722 = vmatmul.bf16.gmra.mxu3 %v8352_v31  ;;  %2890 = vmatmul.bf16.gmra.mxu1 %v8651_v15 }
 0x1da   : > { %v4284_v20 = vmax.f32 %v2576_v9, 0.0 }
 0x1db   : > { %v2318_v35 = vpop.f32.mrf.mxu2 }
 0x1dc   : > { %v2319_v33 = vadd.f32 %v2318_v35, %v8725_v47  ;;  %v2407_v37 = vpop.f32.mrf.mxu3 }
 0x1dd   : > { %v2488_v24 = vpop.f32.mrf.mxu0 }
 0x1de   : > { %v2408_v50 = vadd.f32 %v2407_v37, %v2319_v33  ;;  %v2489_v27 = vadd.f32 %v2488_v24, %v2400_v38  ;;  %v2577_v46 = vpop.f32.mrf.mxu1 }
 0x1e0   : > { %v2578_v16 = vadd.f32 %v2577_v46, %v2489_v27 }
 0x1e2   : > { %v4288_v8 = vmax.f32 %v2578_v16, 0.0 }
 0x1e3   : > { %v2320_v26 = vpop.f32.mrf.mxu2 }
 0x1e4   : > { %v2321_v3 = vadd.f32 %v2320_v26, %v8747_v51  ;;  %v2409_v54 = vpop.f32.mrf.mxu3  ;;  %v9332_v25 = vpack.c.bf16 %v4288_v8, %v4284_v20 }
 0x1e5   : > { %v2491_v22 = vpop.f32.mrf.mxu0 }
 0x1e6   : > { %12282 = vst [vmem:[#allocation114_spill] sm:$0xff] %v9332_v25  ;;  %v2410_v11 = vadd.f32 %v2409_v54, %v2321_v3  ;;  %v2492_v43 = vadd.f32 %v2491_v22, %v2403_v18  ;;  %v2580_v48 = vpop.f32.mrf.mxu1 }
 0x1e8   : > { %v2581_v14 = vadd.f32 %v2580_v48, %v2492_v43  ;;  %2638 = vmatmul.bf16.gmra.mxu2 %v8416_v4  ;;  %2806 = vmatmul.bf16.gmra.mxu0 %v8675_v62  ;;  %v12286_v43 = vld [vmem:[#allocation58_spill] sm:$0xff] }
 0x1e9   : > { %2727 = vmatmul.bf16.gmra.mxu3 %v8420_v10  ;;  %2895 = vmatmul.bf16.gmra.mxu1 %v8679_v1 }
 0x1ea   : > { %v4292_v18 = vmax.f32 %v2581_v14, 0.0 }
 0x1eb   : > { %v2323_v47 = vpop.f32.mrf.mxu2 }
 0x1ec   : > { %v2324_v38 = vadd.f32 %v2323_v47, %v8757_v32  ;;  %v2412_v51 = vpop.f32.mrf.mxu3  ;;  %v12284_v32 = vld [vmem:[#allocation28_spill] sm:$0xff] }
 0x1ed   : > { %v2493_v28 = vpop.f32.mrf.mxu0 }
 0x1ee   : > { %v2413_v53 = vadd.f32 %v2412_v51, %v2324_v38  ;;  %v2494_v9 = vadd.f32 %v2493_v28, %v2405_v63  ;;  %v2582_v35 = vpop.f32.mrf.mxu1  ;;  %v12285_v63 = vld [vmem:[#allocation48_spill] sm:$0xff] }
 0x1f0   : > { %v2583_v33 = vadd.f32 %v2582_v35, %v2494_v9 }
 0x1f2   : > { %v4296_v37 = vmax.f32 %v2583_v33, 0.0  ;;  %v12287_v33 = vld [vmem:[#allocation63_spill] sm:$0xff] }
 0x1f3   : > { %v2325_v24 = vpop.f32.mrf.mxu2 }
 0x1f4   : > { %v2326_v27 = vadd.f32 %v2325_v24, %v8779_v61  ;;  %v2414_v46 = vpop.f32.mrf.mxu3  ;;  %v9340_v16 = vpack.c.bf16 %v4296_v37, %v4292_v18 }
 0x1f5   : > { %v2496_v20 = vpop.f32.mrf.mxu0 }
 0x1f6   : > { %12283 = vst [vmem:[#allocation115_spill] sm:$0xff] %v9340_v16  ;;  %v2415_v8 = vadd.f32 %v2414_v46, %v2326_v27  ;;  %v2497_v26 = vadd.f32 %v2496_v20, %v2408_v50  ;;  %v2585_v3 = vpop.f32.mrf.mxu1 }
 0x1f8   : > { %v2586_v54 = vadd.f32 %v2585_v3, %v2497_v26  ;;  %2643 = vmatmul.bf16.gmra.mxu2 %v8484_v52  ;;  %2811 = vmatmul.bf16.gmra.mxu0 %v8707_v13  ;;  %v12309_v13 = vld [vmem:[#allocation65_spill] sm:$0xff] }
 0x1f9   : > { %2732 = vmatmul.bf16.gmra.mxu3 %v12284_v32  ;;  %2900 = vmatmul.bf16.gmra.mxu1 %v12285_v63 }
 0x1fa   : > { %v4300_v50 = vmax.f32 %v2586_v54, 0.0 }
 0x1fb   : > { %v2328_v22 = vpop.f32.mrf.mxu2 }
 0x1fc   : > { %v2329_v48 = vadd.f32 %v2328_v22, %v12286_v43  ;;  %v2417_v61 = vpop.f32.mrf.mxu3  ;;  %v12289_v22 = vld [vmem:[#allocation30_spill] sm:$0xff] }
 0x1fd   : > { %v2498_v14 = vpop.f32.mrf.mxu0  ;;  %v12290_v43 = vld [vmem:[#allocation50_spill] sm:$0xff] }
 0x1fe   : > { %v2418_v47 = vadd.f32 %v2417_v61, %v2329_v48  ;;  %v2499_v38 = vadd.f32 %v2498_v14, %v2410_v11  ;;  %v2587_v51 = vpop.f32.mrf.mxu1  ;;  %v12291_v11 = vld [vmem:[#allocation32_spill] sm:$0xff] }
 0x1ff   : > { %v12292_v48 = vld [vmem:[#allocation52_spill] sm:$0xff] }
 0x200   : > { %v2588_v28 = vadd.f32 %v2587_v51, %v2499_v38  ;;  %v12293_v61 = vld [vmem:[#allocation64_spill] sm:$0xff] }
 0x202   : > { %v4304_v9 = vmax.f32 %v2588_v28, 0.0 }
 0x203   : > { %v2330_v35 = vpop.f32.mrf.mxu2 }
 0x204   : > { %v2331_v18 = vadd.f32 %v2330_v35, %v12287_v33  ;;  %v2419_v37 = vpop.f32.mrf.mxu3  ;;  %v9348_v24 = vpack.c.bf16 %v4304_v9, %v4300_v50 }
 0x205   : > { %v2501_v27 = vpop.f32.mrf.mxu0 }
 0x206   : > { %12288 = vst [vmem:[#allocation58_spill] sm:$0xff] %v9348_v24  ;;  %v2420_v46 = vadd.f32 %v2419_v37, %v2331_v18  ;;  %v2502_v20 = vadd.f32 %v2501_v27, %v2413_v53  ;;  %v2590_v26 = vpop.f32.mrf.mxu1  ;;  %v12294_v37 = vld [vmem:[#allocation69_spill] sm:$0xff] }
 0x208   : > { %v2591_v3 = vadd.f32 %v2590_v26, %v2502_v20  ;;  %2648 = vmatmul.bf16.gmra.mxu2 %v12289_v22  ;;  %2816 = vmatmul.bf16.gmra.mxu0 %v12290_v43 }
 0x209   : > { %2737 = vmatmul.bf16.gmra.mxu3 %v12291_v11  ;;  %2905 = vmatmul.bf16.gmra.mxu1 %v12292_v48 }
 0x20a   : > { %v4308_v53 = vmax.f32 %v2591_v3, 0.0 }
 0x20b   : > { %v2333_v54 = vpop.f32.mrf.mxu2 }
 0x20c   : > { %v2334_v14 = vadd.f32 %v2333_v54, %v12293_v61  ;;  %v2422_v38 = vpop.f32.mrf.mxu3  ;;  %v12296_v54 = vld [vmem:[#allocation34_spill] sm:$0xff] }
 0x20d   : > { %v2503_v51 = vpop.f32.mrf.mxu0  ;;  %v12297_v61 = vld [vmem:[#allocation54_spill] sm:$0xff] }
 0x20e   : > { %v2423_v28 = vadd.f32 %v2422_v38, %v2334_v14  ;;  %v2504_v50 = vadd.f32 %v2503_v51, %v2415_v8  ;;  %v2592_v9 = vpop.f32.mrf.mxu1  ;;  %v12298_v8 = vld [vmem:[#allocation36_spill] sm:$0xff]  ;;  %v12300_v38 = vld [vmem:[#allocation70_spill] sm:$0xff] }
 0x20f   : > { %v12299_v14 = vld [vmem:[#allocation56_spill] sm:$0xff] }
 0x210   : > { %v2593_v35 = vadd.f32 %v2592_v9, %v2504_v50 }
 0x212   : > { %v4312_v33 = vmax.f32 %v2593_v35, 0.0 }
 0x213   : > { %v2335_v18 = vpop.f32.mrf.mxu2 }
 0x214   : > { %v2336_v27 = vadd.f32 %v2335_v18, %v12294_v37  ;;  %v2424_v20 = vpop.f32.mrf.mxu3  ;;  %v9356_v26 = vpack.c.bf16 %v4312_v33, %v4308_v53 }
 0x215   : > { %v2506_v24 = vpop.f32.mrf.mxu0 }
 0x216   : > { %12295 = vst [vmem:[#allocation63_spill] sm:$0xff] %v9356_v26  ;;  %v2425_v16 = vadd.f32 %v2424_v20, %v2336_v27  ;;  %v2507_v25 = vadd.f32 %v2506_v24, %v2418_v47  ;;  %v2595_v45 = vpop.f32.mrf.mxu1 }
 0x218   : > { %v2596_v21 = vadd.f32 %v2595_v45, %v2507_v25  ;;  %2653 = vmatmul.bf16.gmra.mxu2 %v12296_v54  ;;  %2821 = vmatmul.bf16.gmra.mxu0 %v12297_v61  ;;  %v12301_v25 = vld [vmem:[#allocation75_spill] sm:$0xff] }
 0x219   : > { %2742 = vmatmul.bf16.gmra.mxu3 %v12298_v8  ;;  %2910 = vmatmul.bf16.gmra.mxu1 %v12299_v14 }
 0x21a   : > { %v4316_v47 = vmax.f32 %v2596_v21, 0.0  ;;  %v9371_v21 = vld [vmem:[%s11915_s2] sm:$0xf] }
 0x21b   : > { %v2338_v3 = vpop.f32.mrf.mxu2 }
 0x21c   : > { %v2339_v51 = vadd.f32 %v2338_v3, %v12300_v38  ;;  %v2427_v50 = vpop.f32.mrf.mxu3  ;;  %v12303_v3 = vld [vmem:[#allocation38_spill] sm:$0xff]  ;;  %v12304_v38 = vld [vmem:[#allocation59_spill] sm:$0xff] }
 0x21d   : > { %v2508_v9 = vpop.f32.mrf.mxu0 }
 0x21e   : > { %v2428_v35 = vadd.f32 %v2427_v50, %v2339_v51  ;;  %v2509_v53 = vadd.f32 %v2508_v9, %v2420_v46  ;;  %v2597_v33 = vpop.f32.mrf.mxu1  ;;  %v9374_v46 = vperm.slane %v9371_v21, 1  ;;  %v12305_v51 = vld [vmem:[#allocation40_spill] sm:$0xff]  ;;  %v12306_v50 = vld [vmem:[#allocation61_spill] sm:$0xff] }
 0x220   : > { %v2598_v18 = vadd.f32 %v2597_v33, %v2509_v53 }
 0x222   : > { %v4320_v24 = vmax.f32 %v2598_v18, 0.0 }
 0x223   : > { %v2340_v45 = vpop.f32.mrf.mxu2 }
 0x224   : > { %v2341_v37 = vadd.f32 %v2340_v45, %v12301_v25  ;;  %v2429_v27 = vpop.f32.mrf.mxu3  ;;  %v9364_v20 = vpack.c.bf16 %v4320_v24, %v4316_v47 }
 0x225   : > { %v2511_v26 = vpop.f32.mrf.mxu0 }
 0x226   : > { %12302 = vst [vmem:[#allocation64_spill] sm:$0xff] %v9364_v20  ;;  %v2430_v56 = vadd.f32 %v2429_v27, %v2341_v37  ;;  %v2512_v14 = vadd.f32 %v2511_v26, %v2423_v28  ;;  %v2600_v61 = vpop.f32.mrf.mxu1 }
 0x228   : > { %v2601_v48 = vadd.f32 %v2600_v61, %v2512_v14  ;;  %2658 = vmatmul.bf16.gmra.mxu2 %v12303_v3  ;;  %2826 = vmatmul.bf16.gmra.mxu0 %v12304_v38 }
 0x229   : > { %2747 = vmatmul.bf16.gmra.mxu3 %v12305_v51  ;;  %2915 = vmatmul.bf16.gmra.mxu1 %v12306_v50 }
 0x22a   : > { %v4324_v47 = vmax.f32 %v2601_v48, 0.0 }
 0x22b   : > { %v2619_v9 = vpop.f32.mrf.mxu2 }
 0x22c   : > { %v2620_v28 = vadd.f32 %v2619_v9, %v9374_v46  ;;  %v2708_v26 = vpop.f32.mrf.mxu3  ;;  %v12308_v9 = vld [vmem:[#allocation7_spill] sm:$0xff] }
 0x22d   : > { %v2513_v61 = vpop.f32.mrf.mxu0 }
 0x22e   : > { %v2709_v14 = vadd.f32 %v2708_v26, %v2620_v28  ;;  %v2514_v53 = vadd.f32 %v2513_v61, %v2425_v16  ;;  %v2602_v33 = vpop.f32.mrf.mxu1  ;;  %v12310_v16 = vld [vmem:[#allocation9_spill] sm:$0xff]  ;;  %v12311_v28 = vld [vmem:[#allocation67_spill] sm:$0xff] }
 0x230   : > { %v2603_v18 = vadd.f32 %v2602_v33, %v2514_v53 }
 0x232   : > { %v4328_v24 = vmax.f32 %v2603_v18, 0.0 }
 0x233   : > { %v2621_v45 = vpop.f32.mrf.mxu2 }
 0x234   : > { %v2622_v25 = vadd.f32 %v2621_v45, %v9374_v46  ;;  %v2710_v37 = vpop.f32.mrf.mxu3  ;;  %v9380_v27 = vpack.c.bf16 %v4328_v24, %v4324_v47 }
 0x235   : > { %v2516_v20 = vpop.f32.mrf.mxu0 }
 0x236   : > { %12307 = vst [vmem:[#allocation69_spill] sm:$0xff] %v9380_v27  ;;  %v2711_v38 = vadd.f32 %v2710_v37, %v2622_v25  ;;  %v2517_v50 = vadd.f32 %v2516_v20, %v2428_v35  ;;  %v2605_v43 = vpop.f32.mrf.mxu1 }
 0x238   : > { %v2606_v63 = vadd.f32 %v2605_v43, %v2517_v50  ;;  %2663 = vmatmul.bf16.gmra.mxu2 %v12308_v9  ;;  %2831 = vmatmul.bf16.gmra.mxu0 %v12309_v13 }
 0x239   : > { %2752 = vmatmul.bf16.gmra.mxu3 %v12310_v16  ;;  %2920 = vmatmul.bf16.gmra.mxu1 %v12311_v28 }
 0x23a   : > { %v4332_v35 = vmax.f32 %v2606_v63, 0.0  ;;  %v12316_v63 = vld [vmem:[#allocation73_spill] sm:$0xff] }
 0x23b   : > { %v2624_v48 = vpop.f32.mrf.mxu2 }
 0x23c   : > { %v2625_v26 = vadd.f32 %v2624_v48, %v9374_v46  ;;  %v2713_v61 = vpop.f32.mrf.mxu3  ;;  %v12313_v48 = vld [vmem:[#allocation11_spill] sm:$0xff] }
 0x23d   : > { %v2518_v53 = vpop.f32.mrf.mxu0 }
 0x23e   : > { %v2714_v33 = vadd.f32 %v2713_v61, %v2625_v26  ;;  %v2519_v18 = vadd.f32 %v2518_v53, %v2430_v56  ;;  %v2607_v47 = vpop.f32.mrf.mxu1  ;;  %v12314_v26 = vld [vmem:[#allocation71_spill] sm:$0xff]  ;;  %v12315_v56 = vld [vmem:[#allocation13_spill] sm:$0xff] }
 0x23f   : > { %v7827_v61 = vld [vmem:[%s11914_s1 + $0x4e4] sm:$0xf]  ;;  %v7111_v53 = vld [vmem:[%s11914_s1 + $0x4f0] sm:$0xf0] }
 0x240   : > { %v2608_v24 = vadd.f32 %v2607_v47, %v2519_v18 }
 0x242   : > { %v4336_v20 = vmax.f32 %v2608_v24, 0.0 }
 0x243   : > { %v2626_v43 = vpop.f32.mrf.mxu2 }
 0x244   : > { %v2627_v50 = vadd.f32 %v2626_v43, %v9374_v46  ;;  %v2715_v45 = vpop.f32.mrf.mxu3  ;;  %v9388_v25 = vpack.c.bf16 %v4336_v20, %v4332_v35  ;;  %v7859_v43 = vld [vmem:[%s11914_s1 + $0x5e4] sm:$0xf] }
 0x245   : > { %v2797_v37 = vpop.f32.mrf.mxu0 }
 0x246   : > { %12312 = vst [vmem:[#allocation70_spill] sm:$0xff] %v9388_v25  ;;  %v2716_v27 = vadd.f32 %v2715_v45, %v2627_v50  ;;  %v2798_v28 = vadd.f32 %v2797_v37, %v2709_v14  ;;  %v2886_v13 = vpop.f32.mrf.mxu1  ;;  %v7114_v14 = vor.u32 %v7827_v61, %v7111_v53  ;;  %v7239_v50 = vld [vmem:[%s11914_s1 + $0x5f0] sm:$0xf0] }
 0x247   : > { %v7242_v45 = vor.u32 %v7859_v43, %v7239_v50  ;;  %v12317_v25 = vld [vmem:[#allocation15_spill] sm:$0xff]  ;;  %v12320_v43 = vld [vmem:[#allocation78_spill] sm:$0xff] }
 0x248   : > { %v9390_v1 = vadd.f32 %v2886_v13, %v2798_v28  ;;  %2668 = vmatmul.bf16.gmra.mxu2 %v12313_v48  ;;  %2836 = vmatmul.bf16.gmra.mxu0 %v12314_v26  ;;  %v12319_v26 = vld [vmem:[#allocation17_spill] sm:$0xff] }
 0x249   : > { %2757 = vmatmul.bf16.gmra.mxu3 %v12315_v56  ;;  %2925 = vmatmul.bf16.gmra.mxu1 %v12316_v63  ;;  %v12318_v63 = vld [vmem:[#allocation76_spill] sm:$0xff] }
 0x24a   : > { %2966 = vmatpush.bf16.msrb.mxu2 %v7114_v14  ;;  %3055 = vmatpush.bf16.msrb.mxu3 %v7242_v45 }
 0x24b   : > { %v2629_v18 = vpop.f32.mrf.mxu2 }
 0x24c   : > { %v2630_v13 = vadd.f32 %v2629_v18, %v9374_v46  ;;  %v2718_v28 = vpop.f32.mrf.mxu3 }
 0x24d   : > { %v2799_v47 = vpop.f32.mrf.mxu0 }
 0x24e   : > { %v2719_v24 = vadd.f32 %v2718_v28, %v2630_v13  ;;  %v2800_v35 = vadd.f32 %v2799_v47, %v2711_v38  ;;  %v2888_v20 = vpop.f32.mrf.mxu1 }
 0x250   : > { %v9409_v37 = vadd.f32 %v2888_v20, %v2800_v35 }
 0x253   : > { %v2631_v61 = vpop.f32.mrf.mxu2 }
 0x254   : > { %v2632_v53 = vadd.f32 %v2631_v61, %v9374_v46  ;;  %v2720_v14 = vpop.f32.mrf.mxu3 }
 0x255   : > { %v2802_v18 = vpop.f32.mrf.mxu0 }
 0x256   : > { %v2721_v13 = vadd.f32 %v2720_v14, %v2632_v53  ;;  %v2803_v38 = vadd.f32 %v2802_v18, %v2714_v33  ;;  %v2891_v28 = vpop.f32.mrf.mxu1 }
 0x258   : > { %v9412_v47 = vadd.f32 %v2891_v28, %v2803_v38  ;;  %2673 = vmatmul.bf16.gmra.mxu2 %v12317_v25  ;;  %2841 = vmatmul.bf16.gmra.mxu0 %v12318_v63 }
 0x259   : > { %2762 = vmatmul.bf16.gmra.mxu3 %v12319_v26  ;;  %2930 = vmatmul.bf16.gmra.mxu1 %v12320_v43 }
 0x25b   : > { %v2634_v35 = vpop.f32.mrf.mxu2 }
 0x25c   : > { %v2635_v20 = vadd.f32 %v2634_v35, %v9374_v46  ;;  %v2723_v50 = vpop.f32.mrf.mxu3  ;;  %v12322_v35 = vld [vmem:[#allocation80_spill] sm:$0xff] }
 0x25d   : > { %v2804_v45 = vpop.f32.mrf.mxu0 }
 0x25e   : > { %v2724_v61 = vadd.f32 %v2723_v50, %v2635_v20  ;;  %v2805_v62 = vadd.f32 %v2804_v45, %v2716_v27  ;;  %v2893_v53 = vpop.f32.mrf.mxu1  ;;  %v12323_v20 = vld [vmem:[#allocation21_spill] sm:$0xff]  ;;  %v12324_v27 = vld [vmem:[#allocation82_spill] sm:$0xff]  ;;  %v7095_v50 = vld [vmem:[%s11914_s1 + $0x4d0] sm:$0xf0] }
 0x260   : > { %v9419_v33 = vadd.f32 %v2893_v53, %v2805_v62  ;;  %v7823_v62 = vld [vmem:[%s11914_s1 + $0x4c4] sm:$0xf] }
 0x263   : > { %v2636_v14 = vpop.f32.mrf.mxu2 }
 0x264   : > { %v2637_v18 = vadd.f32 %v2636_v14, %v9374_v46  ;;  %v2725_v38 = vpop.f32.mrf.mxu3 }
 0x265   : > { %v2807_v28 = vpop.f32.mrf.mxu0 }
 0x266   : > { %v9422_v63 = vadd.f32 %v2725_v38, %v2637_v18  ;;  %v2808_v15 = vadd.f32 %v2807_v28, %v2719_v24  ;;  %v2896_v12 = vpop.f32.mrf.mxu1  ;;  %v7098_v24 = vor.u32 %v7823_v62, %v7095_v50  ;;  %v7819_v62 = vld [vmem:[%s11914_s1 + $0x4a4] sm:$0xf]  ;;  %v7079_v50 = vld [vmem:[%s11914_s1 + $0x4b0] sm:$0xf0] }
 0x268   : > { %v9424_v43 = vadd.f32 %v2896_v12, %v2808_v15  ;;  %2678 = vmatmul.bf16.gmra.mxu2 %v12321_v44  ;;  %2846 = vmatmul.bf16.gmra.mxu0 %v12322_v35  ;;  %v7855_v12 = vld [vmem:[%s11914_s1 + $0x5c4] sm:$0xf]  ;;  %v7223_v15 = vld [vmem:[%s11914_s1 + $0x5d0] sm:$0xf0] }
 0x269   : > { %2767 = vmatmul.bf16.gmra.mxu3 %v12323_v20  ;;  %2935 = vmatmul.bf16.gmra.mxu1 %v12324_v27  ;;  %v7226_v18 = vor.u32 %v7855_v12, %v7223_v15  ;;  %v7082_v12 = vor.u32 %v7819_v62, %v7079_v50  ;;  %v7191_v50 = vld [vmem:[%s11914_s1 + $0x590] sm:$0xf0]  ;;  %v6541_v20 = vld [vmem:[%s11914_s1 + $0x68] sm:$0xf] }
 0x26a   : > { %2967 = vmatpush.bf16.msrb.mxu2 %v7098_v24 }
 0x26b   : > { %v2639_v45 = vpop.f32.mrf.mxu2  ;;  %3056 = vmatpush.bf16.msrb.mxu3 %v7226_v18  ;;  %v7063_v18 = vld [vmem:[%s11914_s1 + $0x490] sm:$0xf0] }
 0x26c   : > { %v2640_v53 = vadd.f32 %v2639_v45, %v9374_v46  ;;  %v2728_v14 = vpop.f32.mrf.mxu3  ;;  %v7851_v45 = vld [vmem:[%s11914_s1 + $0x5a4] sm:$0xf] }
 0x26d   : > { %v2809_v38 = vpop.f32.mrf.mxu0 }
 0x26e   : > { %v9443_v28 = vadd.f32 %v2728_v14, %v2640_v53  ;;  %v2810_v27 = vadd.f32 %v2809_v38, %v2721_v13  ;;  %v2898_v35 = vpop.f32.mrf.mxu1  ;;  %v7207_v13 = vld [vmem:[%s11914_s1 + $0x5b0] sm:$0xf0]  ;;  %2968 = vmatpush.bf16.msrb.mxu2 %v7082_v12  ;;  %v7815_v14 = vld [vmem:[%s11914_s1 + $0x484] sm:$0xf] }
 0x26f   : > { %v7210_v15 = vor.u32 %v7851_v45, %v7207_v13  ;;  %v7066_v62 = vor.u32 %v7815_v14, %v7063_v18  ;;  %v7843_v14 = vld [vmem:[%s11914_s1 + $0x564] sm:$0xf] }
 0x270   : > { %v9454_v24 = vadd.f32 %v2898_v35, %v2810_v27  ;;  %v7847_v35 = vld [vmem:[%s11914_s1 + $0x584] sm:$0xf] }
 0x271   : > { %3057 = vmatpush.bf16.msrb.mxu3 %v7210_v15  ;;  %v7194_v12 = vor.u32 %v7847_v35, %v7191_v50  ;;  %v12325_v35 = vld [vmem:[#allocation23_spill] sm:$0xff] }
 0x272   : > { %2969 = vmatpush.bf16.msrb.mxu2 %v7066_v62  ;;  %v12327_v62 = vld [vmem:[#allocation87_spill] sm:$0xff] }
 0x273   : > { %v2641_v53 = vpop.f32.mrf.mxu2 }
 0x274   : > { %v2642_v27 = vadd.f32 %v2641_v53, %v9374_v46  ;;  %v2730_v38 = vpop.f32.mrf.mxu3  ;;  %v7047_v53 = vld [vmem:[%s11914_s1 + $0x470] sm:$0xf0] }
 0x275   : > { %v2812_v45 = vpop.f32.mrf.mxu0  ;;  %3058 = vmatpush.bf16.msrb.mxu3 %v7194_v12  ;;  %v7839_v12 = vld [vmem:[%s11914_s1 + $0x544] sm:$0xf] }
 0x276   : > { %v9472_v13 = vadd.f32 %v2730_v38, %v2642_v27  ;;  %v2813_v15 = vadd.f32 %v2812_v45, %v2724_v61  ;;  %v2901_v39 = vpop.f32.mrf.mxu1  ;;  %v7050_v61 = vor.u32 %v7811_v42, %v7047_v53  ;;  %v7175_v27 = vld [vmem:[%s11914_s1 + $0x570] sm:$0xf0]  ;;  %v12326_v38 = vld [vmem:[#allocation25_spill] sm:$0xff] }
 0x277   : > { %v7178_v50 = vor.u32 %v7843_v14, %v7175_v27  ;;  %v7031_v42 = vld [vmem:[%s11914_s1 + $0x450] sm:$0xf0] }
 0x278   : > { %v9483_v18 = vadd.f32 %v2901_v39, %v2813_v15  ;;  %2683 = vmatmul.bf16.gmra.mxu2 %v12325_v35  ;;  %2851 = vmatmul.bf16.gmra.mxu0 %v8965_v41  ;;  %v7807_v39 = vld [vmem:[%s11914_s1 + $0x444] sm:$0xf]  ;;  %v7159_v14 = vld [vmem:[%s11914_s1 + $0x550] sm:$0xf0] }
 0x279   : > { %2772 = vmatmul.bf16.gmra.mxu3 %v12326_v38  ;;  %2940 = vmatmul.bf16.gmra.mxu1 %v12327_v62  ;;  %v7034_v62 = vor.u32 %v7807_v39, %v7031_v42  ;;  %v7162_v27 = vor.u32 %v7839_v12, %v7159_v14  ;;  %v7803_v35 = vld [vmem:[%s11914_s1 + $0x424] sm:$0xf]  ;;  %v6999_v14 = vld [vmem:[%s11914_s1 + $0x410] sm:$0xf0] }
 0x27a   : > { %2970 = vmatpush.bf16.msrb.mxu2 %v7050_v61  ;;  %3059 = vmatpush.bf16.msrb.mxu3 %v7178_v50  ;;  %v7835_v39 = vld [vmem:[%s11914_s1 + $0x524] sm:$0xf] }
 0x27b   : > { %v2644_v45 = vpop.f32.mrf.mxu2 }
 0x27c   : > { %v2645_v15 = vadd.f32 %v2644_v45, %v9374_v46  ;;  %v2733_v53 = vpop.f32.mrf.mxu3  ;;  %v7015_v45 = vld [vmem:[%s11914_s1 + $0x430] sm:$0xf0] }
 0x27d   : > { %v2814_v61 = vpop.f32.mrf.mxu0  ;;  %v7018_v12 = vor.u32 %v7803_v35, %v7015_v45 }
 0x27e   : > { %v9505_v50 = vadd.f32 %v2733_v53, %v2645_v15  ;;  %v2815_v41 = vadd.f32 %v2814_v61, %v9422_v63  ;;  %v2903_v38 = vpop.f32.mrf.mxu1  ;;  %2971 = vmatpush.bf16.msrb.mxu2 %v7034_v62  ;;  %3060 = vmatpush.bf16.msrb.mxu3 %v7162_v27  ;;  %v7143_v63 = vld [vmem:[%s11914_s1 + $0x530] sm:$0xf0]  ;;  %v7799_v53 = vld [vmem:[%s11914_s1 + $0x404] sm:$0xf] }
 0x27f   : > { %v7146_v62 = vor.u32 %v7835_v39, %v7143_v63  ;;  %v7002_v61 = vor.u32 %v7799_v53, %v6999_v14  ;;  %v7127_v27 = vld [vmem:[%s11914_s1 + $0x510] sm:$0xf0]  ;;  %v6733_v53 = vld [vmem:[%s11914_s1 + $0x1e8] sm:$0xf] }
 0x280   : > { %v9517_v42 = vadd.f32 %v2903_v38, %v2815_v41  ;;  %v7831_v41 = vld [vmem:[%s11914_s1 + $0x504] sm:$0xf] }
 0x281   : > { %v7130_v39 = vor.u32 %v7831_v41, %v7127_v27  ;;  %v12328_v41 = vld [vmem:[#allocation27_spill] sm:$0xff] }
 0x282   : > { %2972 = vmatpush.bf16.msrb.mxu2 %v7018_v12  ;;  %3061 = vmatpush.bf16.msrb.mxu3 %v7146_v62 }
 0x283   : > { %v2646_v15 = vpop.f32.mrf.mxu2 }
 0x284   : > { %v2647_v35 = vadd.f32 %v2646_v15, %v9374_v46  ;;  %v2735_v38 = vpop.f32.mrf.mxu3  ;;  %v7702_v15 = vld [vmem:[%s11914_s1 + $0xf4] sm:$0xf0] }
 0x285   : > { %v2817_v45 = vpop.f32.mrf.mxu0 }
 0x286   : > { %v9535_v12 = vadd.f32 %v2735_v38, %v2647_v35  ;;  %v2818_v63 = vadd.f32 %v2817_v45, %v9443_v28  ;;  %v2906_v62 = vpop.f32.mrf.mxu1  ;;  %2973 = vmatpush.bf16.msrb.mxu2 %v7002_v61  ;;  %3062 = vmatpush.bf16.msrb.mxu3 %v7130_v39  ;;  %v6606_v28 = vor.u32 %v7702_v15, %v6605_v0  ;;  %v7734_v35 = vld [vmem:[%s11914_s1 + $0x1f4] sm:$0xf0]  ;;  %v12329_v38 = vld [vmem:[#allocation29_spill] sm:$0xff]  ;;  %v6589_v39 = vld [vmem:[%s11914_s1 + $0xc8] sm:$0xf] }
 0x287   : > { %v12330_v61 = vld [vmem:[#allocation92_spill] sm:$0xff]  ;;  %v6734_v27 = vor.u32 %v7734_v35, %v6733_v53 }
 0x288   : > { %v9547_v14 = vadd.f32 %v2906_v62, %v2818_v63  ;;  %2688 = vmatmul.bf16.gmra.mxu2 %v12328_v41  ;;  %2856 = vmatmul.bf16.gmra.mxu0 %v8990_v36  ;;  %v7698_v0 = vld [vmem:[%s11914_s1 + $0xd4] sm:$0xf0]  ;;  %v6717_v63 = vld [vmem:[%s11914_s1 + $0x1c8] sm:$0xf] }
 0x289   : > { %2777 = vmatmul.bf16.gmra.mxu3 %v12329_v38  ;;  %2945 = vmatmul.bf16.gmra.mxu1 %v12330_v61  ;;  %v6590_v61 = vor.u32 %v7698_v0, %v6589_v39  ;;  %v7730_v53 = vld [vmem:[%s11914_s1 + $0x1d4] sm:$0xf0]  ;;  %v6573_v41 = vld [vmem:[%s11914_s1 + $0xa8] sm:$0xf] }
 0x28a   : > { %3144 = vmatpush.bf16.msrb.mxu0 %v6606_v28  ;;  %3233 = vmatpush.bf16.msrb.mxu1 %v6734_v27  ;;  %v6718_v35 = vor.u32 %v7730_v53, %v6717_v63  ;;  %v6701_v39 = vld [vmem:[%s11914_s1 + $0x1a8] sm:$0xf]  ;;  %v7690_v53 = vld [vmem:[%s11914_s1 + $0x94] sm:$0xf0] }
 0x28b   : > { %v2649_v45 = vpop.f32.mrf.mxu2 }
 0x28c   : > { %v2650_v62 = vadd.f32 %v2649_v45, %v9374_v46  ;;  %v2738_v15 = vpop.f32.mrf.mxu3  ;;  %v7694_v45 = vld [vmem:[%s11914_s1 + $0xb4] sm:$0xf0] }
 0x28d   : > { %v2819_v28 = vpop.f32.mrf.mxu0  ;;  %v6574_v63 = vor.u32 %v7694_v45, %v6573_v41 }
 0x28e   : > { %v9569_v27 = vadd.f32 %v2738_v15, %v2650_v62  ;;  %v2820_v36 = vadd.f32 %v2819_v28, %v9472_v13  ;;  %v2908_v38 = vpop.f32.mrf.mxu1  ;;  %3145 = vmatpush.bf16.msrb.mxu0 %v6590_v61  ;;  %3234 = vmatpush.bf16.msrb.mxu1 %v6718_v35  ;;  %v7726_v13 = vld [vmem:[%s11914_s1 + $0x1b4] sm:$0xf0]  ;;  %v6557_v15 = vld [vmem:[%s11914_s1 + $0x88] sm:$0xf] }
 0x28f   : > { %v6702_v61 = vor.u32 %v7726_v13, %v6701_v39  ;;  %v6558_v28 = vor.u32 %v7690_v53, %v6557_v15  ;;  %v7722_v35 = vld [vmem:[%s11914_s1 + $0x194] sm:$0xf0]  ;;  %v6669_v15 = vld [vmem:[%s11914_s1 + $0x168] sm:$0xf] }
 0x290   : > { %v9581_v0 = vadd.f32 %v2908_v38, %v2820_v36  ;;  %v6685_v36 = vld [vmem:[%s11914_s1 + $0x188] sm:$0xf] }
 0x291   : > { %v6686_v39 = vor.u32 %v7722_v35, %v6685_v36  ;;  %v12331_v36 = vld [vmem:[#allocation31_spill] sm:$0xff] }
 0x292   : > { %3146 = vmatpush.bf16.msrb.mxu0 %v6574_v63  ;;  %3235 = vmatpush.bf16.msrb.mxu1 %v6702_v61 }
 0x293   : > { %v2651_v62 = vpop.f32.mrf.mxu2 }
 0x294   : > { %v2652_v41 = vadd.f32 %v2651_v62, %v9374_v46  ;;  %v2740_v38 = vpop.f32.mrf.mxu3  ;;  %v7686_v62 = vld [vmem:[%s11914_s1 + $0x74] sm:$0xf0] }
 0x295   : > { %v2822_v45 = vpop.f32.mrf.mxu0 }
 0x296   : > { %v9599_v63 = vadd.f32 %v2740_v38, %v2652_v41  ;;  %v2823_v13 = vadd.f32 %v2822_v45, %v9505_v50  ;;  %v2911_v61 = vpop.f32.mrf.mxu1  ;;  %3147 = vmatpush.bf16.msrb.mxu0 %v6558_v28  ;;  %3236 = vmatpush.bf16.msrb.mxu1 %v6686_v39  ;;  %v6542_v50 = vor.u32 %v7686_v62, %v6541_v20  ;;  %v7718_v41 = vld [vmem:[%s11914_s1 + $0x174] sm:$0xf0]  ;;  %v12332_v38 = vld [vmem:[#allocation33_spill] sm:$0xff]  ;;  %v6525_v45 = vld [vmem:[%s11914_s1 + $0x48] sm:$0xf] }
 0x297   : > { %v6670_v28 = vor.u32 %v7718_v41, %v6669_v15  ;;  %v7682_v20 = vld [vmem:[%s11914_s1 + $0x54] sm:$0xf0]  ;;  %v6653_v39 = vld [vmem:[%s11914_s1 + $0x148] sm:$0xf] }
 0x298   : > { %v9611_v53 = vadd.f32 %v2911_v61, %v2823_v13  ;;  %2693 = vmatmul.bf16.gmra.mxu2 %v12331_v36  ;;  %2861 = vmatmul.bf16.gmra.mxu0 %v9042_v2  ;;  %v6526_v62 = vor.u32 %v7682_v20, %v6525_v45  ;;  %v7714_v15 = vld [vmem:[%s11914_s1 + $0x154] sm:$0xf0]  ;;  %v6637_v45 = vld [vmem:[%s11914_s1 + $0x128] sm:$0xf] }
 0x299   : > { %2782 = vmatmul.bf16.gmra.mxu3 %v12332_v38  ;;  %2950 = vmatmul.bf16.gmra.mxu1 %v9061_v6  ;;  %v6654_v41 = vor.u32 %v7714_v15, %v6653_v39  ;;  %v6509_v38 = vld [vmem:[%s11914_s1 + $0x28] sm:$0xf]  ;;  %v7674_v15 = vld [vmem:[%s11914_s1 + $0x14] sm:$0xf0] }
 0x29a   : > { %3148 = vmatpush.bf16.msrb.mxu0 %v6542_v50  ;;  %3237 = vmatpush.bf16.msrb.mxu1 %v6670_v28 }
 0x29b   : > { %v2654_v35 = vpop.f32.mrf.mxu2 }
 0x29c   : > { %v2655_v13 = vadd.f32 %v2654_v35, %v9374_v46  ;;  %v2743_v61 = vpop.f32.mrf.mxu3  ;;  %v7678_v35 = vld [vmem:[%s11914_s1 + $0x34] sm:$0xf0] }
 0x29d   : > { %v2824_v50 = vpop.f32.mrf.mxu0  ;;  %v6510_v39 = vor.u32 %v7678_v35, %v6509_v38 }
 0x29e   : > { %v2744_v28 = vadd.f32 %v2743_v61, %v2655_v13  ;;  %v2825_v6 = vadd.f32 %v2824_v50, %v9535_v12  ;;  %v2913_v2 = vpop.f32.mrf.mxu1  ;;  %3149 = vmatpush.bf16.msrb.mxu0 %v6526_v62  ;;  %3238 = vmatpush.bf16.msrb.mxu1 %v6654_v41  ;;  %v7710_v12 = vld [vmem:[%s11914_s1 + $0x134] sm:$0xf0]  ;;  %v6493_v62 = vld [vmem:[%s11914_s1 + $0x8] sm:$0xf] }
 0x29f   : > { %v6638_v13 = vor.u32 %v7710_v12, %v6637_v45  ;;  %v6494_v50 = vor.u32 %v7674_v15, %v6493_v62  ;;  %v7706_v41 = vld [vmem:[%s11914_s1 + $0x114] sm:$0xf0] }
 0x2a0   : > { %v9643_v20 = vadd.f32 %v2913_v2, %v2825_v6  ;;  %v6621_v2 = vld [vmem:[%s11914_s1 + $0x108] sm:$0xf] }
 0x2a1   : > { %v6622_v45 = vor.u32 %v7706_v41, %v6621_v2 }
 0x2a2   : > { %3150 = vmatpush.bf16.msrb.mxu0 %v6510_v39  ;;  %3239 = vmatpush.bf16.msrb.mxu1 %v6638_v13 }
 0x2a3   : > { %v2656_v61 = vpop.f32.mrf.mxu2 }
 0x2a4   : > { %v2657_v6 = vadd.f32 %v2656_v61, %v9374_v46  ;;  %v2745_v38 = vpop.f32.mrf.mxu3  ;;  %v12334_v61 = vld [vmem:[#allocation45_spill] sm:$0xff] }
 0x2a5   : > { %v2827_v35 = vpop.f32.mrf.mxu0 }
 0x2a6   : > { %v2746_v39 = vadd.f32 %v2745_v38, %v2657_v6  ;;  %v2828_v12 = vadd.f32 %v2827_v35, %v9569_v27  ;;  %v2916_v13 = vpop.f32.mrf.mxu1  ;;  %3151 = vmatpush.bf16.msrb.mxu0 %v6494_v50  ;;  %3240 = vmatpush.bf16.msrb.mxu1 %v6622_v45 }
 0x2a8   : > { %v9662_v36 = vadd.f32 %v2916_v13, %v2828_v12  ;;  %2866 = vmatmul.bf16.gmra.mxu0 %v9120_v60  ;;  %2974 = vmatmul.bf16.vlgmr.msrb.gmra.mxu2 %v12333_v30 }
 0x2a9   : > { %2955 = vmatmul.bf16.gmra.mxu1 %v9139_v55  ;;  %3063 = vmatmul.bf16.vlgmr.msrb.gmra.mxu3 %v12334_v61 }
 0x2ab   : > { %v2659_v62 = vpop.f32.mrf.mxu2 }
 0x2ac   : > { %v2660_v15 = vadd.f32 %v2659_v62, %v9374_v46  ;;  %v2748_v2 = vpop.f32.mrf.mxu3  ;;  %v12336_v62 = vld [vmem:[#allocation47_spill] sm:$0xff] }
 0x2ad   : > { %v2829_v6 = vpop.f32.mrf.mxu0 }
 0x2ae   : > { %v2749_v38 = vadd.f32 %v2748_v2, %v2660_v15  ;;  %v2830_v27 = vadd.f32 %v2829_v6, %v9599_v63  ;;  %v2918_v50 = vpop.f32.mrf.mxu1  ;;  %v12337_v63 = vld [vmem:[#allocation49_spill] sm:$0xff] }
 0x2b0   : > { %v9670_v41 = vadd.f32 %v2918_v50, %v2830_v27 }
 0x2b3   : > { %v2661_v35 = vpop.f32.mrf.mxu2 }
 0x2b4   : > { %v2662_v45 = vadd.f32 %v2661_v35, %v9374_v46  ;;  %v2750_v12 = vpop.f32.mrf.mxu3 }
 0x2b5   : > { %v2832_v13 = vpop.f32.mrf.mxu0 }
 0x2b6   : > { %v2751_v60 = vadd.f32 %v2750_v12, %v2662_v45  ;;  %v2833_v55 = vadd.f32 %v2832_v13, %v2744_v28  ;;  %v2921_v30 = vpop.f32.mrf.mxu1 }
 0x2b8   : > { %v9673_v61 = vadd.f32 %v2921_v30, %v2833_v55  ;;  %2871 = vmatmul.bf16.gmra.mxu0 %v9198_v34  ;;  %2979 = vmatmul.bf16.gmra.mxu2 %v12336_v62 }
 0x2b9   : > { %2960 = vmatmul.bf16.gmra.mxu1 %v9217_v58  ;;  %3068 = vmatmul.bf16.gmra.mxu3 %v12337_v63  ;;  %v12338_v63 = vld [vmem:[#allocation51_spill] sm:$0xff] }
 0x2ba   : > { %12335 = vst [vmem:[#allocation75_spill] sm:$0xff] %v9673_v61 }
 0x2bb   : > { %v2664_v15 = vpop.f32.mrf.mxu2 }
 0x2bc   : > { %v2665_v2 = vadd.f32 %v2664_v15, %v9374_v46  ;;  %v2753_v6 = vpop.f32.mrf.mxu3  ;;  %v12339_v15 = vld [vmem:[#allocation53_spill] sm:$0xff] }
 0x2bd   : > { %v2834_v27 = vpop.f32.mrf.mxu0 }
 0x2be   : > { %v2754_v50 = vadd.f32 %v2753_v6, %v2665_v2  ;;  %v2835_v35 = vadd.f32 %v2834_v27, %v2746_v39  ;;  %v2923_v45 = vpop.f32.mrf.mxu1 }
 0x2c0   : > { %v9680_v28 = vadd.f32 %v2923_v45, %v2835_v35 }
 0x2c3   : > { %v2666_v55 = vpop.f32.mrf.mxu2 }
 0x2c4   : > { %v2667_v30 = vadd.f32 %v2666_v55, %v9374_v46  ;;  %v2755_v12 = vpop.f32.mrf.mxu3 }
 0x2c5   : > { %v2837_v13 = vpop.f32.mrf.mxu0 }
 0x2c6   : > { %v2756_v34 = vadd.f32 %v2755_v12, %v2667_v30  ;;  %v2838_v62 = vadd.f32 %v2837_v13, %v2749_v38  ;;  %v2926_v58 = vpop.f32.mrf.mxu1 }
 0x2c8   : > { %v9683_v61 = vadd.f32 %v2926_v58, %v2838_v62  ;;  %2984 = vmatmul.bf16.gmra.mxu2 %v12338_v63  ;;  %3152 = vmatmul.bf16.vlgmr.msrb.gmra.mxu0 %v8288_v57 }
 0x2c9   : > { %3073 = vmatmul.bf16.gmra.mxu3 %v12339_v15  ;;  %3241 = vmatmul.bf16.vlgmr.msrb.gmra.mxu1 %v8292_v59  ;;  %v12340_v59 = vld [vmem:[#allocation55_spill] sm:$0xff] }
 0x2cb   : > { %v2669_v39 = vpop.f32.mrf.mxu2 }
 0x2cc   : > { %v2670_v2 = vadd.f32 %v2669_v39, %v9374_v46  ;;  %v2758_v6 = vpop.f32.mrf.mxu3  ;;  %v12341_v39 = vld [vmem:[#allocation57_spill] sm:$0xff] }
 0x2cd   : > { %v2839_v27 = vpop.f32.mrf.mxu0 }
 0x2ce   : > { %v2759_v35 = vadd.f32 %v2758_v6, %v2670_v2  ;;  %v2840_v45 = vadd.f32 %v2839_v27, %v2751_v60  ;;  %v2928_v55 = vpop.f32.mrf.mxu1 }
 0x2d0   : > { %v9690_v38 = vadd.f32 %v2928_v55, %v2840_v45 }
 0x2d3   : > { %v2671_v58 = vpop.f32.mrf.mxu2 }
 0x2d4   : > { %v2672_v62 = vadd.f32 %v2671_v58, %v9374_v46  ;;  %v2760_v30 = vpop.f32.mrf.mxu3 }
 0x2d5   : > { %v2842_v12 = vpop.f32.mrf.mxu0 }
 0x2d6   : > { %v2761_v13 = vadd.f32 %v2760_v30, %v2672_v62  ;;  %v2843_v57 = vadd.f32 %v2842_v12, %v2754_v50  ;;  %v2931_v15 = vpop.f32.mrf.mxu1 }
 0x2d8   : > { %v9693_v63 = vadd.f32 %v2931_v15, %v2843_v57  ;;  %2989 = vmatmul.bf16.gmra.mxu2 %v12340_v59  ;;  %3157 = vmatmul.bf16.gmra.mxu0 %v8308_v5 }
 0x2d9   : > { %3078 = vmatmul.bf16.gmra.mxu3 %v12341_v39  ;;  %3246 = vmatmul.bf16.gmra.mxu1 %v8312_v7  ;;  %v12342_v7 = vld [vmem:[#allocation60_spill] sm:$0xff] }
 0x2db   : > { %v2674_v60 = vpop.f32.mrf.mxu2 }
 0x2dc   : > { %v2675_v2 = vadd.f32 %v2674_v60, %v9374_v46  ;;  %v2763_v6 = vpop.f32.mrf.mxu3  ;;  %v12343_v60 = vld [vmem:[#allocation62_spill] sm:$0xff] }
 0x2dd   : > { %v2844_v27 = vpop.f32.mrf.mxu0 }
 0x2de   : > { %v2764_v45 = vadd.f32 %v2763_v6, %v2675_v2  ;;  %v2845_v55 = vadd.f32 %v2844_v27, %v2756_v34  ;;  %v2933_v58 = vpop.f32.mrf.mxu1 }
 0x2e0   : > { %v9700_v50 = vadd.f32 %v2933_v58, %v2845_v55 }
 0x2e3   : > { %v2676_v57 = vpop.f32.mrf.mxu2 }
 0x2e4   : > { %v2677_v15 = vadd.f32 %v2676_v57, %v9374_v46  ;;  %v2765_v62 = vpop.f32.mrf.mxu3 }
 0x2e5   : > { %v2847_v30 = vpop.f32.mrf.mxu0 }
 0x2e6   : > { %v2766_v12 = vadd.f32 %v2765_v62, %v2677_v15  ;;  %v2848_v5 = vadd.f32 %v2847_v30, %v2759_v35  ;;  %v2936_v39 = vpop.f32.mrf.mxu1 }
 0x2e8   : > { %v9703_v59 = vadd.f32 %v2936_v39, %v2848_v5  ;;  %2994 = vmatmul.bf16.gmra.mxu2 %v12342_v7  ;;  %3162 = vmatmul.bf16.gmra.mxu0 %v8328_v17 }
 0x2e9   : > { %3083 = vmatmul.bf16.gmra.mxu3 %v12343_v60  ;;  %3251 = vmatmul.bf16.gmra.mxu1 %v8332_v19  ;;  %v12344_v19 = vld [vmem:[#allocation66_spill] sm:$0xff] }
 0x2eb   : > { %v2679_v34 = vpop.f32.mrf.mxu2 }
 0x2ec   : > { %v2680_v2 = vadd.f32 %v2679_v34, %v9374_v46  ;;  %v2768_v6 = vpop.f32.mrf.mxu3  ;;  %v12345_v34 = vld [vmem:[#allocation68_spill] sm:$0xff] }
 0x2ed   : > { %v2849_v27 = vpop.f32.mrf.mxu0 }
 0x2ee   : > { %v2769_v55 = vadd.f32 %v2768_v6, %v2680_v2  ;;  %v2850_v58 = vadd.f32 %v2849_v27, %v2761_v13  ;;  %v2938_v57 = vpop.f32.mrf.mxu1 }
 0x2f0   : > { %v9710_v35 = vadd.f32 %v2938_v57, %v2850_v58 }
 0x2f3   : > { %v2681_v5 = vpop.f32.mrf.mxu2 }
 0x2f4   : > { %v2682_v39 = vadd.f32 %v2681_v5, %v9374_v46  ;;  %v2770_v15 = vpop.f32.mrf.mxu3 }
 0x2f5   : > { %v2852_v62 = vpop.f32.mrf.mxu0 }
 0x2f6   : > { %v2771_v30 = vadd.f32 %v2770_v15, %v2682_v39  ;;  %v2853_v17 = vadd.f32 %v2852_v62, %v2764_v45  ;;  %v2941_v60 = vpop.f32.mrf.mxu1 }
 0x2f8   : > { %v9713_v7 = vadd.f32 %v2941_v60, %v2853_v17  ;;  %2999 = vmatmul.bf16.gmra.mxu2 %v12344_v19  ;;  %3167 = vmatmul.bf16.gmra.mxu0 %v8348_v29 }
 0x2f9   : > { %3088 = vmatmul.bf16.gmra.mxu3 %v12345_v34  ;;  %3256 = vmatmul.bf16.gmra.mxu1 %v8352_v31  ;;  %v12346_v31 = vld [vmem:[#allocation72_spill] sm:$0xff] }
 0x2fb   : > { %v2684_v13 = vpop.f32.mrf.mxu2 }
 0x2fc   : > { %v2685_v2 = vadd.f32 %v2684_v13, %v9374_v46  ;;  %v2773_v6 = vpop.f32.mrf.mxu3  ;;  %v12347_v13 = vld [vmem:[#allocation74_spill] sm:$0xff] }
 0x2fd   : > { %v2854_v27 = vpop.f32.mrf.mxu0 }
 0x2fe   : > { %v2774_v58 = vadd.f32 %v2773_v6, %v2685_v2  ;;  %v2855_v57 = vadd.f32 %v2854_v27, %v2766_v12  ;;  %v2943_v5 = vpop.f32.mrf.mxu1 }
 0x300   : > { %v9720_v45 = vadd.f32 %v2943_v5, %v2855_v57 }
 0x303   : > { %v2686_v17 = vpop.f32.mrf.mxu2 }
 0x304   : > { %v2687_v60 = vadd.f32 %v2686_v17, %v9374_v46  ;;  %v2775_v39 = vpop.f32.mrf.mxu3 }
 0x305   : > { %v2857_v15 = vpop.f32.mrf.mxu0 }
 0x306   : > { %v2776_v62 = vadd.f32 %v2775_v39, %v2687_v60  ;;  %v2858_v29 = vadd.f32 %v2857_v15, %v2769_v55  ;;  %v2946_v34 = vpop.f32.mrf.mxu1 }
 0x308   : > { %v9723_v19 = vadd.f32 %v2946_v34, %v2858_v29  ;;  %3004 = vmatmul.bf16.gmra.mxu2 %v12346_v31  ;;  %3172 = vmatmul.bf16.gmra.mxu0 %v8416_v4 }
 0x309   : > { %3093 = vmatmul.bf16.gmra.mxu3 %v12347_v13  ;;  %3261 = vmatmul.bf16.gmra.mxu1 %v8420_v10  ;;  %v12348_v10 = vld [vmem:[#allocation77_spill] sm:$0xff] }
 0x30b   : > { %v2689_v12 = vpop.f32.mrf.mxu2 }
 0x30c   : > { %v2690_v2 = vadd.f32 %v2689_v12, %v9374_v46  ;;  %v2778_v6 = vpop.f32.mrf.mxu3  ;;  %v12349_v12 = vld [vmem:[#allocation79_spill] sm:$0xff] }
 0x30d   : > { %v2859_v27 = vpop.f32.mrf.mxu0 }
 0x30e   : > { %v2779_v57 = vadd.f32 %v2778_v6, %v2690_v2  ;;  %v2860_v5 = vadd.f32 %v2859_v27, %v2771_v30  ;;  %v2948_v17 = vpop.f32.mrf.mxu1 }
 0x310   : > { %v9730_v55 = vadd.f32 %v2948_v17, %v2860_v5 }
 0x313   : > { %v2691_v29 = vpop.f32.mrf.mxu2 }
 0x314   : > { %v2692_v34 = vadd.f32 %v2691_v29, %v9374_v46  ;;  %v2780_v60 = vpop.f32.mrf.mxu3 }
 0x315   : > { %v2862_v39 = vpop.f32.mrf.mxu0 }
 0x316   : > { %v2781_v15 = vadd.f32 %v2780_v60, %v2692_v34  ;;  %v2863_v4 = vadd.f32 %v2862_v39, %v2774_v58  ;;  %v2951_v13 = vpop.f32.mrf.mxu1 }
 0x318   : > { %v9733_v31 = vadd.f32 %v2951_v13, %v2863_v4  ;;  %3009 = vmatmul.bf16.gmra.mxu2 %v12348_v10  ;;  %3177 = vmatmul.bf16.gmra.mxu0 %v8484_v52 }
 0x319   : > { %3098 = vmatmul.bf16.gmra.mxu3 %v12349_v12  ;;  %3266 = vmatmul.bf16.gmra.mxu1 %v12284_v32  ;;  %v12350_v32 = vld [vmem:[#allocation81_spill] sm:$0xff] }
 0x31b   : > { %v2694_v30 = vpop.f32.mrf.mxu2 }
 0x31c   : > { %v2695_v2 = vadd.f32 %v2694_v30, %v9374_v46  ;;  %v2783_v6 = vpop.f32.mrf.mxu3  ;;  %v12351_v30 = vld [vmem:[#allocation83_spill] sm:$0xff] }
 0x31d   : > { %v2864_v27 = vpop.f32.mrf.mxu0 }
 0x31e   : > { %v2784_v5 = vadd.f32 %v2783_v6, %v2695_v2  ;;  %v2865_v17 = vadd.f32 %v2864_v27, %v2776_v62  ;;  %v2953_v29 = vpop.f32.mrf.mxu1 }
 0x320   : > { %v9740_v58 = vadd.f32 %v2953_v29, %v2865_v17 }
 0x323   : > { %v2696_v4 = vpop.f32.mrf.mxu2 }
 0x324   : > { %v2697_v13 = vadd.f32 %v2696_v4, %v9374_v46  ;;  %v2785_v34 = vpop.f32.mrf.mxu3 }
 0x325   : > { %v2867_v60 = vpop.f32.mrf.mxu0 }
 0x326   : > { %v2786_v39 = vadd.f32 %v2785_v34, %v2697_v13  ;;  %v2868_v52 = vadd.f32 %v2867_v60, %v2779_v57  ;;  %v2956_v12 = vpop.f32.mrf.mxu1 }
 0x328   : > { %v9743_v10 = vadd.f32 %v2956_v12, %v2868_v52  ;;  %3014 = vmatmul.bf16.gmra.mxu2 %v12350_v32  ;;  %3182 = vmatmul.bf16.gmra.mxu0 %v12289_v22 }
 0x329   : > { %3103 = vmatmul.bf16.gmra.mxu3 %v12351_v30  ;;  %3271 = vmatmul.bf16.gmra.mxu1 %v12291_v11 }
 0x32b   : > { %v2975_v62 = vpop.f32.mrf.mxu2 }
 0x32c   : > { %v2976_v2 = vadd.f32 %v2975_v62, %v9390_v1  ;;  %v3064_v6 = vpop.f32.mrf.mxu3  ;;  %v12352_v1 = vld [vmem:[#allocation86_spill] sm:$0xff] }
 0x32d   : > { %v2869_v46 = vpop.f32.mrf.mxu0 }
 0x32e   : > { %v3065_v27 = vadd.f32 %v3064_v6, %v2976_v2  ;;  %v2870_v17 = vadd.f32 %v2869_v46, %v2781_v15  ;;  %v2958_v29 = vpop.f32.mrf.mxu1  ;;  %v12353_v15 = vld [vmem:[#allocation88_spill] sm:$0xff] }
 0x330   : > { %v9750_v57 = vadd.f32 %v2958_v29, %v2870_v17  ;;  %v4213_v30 = vmax.f32 %v3065_v27, 0.0  ;;  %v9765_v29 = vperm.slane %v9371_v21, 2  ;;  %v6861_v21 = vld [vmem:[%s11914_s1 + $0x2e8] sm:$0xf] }
 0x333   : > { %v2977_v52 = vpop.f32.mrf.mxu2 }
 0x334   : > { %v2978_v12 = vadd.f32 %v2977_v52, %v9409_v37  ;;  %v3066_v4 = vpop.f32.mrf.mxu3 }
 0x335   : > { %v2872_v13 = vpop.f32.mrf.mxu0 }
 0x336   : > { %v3067_v34 = vadd.f32 %v3066_v4, %v2978_v12  ;;  %v2873_v60 = vadd.f32 %v2872_v13, %v2784_v5  ;;  %v2961_v22 = vpop.f32.mrf.mxu1 }
 0x338   : > { %v4217_v11 = vmax.f32 %v3067_v34, 0.0  ;;  %v9753_v32 = vadd.f32 %v2961_v22, %v2873_v60  ;;  %3019 = vmatmul.bf16.gmra.mxu2 %v12352_v1  ;;  %3187 = vmatmul.bf16.gmra.mxu0 %v12296_v54 }
 0x339   : > { %3108 = vmatmul.bf16.gmra.mxu3 %v12353_v15  ;;  %3276 = vmatmul.bf16.gmra.mxu1 %v12298_v8 }
 0x33a   : > { %v9759_v62 = vpack.c.bf16 %v4217_v11, %v4213_v30 }
 0x33b   : > { %v2980_v37 = vpop.f32.mrf.mxu2 }
 0x33c   : > { %12354 = vst [vmem:[#allocation86_spill] sm:$0xff] %v9759_v62  ;;  %v2981_v2 = vadd.f32 %v2980_v37, %v9412_v47  ;;  %v3069_v6 = vpop.f32.mrf.mxu3 }
 0x33d   : > { %v2874_v5 = vpop.f32.mrf.mxu0 }
 0x33e   : > { %v3070_v46 = vadd.f32 %v3069_v6, %v2981_v2  ;;  %v2875_v27 = vadd.f32 %v2874_v5, %v2786_v39  ;;  %v2963_v17 = vpop.f32.mrf.mxu1  ;;  %v12355_v39 = vld [vmem:[#allocation90_spill] sm:$0xff]  ;;  %v12356_v2 = vld [vmem:[#allocation93_spill] sm:$0xff] }
 0x340   : > { %v9762_v22 = vadd.f32 %v2963_v17, %v2875_v27  ;;  %v4221_v47 = vmax.f32 %v3070_v46, 0.0 }
 0x343   : > { %v2982_v52 = vpop.f32.mrf.mxu2 }
 0x344   : > { %v2983_v12 = vadd.f32 %v2982_v52, %v9419_v33  ;;  %v3071_v4 = vpop.f32.mrf.mxu3  ;;  %v7766_v33 = vld [vmem:[%s11914_s1 + $0x2f4] sm:$0xf0] }
 0x345   : > { %v3153_v13 = vpop.f32.mrf.mxu0  ;;  %v6862_v6 = vor.u32 %v7766_v33, %v6861_v21 }
 0x346   : > { %v3072_v11 = vadd.f32 %v3071_v4, %v2983_v12  ;;  %v3154_v30 = vadd.f32 %v3153_v13, %v9765_v29  ;;  %v3242_v34 = vpop.f32.mrf.mxu1 }
 0x347   : > { %3322 = vmatpush.bf16.msra.mxu2 %v6862_v6 }
 0x348   : > { %v4225_v60 = vmax.f32 %v3072_v11, 0.0  ;;  %v9769_v37 = vadd.f32 %v3242_v34, %v3154_v30  ;;  %3024 = vmatmul.bf16.gmra.mxu2 %v12355_v39  ;;  %3192 = vmatmul.bf16.gmra.mxu0 %v12303_v3  ;;  %v6989_v30 = vld [vmem:[%s11914_s1 + $0x3e8] sm:$0xf]  ;;  %v7798_v34 = vld [vmem:[%s11914_s1 + $0x3f4] sm:$0xf0]  ;;  %v12374_v3 = vld [vmem:[#allocation27_spill] sm:$0xff] }
 0x349   : > { %3113 = vmatmul.bf16.gmra.mxu3 %v12356_v2  ;;  %3281 = vmatmul.bf16.gmra.mxu1 %v12305_v51 }
 0x34a   : > { %v9781_v5 = vpack.c.bf16 %v4225_v60, %v4221_v47  ;;  %v6990_v47 = vor.u32 %v7798_v34, %v6989_v30 }
 0x34b   : > { %v2985_v46 = vpop.f32.mrf.mxu2 }
 0x34c   : > { %12357 = vst [vmem:[#allocation90_spill] sm:$0xff] %v9781_v5  ;;  %v2986_v27 = vadd.f32 %v2985_v46, %v9424_v43  ;;  %v3074_v17 = vpop.f32.mrf.mxu3  ;;  %3411 = vmatpush.bf16.msra.mxu3 %v6990_v47  ;;  %v12359_v5 = vld [vmem:[#allocation98_spill] sm:$0xff] }
 0x34d   : > { %v3155_v52 = vpop.f32.mrf.mxu0 }
 0x34e   : > { %v3075_v12 = vadd.f32 %v3074_v17, %v2986_v27  ;;  %v3156_v4 = vadd.f32 %v3155_v52, %v9765_v29  ;;  %v3244_v13 = vpop.f32.mrf.mxu1 }
 0x350   : > { %v9785_v11 = vadd.f32 %v3244_v13, %v3156_v4  ;;  %v4229_v17 = vmax.f32 %v3075_v12, 0.0  ;;  %v12358_v13 = vld [vmem:[#allocation95_spill] sm:$0xff] }
 0x353   : > { %v2987_v60 = vpop.f32.mrf.mxu2 }
 0x354   : > { %v2988_v43 = vadd.f32 %v2987_v60, %v9454_v24  ;;  %v3076_v21 = vpop.f32.mrf.mxu3 }
 0x355   : > { %v3158_v33 = vpop.f32.mrf.mxu0 }
 0x356   : > { %v3077_v6 = vadd.f32 %v3076_v21, %v2988_v43  ;;  %v3159_v46 = vadd.f32 %v3158_v33, %v9765_v29  ;;  %v3247_v27 = vpop.f32.mrf.mxu1 }
 0x358   : > { %v4233_v52 = vmax.f32 %v3077_v6, 0.0  ;;  %v9795_v4 = vadd.f32 %v3247_v27, %v3159_v46  ;;  %3029 = vmatmul.bf16.gmra.mxu2 %v12358_v13  ;;  %3197 = vmatmul.bf16.gmra.mxu0 %v12308_v9 }
 0x359   : > { %3118 = vmatmul.bf16.gmra.mxu3 %v12359_v5  ;;  %3286 = vmatmul.bf16.gmra.mxu1 %v12310_v16 }
 0x35a   : > { %v9801_v30 = vpack.c.bf16 %v4233_v52, %v4229_v17 }
 0x35b   : > { %v2990_v24 = vpop.f32.mrf.mxu2 }
 0x35c   : > { %12360 = vst [vmem:[#allocation93_spill] sm:$0xff] %v9801_v30  ;;  %v2991_v34 = vadd.f32 %v2990_v24, %v9483_v18  ;;  %v3079_v47 = vpop.f32.mrf.mxu3  ;;  %v12361_v24 = vld [vmem:[#allocation100_spill] sm:$0xff] }
 0x35d   : > { %v3160_v60 = vpop.f32.mrf.mxu0 }
 0x35e   : > { %v3080_v43 = vadd.f32 %v3079_v47, %v2991_v34  ;;  %v3161_v12 = vadd.f32 %v3160_v60, %v9765_v29  ;;  %v3249_v21 = vpop.f32.mrf.mxu1  ;;  %v12362_v34 = vld [vmem:[#allocation103_spill] sm:$0xff] }
 0x360   : > { %v9805_v33 = vadd.f32 %v3249_v21, %v3161_v12  ;;  %v4237_v30 = vmax.f32 %v3080_v43, 0.0  ;;  %v6973_v43 = vld [vmem:[%s11914_s1 + $0x3c8] sm:$0xf]  ;;  %v7794_v12 = vld [vmem:[%s11914_s1 + $0x3d4] sm:$0xf0] }
 0x363   : > { %v2992_v6 = vpop.f32.mrf.mxu2 }
 0x364   : > { %v2993_v46 = vadd.f32 %v2992_v6, %v9517_v42  ;;  %v3081_v27 = vpop.f32.mrf.mxu3  ;;  %v6845_v42 = vld [vmem:[%s11914_s1 + $0x2c8] sm:$0xf] }
 0x365   : > { %v3163_v62 = vpop.f32.mrf.mxu0 }
 0x366   : > { %v3082_v9 = vadd.f32 %v3081_v27, %v2993_v46  ;;  %v3164_v17 = vadd.f32 %v3163_v62, %v9765_v29  ;;  %v3252_v52 = vpop.f32.mrf.mxu1  ;;  %v7762_v62 = vld [vmem:[%s11914_s1 + $0x2d4] sm:$0xf0]  ;;  %v6974_v46 = vor.u32 %v7794_v12, %v6973_v43 }
 0x367   : > { %v6846_v47 = vor.u32 %v7762_v62, %v6845_v42  ;;  %v7758_v42 = vld [vmem:[%s11914_s1 + $0x2b4] sm:$0xf0] }
 0x368   : > { %v4241_v16 = vmax.f32 %v3082_v9, 0.0  ;;  %v9809_v18 = vadd.f32 %v3252_v52, %v3164_v17  ;;  %3034 = vmatmul.bf16.gmra.mxu2 %v12361_v24  ;;  %3202 = vmatmul.bf16.gmra.mxu0 %v12313_v48 }
 0x369   : > { %3123 = vmatmul.bf16.gmra.mxu3 %v12362_v34  ;;  %3291 = vmatmul.bf16.gmra.mxu1 %v12315_v56 }
 0x36a   : > { %v9821_v9 = vpack.c.bf16 %v4241_v16, %v4237_v30  ;;  %3323 = vmatpush.bf16.msra.mxu2 %v6846_v47  ;;  %3412 = vmatpush.bf16.msra.mxu3 %v6974_v46  ;;  %v6829_v30 = vld [vmem:[%s11914_s1 + $0x2a8] sm:$0xf] }
 0x36b   : > { %v2995_v60 = vpop.f32.mrf.mxu2  ;;  %v6830_v47 = vor.u32 %v7758_v42, %v6829_v30  ;;  %v6941_v46 = vld [vmem:[%s11914_s1 + $0x388] sm:$0xf]  ;;  %v7786_v30 = vld [vmem:[%s11914_s1 + $0x394] sm:$0xf0] }
 0x36c   : > { %12363 = vst [vmem:[#allocation95_spill] sm:$0xff] %v9821_v9  ;;  %v2996_v21 = vadd.f32 %v2995_v60, %v9547_v14  ;;  %v3084_v6 = vpop.f32.mrf.mxu3  ;;  %v6957_v14 = vld [vmem:[%s11914_s1 + $0x3a8] sm:$0xf]  ;;  %v7790_v60 = vld [vmem:[%s11914_s1 + $0x3b4] sm:$0xf0] }
 0x36d   : > { %v3165_v27 = vpop.f32.mrf.mxu0  ;;  %v6958_v43 = vor.u32 %v7790_v60, %v6957_v14  ;;  %v6942_v14 = vor.u32 %v7786_v30, %v6941_v46  ;;  %v6797_v9 = vld [vmem:[%s11914_s1 + $0x268] sm:$0xf] }
 0x36e   : > { %v3085_v17 = vadd.f32 %v3084_v6, %v2996_v21  ;;  %v3166_v52 = vadd.f32 %v3165_v27, %v9765_v29  ;;  %v3254_v16 = vpop.f32.mrf.mxu1  ;;  %3324 = vmatpush.bf16.msra.mxu2 %v6830_v47  ;;  %v6813_v21 = vld [vmem:[%s11914_s1 + $0x288] sm:$0xf]  ;;  %v7754_v6 = vld [vmem:[%s11914_s1 + $0x294] sm:$0xf0] }
 0x36f   : > { %3413 = vmatpush.bf16.msra.mxu3 %v6958_v43 }
 0x370   : > { %v9840_v62 = vadd.f32 %v3254_v16, %v3166_v52  ;;  %v6814_v16 = vor.u32 %v7754_v6, %v6813_v21  ;;  %v4245_v21 = vmax.f32 %v3085_v17, 0.0 }
 0x372   : > { %3325 = vmatpush.bf16.msra.mxu2 %v6814_v16 }
 0x373   : > { %v2997_v12 = vpop.f32.mrf.mxu2  ;;  %3414 = vmatpush.bf16.msra.mxu3 %v6942_v14  ;;  %v6909_v14 = vld [vmem:[%s11914_s1 + $0x348] sm:$0xf] }
 0x374   : > { %v2998_v27 = vadd.f32 %v2997_v12, %v9581_v0  ;;  %v3086_v52 = vpop.f32.mrf.mxu3  ;;  %v7750_v0 = vld [vmem:[%s11914_s1 + $0x274] sm:$0xf0]  ;;  %v6925_v12 = vld [vmem:[%s11914_s1 + $0x368] sm:$0xf] }
 0x375   : > { %v3168_v42 = vpop.f32.mrf.mxu0 }
 0x376   : > { %v3087_v47 = vadd.f32 %v3086_v52, %v2998_v27  ;;  %v3169_v60 = vadd.f32 %v3168_v42, %v9765_v29  ;;  %v3257_v43 = vpop.f32.mrf.mxu1  ;;  %v6798_v27 = vor.u32 %v7750_v0, %v6797_v9  ;;  %v7782_v52 = vld [vmem:[%s11914_s1 + $0x374] sm:$0xf0]  ;;  %v6781_v42 = vld [vmem:[%s11914_s1 + $0x248] sm:$0xf] }
 0x377   : > { %v6926_v16 = vor.u32 %v7782_v52, %v6925_v12  ;;  %v7746_v9 = vld [vmem:[%s11914_s1 + $0x254] sm:$0xf0] }
 0x378   : > { %v4249_v6 = vmax.f32 %v3087_v47, 0.0  ;;  %v9868_v46 = vadd.f32 %v3257_v43, %v3169_v60  ;;  %3039 = vmatmul.bf16.gmra.mxu2 %v9210_v40  ;;  %3207 = vmatmul.bf16.gmra.mxu0 %v12317_v25  ;;  %v6782_v43 = vor.u32 %v7746_v9, %v6781_v42  ;;  %v7778_v0 = vld [vmem:[%s11914_s1 + $0x354] sm:$0xf0] }
 0x379   : > { %3128 = vmatmul.bf16.gmra.mxu3 %v9219_v23  ;;  %3296 = vmatmul.bf16.gmra.mxu1 %v12319_v26 }
 0x37a   : > { %3326 = vmatpush.bf16.msra.mxu2 %v6798_v27  ;;  %v9877_v30 = vpack.c.bf16 %v4249_v6, %v4245_v21  ;;  %3415 = vmatpush.bf16.msra.mxu3 %v6926_v16  ;;  %v6910_v21 = vor.u32 %v7778_v0, %v6909_v14  ;;  %v6765_v16 = vld [vmem:[%s11914_s1 + $0x228] sm:$0xf]  ;;  %v7774_v14 = vld [vmem:[%s11914_s1 + $0x334] sm:$0xf0] }
 0x37b   : > { %v3000_v17 = vpop.f32.mrf.mxu2  ;;  %v7738_v0 = vld [vmem:[%s11914_s1 + $0x214] sm:$0xf0] }
 0x37c   : > { %12364 = vst [vmem:[#allocation98_spill] sm:$0xff] %v9877_v30  ;;  %v3001_v47 = vadd.f32 %v3000_v17, %v9611_v53  ;;  %v3089_v60 = vpop.f32.mrf.mxu3  ;;  %v7742_v53 = vld [vmem:[%s11914_s1 + $0x234] sm:$0xf0]  ;;  %v6893_v17 = vld [vmem:[%s11914_s1 + $0x328] sm:$0xf] }
 0x37d   : > { %v3170_v12 = vpop.f32.mrf.mxu0  ;;  %v6766_v9 = vor.u32 %v7742_v53, %v6765_v16  ;;  %v7770_v16 = vld [vmem:[%s11914_s1 + $0x314] sm:$0xf0]  ;;  %v7117_v30 = vld [vmem:[%s11914_s1 + $0x4e8] sm:$0xf] }
 0x37e   : > { %v3090_v6 = vadd.f32 %v3089_v60, %v3001_v47  ;;  %v3171_v27 = vadd.f32 %v3170_v12, %v9765_v29  ;;  %v3259_v52 = vpop.f32.mrf.mxu1  ;;  %3327 = vmatpush.bf16.msra.mxu2 %v6782_v43  ;;  %3416 = vmatpush.bf16.msra.mxu3 %v6910_v21  ;;  %v6894_v47 = vor.u32 %v7774_v14, %v6893_v17  ;;  %v6749_v43 = vld [vmem:[%s11914_s1 + $0x208] sm:$0xf] }
 0x37f   : > { %v6877_v12 = vld [vmem:[%s11914_s1 + $0x308] sm:$0xf] }
 0x380   : > { %v9902_v42 = vadd.f32 %v3259_v52, %v3171_v27  ;;  %v6750_v52 = vor.u32 %v7738_v0, %v6749_v43  ;;  %v6878_v17 = vor.u32 %v7770_v16, %v6877_v12  ;;  %v4253_v43 = vmax.f32 %v3090_v6, 0.0  ;;  %v12366_v16 = vld [vmem:[#allocation21_spill] sm:$0xff] }
 0x382   : > { %3328 = vmatpush.bf16.msra.mxu2 %v6766_v9  ;;  %3417 = vmatpush.bf16.msra.mxu3 %v6894_v47 }
 0x383   : > { %v3002_v60 = vpop.f32.mrf.mxu2 }
 0x384   : > { %v3003_v21 = vadd.f32 %v3002_v60, %v9643_v20  ;;  %v3091_v27 = vpop.f32.mrf.mxu3  ;;  %v7830_v20 = vld [vmem:[%s11914_s1 + $0x4f4] sm:$0xf0]  ;;  %v7245_v60 = vld [vmem:[%s11914_s1 + $0x5e8] sm:$0xf] }
 0x385   : > { %v3173_v53 = vpop.f32.mrf.mxu0 }
 0x386   : > { %v3092_v9 = vadd.f32 %v3091_v27, %v3003_v21  ;;  %v3174_v14 = vadd.f32 %v3173_v53, %v9765_v29  ;;  %v3262_v47 = vpop.f32.mrf.mxu1  ;;  %3329 = vmatpush.bf16.msra.mxu2 %v6750_v52  ;;  %3418 = vmatpush.bf16.msra.mxu3 %v6878_v17  ;;  %v7118_v21 = vor.u32 %v7830_v20, %v7117_v30  ;;  %v7862_v27 = vld [vmem:[%s11914_s1 + $0x5f4] sm:$0xf0] }
 0x387   : > { %v12365_v52 = vld [vmem:[#allocation108_spill] sm:$0xff]  ;;  %v7246_v53 = vor.u32 %v7862_v27, %v7245_v60 }
 0x388   : > { %v4257_v0 = vmax.f32 %v3092_v9, 0.0  ;;  %v9930_v12 = vadd.f32 %v3262_v47, %v3174_v14  ;;  %3044 = vmatmul.bf16.gmra.mxu2 %v9282_v49  ;;  %3212 = vmatmul.bf16.gmra.mxu0 %v12321_v44  ;;  %v7101_v9 = vld [vmem:[%s11914_s1 + $0x4c8] sm:$0xf]  ;;  %v7826_v30 = vld [vmem:[%s11914_s1 + $0x4d4] sm:$0xf0] }
 0x389   : > { %3133 = vmatmul.bf16.gmra.mxu3 %v12365_v52  ;;  %3301 = vmatmul.bf16.gmra.mxu1 %v12366_v16  ;;  %v7229_v14 = vld [vmem:[%s11914_s1 + $0x5c8] sm:$0xf]  ;;  %v7102_v60 = vor.u32 %v7826_v30, %v7101_v9 }
 0x38a   : > { %3500 = vmatpush.bf16.msra.mxu0 %v7118_v21  ;;  %v9939_v17 = vpack.c.bf16 %v4257_v0, %v4253_v43  ;;  %3589 = vmatpush.bf16.msra.mxu1 %v7246_v53  ;;  %v7858_v43 = vld [vmem:[%s11914_s1 + $0x5d4] sm:$0xf0]  ;;  %v7085_v16 = vld [vmem:[%s11914_s1 + $0x4a8] sm:$0xf] }
 0x38b   : > { %v3005_v6 = vpop.f32.mrf.mxu2  ;;  %v7230_v21 = vor.u32 %v7858_v43, %v7229_v14  ;;  %v7854_v14 = vld [vmem:[%s11914_s1 + $0x5b4] sm:$0xf0]  ;;  %v7053_v44 = vld [vmem:[%s11914_s1 + $0x468] sm:$0xf] }
 0x38c   : > { %12367 = vst [vmem:[#allocation100_spill] sm:$0xff] %v9939_v17  ;;  %v3006_v47 = vadd.f32 %v3005_v6, %v9662_v36  ;;  %v3094_v20 = vpop.f32.mrf.mxu3  ;;  %v7822_v36 = vld [vmem:[%s11914_s1 + $0x4b4] sm:$0xf0]  ;;  %v7213_v6 = vld [vmem:[%s11914_s1 + $0x5a8] sm:$0xf] }
 0x38d   : > { %v3175_v0 = vpop.f32.mrf.mxu0  ;;  %v7086_v30 = vor.u32 %v7822_v36, %v7085_v16  ;;  %v7818_v43 = vld [vmem:[%s11914_s1 + $0x494] sm:$0xf0]  ;;  %v7197_v16 = vld [vmem:[%s11914_s1 + $0x588] sm:$0xf] }
 0x38e   : > { %v3095_v27 = vadd.f32 %v3094_v20, %v3006_v47  ;;  %v3176_v53 = vadd.f32 %v3175_v0, %v9765_v29  ;;  %v3264_v17 = vpop.f32.mrf.mxu1  ;;  %3501 = vmatpush.bf16.msra.mxu0 %v7102_v60  ;;  %3590 = vmatpush.bf16.msra.mxu1 %v7230_v21  ;;  %v7214_v47 = vor.u32 %v7854_v14, %v7213_v6  ;;  %v7069_v60 = vld [vmem:[%s11914_s1 + $0x488] sm:$0xf] }
 0x38f   : > { %v7070_v21 = vor.u32 %v7818_v43, %v7069_v60 }
 0x390   : > { %v9964_v9 = vadd.f32 %v3264_v17, %v3176_v53  ;;  %v7850_v53 = vld [vmem:[%s11914_s1 + $0x594] sm:$0xf0]  ;;  %v4261_v60 = vmax.f32 %v3095_v27, 0.0 }
 0x391   : > { %v7198_v6 = vor.u32 %v7850_v53, %v7197_v16  ;;  %v7846_v53 = vld [vmem:[%s11914_s1 + $0x574] sm:$0xf0] }
 0x392   : > { %3502 = vmatpush.bf16.msra.mxu0 %v7086_v30  ;;  %3591 = vmatpush.bf16.msra.mxu1 %v7214_v47 }
 0x393   : > { %v3007_v20 = vpop.f32.mrf.mxu2 }
 0x394   : > { %v3008_v17 = vadd.f32 %v3007_v20, %v9670_v41  ;;  %v3096_v0 = vpop.f32.mrf.mxu3  ;;  %v7814_v41 = vld [vmem:[%s11914_s1 + $0x474] sm:$0xf0]  ;;  %v7181_v20 = vld [vmem:[%s11914_s1 + $0x568] sm:$0xf] }
 0x395   : > { %v3178_v36 = vpop.f32.mrf.mxu0  ;;  %v7182_v26 = vor.u32 %v7846_v53, %v7181_v20 }
 0x396   : > { %v3097_v30 = vadd.f32 %v3096_v0, %v3008_v17  ;;  %v3179_v14 = vadd.f32 %v3178_v36, %v9765_v29  ;;  %v3267_v47 = vpop.f32.mrf.mxu1  ;;  %3503 = vmatpush.bf16.msra.mxu0 %v7070_v21  ;;  %3592 = vmatpush.bf16.msra.mxu1 %v7198_v6  ;;  %v12368_v17 = vld [vmem:[#allocation109_spill] sm:$0xff]  ;;  %v12369_v0 = vld [vmem:[#allocation23_spill] sm:$0xff]  ;;  %v7054_v21 = vor.u32 %v7814_v41, %v7053_v44  ;;  %v7810_v44 = vld [vmem:[%s11914_s1 + $0x454] sm:$0xf0] }
 0x397   : > { %v12370_v36 = vld [vmem:[#allocation111_spill] sm:$0xff]  ;;  %v12371_v6 = vld [vmem:[#allocation25_spill] sm:$0xff] }
 0x398   : > { %v4265_v43 = vmax.f32 %v3097_v30, 0.0  ;;  %v9992_v16 = vadd.f32 %v3267_v47, %v3179_v14  ;;  %3049 = vmatmul.bf16.gmra.mxu2 %v12368_v17  ;;  %3217 = vmatmul.bf16.gmra.mxu0 %v12369_v0  ;;  %v7037_v30 = vld [vmem:[%s11914_s1 + $0x448] sm:$0xf]  ;;  %v12373_v47 = vld [vmem:[#allocation75_spill] sm:$0xff] }
 0x399   : > { %3138 = vmatmul.bf16.gmra.mxu3 %v12370_v36  ;;  %3306 = vmatmul.bf16.gmra.mxu1 %v12371_v6  ;;  %v7165_v14 = vld [vmem:[%s11914_s1 + $0x548] sm:$0xf] }
 0x39a   : > { %3504 = vmatpush.bf16.msra.mxu0 %v7054_v21  ;;  %v10001_v25 = vpack.c.bf16 %v4265_v43, %v4261_v60  ;;  %3593 = vmatpush.bf16.msra.mxu1 %v7182_v26  ;;  %v7038_v21 = vor.u32 %v7810_v44, %v7037_v30  ;;  %v7842_v26 = vld [vmem:[%s11914_s1 + $0x554] sm:$0xf0]  ;;  %v7021_v0 = vld [vmem:[%s11914_s1 + $0x428] sm:$0xf] }
 0x39b   : > { %v3010_v27 = vpop.f32.mrf.mxu2  ;;  %v7166_v43 = vor.u32 %v7842_v26, %v7165_v14  ;;  %v7149_v30 = vld [vmem:[%s11914_s1 + $0x528] sm:$0xf]  ;;  %v7802_v26 = vld [vmem:[%s11914_s1 + $0x414] sm:$0xf0] }
 0x39c   : > { %12372 = vst [vmem:[#allocation103_spill] sm:$0xff] %v10001_v25  ;;  %v3011_v41 = vadd.f32 %v3010_v27, %v12373_v47  ;;  %v3099_v20 = vpop.f32.mrf.mxu3  ;;  %v7806_v27 = vld [vmem:[%s11914_s1 + $0x434] sm:$0xf0] }
 0x39d   : > { %v3180_v60 = vpop.f32.mrf.mxu0  ;;  %v7022_v14 = vor.u32 %v7806_v27, %v7021_v0  ;;  %v7838_v47 = vld [vmem:[%s11914_s1 + $0x534] sm:$0xf0] }
 0x39e   : > { %v3100_v53 = vadd.f32 %v3099_v20, %v3011_v41  ;;  %v3181_v25 = vadd.f32 %v3180_v60, %v9765_v29  ;;  %v3269_v6 = vpop.f32.mrf.mxu1  ;;  %3505 = vmatpush.bf16.msra.mxu0 %v7038_v21  ;;  %3594 = vmatpush.bf16.msra.mxu1 %v7166_v43  ;;  %v7150_v41 = vor.u32 %v7838_v47, %v7149_v30  ;;  %v7005_v21 = vld [vmem:[%s11914_s1 + $0x408] sm:$0xf]  ;;  %v7834_v43 = vld [vmem:[%s11914_s1 + $0x514] sm:$0xf0] }
 0x39f   : > { %v7006_v60 = vor.u32 %v7802_v26, %v7005_v21  ;;  %v12377_v21 = vld [vmem:[#allocation37_spill] sm:$0xff] }
 0x3a0   : > { %v10026_v44 = vadd.f32 %v3269_v6, %v3181_v25  ;;  %v7133_v25 = vld [vmem:[%s11914_s1 + $0x508] sm:$0xf]  ;;  %v4269_v56 = vmax.f32 %v3100_v53, 0.0 }
 0x3a1   : > { %v7134_v30 = vor.u32 %v7834_v43, %v7133_v25 }
 0x3a2   : > { %3506 = vmatpush.bf16.msra.mxu0 %v7022_v14  ;;  %3595 = vmatpush.bf16.msra.mxu1 %v7150_v41 }
 0x3a3   : > { %v3012_v20 = vpop.f32.mrf.mxu2 }
 0x3a4   : > { %v3013_v0 = vadd.f32 %v3012_v20, %v9680_v28  ;;  %v3101_v6 = vpop.f32.mrf.mxu3  ;;  %v12375_v28 = vld [vmem:[#allocation35_spill] sm:$0xff]  ;;  %v12376_v20 = vld [vmem:[#allocation29_spill] sm:$0xff] }
 0x3a5   : > { %v3183_v27 = vpop.f32.mrf.mxu0 }
 0x3a6   : > { %v3102_v14 = vadd.f32 %v3101_v6, %v3013_v0  ;;  %v3184_v47 = vadd.f32 %v3183_v27, %v9765_v29  ;;  %v3272_v41 = vpop.f32.mrf.mxu1  ;;  %3507 = vmatpush.bf16.msra.mxu0 %v7006_v60  ;;  %3596 = vmatpush.bf16.msra.mxu1 %v7134_v30 }
 0x3a8   : > { %v4273_v48 = vmax.f32 %v3102_v14, 0.0  ;;  %v10045_v51 = vadd.f32 %v3272_v41, %v3184_v47  ;;  %3222 = vmatmul.bf16.gmra.mxu0 %v12374_v3  ;;  %3330 = vmatmul.bf16.vlgmr.msra.gmra.mxu2 %v12375_v28 }
 0x3a9   : > { %3311 = vmatmul.bf16.gmra.mxu1 %v12376_v20  ;;  %3419 = vmatmul.bf16.vlgmr.msra.gmra.mxu3 %v12377_v21 }
 0x3aa   : > { %v10051_v26 = vpack.c.bf16 %v4273_v48, %v4269_v56 }
 0x3ab   : > { %v3015_v25 = vpop.f32.mrf.mxu2 }
 0x3ac   : > { %12378 = vst [vmem:[#allocation108_spill] sm:$0xff] %v10051_v26  ;;  %v3016_v0 = vadd.f32 %v3015_v25, %v9683_v61  ;;  %v3104_v6 = vpop.f32.mrf.mxu3  ;;  %v12379_v25 = vld [vmem:[#allocation31_spill] sm:$0xff] }
 0x3ad   : > { %v3185_v60 = vpop.f32.mrf.mxu0 }
 0x3ae   : > { %v3105_v43 = vadd.f32 %v3104_v6, %v3016_v0  ;;  %v3186_v53 = vadd.f32 %v3185_v60, %v9765_v29  ;;  %v3274_v27 = vpop.f32.mrf.mxu1  ;;  %v12380_v0 = vld [vmem:[#allocation39_spill] sm:$0xff]  ;;  %v12381_v6 = vld [vmem:[#allocation33_spill] sm:$0xff] }
 0x3af   : > { %v12382_v60 = vld [vmem:[#allocation41_spill] sm:$0xff] }
 0x3b0   : > { %v10055_v30 = vadd.f32 %v3274_v27, %v3186_v53  ;;  %v4277_v26 = vmax.f32 %v3105_v43, 0.0 }
 0x3b3   : > { %v3017_v14 = vpop.f32.mrf.mxu2 }
 0x3b4   : > { %v3018_v47 = vadd.f32 %v3017_v14, %v9690_v38  ;;  %v3106_v41 = vpop.f32.mrf.mxu3 }
 0x3b5   : > { %v3188_v20 = vpop.f32.mrf.mxu0 }
 0x3b6   : > { %v3107_v3 = vadd.f32 %v3106_v41, %v3018_v47  ;;  %v3189_v48 = vadd.f32 %v3188_v20, %v9765_v29  ;;  %v3277_v56 = vpop.f32.mrf.mxu1 }
 0x3b8   : > { %v4281_v8 = vmax.f32 %v3107_v3, 0.0  ;;  %v10059_v61 = vadd.f32 %v3277_v56, %v3189_v48  ;;  %3227 = vmatmul.bf16.gmra.mxu0 %v12379_v25  ;;  %3335 = vmatmul.bf16.gmra.mxu2 %v12380_v0 }
 0x3b9   : > { %3316 = vmatmul.bf16.gmra.mxu1 %v12381_v6  ;;  %3424 = vmatmul.bf16.gmra.mxu3 %v12382_v60 }
 0x3ba   : > { %v10065_v53 = vpack.c.bf16 %v4281_v8, %v4277_v26 }
 0x3bb   : > { %v3020_v38 = vpop.f32.mrf.mxu2 }
 0x3bc   : > { %12383 = vst [vmem:[#allocation109_spill] sm:$0xff] %v10065_v53  ;;  %v3021_v27 = vadd.f32 %v3020_v38, %v9693_v63  ;;  %v3109_v14 = vpop.f32.mrf.mxu3  ;;  %v12384_v38 = vld [vmem:[#allocation42_spill] sm:$0xff] }
 0x3bd   : > { %v3190_v20 = vpop.f32.mrf.mxu0 }
 0x3be   : > { %v3110_v47 = vadd.f32 %v3109_v14, %v3021_v27  ;;  %v3191_v3 = vadd.f32 %v3190_v20, %v9765_v29  ;;  %v3279_v43 = vpop.f32.mrf.mxu1  ;;  %v12385_v27 = vld [vmem:[#allocation43_spill] sm:$0xff]  ;;  %v12386_v14 = vld [vmem:[#allocation44_spill] sm:$0xff]  ;;  %v12387_v20 = vld [vmem:[#allocation45_spill] sm:$0xff] }
 0x3c0   : > { %v10069_v41 = vadd.f32 %v3279_v43, %v3191_v3  ;;  %v4285_v53 = vmax.f32 %v3110_v47, 0.0 }
 0x3c3   : > { %v3022_v48 = vpop.f32.mrf.mxu2 }
 0x3c4   : > { %v3023_v56 = vadd.f32 %v3022_v48, %v9700_v50  ;;  %v3111_v25 = vpop.f32.mrf.mxu3 }
 0x3c5   : > { %v3193_v6 = vpop.f32.mrf.mxu0 }
 0x3c6   : > { %v3112_v54 = vadd.f32 %v3111_v25, %v3023_v56  ;;  %v3194_v8 = vadd.f32 %v3193_v6, %v9765_v29  ;;  %v3282_v26 = vpop.f32.mrf.mxu1 }
 0x3c8   : > { %v4289_v60 = vmax.f32 %v3112_v54, 0.0  ;;  %v10073_v63 = vadd.f32 %v3282_v26, %v3194_v8  ;;  %3340 = vmatmul.bf16.gmra.mxu2 %v12384_v38  ;;  %3508 = vmatmul.bf16.vlgmr.msra.gmra.mxu0 %v12385_v27 }
 0x3c9   : > { %3429 = vmatmul.bf16.gmra.mxu3 %v12386_v14  ;;  %3597 = vmatmul.bf16.vlgmr.msra.gmra.mxu1 %v12387_v20 }
 0x3ca   : > { %v10079_v3 = vpack.c.bf16 %v4289_v60, %v4285_v53 }
 0x3cb   : > { %v3025_v50 = vpop.f32.mrf.mxu2 }
 0x3cc   : > { %12388 = vst [vmem:[#allocation111_spill] sm:$0xff] %v10079_v3  ;;  %v3026_v25 = vadd.f32 %v3025_v50, %v9703_v59  ;;  %v3114_v43 = vpop.f32.mrf.mxu3  ;;  %v12389_v50 = vld [vmem:[#allocation46_spill] sm:$0xff] }
 0x3cd   : > { %v3195_v6 = vpop.f32.mrf.mxu0 }
 0x3ce   : > { %v3115_v48 = vadd.f32 %v3114_v43, %v3026_v25  ;;  %v3196_v54 = vadd.f32 %v3195_v6, %v9765_v29  ;;  %v3284_v47 = vpop.f32.mrf.mxu1  ;;  %v12390_v25 = vld [vmem:[#allocation47_spill] sm:$0xff]  ;;  %v12391_v43 = vld [vmem:[#allocation48_spill] sm:$0xff]  ;;  %v12392_v6 = vld [vmem:[#allocation49_spill] sm:$0xff] }
 0x3d0   : > { %v10083_v56 = vadd.f32 %v3284_v47, %v3196_v54  ;;  %v4293_v3 = vmax.f32 %v3115_v48, 0.0 }
 0x3d3   : > { %v3027_v8 = vpop.f32.mrf.mxu2 }
 0x3d4   : > { %v3028_v26 = vadd.f32 %v3027_v8, %v9710_v35  ;;  %v3116_v27 = vpop.f32.mrf.mxu3 }
 0x3d5   : > { %v3198_v14 = vpop.f32.mrf.mxu0 }
 0x3d6   : > { %v3117_v38 = vadd.f32 %v3116_v27, %v3028_v26  ;;  %v3199_v60 = vadd.f32 %v3198_v14, %v9765_v29  ;;  %v3287_v53 = vpop.f32.mrf.mxu1 }
 0x3d8   : > { %v4297_v20 = vmax.f32 %v3117_v38, 0.0  ;;  %v10087_v59 = vadd.f32 %v3287_v53, %v3199_v60  ;;  %3345 = vmatmul.bf16.gmra.mxu2 %v12389_v50  ;;  %3513 = vmatmul.bf16.gmra.mxu0 %v12390_v25 }
 0x3d9   : > { %3434 = vmatmul.bf16.gmra.mxu3 %v12391_v43  ;;  %3602 = vmatmul.bf16.gmra.mxu1 %v12392_v6 }
 0x3da   : > { %v10093_v54 = vpack.c.bf16 %v4297_v20, %v4293_v3 }
 0x3db   : > { %v3030_v35 = vpop.f32.mrf.mxu2 }
 0x3dc   : > { %12393 = vst [vmem:[#allocation75_spill] sm:$0xff] %v10093_v54  ;;  %v3031_v27 = vadd.f32 %v3030_v35, %v9713_v7  ;;  %v3119_v47 = vpop.f32.mrf.mxu3  ;;  %v12394_v35 = vld [vmem:[#allocation50_spill] sm:$0xff] }
 0x3dd   : > { %v3200_v14 = vpop.f32.mrf.mxu0 }
 0x3de   : > { %v3120_v8 = vadd.f32 %v3119_v47, %v3031_v27  ;;  %v3201_v38 = vadd.f32 %v3200_v14, %v9765_v29  ;;  %v3289_v48 = vpop.f32.mrf.mxu1  ;;  %v12395_v27 = vld [vmem:[#allocation51_spill] sm:$0xff]  ;;  %v12396_v47 = vld [vmem:[#allocation52_spill] sm:$0xff]  ;;  %v12397_v14 = vld [vmem:[#allocation53_spill] sm:$0xff] }
 0x3e0   : > { %v10097_v26 = vadd.f32 %v3289_v48, %v3201_v38  ;;  %v4301_v54 = vmax.f32 %v3120_v8, 0.0 }
 0x3e3   : > { %v3032_v60 = vpop.f32.mrf.mxu2 }
 0x3e4   : > { %v3033_v53 = vadd.f32 %v3032_v60, %v9720_v45  ;;  %v3121_v25 = vpop.f32.mrf.mxu3 }
 0x3e5   : > { %v3203_v43 = vpop.f32.mrf.mxu0 }
 0x3e6   : > { %v3122_v50 = vadd.f32 %v3121_v25, %v3033_v53  ;;  %v3204_v20 = vadd.f32 %v3203_v43, %v9765_v29  ;;  %v3292_v3 = vpop.f32.mrf.mxu1 }
 0x3e8   : > { %v4305_v6 = vmax.f32 %v3122_v50, 0.0  ;;  %v10101_v7 = vadd.f32 %v3292_v3, %v3204_v20  ;;  %3350 = vmatmul.bf16.gmra.mxu2 %v12394_v35  ;;  %3518 = vmatmul.bf16.gmra.mxu0 %v12395_v27 }
 0x3e9   : > { %3439 = vmatmul.bf16.gmra.mxu3 %v12396_v47  ;;  %3607 = vmatmul.bf16.gmra.mxu1 %v12397_v14 }
 0x3ea   : > { %v10107_v38 = vpack.c.bf16 %v4305_v6, %v4301_v54 }
 0x3eb   : > { %v3035_v45 = vpop.f32.mrf.mxu2 }
 0x3ec   : > { %12398 = vst [vmem:[#allocation35_spill] sm:$0xff] %v10107_v38  ;;  %v3036_v25 = vadd.f32 %v3035_v45, %v9723_v19  ;;  %v3124_v48 = vpop.f32.mrf.mxu3  ;;  %v12399_v45 = vld [vmem:[#allocation54_spill] sm:$0xff] }
 0x3ed   : > { %v3205_v43 = vpop.f32.mrf.mxu0 }
 0x3ee   : > { %v3125_v60 = vadd.f32 %v3124_v48, %v3036_v25  ;;  %v3206_v50 = vadd.f32 %v3205_v43, %v9765_v29  ;;  %v3294_v8 = vpop.f32.mrf.mxu1  ;;  %v12400_v25 = vld [vmem:[#allocation55_spill] sm:$0xff]  ;;  %v12401_v48 = vld [vmem:[#allocation56_spill] sm:$0xff]  ;;  %v12402_v43 = vld [vmem:[#allocation57_spill] sm:$0xff] }
 0x3f0   : > { %v10111_v53 = vadd.f32 %v3294_v8, %v3206_v50  ;;  %v4309_v38 = vmax.f32 %v3125_v60, 0.0 }
 0x3f3   : > { %v3037_v20 = vpop.f32.mrf.mxu2 }
 0x3f4   : > { %v3038_v3 = vadd.f32 %v3037_v20, %v9730_v55  ;;  %v3126_v27 = vpop.f32.mrf.mxu3 }
 0x3f5   : > { %v3208_v47 = vpop.f32.mrf.mxu0 }
 0x3f6   : > { %v3127_v35 = vadd.f32 %v3126_v27, %v3038_v3  ;;  %v3209_v6 = vadd.f32 %v3208_v47, %v9765_v29  ;;  %v3297_v54 = vpop.f32.mrf.mxu1 }
 0x3f8   : > { %v4313_v14 = vmax.f32 %v3127_v35, 0.0  ;;  %v10115_v19 = vadd.f32 %v3297_v54, %v3209_v6  ;;  %3355 = vmatmul.bf16.gmra.mxu2 %v12399_v45  ;;  %3523 = vmatmul.bf16.gmra.mxu0 %v12400_v25 }
 0x3f9   : > { %3444 = vmatmul.bf16.gmra.mxu3 %v12401_v48  ;;  %3612 = vmatmul.bf16.gmra.mxu1 %v12402_v43 }
 0x3fa   : > { %v10121_v50 = vpack.c.bf16 %v4313_v14, %v4309_v38 }
 0x3fb   : > { %v3040_v55 = vpop.f32.mrf.mxu2 }
 0x3fc   : > { %12403 = vst [vmem:[#allocation37_spill] sm:$0xff] %v10121_v50  ;;  %v3041_v27 = vadd.f32 %v3040_v55, %v9733_v31  ;;  %v3129_v8 = vpop.f32.mrf.mxu3  ;;  %v12404_v55 = vld [vmem:[#allocation59_spill] sm:$0xff] }
 0x3fd   : > { %v3210_v47 = vpop.f32.mrf.mxu0 }
 0x3fe   : > { %v3130_v20 = vadd.f32 %v3129_v8, %v3041_v27  ;;  %v3211_v35 = vadd.f32 %v3210_v47, %v9765_v29  ;;  %v3299_v60 = vpop.f32.mrf.mxu1  ;;  %v12405_v27 = vld [vmem:[#allocation60_spill] sm:$0xff]  ;;  %v12406_v8 = vld [vmem:[#allocation61_spill] sm:$0xff]  ;;  %v12407_v47 = vld [vmem:[#allocation62_spill] sm:$0xff] }
 0x400   : > { %v10125_v3 = vadd.f32 %v3299_v60, %v3211_v35  ;;  %v4317_v50 = vmax.f32 %v3130_v20, 0.0 }
 0x403   : > { %v3042_v6 = vpop.f32.mrf.mxu2 }
 0x404   : > { %v3043_v54 = vadd.f32 %v3042_v6, %v9740_v58  ;;  %v3131_v25 = vpop.f32.mrf.mxu3 }
 0x405   : > { %v3213_v48 = vpop.f32.mrf.mxu0 }
 0x406   : > { %v3132_v45 = vadd.f32 %v3131_v25, %v3043_v54  ;;  %v3214_v14 = vadd.f32 %v3213_v48, %v9765_v29  ;;  %v3302_v38 = vpop.f32.mrf.mxu1 }
 0x408   : > { %v4321_v43 = vmax.f32 %v3132_v45, 0.0  ;;  %v10129_v31 = vadd.f32 %v3302_v38, %v3214_v14  ;;  %3360 = vmatmul.bf16.gmra.mxu2 %v12404_v55  ;;  %3528 = vmatmul.bf16.gmra.mxu0 %v12405_v27 }
 0x409   : > { %3449 = vmatmul.bf16.gmra.mxu3 %v12406_v8  ;;  %3617 = vmatmul.bf16.gmra.mxu1 %v12407_v47 }
 0x40a   : > { %v10135_v35 = vpack.c.bf16 %v4321_v43, %v4317_v50 }
 0x40b   : > { %v3045_v58 = vpop.f32.mrf.mxu2 }
 0x40c   : > { %12408 = vst [vmem:[#allocation39_spill] sm:$0xff] %v10135_v35  ;;  %v3046_v25 = vadd.f32 %v3045_v58, %v9743_v10  ;;  %v3134_v60 = vpop.f32.mrf.mxu3  ;;  %v12409_v58 = vld [vmem:[#allocation65_spill] sm:$0xff] }
 0x40d   : > { %v3215_v48 = vpop.f32.mrf.mxu0 }
 0x40e   : > { %v3135_v6 = vadd.f32 %v3134_v60, %v3046_v25  ;;  %v3216_v45 = vadd.f32 %v3215_v48, %v9765_v29  ;;  %v3304_v20 = vpop.f32.mrf.mxu1  ;;  %v12410_v25 = vld [vmem:[#allocation66_spill] sm:$0xff]  ;;  %v12411_v60 = vld [vmem:[#allocation67_spill] sm:$0xff]  ;;  %v12412_v48 = vld [vmem:[#allocation68_spill] sm:$0xff] }
 0x410   : > { %v10139_v54 = vadd.f32 %v3304_v20, %v3216_v45  ;;  %v4325_v35 = vmax.f32 %v3135_v6, 0.0 }
 0x413   : > { %v3047_v14 = vpop.f32.mrf.mxu2 }
 0x414   : > { %v3048_v38 = vadd.f32 %v3047_v14, %v9750_v57  ;;  %v3136_v27 = vpop.f32.mrf.mxu3 }
 0x415   : > { %v3218_v8 = vpop.f32.mrf.mxu0 }
 0x416   : > { %v3137_v55 = vadd.f32 %v3136_v27, %v3048_v38  ;;  %v3219_v43 = vadd.f32 %v3218_v8, %v9765_v29  ;;  %v3307_v50 = vpop.f32.mrf.mxu1 }
 0x418   : > { %v4329_v47 = vmax.f32 %v3137_v55, 0.0  ;;  %v10143_v10 = vadd.f32 %v3307_v50, %v3219_v43  ;;  %3365 = vmatmul.bf16.gmra.mxu2 %v12409_v58  ;;  %3533 = vmatmul.bf16.gmra.mxu0 %v12410_v25 }
 0x419   : > { %3454 = vmatmul.bf16.gmra.mxu3 %v12411_v60  ;;  %3622 = vmatmul.bf16.gmra.mxu1 %v12412_v48 }
 0x41a   : > { %v10149_v45 = vpack.c.bf16 %v4329_v47, %v4325_v35 }
 0x41b   : > { %v3050_v57 = vpop.f32.mrf.mxu2 }
 0x41c   : > { %12413 = vst [vmem:[#allocation116_spill] sm:$0xff] %v10149_v45  ;;  %v3051_v27 = vadd.f32 %v3050_v57, %v9753_v32  ;;  %v3139_v20 = vpop.f32.mrf.mxu3  ;;  %v12414_v57 = vld [vmem:[#allocation71_spill] sm:$0xff] }
 0x41d   : > { %v3220_v8 = vpop.f32.mrf.mxu0 }
 0x41e   : > { %v3140_v14 = vadd.f32 %v3139_v20, %v3051_v27  ;;  %v3221_v55 = vadd.f32 %v3220_v8, %v9765_v29  ;;  %v3309_v6 = vpop.f32.mrf.mxu1  ;;  %v12415_v27 = vld [vmem:[#allocation72_spill] sm:$0xff]  ;;  %v12416_v20 = vld [vmem:[#allocation73_spill] sm:$0xff]  ;;  %v12417_v8 = vld [vmem:[#allocation74_spill] sm:$0xff] }
 0x420   : > { %v10153_v38 = vadd.f32 %v3309_v6, %v3221_v55  ;;  %v4333_v45 = vmax.f32 %v3140_v14, 0.0 }
 0x423   : > { %v3052_v43 = vpop.f32.mrf.mxu2 }
 0x424   : > { %v3053_v50 = vadd.f32 %v3052_v43, %v9762_v22  ;;  %v3141_v25 = vpop.f32.mrf.mxu3 }
 0x425   : > { %v3223_v60 = vpop.f32.mrf.mxu0 }
 0x426   : > { %v3142_v58 = vadd.f32 %v3141_v25, %v3053_v50  ;;  %v3224_v47 = vadd.f32 %v3223_v60, %v9765_v29  ;;  %v3312_v35 = vpop.f32.mrf.mxu1 }
 0x428   : > { %v4337_v48 = vmax.f32 %v3142_v58, 0.0  ;;  %v10157_v32 = vadd.f32 %v3312_v35, %v3224_v47  ;;  %3370 = vmatmul.bf16.gmra.mxu2 %v12414_v57  ;;  %3538 = vmatmul.bf16.gmra.mxu0 %v12415_v27 }
 0x429   : > { %3459 = vmatmul.bf16.gmra.mxu3 %v12416_v20  ;;  %3627 = vmatmul.bf16.gmra.mxu1 %v12417_v8 }
 0x42a   : > { %v10163_v55 = vpack.c.bf16 %v4337_v48, %v4333_v45 }
 0x42b   : > { %v3331_v22 = vpop.f32.mrf.mxu2 }
 0x42c   : > { %12418 = vst [vmem:[#allocation117_spill] sm:$0xff] %v10163_v55  ;;  %v3332_v25 = vadd.f32 %v3331_v22, %v9769_v37  ;;  %v3420_v6 = vpop.f32.mrf.mxu3  ;;  %v12421_v37 = vld [vmem:[#allocation76_spill] sm:$0xff]  ;;  %v12422_v22 = vld [vmem:[#allocation77_spill] sm:$0xff] }
 0x42d   : > { %v3225_v60 = vpop.f32.mrf.mxu0 }
 0x42e   : > { %v3421_v43 = vadd.f32 %v3420_v6, %v3332_v25  ;;  %v3226_v58 = vadd.f32 %v3225_v60, %v9765_v29  ;;  %v3314_v14 = vpop.f32.mrf.mxu1  ;;  %v12423_v25 = vld [vmem:[#allocation78_spill] sm:$0xff]  ;;  %v12424_v6 = vld [vmem:[#allocation79_spill] sm:$0xff] }
 0x430   : > { %v10167_v50 = vadd.f32 %v3314_v14, %v3226_v58 }
 0x432   : > { %12419 = vst [vmem:[#allocation118_spill] sm:$0xff] %v10167_v50  ;;  %v12425_v50 = vld [vmem:[#allocation80_spill] sm:$0xff] }
 0x433   : > { %v3333_v47 = vpop.f32.mrf.mxu2 }
 0x434   : > { %v3334_v35 = vadd.f32 %v3333_v47, %v9785_v11  ;;  %v3422_v27 = vpop.f32.mrf.mxu3 }
 0x435   : > { %v3228_v20 = vpop.f32.mrf.mxu0 }
 0x436   : > { %v3423_v57 = vadd.f32 %v3422_v27, %v3334_v35  ;;  %v3229_v48 = vadd.f32 %v3228_v20, %v9765_v29  ;;  %v3317_v45 = vpop.f32.mrf.mxu1 }
 0x438   : > { %v10171_v55 = vadd.f32 %v3317_v45, %v3229_v48  ;;  %3375 = vmatmul.bf16.gmra.mxu2 %v12421_v37  ;;  %3543 = vmatmul.bf16.gmra.mxu0 %v12422_v22 }
 0x439   : > { %3464 = vmatmul.bf16.gmra.mxu3 %v12423_v25  ;;  %3632 = vmatmul.bf16.gmra.mxu1 %v12424_v6 }
 0x43a   : > { %12420 = vst [vmem:[#allocation119_spill] sm:$0xff] %v10171_v55 }
 0x43b   : > { %v3336_v60 = vpop.f32.mrf.mxu2 }
 0x43c   : > { %v3337_v58 = vadd.f32 %v3336_v60, %v9795_v4  ;;  %v3425_v11 = vpop.f32.mrf.mxu3  ;;  %v12426_v4 = vld [vmem:[#allocation81_spill] sm:$0xff]  ;;  %v12427_v60 = vld [vmem:[#allocation82_spill] sm:$0xff] }
 0x43d   : > { %v3230_v14 = vpop.f32.mrf.mxu0 }
 0x43e   : > { %v3426_v47 = vadd.f32 %v3425_v11, %v3337_v58  ;;  %v3231_v27 = vadd.f32 %v3230_v14, %v9765_v29  ;;  %v3319_v20 = vpop.f32.mrf.mxu1  ;;  %v12428_v58 = vld [vmem:[#allocation83_spill] sm:$0xff] }
 0x43f   : > { %v7700_v29 = vld [vmem:[%s11914_s1 + $0xec] sm:$0xf] }
 0x440   : > { %v10179_v35 = vadd.f32 %v3319_v20, %v3231_v27  ;;  %v7732_v20 = vld [vmem:[%s11914_s1 + $0x1ec] sm:$0xf] }
 0x443   : > { %v3338_v48 = vpop.f32.mrf.mxu2 }
 0x444   : > { %v3339_v45 = vadd.f32 %v3338_v48, %v9805_v33  ;;  %v3427_v8 = vpop.f32.mrf.mxu3  ;;  %v6607_v33 = vld [vmem:[%s11914_s1 + $0xf8] sm:$0xf0] }
 0x445   : > { %v3509_v22 = vpop.f32.mrf.mxu0  ;;  %v6735_v48 = vld [vmem:[%s11914_s1 + $0x1f8] sm:$0xf0] }
 0x446   : > { %v3428_v37 = vadd.f32 %v3427_v8, %v3339_v45  ;;  %v3510_v25 = vadd.f32 %v3509_v22, %v3421_v43  ;;  %v3598_v55 = vpop.f32.mrf.mxu1  ;;  %v6610_v43 = vor.u32 %v7700_v29, %v6607_v33  ;;  %v6738_v45 = vor.u32 %v7732_v20, %v6735_v48  ;;  %v12431_v20 = vld [vmem:[#allocation87_spill] sm:$0xff] }
 0x448   : > { %v3599_v6 = vadd.f32 %v3598_v55, %v3510_v25  ;;  %3380 = vmatmul.bf16.gmra.mxu2 %v12425_v50  ;;  %3548 = vmatmul.bf16.gmra.mxu0 %v12426_v4  ;;  %v12430_v50 = vld [vmem:[#allocation85_spill] sm:$0xff] }
 0x449   : > { %3469 = vmatmul.bf16.gmra.mxu3 %v12427_v60  ;;  %3637 = vmatmul.bf16.gmra.mxu1 %v12428_v58 }
 0x44a   : > { %3678 = vmatpush.bf16.msrb.mxu2 %v6610_v43  ;;  %3767 = vmatpush.bf16.msrb.mxu3 %v6738_v45  ;;  %v4214_v29 = vmax.f32 %v3599_v6, 0.0 }
 0x44b   : > { %v3341_v8 = vpop.f32.mrf.mxu2 }
 0x44c   : > { %v3342_v55 = vadd.f32 %v3341_v8, %v9809_v18  ;;  %v3430_v22 = vpop.f32.mrf.mxu3 }
 0x44d   : > { %v3511_v25 = vpop.f32.mrf.mxu0 }
 0x44e   : > { %v3431_v11 = vadd.f32 %v3430_v22, %v3342_v55  ;;  %v3512_v14 = vadd.f32 %v3511_v25, %v3423_v57  ;;  %v3600_v27 = vpop.f32.mrf.mxu1 }
 0x450   : > { %v3601_v58 = vadd.f32 %v3600_v27, %v3512_v14 }
 0x452   : > { %v4218_v33 = vmax.f32 %v3601_v58, 0.0 }
 0x453   : > { %v3343_v18 = vpop.f32.mrf.mxu2 }
 0x454   : > { %v10199_v8 = vpack.c.bf16 %v4218_v33, %v4214_v29  ;;  %v3344_v43 = vadd.f32 %v3343_v18, %v9840_v62  ;;  %v3432_v57 = vpop.f32.mrf.mxu3 }
 0x455   : > { %v3514_v55 = vpop.f32.mrf.mxu0 }
 0x456   : > { %12429 = vst [vmem:[#allocation120_spill] sm:$0xff] %v10199_v8  ;;  %v3433_v22 = vadd.f32 %v3432_v57, %v3344_v43  ;;  %v3515_v25 = vadd.f32 %v3514_v55, %v3426_v47  ;;  %v3603_v4 = vpop.f32.mrf.mxu1 }
 0x458   : > { %v3604_v60 = vadd.f32 %v3603_v4, %v3515_v25  ;;  %3385 = vmatmul.bf16.gmra.mxu2 %v12430_v50  ;;  %3553 = vmatmul.bf16.gmra.mxu0 %v12352_v1 }
 0x459   : > { %3474 = vmatmul.bf16.gmra.mxu3 %v12431_v20  ;;  %3642 = vmatmul.bf16.gmra.mxu1 %v12353_v15 }
 0x45a   : > { %v4222_v47 = vmax.f32 %v3604_v60, 0.0  ;;  %v6591_v60 = vld [vmem:[%s11914_s1 + $0xd8] sm:$0xf0] }
 0x45b   : > { %v3346_v6 = vpop.f32.mrf.mxu2 }
 0x45c   : > { %v3347_v58 = vadd.f32 %v3346_v6, %v9868_v46  ;;  %v3435_v14 = vpop.f32.mrf.mxu3  ;;  %v12433_v6 = vld [vmem:[#allocation89_spill] sm:$0xff] }
 0x45d   : > { %v3516_v27 = vpop.f32.mrf.mxu0 }
 0x45e   : > { %v3436_v62 = vadd.f32 %v3435_v14, %v3347_v58  ;;  %v3517_v48 = vadd.f32 %v3516_v27, %v3428_v37  ;;  %v3605_v45 = vpop.f32.mrf.mxu1  ;;  %v12434_v37 = vld [vmem:[#allocation92_spill] sm:$0xff] }
 0x460   : > { %v3606_v29 = vadd.f32 %v3605_v45, %v3517_v48 }
 0x462   : > { %v4226_v33 = vmax.f32 %v3606_v29, 0.0 }
 0x463   : > { %v3348_v4 = vpop.f32.mrf.mxu2 }
 0x464   : > { %v3349_v18 = vadd.f32 %v3348_v4, %v9902_v42  ;;  %v3437_v43 = vpop.f32.mrf.mxu3  ;;  %v10208_v57 = vpack.c.bf16 %v4226_v33, %v4222_v47  ;;  %v7696_v42 = vld [vmem:[%s11914_s1 + $0xcc] sm:$0xf] }
 0x465   : > { %v3519_v55 = vpop.f32.mrf.mxu0  ;;  %v7692_v4 = vld [vmem:[%s11914_s1 + $0xac] sm:$0xf] }
 0x466   : > { %12432 = vst [vmem:[#allocation85_spill] sm:$0xff] %v10208_v57  ;;  %v10210_v25 = vadd.f32 %v3437_v43, %v3349_v18  ;;  %v3520_v8 = vadd.f32 %v3519_v55, %v3431_v11  ;;  %v3608_v15 = vpop.f32.mrf.mxu1  ;;  %v6594_v11 = vor.u32 %v7696_v42, %v6591_v60  ;;  %v6575_v18 = vld [vmem:[%s11914_s1 + $0xb8] sm:$0xf0] }
 0x467   : > { %v6578_v55 = vor.u32 %v7692_v4, %v6575_v18 }
 0x468   : > { %v3609_v46 = vadd.f32 %v3608_v15, %v3520_v8  ;;  %3390 = vmatmul.bf16.gmra.mxu2 %v12433_v6  ;;  %3558 = vmatmul.bf16.gmra.mxu0 %v12355_v39  ;;  %v7728_v15 = vld [vmem:[%s11914_s1 + $0x1cc] sm:$0xf]  ;;  %v6719_v8 = vld [vmem:[%s11914_s1 + $0x1d8] sm:$0xf0] }
 0x469   : > { %3479 = vmatmul.bf16.gmra.mxu3 %v12434_v37  ;;  %3647 = vmatmul.bf16.gmra.mxu1 %v12356_v2  ;;  %v6722_v48 = vor.u32 %v7728_v15, %v6719_v8  ;;  %v7688_v15 = vld [vmem:[%s11914_s1 + $0x8c] sm:$0xf]  ;;  %v6559_v8 = vld [vmem:[%s11914_s1 + $0x98] sm:$0xf0] }
 0x46a   : > { %3679 = vmatpush.bf16.msrb.mxu2 %v6594_v11  ;;  %v4230_v60 = vmax.f32 %v3609_v46, 0.0  ;;  %v6562_v46 = vor.u32 %v7688_v15, %v6559_v8 }
 0x46b   : > { %v3351_v58 = vpop.f32.mrf.mxu2  ;;  %3768 = vmatpush.bf16.msrb.mxu3 %v6722_v48 }
 0x46c   : > { %v3352_v14 = vadd.f32 %v3351_v58, %v9930_v12  ;;  %v3440_v27 = vpop.f32.mrf.mxu3  ;;  %v7724_v12 = vld [vmem:[%s11914_s1 + $0x1ac] sm:$0xf] }
 0x46d   : > { %v3521_v45 = vpop.f32.mrf.mxu0 }
 0x46e   : > { %v10229_v29 = vadd.f32 %v3440_v27, %v3352_v14  ;;  %v3522_v47 = vadd.f32 %v3521_v45, %v3433_v22  ;;  %v3610_v33 = vpop.f32.mrf.mxu1  ;;  %v6703_v22 = vld [vmem:[%s11914_s1 + $0x1b8] sm:$0xf0]  ;;  %3680 = vmatpush.bf16.msrb.mxu2 %v6578_v55  ;;  %v7720_v14 = vld [vmem:[%s11914_s1 + $0x18c] sm:$0xf] }
 0x46f   : > { %v6706_v42 = vor.u32 %v7724_v12, %v6703_v22  ;;  %v6687_v45 = vld [vmem:[%s11914_s1 + $0x198] sm:$0xf0]  ;;  %v7716_v22 = vld [vmem:[%s11914_s1 + $0x16c] sm:$0xf] }
 0x470   : > { %v3611_v43 = vadd.f32 %v3610_v33, %v3522_v47  ;;  %v6690_v4 = vor.u32 %v7720_v14, %v6687_v45  ;;  %v6543_v55 = vld [vmem:[%s11914_s1 + $0x78] sm:$0xf0]  ;;  %v7680_v14 = vld [vmem:[%s11914_s1 + $0x4c] sm:$0xf] }
 0x471   : > { %3769 = vmatpush.bf16.msrb.mxu3 %v6706_v42 }
 0x472   : > { %v4234_v58 = vmax.f32 %v3611_v43, 0.0  ;;  %3681 = vmatpush.bf16.msrb.mxu2 %v6562_v46 }
 0x473   : > { %v3353_v11 = vpop.f32.mrf.mxu2 }
 0x474   : > { %v3354_v27 = vadd.f32 %v3353_v11, %v9964_v9  ;;  %v3442_v48 = vpop.f32.mrf.mxu3  ;;  %v10256_v47 = vpack.c.bf16 %v4234_v58, %v4230_v60  ;;  %v7684_v9 = vld [vmem:[%s11914_s1 + $0x6c] sm:$0xf]  ;;  %v6671_v58 = vld [vmem:[%s11914_s1 + $0x178] sm:$0xf0] }
 0x475   : > { %v3524_v33 = vpop.f32.mrf.mxu0  ;;  %3770 = vmatpush.bf16.msrb.mxu3 %v6690_v4  ;;  %v12435_v60 = vld [vmem:[#allocation94_spill] sm:$0xff]  ;;  %v12436_v11 = vld [vmem:[#allocation97_spill] sm:$0xff]  ;;  %v6674_v15 = vor.u32 %v7716_v22, %v6671_v58 }
 0x476   : > { %v10258_v18 = vadd.f32 %v3442_v48, %v3354_v27  ;;  %v3525_v12 = vadd.f32 %v3524_v33, %v3436_v62  ;;  %v3613_v43 = vpop.f32.mrf.mxu1  ;;  %v6546_v62 = vor.u32 %v7684_v9, %v6543_v55  ;;  %v6527_v27 = vld [vmem:[%s11914_s1 + $0x58] sm:$0xf0]  ;;  %v7712_v48 = vld [vmem:[%s11914_s1 + $0x14c] sm:$0xf] }
 0x477   : > { %v6530_v33 = vor.u32 %v7680_v14, %v6527_v27  ;;  %v6655_v4 = vld [vmem:[%s11914_s1 + $0x158] sm:$0xf0]  ;;  %v7708_v58 = vld [vmem:[%s11914_s1 + $0x12c] sm:$0xf] }
 0x478   : > { %v3614_v42 = vadd.f32 %v3613_v43, %v3525_v12  ;;  %3395 = vmatmul.bf16.gmra.mxu2 %v12435_v60  ;;  %3563 = vmatmul.bf16.gmra.mxu0 %v12358_v13  ;;  %v6658_v43 = vor.u32 %v7712_v48, %v6655_v4  ;;  %v7704_v4 = vld [vmem:[%s11914_s1 + $0x10c] sm:$0xf] }
 0x479   : > { %3484 = vmatmul.bf16.gmra.mxu3 %v12436_v11  ;;  %3652 = vmatmul.bf16.gmra.mxu1 %v12359_v5 }
 0x47a   : > { %3682 = vmatpush.bf16.msrb.mxu2 %v6546_v62  ;;  %3771 = vmatpush.bf16.msrb.mxu3 %v6674_v15  ;;  %v7676_v62 = vld [vmem:[%s11914_s1 + $0x2c] sm:$0xf]  ;;  %v4238_v27 = vmax.f32 %v3614_v42, 0.0 }
 0x47b   : > { %v3356_v8 = vpop.f32.mrf.mxu2 }
 0x47c   : > { %v3357_v46 = vadd.f32 %v3356_v8, %v9992_v16  ;;  %v3445_v45 = vpop.f32.mrf.mxu3  ;;  %v6511_v16 = vld [vmem:[%s11914_s1 + $0x38] sm:$0xf0] }
 0x47d   : > { %v3526_v12 = vpop.f32.mrf.mxu0  ;;  %v6514_v8 = vor.u32 %v7676_v62, %v6511_v16 }
 0x47e   : > { %v10289_v9 = vadd.f32 %v3445_v45, %v3357_v46  ;;  %v3527_v55 = vadd.f32 %v3526_v12, %v10210_v25  ;;  %v3615_v22 = vpop.f32.mrf.mxu1  ;;  %3683 = vmatpush.bf16.msrb.mxu2 %v6530_v33  ;;  %3772 = vmatpush.bf16.msrb.mxu3 %v6658_v43  ;;  %v6639_v25 = vld [vmem:[%s11914_s1 + $0x138] sm:$0xf0]  ;;  %v7672_v45 = vld [vmem:[%s11914_s1 + $0xc] sm:$0xf] }
 0x47f   : > { %v6642_v14 = vor.u32 %v7708_v58, %v6639_v25  ;;  %v6495_v33 = vld [vmem:[%s11914_s1 + $0x18] sm:$0xf0] }
 0x480   : > { %v3616_v15 = vadd.f32 %v3615_v22, %v3527_v55  ;;  %v6498_v42 = vor.u32 %v7672_v45, %v6495_v33  ;;  %v6623_v55 = vld [vmem:[%s11914_s1 + $0x118] sm:$0xf0]  ;;  %v12439_v45 = vld [vmem:[#allocation102_spill] sm:$0xff] }
 0x481   : > { %v6626_v16 = vor.u32 %v7704_v4, %v6623_v55  ;;  %v6863_v25 = vld [vmem:[%s11914_s1 + $0x2f8] sm:$0xf0] }
 0x482   : > { %v4242_v48 = vmax.f32 %v3616_v15, 0.0  ;;  %3684 = vmatpush.bf16.msrb.mxu2 %v6514_v8  ;;  %3773 = vmatpush.bf16.msrb.mxu3 %v6642_v14  ;;  %v7796_v14 = vld [vmem:[%s11914_s1 + $0x3ec] sm:$0xf] }
 0x483   : > { %v3358_v46 = vpop.f32.mrf.mxu2 }
 0x484   : > { %v3359_v12 = vadd.f32 %v3358_v46, %v10026_v44  ;;  %v3447_v43 = vpop.f32.mrf.mxu3  ;;  %v10317_v22 = vpack.c.bf16 %v4242_v48, %v4238_v27  ;;  %v7764_v44 = vld [vmem:[%s11914_s1 + $0x2ec] sm:$0xf]  ;;  %v6991_v46 = vld [vmem:[%s11914_s1 + $0x3f8] sm:$0xf0] }
 0x485   : > { %v3529_v62 = vpop.f32.mrf.mxu0  ;;  %v12438_v48 = vld [vmem:[#allocation99_spill] sm:$0xff]  ;;  %v6994_v33 = vor.u32 %v7796_v14, %v6991_v46 }
 0x486   : > { %12437 = vst [vmem:[#allocation87_spill] sm:$0xff] %v10317_v22  ;;  %v10319_v58 = vadd.f32 %v3447_v43, %v3359_v12  ;;  %v3530_v15 = vadd.f32 %v3529_v62, %v10229_v29  ;;  %v3618_v8 = vpop.f32.mrf.mxu1  ;;  %3685 = vmatpush.bf16.msrb.mxu2 %v6498_v42  ;;  %3774 = vmatpush.bf16.msrb.mxu3 %v6626_v16  ;;  %v7760_v12 = vld [vmem:[%s11914_s1 + $0x2cc] sm:$0xf]  ;;  %v6847_v43 = vld [vmem:[%s11914_s1 + $0x2d8] sm:$0xf0] }
 0x487   : > { %v6866_v29 = vor.u32 %v7764_v44, %v6863_v25  ;;  %3945 = vmatpush.bf16.msrb.mxu1 %v6994_v33  ;;  %v7792_v42 = vld [vmem:[%s11914_s1 + $0x3cc] sm:$0xf]  ;;  %v6850_v16 = vor.u32 %v7760_v12, %v6847_v43 }
 0x488   : > { %v3619_v27 = vadd.f32 %v3618_v8, %v3530_v15  ;;  %3400 = vmatmul.bf16.gmra.mxu2 %v12438_v48  ;;  %3568 = vmatmul.bf16.gmra.mxu0 %v12361_v24  ;;  %v6975_v15 = vld [vmem:[%s11914_s1 + $0x3d8] sm:$0xf0]  ;;  %v7756_v46 = vld [vmem:[%s11914_s1 + $0x2ac] sm:$0xf] }
 0x489   : > { %3489 = vmatmul.bf16.gmra.mxu3 %v12439_v45  ;;  %3657 = vmatmul.bf16.gmra.mxu1 %v12362_v34  ;;  %v6978_v44 = vor.u32 %v7792_v42, %v6975_v15  ;;  %v7788_v33 = vld [vmem:[%s11914_s1 + $0x3ac] sm:$0xf]  ;;  %v6815_v15 = vld [vmem:[%s11914_s1 + $0x298] sm:$0xf0] }
 0x48a   : > { %3856 = vmatpush.bf16.msrb.mxu0 %v6866_v29  ;;  %v4246_v42 = vmax.f32 %v3619_v27, 0.0 }
 0x48b   : > { %v3361_v4 = vpop.f32.mrf.mxu2  ;;  %3946 = vmatpush.bf16.msrb.mxu1 %v6978_v44 }
 0x48c   : > { %v3362_v55 = vadd.f32 %v3361_v4, %v10045_v51  ;;  %v3450_v62 = vpop.f32.mrf.mxu3  ;;  %v6831_v51 = vld [vmem:[%s11914_s1 + $0x2b8] sm:$0xf0] }
 0x48d   : > { %v3531_v8 = vpop.f32.mrf.mxu0  ;;  %v6834_v12 = vor.u32 %v7756_v46, %v6831_v51 }
 0x48e   : > { %v10351_v25 = vadd.f32 %v3450_v62, %v3362_v55  ;;  %v3532_v14 = vadd.f32 %v3531_v8, %v10258_v18  ;;  %v3620_v29 = vpop.f32.mrf.mxu1  ;;  %3857 = vmatpush.bf16.msrb.mxu0 %v6850_v16  ;;  %v6959_v18 = vld [vmem:[%s11914_s1 + $0x3b8] sm:$0xf0]  ;;  %v7752_v16 = vld [vmem:[%s11914_s1 + $0x28c] sm:$0xf] }
 0x48f   : > { %v6962_v43 = vor.u32 %v7788_v33, %v6959_v18  ;;  %v7784_v8 = vld [vmem:[%s11914_s1 + $0x38c] sm:$0xf]  ;;  %v6818_v27 = vor.u32 %v7752_v16, %v6815_v15  ;;  %v6927_v16 = vld [vmem:[%s11914_s1 + $0x378] sm:$0xf0] }
 0x490   : > { %v3621_v4 = vadd.f32 %v3620_v29, %v3532_v14  ;;  %v6943_v29 = vld [vmem:[%s11914_s1 + $0x398] sm:$0xf0]  ;;  %v12442_v15 = vld [vmem:[#allocation106_spill] sm:$0xff] }
 0x491   : > { %3947 = vmatpush.bf16.msrb.mxu1 %v6962_v43  ;;  %v6946_v33 = vor.u32 %v7784_v8, %v6943_v29  ;;  %v6799_v43 = vld [vmem:[%s11914_s1 + $0x278] sm:$0xf0]  ;;  %v7776_v29 = vld [vmem:[%s11914_s1 + $0x34c] sm:$0xf] }
 0x492   : > { %v4250_v55 = vmax.f32 %v3621_v4, 0.0  ;;  %3858 = vmatpush.bf16.msrb.mxu0 %v6834_v12 }
 0x493   : > { %v3363_v62 = vpop.f32.mrf.mxu2 }
 0x494   : > { %v3364_v44 = vadd.f32 %v3363_v62, %v10055_v30  ;;  %v3452_v14 = vpop.f32.mrf.mxu3  ;;  %v10379_v46 = vpack.c.bf16 %v4250_v55, %v4246_v42  ;;  %v7748_v30 = vld [vmem:[%s11914_s1 + $0x26c] sm:$0xf]  ;;  %v12441_v62 = vld [vmem:[#allocation104_spill] sm:$0xff] }
 0x495   : > { %v3534_v51 = vpop.f32.mrf.mxu0  ;;  %3948 = vmatpush.bf16.msrb.mxu1 %v6946_v33  ;;  %v7780_v42 = vld [vmem:[%s11914_s1 + $0x36c] sm:$0xf] }
 0x496   : > { %12440 = vst [vmem:[#allocation89_spill] sm:$0xff] %v10379_v46  ;;  %v10381_v4 = vadd.f32 %v3452_v14, %v3364_v44  ;;  %v3535_v12 = vadd.f32 %v3534_v51, %v10289_v9  ;;  %v3623_v18 = vpop.f32.mrf.mxu1  ;;  %3859 = vmatpush.bf16.msrb.mxu0 %v6818_v27  ;;  %v6802_v9 = vor.u32 %v7748_v30, %v6799_v43  ;;  %v7744_v14 = vld [vmem:[%s11914_s1 + $0x24c] sm:$0xf]  ;;  %v6783_v27 = vld [vmem:[%s11914_s1 + $0x258] sm:$0xf0] }
 0x497   : > { %v6930_v8 = vor.u32 %v7780_v42, %v6927_v16 }
 0x498   : > { %v3624_v55 = vadd.f32 %v3623_v18, %v3535_v12  ;;  %3405 = vmatmul.bf16.gmra.mxu2 %v12441_v62  ;;  %3573 = vmatmul.bf16.gmra.mxu0 %v9210_v40  ;;  %v6786_v12 = vor.u32 %v7744_v14, %v6783_v27  ;;  %v6911_v18 = vld [vmem:[%s11914_s1 + $0x358] sm:$0xf0] }
 0x499   : > { %3494 = vmatmul.bf16.gmra.mxu3 %v12442_v15  ;;  %3662 = vmatmul.bf16.gmra.mxu1 %v9219_v23  ;;  %v6914_v43 = vor.u32 %v7776_v29, %v6911_v18  ;;  %v7736_v18 = vld [vmem:[%s11914_s1 + $0x20c] sm:$0xf] }
 0x49a   : > { %3860 = vmatpush.bf16.msrb.mxu0 %v6802_v9  ;;  %3949 = vmatpush.bf16.msrb.mxu1 %v6930_v8  ;;  %v7740_v8 = vld [vmem:[%s11914_s1 + $0x22c] sm:$0xf] }
 0x49b   : > { %v3366_v44 = vpop.f32.mrf.mxu2 }
 0x49c   : > { %v3367_v51 = vadd.f32 %v3366_v44, %v10059_v61  ;;  %v3455_v33 = vpop.f32.mrf.mxu3  ;;  %v6767_v61 = vld [vmem:[%s11914_s1 + $0x238] sm:$0xf0]  ;;  %v7772_v44 = vld [vmem:[%s11914_s1 + $0x32c] sm:$0xf] }
 0x49d   : > { %v3536_v30 = vpop.f32.mrf.mxu0  ;;  %v6770_v27 = vor.u32 %v7740_v8, %v6767_v61  ;;  %v6879_v8 = vld [vmem:[%s11914_s1 + $0x318] sm:$0xf0] }
 0x49e   : > { %v3456_v42 = vadd.f32 %v3455_v33, %v3367_v51  ;;  %v3537_v9 = vadd.f32 %v3536_v30, %v10319_v58  ;;  %v3625_v16 = vpop.f32.mrf.mxu1  ;;  %3861 = vmatpush.bf16.msrb.mxu0 %v6786_v12  ;;  %3950 = vmatpush.bf16.msrb.mxu1 %v6914_v43  ;;  %v6895_v58 = vld [vmem:[%s11914_s1 + $0x338] sm:$0xf0]  ;;  %v4254_v51 = vmax.f32 %v3624_v55, 0.0  ;;  %v7768_v43 = vld [vmem:[%s11914_s1 + $0x30c] sm:$0xf] }
 0x49f   : > { %v6898_v29 = vor.u32 %v7772_v44, %v6895_v58  ;;  %v6751_v30 = vld [vmem:[%s11914_s1 + $0x218] sm:$0xf0] }
 0x4a0   : > { %v3626_v14 = vadd.f32 %v3625_v16, %v3537_v9  ;;  %v6754_v55 = vor.u32 %v7736_v18, %v6751_v30 }
 0x4a2   : > { %v4258_v33 = vmax.f32 %v3626_v14, 0.0  ;;  %3862 = vmatpush.bf16.msrb.mxu0 %v6770_v27  ;;  %3951 = vmatpush.bf16.msrb.mxu1 %v6898_v29  ;;  %v6882_v14 = vor.u32 %v7768_v43, %v6879_v8 }
 0x4a3   : > { %v3368_v12 = vpop.f32.mrf.mxu2 }
 0x4a4   : > { %v3369_v9 = vadd.f32 %v3368_v12, %v10069_v41  ;;  %v3457_v16 = vpop.f32.mrf.mxu3  ;;  %v10439_v61 = vpack.c.bf16 %v4258_v33, %v4254_v51  ;;  %v12444_v41 = vld [vmem:[#allocation6_spill] sm:$0xff]  ;;  %v12445_v12 = vld [vmem:[#allocation8_spill] sm:$0xff] }
 0x4a5   : > { %v3539_v44 = vpop.f32.mrf.mxu0 }
 0x4a6   : > { %12443 = vst [vmem:[#allocation92_spill] sm:$0xff] %v10439_v61  ;;  %v3458_v27 = vadd.f32 %v3457_v16, %v3369_v9  ;;  %v3540_v58 = vadd.f32 %v3539_v44, %v10351_v25  ;;  %v3628_v29 = vpop.f32.mrf.mxu1  ;;  %3863 = vmatpush.bf16.msrb.mxu0 %v6754_v55  ;;  %3952 = vmatpush.bf16.msrb.mxu1 %v6882_v14 }
 0x4a8   : > { %v3629_v46 = vadd.f32 %v3628_v29, %v3540_v58  ;;  %3578 = vmatmul.bf16.gmra.mxu0 %v9282_v49  ;;  %3686 = vmatmul.bf16.vlgmr.msrb.gmra.mxu2 %v12444_v41 }
 0x4a9   : > { %3667 = vmatmul.bf16.gmra.mxu1 %v12365_v52  ;;  %3775 = vmatmul.bf16.vlgmr.msrb.gmra.mxu3 %v12445_v12 }
 0x4aa   : > { %v4262_v55 = vmax.f32 %v3629_v46, 0.0 }
 0x4ab   : > { %v3371_v18 = vpop.f32.mrf.mxu2 }
 0x4ac   : > { %v3372_v51 = vadd.f32 %v3371_v18, %v10073_v63  ;;  %v3460_v33 = vpop.f32.mrf.mxu3  ;;  %v12447_v18 = vld [vmem:[#allocation10_spill] sm:$0xff] }
 0x4ad   : > { %v3541_v30 = vpop.f32.mrf.mxu0 }
 0x4ae   : > { %v3461_v43 = vadd.f32 %v3460_v33, %v3372_v51  ;;  %v3542_v25 = vadd.f32 %v3541_v30, %v10381_v4  ;;  %v3630_v9 = vpop.f32.mrf.mxu1  ;;  %v12448_v4 = vld [vmem:[#allocation12_spill] sm:$0xff] }
 0x4b0   : > { %v3631_v16 = vadd.f32 %v3630_v9, %v3542_v25 }
 0x4b2   : > { %v4266_v8 = vmax.f32 %v3631_v16, 0.0 }
 0x4b3   : > { %v3373_v44 = vpop.f32.mrf.mxu2 }
 0x4b4   : > { %v3374_v14 = vadd.f32 %v3373_v44, %v10083_v56  ;;  %v3462_v58 = vpop.f32.mrf.mxu3  ;;  %v10449_v29 = vpack.c.bf16 %v4266_v8, %v4262_v55 }
 0x4b5   : > { %v3544_v41 = vpop.f32.mrf.mxu0 }
 0x4b6   : > { %12446 = vst [vmem:[#allocation94_spill] sm:$0xff] %v10449_v29  ;;  %v3463_v12 = vadd.f32 %v3462_v58, %v3374_v14  ;;  %v3545_v61 = vadd.f32 %v3544_v41, %v3456_v42  ;;  %v3633_v22 = vpop.f32.mrf.mxu1  ;;  %v12525_v29 = vld [vmem:[#allocation68_spill] sm:$0xff] }
 0x4b8   : > { %v3634_v63 = vadd.f32 %v3633_v22, %v3545_v61  ;;  %3583 = vmatmul.bf16.gmra.mxu0 %v12368_v17  ;;  %3691 = vmatmul.bf16.gmra.mxu2 %v12447_v18 }
 0x4b9   : > { %3672 = vmatmul.bf16.gmra.mxu1 %v12370_v36  ;;  %3780 = vmatmul.bf16.gmra.mxu3 %v12448_v4 }
 0x4ba   : > { %v4270_v42 = vmax.f32 %v3634_v63, 0.0 }
 0x4bb   : > { %v3376_v46 = vpop.f32.mrf.mxu2 }
 0x4bc   : > { %v3377_v51 = vadd.f32 %v3376_v46, %v10087_v59  ;;  %v3465_v56 = vpop.f32.mrf.mxu3  ;;  %v12450_v59 = vld [vmem:[#allocation14_spill] sm:$0xff] }
 0x4bd   : > { %v3546_v33 = vpop.f32.mrf.mxu0 }
 0x4be   : > { %v3466_v30 = vadd.f32 %v3465_v56, %v3377_v51  ;;  %v3547_v25 = vadd.f32 %v3546_v33, %v3458_v27  ;;  %v3635_v9 = vpop.f32.mrf.mxu1  ;;  %v12451_v27 = vld [vmem:[#allocation16_spill] sm:$0xff] }
 0x4c0   : > { %v3636_v16 = vadd.f32 %v3635_v9, %v3547_v25 }
 0x4c2   : > { %v4274_v55 = vmax.f32 %v3636_v16, 0.0 }
 0x4c3   : > { %v3378_v22 = vpop.f32.mrf.mxu2 }
 0x4c4   : > { %v3379_v61 = vadd.f32 %v3378_v22, %v10097_v26  ;;  %v3467_v8 = vpop.f32.mrf.mxu3  ;;  %v10457_v44 = vpack.c.bf16 %v4274_v55, %v4270_v42 }
 0x4c5   : > { %v3549_v14 = vpop.f32.mrf.mxu0 }
 0x4c6   : > { %12449 = vst [vmem:[#allocation97_spill] sm:$0xff] %v10457_v44  ;;  %v3468_v58 = vadd.f32 %v3467_v8, %v3379_v61  ;;  %v3550_v41 = vadd.f32 %v3549_v14, %v3461_v43  ;;  %v3638_v18 = vpop.f32.mrf.mxu1  ;;  %v12523_v44 = vld [vmem:[#allocation66_spill] sm:$0xff] }
 0x4c8   : > { %v3639_v4 = vadd.f32 %v3638_v18, %v3550_v41  ;;  %3696 = vmatmul.bf16.gmra.mxu2 %v12450_v59  ;;  %3864 = vmatmul.bf16.vlgmr.msrb.gmra.mxu0 %v12375_v28  ;;  %v12455_v18 = vld [vmem:[#allocation41_spill] sm:$0xff] }
 0x4c9   : > { %3785 = vmatmul.bf16.gmra.mxu3 %v12451_v27  ;;  %3953 = vmatmul.bf16.vlgmr.msrb.gmra.mxu1 %v12377_v21 }
 0x4ca   : > { %v4278_v43 = vmax.f32 %v3639_v4, 0.0 }
 0x4cb   : > { %v3381_v63 = vpop.f32.mrf.mxu2 }
 0x4cc   : > { %v3382_v46 = vadd.f32 %v3381_v63, %v10101_v7  ;;  %v3470_v26 = vpop.f32.mrf.mxu3  ;;  %v12453_v7 = vld [vmem:[#allocation18_spill] sm:$0xff] }
 0x4cd   : > { %v3551_v51 = vpop.f32.mrf.mxu0 }
 0x4ce   : > { %v3471_v56 = vadd.f32 %v3470_v26, %v3382_v46  ;;  %v3552_v33 = vadd.f32 %v3551_v51, %v3463_v12  ;;  %v3640_v25 = vpop.f32.mrf.mxu1  ;;  %v12454_v12 = vld [vmem:[#allocation20_spill] sm:$0xff] }
 0x4d0   : > { %v3641_v9 = vadd.f32 %v3640_v25, %v3552_v33 }
 0x4d2   : > { %v4282_v16 = vmax.f32 %v3641_v9, 0.0 }
 0x4d3   : > { %v3383_v42 = vpop.f32.mrf.mxu2 }
 0x4d4   : > { %v3384_v55 = vadd.f32 %v3383_v42, %v10111_v53  ;;  %v3472_v22 = vpop.f32.mrf.mxu3  ;;  %v10465_v28 = vpack.c.bf16 %v4282_v16, %v4278_v43 }
 0x4d5   : > { %v3554_v61 = vpop.f32.mrf.mxu0 }
 0x4d6   : > { %12452 = vst [vmem:[#allocation99_spill] sm:$0xff] %v10465_v28  ;;  %v3473_v8 = vadd.f32 %v3472_v22, %v3384_v55  ;;  %v3555_v21 = vadd.f32 %v3554_v61, %v3466_v30  ;;  %v3643_v14 = vpop.f32.mrf.mxu1 }
 0x4d8   : > { %v3644_v41 = vadd.f32 %v3643_v14, %v3555_v21  ;;  %3701 = vmatmul.bf16.gmra.mxu2 %v12453_v7  ;;  %3869 = vmatmul.bf16.gmra.mxu0 %v12380_v0  ;;  %v12458_v21 = vld [vmem:[#allocation42_spill] sm:$0xff]  ;;  %v12460_v14 = vld [vmem:[#allocation44_spill] sm:$0xff] }
 0x4d9   : > { %3790 = vmatmul.bf16.gmra.mxu3 %v12454_v12  ;;  %3958 = vmatmul.bf16.gmra.mxu1 %v12455_v18 }
 0x4da   : > { %v4286_v30 = vmax.f32 %v3644_v41, 0.0 }
 0x4db   : > { %v3386_v4 = vpop.f32.mrf.mxu2 }
 0x4dc   : > { %v3387_v59 = vadd.f32 %v3386_v4, %v10115_v19  ;;  %v3475_v53 = vpop.f32.mrf.mxu3  ;;  %v12457_v19 = vld [vmem:[#allocation22_spill] sm:$0xff] }
 0x4dd   : > { %v3556_v27 = vpop.f32.mrf.mxu0 }
 0x4de   : > { %v3476_v63 = vadd.f32 %v3475_v53, %v3387_v59  ;;  %v3557_v46 = vadd.f32 %v3556_v27, %v3468_v58  ;;  %v3645_v26 = vpop.f32.mrf.mxu1  ;;  %v12459_v58 = vld [vmem:[#allocation24_spill] sm:$0xff] }
 0x4e0   : > { %v3646_v51 = vadd.f32 %v3645_v26, %v3557_v46 }
 0x4e2   : > { %v4290_v33 = vmax.f32 %v3646_v51, 0.0 }
 0x4e3   : > { %v3388_v25 = vpop.f32.mrf.mxu2 }
 0x4e4   : > { %v3389_v9 = vadd.f32 %v3388_v25, %v10125_v3  ;;  %v3477_v43 = vpop.f32.mrf.mxu3  ;;  %v10473_v0 = vpack.c.bf16 %v4290_v33, %v4286_v30 }
 0x4e5   : > { %v3559_v16 = vpop.f32.mrf.mxu0 }
 0x4e6   : > { %12456 = vst [vmem:[#allocation102_spill] sm:$0xff] %v10473_v0  ;;  %v3478_v42 = vadd.f32 %v3477_v43, %v3389_v9  ;;  %v3560_v55 = vadd.f32 %v3559_v16, %v3471_v56  ;;  %v3648_v22 = vpop.f32.mrf.mxu1 }
 0x4e8   : > { %v3649_v61 = vadd.f32 %v3648_v22, %v3560_v55  ;;  %3706 = vmatmul.bf16.gmra.mxu2 %v12457_v19  ;;  %3874 = vmatmul.bf16.gmra.mxu0 %v12458_v21  ;;  %v12463_v55 = vld [vmem:[#allocation46_spill] sm:$0xff]  ;;  %v12465_v22 = vld [vmem:[#allocation48_spill] sm:$0xff] }
 0x4e9   : > { %3795 = vmatmul.bf16.gmra.mxu3 %v12459_v58  ;;  %3963 = vmatmul.bf16.gmra.mxu1 %v12460_v14 }
 0x4ea   : > { %v4294_v56 = vmax.f32 %v3649_v61, 0.0 }
 0x4eb   : > { %v3391_v41 = vpop.f32.mrf.mxu2 }
 0x4ec   : > { %v3392_v7 = vadd.f32 %v3391_v41, %v10129_v31  ;;  %v3480_v3 = vpop.f32.mrf.mxu3  ;;  %v12462_v31 = vld [vmem:[#allocation26_spill] sm:$0xff] }
 0x4ed   : > { %v3561_v12 = vpop.f32.mrf.mxu0 }
 0x4ee   : > { %v3481_v18 = vadd.f32 %v3480_v3, %v3392_v7  ;;  %v3562_v4 = vadd.f32 %v3561_v12, %v3473_v8  ;;  %v3650_v59 = vpop.f32.mrf.mxu1  ;;  %v12464_v8 = vld [vmem:[#allocation28_spill] sm:$0xff] }
 0x4f0   : > { %v3651_v53 = vadd.f32 %v3650_v59, %v3562_v4 }
 0x4f2   : > { %v4298_v27 = vmax.f32 %v3651_v53, 0.0 }
 0x4f3   : > { %v3393_v46 = vpop.f32.mrf.mxu2 }
 0x4f4   : > { %v3394_v26 = vadd.f32 %v3393_v46, %v10139_v54  ;;  %v3482_v51 = vpop.f32.mrf.mxu3  ;;  %v10481_v30 = vpack.c.bf16 %v4298_v27, %v4294_v56 }
 0x4f5   : > { %v3564_v33 = vpop.f32.mrf.mxu0 }
 0x4f6   : > { %12461 = vst [vmem:[#allocation104_spill] sm:$0xff] %v10481_v30  ;;  %v3483_v25 = vadd.f32 %v3482_v51, %v3394_v26  ;;  %v3565_v9 = vadd.f32 %v3564_v33, %v3476_v63  ;;  %v3653_v43 = vpop.f32.mrf.mxu1  ;;  %v12468_v33 = vld [vmem:[#allocation50_spill] sm:$0xff] }
 0x4f7   : > { %v12521_v30 = vld [vmem:[#allocation62_spill] sm:$0xff] }
 0x4f8   : > { %v3654_v16 = vadd.f32 %v3653_v43, %v3565_v9  ;;  %3711 = vmatmul.bf16.gmra.mxu2 %v12462_v31  ;;  %3879 = vmatmul.bf16.gmra.mxu0 %v12463_v55  ;;  %v12470_v9 = vld [vmem:[#allocation52_spill] sm:$0xff] }
 0x4f9   : > { %3800 = vmatmul.bf16.gmra.mxu3 %v12464_v8  ;;  %3968 = vmatmul.bf16.gmra.mxu1 %v12465_v22 }
 0x4fa   : > { %v4302_v63 = vmax.f32 %v3654_v16, 0.0 }
 0x4fb   : > { %v3396_v61 = vpop.f32.mrf.mxu2 }
 0x4fc   : > { %v3397_v19 = vadd.f32 %v3396_v61, %v10143_v10  ;;  %v3485_v54 = vpop.f32.mrf.mxu3  ;;  %v12467_v10 = vld [vmem:[#allocation30_spill] sm:$0xff] }
 0x4fd   : > { %v3566_v21 = vpop.f32.mrf.mxu0 }
 0x4fe   : > { %v3486_v58 = vadd.f32 %v3485_v54, %v3397_v19  ;;  %v3567_v14 = vadd.f32 %v3566_v21, %v3478_v42  ;;  %v3655_v41 = vpop.f32.mrf.mxu1  ;;  %v12469_v42 = vld [vmem:[#allocation32_spill] sm:$0xff]  ;;  %v12471_v21 = vld [vmem:[#allocation118_spill] sm:$0xff] }
 0x500   : > { %v3656_v7 = vadd.f32 %v3655_v41, %v3567_v14 }
 0x502   : > { %v4306_v3 = vmax.f32 %v3656_v7, 0.0 }
 0x503   : > { %v3398_v12 = vpop.f32.mrf.mxu2 }
 0x504   : > { %v3399_v4 = vadd.f32 %v3398_v12, %v10153_v38  ;;  %v3487_v59 = vpop.f32.mrf.mxu3  ;;  %v10489_v53 = vpack.c.bf16 %v4306_v3, %v4302_v63 }
 0x505   : > { %v3569_v56 = vpop.f32.mrf.mxu0 }
 0x506   : > { %12466 = vst [vmem:[#allocation106_spill] sm:$0xff] %v10489_v53  ;;  %v3488_v27 = vadd.f32 %v3487_v59, %v3399_v4  ;;  %v3570_v46 = vadd.f32 %v3569_v56, %v3481_v18  ;;  %v3658_v26 = vpop.f32.mrf.mxu1  ;;  %v12474_v56 = vld [vmem:[#allocation54_spill] sm:$0xff]  ;;  %v12519_v53 = vld [vmem:[#allocation60_spill] sm:$0xff] }
 0x508   : > { %v3659_v51 = vadd.f32 %v3658_v26, %v3570_v46  ;;  %3716 = vmatmul.bf16.gmra.mxu2 %v12467_v10  ;;  %3884 = vmatmul.bf16.gmra.mxu0 %v12468_v33  ;;  %v12476_v46 = vld [vmem:[#allocation56_spill] sm:$0xff] }
 0x509   : > { %3805 = vmatmul.bf16.gmra.mxu3 %v12469_v42  ;;  %3973 = vmatmul.bf16.gmra.mxu1 %v12470_v9 }
 0x50a   : > { %v4310_v18 = vmax.f32 %v3659_v51, 0.0  ;;  %v12477_v51 = vld [vmem:[#allocation119_spill] sm:$0xff] }
 0x50b   : > { %v3401_v43 = vpop.f32.mrf.mxu2 }
 0x50c   : > { %v3402_v16 = vadd.f32 %v3401_v43, %v10157_v32  ;;  %v3490_v38 = vpop.f32.mrf.mxu3  ;;  %v12473_v32 = vld [vmem:[#allocation34_spill] sm:$0xff] }
 0x50d   : > { %v3571_v31 = vpop.f32.mrf.mxu0 }
 0x50e   : > { %v3491_v55 = vadd.f32 %v3490_v38, %v3402_v16  ;;  %v3572_v8 = vadd.f32 %v3571_v31, %v3483_v25  ;;  %v3660_v22 = vpop.f32.mrf.mxu1  ;;  %v12475_v25 = vld [vmem:[#allocation36_spill] sm:$0xff] }
 0x510   : > { %v3661_v61 = vadd.f32 %v3660_v22, %v3572_v8 }
 0x512   : > { %v4314_v19 = vmax.f32 %v3661_v61, 0.0 }
 0x513   : > { %v3403_v54 = vpop.f32.mrf.mxu2 }
 0x514   : > { %v3404_v14 = vadd.f32 %v3403_v54, %v12471_v21  ;;  %v3492_v41 = vpop.f32.mrf.mxu3  ;;  %v10497_v7 = vpack.c.bf16 %v4314_v19, %v4310_v18 }
 0x515   : > { %v3574_v63 = vpop.f32.mrf.mxu0 }
 0x516   : > { %12472 = vst [vmem:[#allocation6_spill] sm:$0xff] %v10497_v7  ;;  %v3493_v3 = vadd.f32 %v3492_v41, %v3404_v14  ;;  %v3575_v12 = vadd.f32 %v3574_v63, %v3486_v58  ;;  %v3663_v4 = vpop.f32.mrf.mxu1  ;;  %v12479_v63 = vld [vmem:[#allocation38_spill] sm:$0xff] }
 0x518   : > { %v3664_v59 = vadd.f32 %v3663_v4, %v3575_v12  ;;  %3721 = vmatmul.bf16.gmra.mxu2 %v12473_v32  ;;  %3889 = vmatmul.bf16.gmra.mxu0 %v12474_v56  ;;  %v12480_v12 = vld [vmem:[#allocation59_spill] sm:$0xff] }
 0x519   : > { %3810 = vmatmul.bf16.gmra.mxu3 %v12475_v25  ;;  %3978 = vmatmul.bf16.gmra.mxu1 %v12476_v46 }
 0x51a   : > { %v4318_v58 = vmax.f32 %v3664_v59, 0.0  ;;  %v12481_v59 = vld [vmem:[#allocation40_spill] sm:$0xff] }
 0x51b   : > { %v3406_v26 = vpop.f32.mrf.mxu2 }
 0x51c   : > { %v3407_v10 = vadd.f32 %v3406_v26, %v12477_v51  ;;  %v3495_v33 = vpop.f32.mrf.mxu3 }
 0x51d   : > { %v3576_v42 = vpop.f32.mrf.mxu0 }
 0x51e   : > { %v3496_v9 = vadd.f32 %v3495_v33, %v3407_v10  ;;  %v3577_v43 = vadd.f32 %v3576_v42, %v3488_v27  ;;  %v3665_v16 = vpop.f32.mrf.mxu1  ;;  %v8011_v27 = vld [vmem:[%s11915_s2] sm:$0xf] }
 0x51f   : > { %v10512_v4 = vperm.slane %v8011_v27, 3 }
 0x520   : > { %v3666_v38 = vadd.f32 %v3665_v16, %v3577_v43 }
 0x522   : > { %v4322_v31 = vmax.f32 %v3666_v38, 0.0 }
 0x523   : > { %v3408_v8 = vpop.f32.mrf.mxu2 }
 0x524   : > { %v3409_v22 = vadd.f32 %v3408_v8, %v10179_v35  ;;  %v3497_v61 = vpop.f32.mrf.mxu3  ;;  %v10505_v18 = vpack.c.bf16 %v4322_v31, %v4318_v58  ;;  %v12482_v35 = vld [vmem:[#allocation61_spill] sm:$0xff] }
 0x525   : > { %v3579_v19 = vpop.f32.mrf.mxu0 }
 0x526   : > { %12478 = vst [vmem:[#allocation8_spill] sm:$0xff] %v10505_v18  ;;  %v3498_v54 = vadd.f32 %v3497_v61, %v3409_v22  ;;  %v3580_v21 = vadd.f32 %v3579_v19, %v3491_v55  ;;  %v3668_v14 = vpop.f32.mrf.mxu1 }
 0x528   : > { %v3669_v41 = vadd.f32 %v3668_v14, %v3580_v21  ;;  %3726 = vmatmul.bf16.gmra.mxu2 %v12479_v63  ;;  %3894 = vmatmul.bf16.gmra.mxu0 %v12480_v12  ;;  %v12484_v21 = vld [vmem:[#allocation7_spill] sm:$0xff]  ;;  %v12485_v14 = vld [vmem:[#allocation65_spill] sm:$0xff] }
 0x529   : > { %3815 = vmatmul.bf16.gmra.mxu3 %v12481_v59  ;;  %3983 = vmatmul.bf16.gmra.mxu1 %v12482_v35  ;;  %v12487_v63 = vld [vmem:[#allocation67_spill] sm:$0xff] }
 0x52a   : > { %v4326_v33 = vmax.f32 %v3669_v41, 0.0 }
 0x52b   : > { %v3687_v32 = vpop.f32.mrf.mxu2 }
 0x52c   : > { %v3688_v56 = vadd.f32 %v3687_v32, %v10512_v4  ;;  %v3776_v55 = vpop.f32.mrf.mxu3 }
 0x52d   : > { %v3581_v25 = vpop.f32.mrf.mxu0 }
 0x52e   : > { %v3777_v46 = vadd.f32 %v3776_v55, %v3688_v56  ;;  %v3582_v26 = vadd.f32 %v3581_v25, %v3493_v3  ;;  %v3670_v51 = vpop.f32.mrf.mxu1  ;;  %v12486_v3 = vld [vmem:[#allocation9_spill] sm:$0xff] }
 0x530   : > { %v3671_v10 = vadd.f32 %v3670_v51, %v3582_v26 }
 0x532   : > { %v4330_v42 = vmax.f32 %v3671_v10, 0.0 }
 0x533   : > { %v3689_v43 = vpop.f32.mrf.mxu2 }
 0x534   : > { %v3690_v16 = vadd.f32 %v3689_v43, %v10512_v4  ;;  %v3778_v38 = vpop.f32.mrf.mxu3  ;;  %v10518_v58 = vpack.c.bf16 %v4330_v42, %v4326_v33 }
 0x535   : > { %v3584_v31 = vpop.f32.mrf.mxu0 }
 0x536   : > { %12483 = vst [vmem:[#allocation10_spill] sm:$0xff] %v10518_v58  ;;  %v3779_v8 = vadd.f32 %v3778_v38, %v3690_v16  ;;  %v3585_v22 = vadd.f32 %v3584_v31, %v3496_v9  ;;  %v3673_v61 = vpop.f32.mrf.mxu1  ;;  %v12517_v58 = vld [vmem:[#allocation57_spill] sm:$0xff] }
 0x538   : > { %v3674_v19 = vadd.f32 %v3673_v61, %v3585_v22  ;;  %3731 = vmatmul.bf16.gmra.mxu2 %v12484_v21  ;;  %3899 = vmatmul.bf16.gmra.mxu0 %v12485_v14  ;;  %v12489_v22 = vld [vmem:[#allocation11_spill] sm:$0xff]  ;;  %v7119_v14 = vld [vmem:[%s11914_s1 + $0x4f8] sm:$0xf0] }
 0x539   : > { %3820 = vmatmul.bf16.gmra.mxu3 %v12486_v3  ;;  %3988 = vmatmul.bf16.gmra.mxu1 %v12487_v63  ;;  %v12490_v61 = vld [vmem:[#allocation71_spill] sm:$0xff] }
 0x53a   : > { %v4334_v9 = vmax.f32 %v3674_v19, 0.0  ;;  %v12492_v19 = vld [vmem:[#allocation73_spill] sm:$0xff]  ;;  %v7828_v21 = vld [vmem:[%s11914_s1 + $0x4ec] sm:$0xf] }
 0x53b   : > { %v3692_v41 = vpop.f32.mrf.mxu2 }
 0x53c   : > { %v3693_v12 = vadd.f32 %v3692_v41, %v10512_v4  ;;  %v3781_v27 = vpop.f32.mrf.mxu3 }
 0x53d   : > { %v3586_v59 = vpop.f32.mrf.mxu0 }
 0x53e   : > { %v3782_v35 = vadd.f32 %v3781_v27, %v3693_v12  ;;  %v3587_v32 = vadd.f32 %v3586_v59, %v3498_v54  ;;  %v3675_v56 = vpop.f32.mrf.mxu1  ;;  %v12491_v54 = vld [vmem:[#allocation13_spill] sm:$0xff] }
 0x540   : > { %v3676_v55 = vadd.f32 %v3675_v56, %v3587_v32  ;;  %v7860_v56 = vld [vmem:[%s11914_s1 + $0x5ec] sm:$0xf] }
 0x542   : > { %v4338_v25 = vmax.f32 %v3676_v55, 0.0  ;;  %v7247_v55 = vld [vmem:[%s11914_s1 + $0x5f8] sm:$0xf0] }
 0x543   : > { %v3694_v26 = vpop.f32.mrf.mxu2 }
 0x544   : > { %v3695_v51 = vadd.f32 %v3694_v26, %v10512_v4  ;;  %v3783_v10 = vpop.f32.mrf.mxu3  ;;  %v10526_v33 = vpack.c.bf16 %v4338_v25, %v4334_v9  ;;  %v7250_v9 = vor.u32 %v7860_v56, %v7247_v55 }
 0x545   : > { %v3865_v42 = vpop.f32.mrf.mxu0 }
 0x546   : > { %12488 = vst [vmem:[#allocation12_spill] sm:$0xff] %v10526_v33  ;;  %v3784_v43 = vadd.f32 %v3783_v10, %v3695_v51  ;;  %v3866_v16 = vadd.f32 %v3865_v42, %v3777_v46  ;;  %v3954_v38 = vpop.f32.mrf.mxu1  ;;  %v7122_v46 = vor.u32 %v7828_v21, %v7119_v14  ;;  %4123 = vmatpush.bf16.msra.mxu3 %v7250_v9  ;;  %v12496_v21 = vld [vmem:[#allocation78_spill] sm:$0xff]  ;;  %v12515_v33 = vld [vmem:[#allocation55_spill] sm:$0xff] }
 0x548   : > { %v10528_v31 = vadd.f32 %v3954_v38, %v3866_v16  ;;  %3736 = vmatmul.bf16.gmra.mxu2 %v12489_v22  ;;  %3904 = vmatmul.bf16.gmra.mxu0 %v12490_v61  ;;  %v12493_v61 = vld [vmem:[#allocation15_spill] sm:$0xff] }
 0x549   : > { %3825 = vmatmul.bf16.gmra.mxu3 %v12491_v54  ;;  %3993 = vmatmul.bf16.gmra.mxu1 %v12492_v19  ;;  %v12494_v54 = vld [vmem:[#allocation76_spill] sm:$0xff]  ;;  %v12495_v19 = vld [vmem:[#allocation17_spill] sm:$0xff] }
 0x54a   : > { %4034 = vmatpush.bf16.msra.mxu2 %v7122_v46 }
 0x54b   : > { %v3697_v3 = vpop.f32.mrf.mxu2 }
 0x54c   : > { %v3698_v63 = vadd.f32 %v3697_v3, %v10512_v4  ;;  %v3786_v41 = vpop.f32.mrf.mxu3 }
 0x54d   : > { %v3867_v12 = vpop.f32.mrf.mxu0 }
 0x54e   : > { %v3787_v27 = vadd.f32 %v3786_v41, %v3698_v63  ;;  %v3868_v59 = vadd.f32 %v3867_v12, %v3779_v8  ;;  %v3956_v32 = vpop.f32.mrf.mxu1 }
 0x550   : > { %v10547_v25 = vadd.f32 %v3956_v32, %v3868_v59 }
 0x553   : > { %v3699_v26 = vpop.f32.mrf.mxu2 }
 0x554   : > { %v3700_v51 = vadd.f32 %v3699_v26, %v10512_v4  ;;  %v3788_v10 = vpop.f32.mrf.mxu3 }
 0x555   : > { %v3870_v42 = vpop.f32.mrf.mxu0 }
 0x556   : > { %v3789_v16 = vadd.f32 %v3788_v10, %v3700_v51  ;;  %v3871_v8 = vadd.f32 %v3870_v42, %v3782_v35  ;;  %v3959_v38 = vpop.f32.mrf.mxu1 }
 0x558   : > { %v10550_v22 = vadd.f32 %v3959_v38, %v3871_v8  ;;  %3741 = vmatmul.bf16.gmra.mxu2 %v12493_v61  ;;  %3909 = vmatmul.bf16.gmra.mxu0 %v12494_v54  ;;  %v12497_v8 = vld [vmem:[#allocation19_spill] sm:$0xff]  ;;  %v12498_v38 = vld [vmem:[#allocation80_spill] sm:$0xff]  ;;  %v12499_v61 = vld [vmem:[#allocation21_spill] sm:$0xff] }
 0x559   : > { %3830 = vmatmul.bf16.gmra.mxu3 %v12495_v19  ;;  %3998 = vmatmul.bf16.gmra.mxu1 %v12496_v21  ;;  %v7824_v54 = vld [vmem:[%s11914_s1 + $0x4cc] sm:$0xf]  ;;  %v7103_v19 = vld [vmem:[%s11914_s1 + $0x4d8] sm:$0xf0] }
 0x55b   : > { %v3702_v14 = vpop.f32.mrf.mxu2 }
 0x55c   : > { %v3703_v46 = vadd.f32 %v3702_v14, %v10512_v4  ;;  %v3791_v3 = vpop.f32.mrf.mxu3  ;;  %v7856_v14 = vld [vmem:[%s11914_s1 + $0x5cc] sm:$0xf] }
 0x55d   : > { %v3872_v63 = vpop.f32.mrf.mxu0 }
 0x55e   : > { %v3792_v41 = vadd.f32 %v3791_v3, %v3703_v46  ;;  %v3873_v12 = vadd.f32 %v3872_v63, %v3784_v43  ;;  %v3961_v59 = vpop.f32.mrf.mxu1  ;;  %v12500_v43 = vld [vmem:[#allocation82_spill] sm:$0xff]  ;;  %v7231_v46 = vld [vmem:[%s11914_s1 + $0x5d8] sm:$0xf0] }
 0x560   : > { %v10557_v35 = vadd.f32 %v3961_v59, %v3873_v12  ;;  %v7234_v12 = vor.u32 %v7856_v14, %v7231_v46 }
 0x562   : > { %4124 = vmatpush.bf16.msra.mxu3 %v7234_v12 }
 0x563   : > { %v3704_v32 = vpop.f32.mrf.mxu2 }
 0x564   : > { %v3705_v56 = vadd.f32 %v3704_v32, %v10512_v4  ;;  %v3793_v55 = vpop.f32.mrf.mxu3 }
 0x565   : > { %v3875_v9 = vpop.f32.mrf.mxu0 }
 0x566   : > { %v10560_v26 = vadd.f32 %v3793_v55, %v3705_v56  ;;  %v3876_v51 = vadd.f32 %v3875_v9, %v3787_v27  ;;  %v3964_v10 = vpop.f32.mrf.mxu1  ;;  %v7106_v27 = vor.u32 %v7824_v54, %v7103_v19  ;;  %v7820_v9 = vld [vmem:[%s11914_s1 + $0x4ac] sm:$0xf]  ;;  %v7071_v19 = vld [vmem:[%s11914_s1 + $0x498] sm:$0xf0] }
 0x567   : > { %v7816_v54 = vld [vmem:[%s11914_s1 + $0x48c] sm:$0xf] }
 0x568   : > { %v10562_v42 = vadd.f32 %v3964_v10, %v3876_v51  ;;  %3746 = vmatmul.bf16.gmra.mxu2 %v12497_v8  ;;  %3914 = vmatmul.bf16.gmra.mxu0 %v12498_v38  ;;  %v7087_v51 = vld [vmem:[%s11914_s1 + $0x4b8] sm:$0xf0]  ;;  %v7852_v10 = vld [vmem:[%s11914_s1 + $0x5ac] sm:$0xf]  ;;  %v7074_v46 = vor.u32 %v7816_v54, %v7071_v19 }
 0x569   : > { %3835 = vmatmul.bf16.gmra.mxu3 %v12499_v61  ;;  %4003 = vmatmul.bf16.gmra.mxu1 %v12500_v43  ;;  %v7090_v38 = vor.u32 %v7820_v9, %v7087_v51  ;;  %v7812_v9 = vld [vmem:[%s11914_s1 + $0x46c] sm:$0xf]  ;;  %v7055_v51 = vld [vmem:[%s11914_s1 + $0x478] sm:$0xf0] }
 0x56a   : > { %4035 = vmatpush.bf16.msra.mxu2 %v7106_v27  ;;  %v7848_v27 = vld [vmem:[%s11914_s1 + $0x58c] sm:$0xf] }
 0x56b   : > { %v3707_v21 = vpop.f32.mrf.mxu2 }
 0x56c   : > { %v3708_v3 = vadd.f32 %v3707_v21, %v10512_v4  ;;  %v3796_v63 = vpop.f32.mrf.mxu3 }
 0x56d   : > { %v3877_v59 = vpop.f32.mrf.mxu0 }
 0x56e   : > { %v10581_v32 = vadd.f32 %v3796_v63, %v3708_v3  ;;  %v3878_v56 = vadd.f32 %v3877_v59, %v3789_v16  ;;  %v3966_v55 = vpop.f32.mrf.mxu1  ;;  %v7215_v16 = vld [vmem:[%s11914_s1 + $0x5b8] sm:$0xf0]  ;;  %4036 = vmatpush.bf16.msra.mxu2 %v7090_v38 }
 0x56f   : > { %v7218_v61 = vor.u32 %v7852_v10, %v7215_v16  ;;  %v7199_v3 = vld [vmem:[%s11914_s1 + $0x598] sm:$0xf0]  ;;  %v7844_v10 = vld [vmem:[%s11914_s1 + $0x56c] sm:$0xf] }
 0x570   : > { %v10592_v8 = vadd.f32 %v3966_v55, %v3878_v56  ;;  %v7202_v12 = vor.u32 %v7848_v27, %v7199_v3  ;;  %v12501_v16 = vld [vmem:[#allocation23_spill] sm:$0xff]  ;;  %v7167_v3 = vld [vmem:[%s11914_s1 + $0x558] sm:$0xf0] }
 0x571   : > { %4125 = vmatpush.bf16.msra.mxu3 %v7218_v61  ;;  %v7183_v61 = vld [vmem:[%s11914_s1 + $0x578] sm:$0xf0]  ;;  %v7808_v27 = vld [vmem:[%s11914_s1 + $0x44c] sm:$0xf] }
 0x572   : > { %4037 = vmatpush.bf16.msra.mxu2 %v7074_v46  ;;  %v7186_v54 = vor.u32 %v7844_v10, %v7183_v61  ;;  %v7023_v10 = vld [vmem:[%s11914_s1 + $0x438] sm:$0xf0] }
 0x573   : > { %v3709_v43 = vpop.f32.mrf.mxu2 }
 0x574   : > { %v3710_v21 = vadd.f32 %v3709_v43, %v10512_v4  ;;  %v3798_v14 = vpop.f32.mrf.mxu3  ;;  %v12502_v43 = vld [vmem:[#allocation25_spill] sm:$0xff] }
 0x575   : > { %v3880_v63 = vpop.f32.mrf.mxu0  ;;  %4126 = vmatpush.bf16.msra.mxu3 %v7202_v12 }
 0x576   : > { %v10610_v59 = vadd.f32 %v3798_v14, %v3710_v21  ;;  %v3881_v56 = vadd.f32 %v3880_v63, %v3792_v41  ;;  %v3969_v55 = vpop.f32.mrf.mxu1  ;;  %v7058_v41 = vor.u32 %v7812_v9, %v7055_v51  ;;  %v7840_v21 = vld [vmem:[%s11914_s1 + $0x54c] sm:$0xf] }
 0x577   : > { %v7170_v12 = vor.u32 %v7840_v21, %v7167_v3  ;;  %v7804_v51 = vld [vmem:[%s11914_s1 + $0x42c] sm:$0xf] }
 0x578   : > { %v10621_v38 = vadd.f32 %v3969_v55, %v3881_v56  ;;  %3751 = vmatmul.bf16.gmra.mxu2 %v12501_v16  ;;  %3919 = vmatmul.bf16.gmra.mxu0 %v12430_v50  ;;  %v7039_v50 = vld [vmem:[%s11914_s1 + $0x458] sm:$0xf0]  ;;  %v7836_v16 = vld [vmem:[%s11914_s1 + $0x52c] sm:$0xf]  ;;  %v7026_v61 = vor.u32 %v7804_v51, %v7023_v10  ;;  %v7309_v51 = vld [vmem:[%s11916_s3 + $0x70] sm:$0xf] }
 0x579   : > { %3840 = vmatmul.bf16.gmra.mxu3 %v12502_v43  ;;  %4008 = vmatmul.bf16.gmra.mxu1 %v12431_v20  ;;  %v7042_v20 = vor.u32 %v7808_v27, %v7039_v50  ;;  %v7007_v27 = vld [vmem:[%s11914_s1 + $0x418] sm:$0xf0]  ;;  %v7832_v50 = vld [vmem:[%s11914_s1 + $0x50c] sm:$0xf]  ;;  %v7878_v10 = vld [vmem:[%s11916_s3 + $0x74] sm:$0xf0] }
 0x57a   : > { %4038 = vmatpush.bf16.msra.mxu2 %v7058_v41  ;;  %4127 = vmatpush.bf16.msra.mxu3 %v7186_v54 }
 0x57b   : > { %v3712_v19 = vpop.f32.mrf.mxu2 }
 0x57c   : > { %v3713_v14 = vadd.f32 %v3712_v19, %v10512_v4  ;;  %v3801_v46 = vpop.f32.mrf.mxu3  ;;  %v7800_v19 = vld [vmem:[%s11914_s1 + $0x40c] sm:$0xf] }
 0x57d   : > { %v3882_v63 = vpop.f32.mrf.mxu0 }
 0x57e   : > { %v10643_v56 = vadd.f32 %v3801_v46, %v3713_v14  ;;  %v3883_v55 = vadd.f32 %v3882_v63, %v10560_v26  ;;  %v3971_v9 = vpop.f32.mrf.mxu1  ;;  %4039 = vmatpush.bf16.msra.mxu2 %v7042_v20  ;;  %4128 = vmatpush.bf16.msra.mxu3 %v7170_v12  ;;  %v7151_v26 = vld [vmem:[%s11914_s1 + $0x538] sm:$0xf0]  ;;  %v7010_v46 = vor.u32 %v7800_v19, %v7007_v27 }
 0x57f   : > { %v7154_v43 = vor.u32 %v7836_v16, %v7151_v26  ;;  %v7135_v20 = vld [vmem:[%s11914_s1 + $0x518] sm:$0xf0]  ;;  %v7373_v16 = vld [vmem:[%s11916_s3 + $0xf0] sm:$0xf] }
 0x580   : > { %v10655_v41 = vadd.f32 %v3971_v9, %v3883_v55  ;;  %v7138_v63 = vor.u32 %v7832_v50, %v7135_v20  ;;  %v12503_v26 = vld [vmem:[#allocation27_spill] sm:$0xff]  ;;  %v7301_v50 = vld [vmem:[%s11916_s3 + $0x60] sm:$0xf]  ;;  %v7892_v20 = vld [vmem:[%s11916_s3 + $0xe4] sm:$0xf0] }
 0x582   : > { %4040 = vmatpush.bf16.msra.mxu2 %v7026_v61  ;;  %4129 = vmatpush.bf16.msra.mxu3 %v7154_v43  ;;  %v7894_v43 = vld [vmem:[%s11916_s3 + $0xf4] sm:$0xf0] }
 0x583   : > { %v3714_v54 = vpop.f32.mrf.mxu2  ;;  %v7374_v19 = vor.u32 %v7894_v43, %v7373_v16  ;;  %v7874_v16 = vld [vmem:[%s11916_s3 + $0x54] sm:$0xf0] }
 0x584   : > { %v3715_v21 = vadd.f32 %v3714_v54, %v10512_v4  ;;  %v3803_v14 = vpop.f32.mrf.mxu3  ;;  %v12504_v54 = vld [vmem:[#allocation29_spill] sm:$0xff] }
 0x585   : > { %v3885_v3 = vpop.f32.mrf.mxu0  ;;  %4883 = vmatpush.bf16.msra.mxu1 %v7374_v19 }
 0x586   : > { %v10673_v12 = vadd.f32 %v3803_v14, %v3715_v21  ;;  %v3886_v55 = vadd.f32 %v3885_v3, %v10581_v32  ;;  %v3974_v9 = vpop.f32.mrf.mxu1  ;;  %4041 = vmatpush.bf16.msra.mxu2 %v7010_v46  ;;  %4130 = vmatpush.bf16.msra.mxu3 %v7138_v63  ;;  %v7310_v32 = vor.u32 %v7878_v10, %v7309_v51  ;;  %v7365_v21 = vld [vmem:[%s11916_s3 + $0xe0] sm:$0xf]  ;;  %v7293_v10 = vld [vmem:[%s11916_s3 + $0x50] sm:$0xf] }
 0x587   : > { %v7366_v63 = vor.u32 %v7892_v20, %v7365_v21  ;;  %v7294_v43 = vor.u32 %v7874_v16, %v7293_v10  ;;  %v7277_v10 = vld [vmem:[%s11916_s3 + $0x30] sm:$0xf]  ;;  %v7870_v16 = vld [vmem:[%s11916_s3 + $0x34] sm:$0xf0] }
 0x588   : > { %v10685_v61 = vadd.f32 %v3974_v9, %v3886_v55  ;;  %3756 = vmatmul.bf16.gmra.mxu2 %v12503_v26  ;;  %3924 = vmatmul.bf16.gmra.mxu0 %v12433_v6  ;;  %v7876_v6 = vld [vmem:[%s11916_s3 + $0x64] sm:$0xf0]  ;;  %v7357_v26 = vld [vmem:[%s11916_s3 + $0xd0] sm:$0xf] }
 0x589   : > { %3845 = vmatmul.bf16.gmra.mxu3 %v12504_v54  ;;  %4013 = vmatmul.bf16.gmra.mxu1 %v12434_v37  ;;  %v7302_v37 = vor.u32 %v7876_v6, %v7301_v50  ;;  %v7872_v50 = vld [vmem:[%s11916_s3 + $0x44] sm:$0xf0]  ;;  %v7349_v6 = vld [vmem:[%s11916_s3 + $0xc0] sm:$0xf] }
 0x58a   : > { %4794 = vmatpush.bf16.msra.mxu0 %v7310_v32  ;;  %4884 = vmatpush.bf16.msra.mxu1 %v7366_v63 }
 0x58b   : > { %v3717_v27 = vpop.f32.mrf.mxu2 }
 0x58c   : > { %v3718_v14 = vadd.f32 %v3717_v27, %v10512_v4  ;;  %v3806_v46 = vpop.f32.mrf.mxu3  ;;  %v7285_v27 = vld [vmem:[%s11916_s3 + $0x40] sm:$0xf] }
 0x58d   : > { %v3887_v3 = vpop.f32.mrf.mxu0 }
 0x58e   : > { %v10707_v55 = vadd.f32 %v3806_v46, %v3718_v14  ;;  %v3888_v9 = vadd.f32 %v3887_v3, %v10610_v59  ;;  %v3976_v51 = vpop.f32.mrf.mxu1  ;;  %4795 = vmatpush.bf16.msra.mxu0 %v7302_v37  ;;  %v7890_v59 = vld [vmem:[%s11916_s3 + $0xd4] sm:$0xf0]  ;;  %v7286_v46 = vor.u32 %v7872_v50, %v7285_v27  ;;  %v7888_v37 = vld [vmem:[%s11916_s3 + $0xc4] sm:$0xf0] }
 0x58f   : > { %v7358_v54 = vor.u32 %v7890_v59, %v7357_v26  ;;  %v7350_v3 = vor.u32 %v7888_v37, %v7349_v6  ;;  %v7341_v26 = vld [vmem:[%s11916_s3 + $0xb0] sm:$0xf]  ;;  %v7269_v6 = vld [vmem:[%s11916_s3 + $0x20] sm:$0xf]  ;;  %v7884_v37 = vld [vmem:[%s11916_s3 + $0xa4] sm:$0xf0] }
 0x590   : > { %v10719_v32 = vadd.f32 %v3976_v51, %v3888_v9  ;;  %v12505_v59 = vld [vmem:[#allocation31_spill] sm:$0xff] }
 0x591   : > { %4885 = vmatpush.bf16.msra.mxu1 %v7358_v54  ;;  %v7886_v54 = vld [vmem:[%s11916_s3 + $0xb4] sm:$0xf0] }
 0x592   : > { %4796 = vmatpush.bf16.msra.mxu0 %v7294_v43  ;;  %v7342_v27 = vor.u32 %v7886_v54, %v7341_v26  ;;  %v7866_v26 = vld [vmem:[%s11916_s3 + $0x14] sm:$0xf0] }
 0x593   : > { %v3719_v19 = vpop.f32.mrf.mxu2 }
 0x594   : > { %v3720_v21 = vadd.f32 %v3719_v19, %v10512_v4  ;;  %v3808_v14 = vpop.f32.mrf.mxu3  ;;  %v12506_v19 = vld [vmem:[#allocation33_spill] sm:$0xff] }
 0x595   : > { %v3890_v20 = vpop.f32.mrf.mxu0  ;;  %4886 = vmatpush.bf16.msra.mxu1 %v7350_v3 }
 0x596   : > { %v10737_v63 = vadd.f32 %v3808_v14, %v3720_v21  ;;  %v3891_v9 = vadd.f32 %v3890_v20, %v10643_v56  ;;  %v3979_v51 = vpop.f32.mrf.mxu1  ;;  %4797 = vmatpush.bf16.msra.mxu0 %v7286_v46  ;;  %v7278_v56 = vor.u32 %v7870_v16, %v7277_v10  ;;  %v7333_v21 = vld [vmem:[%s11916_s3 + $0xa0] sm:$0xf]  ;;  %v7261_v16 = vld [vmem:[%s11916_s3 + $0x10] sm:$0xf] }
 0x597   : > { %v7334_v3 = vor.u32 %v7884_v37, %v7333_v21  ;;  %v7262_v54 = vor.u32 %v7866_v26, %v7261_v16  ;;  %v12507_v26 = vld [vmem:[#allocation43_spill] sm:$0xff] }
 0x598   : > { %v10749_v43 = vadd.f32 %v3979_v51, %v3891_v9  ;;  %3761 = vmatmul.bf16.gmra.mxu2 %v12505_v59  ;;  %3929 = vmatmul.bf16.gmra.mxu0 %v12435_v60  ;;  %v7868_v60 = vld [vmem:[%s11916_s3 + $0x24] sm:$0xf0]  ;;  %v7325_v59 = vld [vmem:[%s11916_s3 + $0x90] sm:$0xf] }
 0x599   : > { %3850 = vmatmul.bf16.gmra.mxu3 %v12506_v19  ;;  %4018 = vmatmul.bf16.gmra.mxu1 %v12436_v11  ;;  %v7270_v11 = vor.u32 %v7868_v60, %v7269_v6  ;;  %v7864_v6 = vld [vmem:[%s11916_s3 + $0x4] sm:$0xf0]  ;;  %v7317_v60 = vld [vmem:[%s11916_s3 + $0x80] sm:$0xf] }
 0x59a   : > { %4798 = vmatpush.bf16.msra.mxu0 %v7278_v56  ;;  %4887 = vmatpush.bf16.msra.mxu1 %v7342_v27 }
 0x59b   : > { %v3722_v50 = vpop.f32.mrf.mxu2 }
 0x59c   : > { %v3723_v14 = vadd.f32 %v3722_v50, %v10512_v4  ;;  %v3811_v46 = vpop.f32.mrf.mxu3  ;;  %v7253_v50 = vld [vmem:[%s11916_s3] sm:$0xf] }
 0x59d   : > { %v3892_v20 = vpop.f32.mrf.mxu0 }
 0x59e   : > { %v3812_v9 = vadd.f32 %v3811_v46, %v3723_v14  ;;  %v3893_v51 = vadd.f32 %v3892_v20, %v10673_v12  ;;  %v3981_v10 = vpop.f32.mrf.mxu1  ;;  %4799 = vmatpush.bf16.msra.mxu0 %v7270_v11  ;;  %4888 = vmatpush.bf16.msra.mxu1 %v7334_v3  ;;  %v7882_v12 = vld [vmem:[%s11916_s3 + $0x94] sm:$0xf0]  ;;  %v7254_v46 = vor.u32 %v7864_v6, %v7253_v50  ;;  %v7880_v11 = vld [vmem:[%s11916_s3 + $0x84] sm:$0xf0] }
 0x59f   : > { %v7326_v19 = vor.u32 %v7882_v12, %v7325_v59  ;;  %v7318_v20 = vor.u32 %v7880_v11, %v7317_v60  ;;  %v12508_v59 = vld [vmem:[#allocation45_spill] sm:$0xff] }
 0x5a0   : > { %v10781_v56 = vadd.f32 %v3981_v10, %v3893_v51 }
 0x5a2   : > { %4800 = vmatpush.bf16.msra.mxu0 %v7262_v54  ;;  %4889 = vmatpush.bf16.msra.mxu1 %v7326_v19 }
 0x5a3   : > { %v3724_v27 = vpop.f32.mrf.mxu2 }
 0x5a4   : > { %v3725_v21 = vadd.f32 %v3724_v27, %v10512_v4  ;;  %v3813_v14 = vpop.f32.mrf.mxu3 }
 0x5a5   : > { %v3895_v37 = vpop.f32.mrf.mxu0 }
 0x5a6   : > { %v3814_v3 = vadd.f32 %v3813_v14, %v3725_v21  ;;  %v3896_v51 = vadd.f32 %v3895_v37, %v10707_v55  ;;  %v3984_v10 = vpop.f32.mrf.mxu1  ;;  %4801 = vmatpush.bf16.msra.mxu0 %v7254_v46  ;;  %4890 = vmatpush.bf16.msra.mxu1 %v7318_v20 }
 0x5a8   : > { %v10800_v16 = vadd.f32 %v3984_v10, %v3896_v51  ;;  %3934 = vmatmul.bf16.gmra.mxu0 %v12438_v48  ;;  %4042 = vmatmul.bf16.vlgmr.msra.gmra.mxu2 %v12507_v26  ;;  %v12509_v51 = vld [vmem:[#allocation47_spill] sm:$0xff] }
 0x5a9   : > { %4023 = vmatmul.bf16.gmra.mxu1 %v12439_v45  ;;  %4131 = vmatmul.bf16.vlgmr.msra.gmra.mxu3 %v12508_v59 }
 0x5ab   : > { %v3727_v54 = vpop.f32.mrf.mxu2 }
 0x5ac   : > { %v3728_v12 = vadd.f32 %v3727_v54, %v10512_v4  ;;  %v3816_v19 = vpop.f32.mrf.mxu3 }
 0x5ad   : > { %v3897_v27 = vpop.f32.mrf.mxu0 }
 0x5ae   : > { %v3817_v50 = vadd.f32 %v3816_v19, %v3728_v12  ;;  %v3898_v55 = vadd.f32 %v3897_v27, %v10737_v63  ;;  %v3986_v6 = vpop.f32.mrf.mxu1  ;;  %v12510_v63 = vld [vmem:[#allocation49_spill] sm:$0xff] }
 0x5b0   : > { %v10808_v60 = vadd.f32 %v3986_v6, %v3898_v55 }
 0x5b3   : > { %v3729_v21 = vpop.f32.mrf.mxu2 }
 0x5b4   : > { %v3730_v48 = vadd.f32 %v3729_v21, %v10512_v4  ;;  %v3818_v14 = vpop.f32.mrf.mxu3 }
 0x5b5   : > { %v3900_v46 = vpop.f32.mrf.mxu0 }
 0x5b6   : > { %v3819_v11 = vadd.f32 %v3818_v14, %v3730_v48  ;;  %v3901_v45 = vadd.f32 %v3900_v46, %v3812_v9  ;;  %v3989_v37 = vpop.f32.mrf.mxu1 }
 0x5b8   : > { %v10811_v20 = vadd.f32 %v3989_v37, %v3901_v45  ;;  %3939 = vmatmul.bf16.gmra.mxu0 %v12441_v62  ;;  %4047 = vmatmul.bf16.gmra.mxu2 %v12509_v51  ;;  %v12511_v45 = vld [vmem:[#allocation51_spill] sm:$0xff]  ;;  %v12512_v37 = vld [vmem:[#allocation84_spill] sm:$0xff]  ;;  %v12513_v51 = vld [vmem:[#allocation53_spill] sm:$0xff] }
 0x5b9   : > { %4028 = vmatmul.bf16.gmra.mxu1 %v12442_v15  ;;  %4136 = vmatmul.bf16.gmra.mxu3 %v12510_v63 }
 0x5bb   : > { %v3732_v10 = vpop.f32.mrf.mxu2 }
 0x5bc   : > { %v3733_v26 = vadd.f32 %v3732_v10, %v10512_v4  ;;  %v3821_v59 = vpop.f32.mrf.mxu3 }
 0x5bd   : > { %v3902_v54 = vpop.f32.mrf.mxu0 }
 0x5be   : > { %v3822_v12 = vadd.f32 %v3821_v59, %v3733_v26  ;;  %v3903_v19 = vadd.f32 %v3902_v54, %v3814_v3  ;;  %v3991_v27 = vpop.f32.mrf.mxu1  ;;  %v12514_v3 = vld [vmem:[#allocation86_spill] sm:$0xff] }
 0x5c0   : > { %v10818_v9 = vadd.f32 %v3991_v27, %v3903_v19 }
 0x5c3   : > { %v3734_v55 = vpop.f32.mrf.mxu2 }
 0x5c4   : > { %v3735_v6 = vadd.f32 %v3734_v55, %v10512_v4  ;;  %v3823_v62 = vpop.f32.mrf.mxu3 }
 0x5c5   : > { %v3905_v21 = vpop.f32.mrf.mxu0 }
 0x5c6   : > { %v3824_v48 = vadd.f32 %v3823_v62, %v3735_v6  ;;  %v3906_v14 = vadd.f32 %v3905_v21, %v3817_v50  ;;  %v3994_v15 = vpop.f32.mrf.mxu1 }
 0x5c8   : > { %v10821_v46 = vadd.f32 %v3994_v15, %v3906_v14  ;;  %4052 = vmatmul.bf16.gmra.mxu2 %v12511_v45  ;;  %4802 = vmatmul.bf16.vlgmr.msra.gmra.mxu0 %v12512_v37 }
 0x5c9   : > { %4141 = vmatmul.bf16.gmra.mxu3 %v12513_v51  ;;  %4891 = vmatmul.bf16.vlgmr.msra.gmra.mxu1 %v12514_v3 }
 0x5cb   : > { %v3737_v63 = vpop.f32.mrf.mxu2 }
 0x5cc   : > { %v3738_v10 = vadd.f32 %v3737_v63, %v10512_v4  ;;  %v3826_v26 = vpop.f32.mrf.mxu3  ;;  %v12516_v63 = vld [vmem:[#allocation91_spill] sm:$0xff] }
 0x5cd   : > { %v3907_v59 = vpop.f32.mrf.mxu0 }
 0x5ce   : > { %v3827_v54 = vadd.f32 %v3826_v26, %v3738_v10  ;;  %v3908_v19 = vadd.f32 %v3907_v59, %v3819_v11  ;;  %v3996_v27 = vpop.f32.mrf.mxu1  ;;  %v12518_v11 = vld [vmem:[#allocation90_spill] sm:$0xff] }
 0x5d0   : > { %v10828_v50 = vadd.f32 %v3996_v27, %v3908_v19 }
 0x5d3   : > { %v3739_v55 = vpop.f32.mrf.mxu2 }
 0x5d4   : > { %v3740_v6 = vadd.f32 %v3739_v55, %v10512_v4  ;;  %v3828_v62 = vpop.f32.mrf.mxu3 }
 0x5d5   : > { %v3910_v21 = vpop.f32.mrf.mxu0 }
 0x5d6   : > { %v3829_v14 = vadd.f32 %v3828_v62, %v3740_v6  ;;  %v3911_v15 = vadd.f32 %v3910_v21, %v3822_v12  ;;  %v3999_v45 = vpop.f32.mrf.mxu1 }
 0x5d8   : > { %v10831_v51 = vadd.f32 %v3999_v45, %v3911_v15  ;;  %4057 = vmatmul.bf16.gmra.mxu2 %v12515_v33  ;;  %4807 = vmatmul.bf16.gmra.mxu0 %v12516_v63 }
 0x5d9   : > { %4146 = vmatmul.bf16.gmra.mxu3 %v12517_v58  ;;  %4896 = vmatmul.bf16.gmra.mxu1 %v12518_v11 }
 0x5db   : > { %v3742_v10 = vpop.f32.mrf.mxu2 }
 0x5dc   : > { %v3743_v26 = vadd.f32 %v3742_v10, %v10512_v4  ;;  %v3831_v59 = vpop.f32.mrf.mxu3  ;;  %v12520_v10 = vld [vmem:[#allocation96_spill] sm:$0xff] }
 0x5dd   : > { %v3912_v19 = vpop.f32.mrf.mxu0 }
 0x5de   : > { %v3832_v27 = vadd.f32 %v3831_v59, %v3743_v26  ;;  %v3913_v55 = vadd.f32 %v3912_v19, %v3824_v48  ;;  %v4001_v6 = vpop.f32.mrf.mxu1  ;;  %v12522_v48 = vld [vmem:[#allocation93_spill] sm:$0xff] }
 0x5e0   : > { %v10838_v12 = vadd.f32 %v4001_v6, %v3913_v55 }
 0x5e3   : > { %v3744_v62 = vpop.f32.mrf.mxu2 }
 0x5e4   : > { %v3745_v21 = vadd.f32 %v3744_v62, %v10512_v4  ;;  %v3833_v33 = vpop.f32.mrf.mxu3 }
 0x5e5   : > { %v3915_v15 = vpop.f32.mrf.mxu0 }
 0x5e6   : > { %v3834_v45 = vadd.f32 %v3833_v33, %v3745_v21  ;;  %v3916_v18 = vadd.f32 %v3915_v15, %v3827_v54  ;;  %v4004_v58 = vpop.f32.mrf.mxu1 }
 0x5e8   : > { %v10841_v7 = vadd.f32 %v4004_v58, %v3916_v18  ;;  %4062 = vmatmul.bf16.gmra.mxu2 %v12519_v53  ;;  %4812 = vmatmul.bf16.gmra.mxu0 %v12520_v10  ;;  %v12531_v10 = vld [vmem:[#allocation74_spill] sm:$0xff] }
 0x5e9   : > { %4151 = vmatmul.bf16.gmra.mxu3 %v12521_v30  ;;  %4901 = vmatmul.bf16.gmra.mxu1 %v12522_v48 }
 0x5eb   : > { %v3747_v26 = vpop.f32.mrf.mxu2 }
 0x5ec   : > { %v3748_v59 = vadd.f32 %v3747_v26, %v10512_v4  ;;  %v3836_v19 = vpop.f32.mrf.mxu3  ;;  %v12524_v26 = vld [vmem:[#allocation101_spill] sm:$0xff] }
 0x5ed   : > { %v3917_v55 = vpop.f32.mrf.mxu0 }
 0x5ee   : > { %v3837_v6 = vadd.f32 %v3836_v19, %v3748_v59  ;;  %v3918_v62 = vadd.f32 %v3917_v55, %v3829_v14  ;;  %v4006_v21 = vpop.f32.mrf.mxu1  ;;  %v12526_v14 = vld [vmem:[#allocation95_spill] sm:$0xff] }
 0x5f0   : > { %v10848_v54 = vadd.f32 %v4006_v21, %v3918_v62 }
 0x5f3   : > { %v3749_v18 = vpop.f32.mrf.mxu2 }
 0x5f4   : > { %v3750_v33 = vadd.f32 %v3749_v18, %v10512_v4  ;;  %v3838_v53 = vpop.f32.mrf.mxu3 }
 0x5f5   : > { %v3920_v15 = vpop.f32.mrf.mxu0 }
 0x5f6   : > { %v3839_v58 = vadd.f32 %v3838_v53, %v3750_v33  ;;  %v3921_v0 = vadd.f32 %v3920_v15, %v3832_v27  ;;  %v4009_v30 = vpop.f32.mrf.mxu1 }
 0x5f8   : > { %v10851_v28 = vadd.f32 %v4009_v30, %v3921_v0  ;;  %4067 = vmatmul.bf16.gmra.mxu2 %v12523_v44  ;;  %4817 = vmatmul.bf16.gmra.mxu0 %v12524_v26 }
 0x5f9   : > { %4156 = vmatmul.bf16.gmra.mxu3 %v12525_v29  ;;  %4906 = vmatmul.bf16.gmra.mxu1 %v12526_v14  ;;  %v12529_v14 = vld [vmem:[#allocation72_spill] sm:$0xff] }
 0x5fb   : > { %v3752_v59 = vpop.f32.mrf.mxu2 }
 0x5fc   : > { %v3753_v19 = vadd.f32 %v3752_v59, %v10512_v4  ;;  %v3841_v55 = vpop.f32.mrf.mxu3  ;;  %v12530_v59 = vld [vmem:[#allocation105_spill] sm:$0xff] }
 0x5fd   : > { %v3922_v62 = vpop.f32.mrf.mxu0 }
 0x5fe   : > { %v3842_v21 = vadd.f32 %v3841_v55, %v3753_v19  ;;  %v3923_v18 = vadd.f32 %v3922_v62, %v3834_v45  ;;  %v4011_v33 = vpop.f32.mrf.mxu1  ;;  %v12532_v45 = vld [vmem:[#allocation98_spill] sm:$0xff] }
 0x600   : > { %v10858_v27 = vadd.f32 %v4011_v33, %v3923_v18 }
 0x602   : > { %12527 = vst [vmem:[#allocation14_spill] sm:$0xff] %v10858_v27  ;;  %v12537_v27 = vld [vmem:[#allocation79_spill] sm:$0xff] }
 0x603   : > { %v3754_v0 = vpop.f32.mrf.mxu2 }
 0x604   : > { %v3755_v53 = vadd.f32 %v3754_v0, %v10512_v4  ;;  %v3843_v44 = vpop.f32.mrf.mxu3 }
 0x605   : > { %v3925_v15 = vpop.f32.mrf.mxu0 }
 0x606   : > { %v3844_v30 = vadd.f32 %v3843_v44, %v3755_v53  ;;  %v3926_v26 = vadd.f32 %v3925_v15, %v3837_v6  ;;  %v4014_v29 = vpop.f32.mrf.mxu1 }
 0x608   : > { %v10861_v48 = vadd.f32 %v4014_v29, %v3926_v26  ;;  %4072 = vmatmul.bf16.gmra.mxu2 %v12529_v14  ;;  %4822 = vmatmul.bf16.gmra.mxu0 %v12530_v59 }
 0x609   : > { %4161 = vmatmul.bf16.gmra.mxu3 %v12531_v10  ;;  %4911 = vmatmul.bf16.gmra.mxu1 %v12532_v45  ;;  %v12535_v45 = vld [vmem:[#allocation77_spill] sm:$0xff] }
 0x60a   : > { %12528 = vst [vmem:[#allocation16_spill] sm:$0xff] %v10861_v48 }
 0x60b   : > { %v3757_v19 = vpop.f32.mrf.mxu2 }
 0x60c   : > { %v3758_v55 = vadd.f32 %v3757_v19, %v10512_v4  ;;  %v3846_v62 = vpop.f32.mrf.mxu3  ;;  %v12536_v19 = vld [vmem:[#allocation107_spill] sm:$0xff] }
 0x60d   : > { %v3927_v18 = vpop.f32.mrf.mxu0 }
 0x60e   : > { %v3847_v33 = vadd.f32 %v3846_v62, %v3758_v55  ;;  %v3928_v0 = vadd.f32 %v3927_v18, %v3839_v58  ;;  %v4016_v53 = vpop.f32.mrf.mxu1  ;;  %v12538_v58 = vld [vmem:[#allocation100_spill] sm:$0xff] }
 0x610   : > { %v10868_v6 = vadd.f32 %v4016_v53, %v3928_v0 }
 0x612   : > { %12533 = vst [vmem:[#allocation18_spill] sm:$0xff] %v10868_v6  ;;  %v12542_v6 = vld [vmem:[#allocation83_spill] sm:$0xff] }
 0x613   : > { %v3759_v26 = vpop.f32.mrf.mxu2 }
 0x614   : > { %v3760_v44 = vadd.f32 %v3759_v26, %v10512_v4  ;;  %v3848_v14 = vpop.f32.mrf.mxu3 }
 0x615   : > { %v3930_v15 = vpop.f32.mrf.mxu0 }
 0x616   : > { %v3849_v29 = vadd.f32 %v3848_v14, %v3760_v44  ;;  %v3931_v59 = vadd.f32 %v3930_v15, %v3842_v21  ;;  %v4019_v10 = vpop.f32.mrf.mxu1 }
 0x618   : > { %v10871_v48 = vadd.f32 %v4019_v10, %v3931_v59  ;;  %4077 = vmatmul.bf16.gmra.mxu2 %v12535_v45  ;;  %4827 = vmatmul.bf16.gmra.mxu0 %v12536_v19 }
 0x619   : > { %4166 = vmatmul.bf16.gmra.mxu3 %v12537_v27  ;;  %4916 = vmatmul.bf16.gmra.mxu1 %v12538_v58  ;;  %v12540_v58 = vld [vmem:[#allocation81_spill] sm:$0xff] }
 0x61a   : > { %12534 = vst [vmem:[#allocation20_spill] sm:$0xff] %v10871_v48 }
 0x61b   : > { %v3762_v55 = vpop.f32.mrf.mxu2 }
 0x61c   : > { %v3763_v62 = vadd.f32 %v3762_v55, %v10512_v4  ;;  %v3851_v18 = vpop.f32.mrf.mxu3  ;;  %v12541_v55 = vld [vmem:[#allocation110_spill] sm:$0xff] }
 0x61d   : > { %v3932_v0 = vpop.f32.mrf.mxu0 }
 0x61e   : > { %v3852_v53 = vadd.f32 %v3851_v18, %v3763_v62  ;;  %v3933_v26 = vadd.f32 %v3932_v0, %v3844_v30  ;;  %v4021_v44 = vpop.f32.mrf.mxu1  ;;  %v12543_v30 = vld [vmem:[#allocation103_spill] sm:$0xff] }
 0x620   : > { %v10878_v21 = vadd.f32 %v4021_v44, %v3933_v26 }
 0x623   : > { %v3764_v59 = vpop.f32.mrf.mxu2 }
 0x624   : > { %v3765_v14 = vadd.f32 %v3764_v59, %v10512_v4  ;;  %v3853_v45 = vpop.f32.mrf.mxu3 }
 0x625   : > { %v3935_v15 = vpop.f32.mrf.mxu0 }
 0x626   : > { %v3854_v10 = vadd.f32 %v3853_v45, %v3765_v14  ;;  %v3936_v19 = vadd.f32 %v3935_v15, %v3847_v33  ;;  %v4024_v27 = vpop.f32.mrf.mxu1 }
 0x628   : > { %v10881_v48 = vadd.f32 %v4024_v27, %v3936_v19  ;;  %4082 = vmatmul.bf16.gmra.mxu2 %v12540_v58  ;;  %4832 = vmatmul.bf16.gmra.mxu0 %v12541_v55 }
 0x629   : > { %4171 = vmatmul.bf16.gmra.mxu3 %v12542_v6  ;;  %4921 = vmatmul.bf16.gmra.mxu1 %v12543_v30 }
 0x62a   : > { %12539 = vst [vmem:[#allocation41_spill] sm:$0xff] %v10881_v48 }
 0x62b   : > { %v4043_v62 = vpop.f32.mrf.mxu2 }
 0x62c   : > { %v4044_v18 = vadd.f32 %v4043_v62, %v10528_v31  ;;  %v4132_v0 = vpop.f32.mrf.mxu3  ;;  %v12544_v31 = vld [vmem:[#allocation112_spill] sm:$0xff] }
 0x62d   : > { %v3937_v4 = vpop.f32.mrf.mxu0  ;;  %v12546_v62 = vld [vmem:[#allocation108_spill] sm:$0xff] }
 0x62e   : > { %v4133_v26 = vadd.f32 %v4132_v0, %v4044_v18  ;;  %v3938_v44 = vadd.f32 %v3937_v4, %v3849_v29  ;;  %v4026_v59 = vpop.f32.mrf.mxu1  ;;  %v12545_v29 = vld [vmem:[#allocation88_spill] sm:$0xff] }
 0x630   : > { %v10888_v33 = vadd.f32 %v4026_v59, %v3938_v44  ;;  %v4215_v55 = vmax.f32 %v4133_v26, 0.0 }
 0x633   : > { %v4045_v19 = vpop.f32.mrf.mxu2 }
 0x634   : > { %v4046_v14 = vadd.f32 %v4045_v19, %v10547_v25  ;;  %v4134_v58 = vpop.f32.mrf.mxu3 }
 0x635   : > { %v3940_v45 = vpop.f32.mrf.mxu0 }
 0x636   : > { %v4135_v15 = vadd.f32 %v4134_v58, %v4046_v14  ;;  %v3941_v27 = vadd.f32 %v3940_v45, %v3852_v53  ;;  %v4029_v6 = vpop.f32.mrf.mxu1 }
 0x638   : > { %v4219_v30 = vmax.f32 %v4135_v15, 0.0  ;;  %v10891_v48 = vadd.f32 %v4029_v6, %v3941_v27  ;;  %4087 = vmatmul.bf16.gmra.mxu2 %v12352_v1  ;;  %4837 = vmatmul.bf16.gmra.mxu0 %v12544_v31  ;;  %v10903_v1 = vld [vmem:[%s11917_s4] sm:$0x3] }
 0x639   : > { %4176 = vmatmul.bf16.gmra.mxu3 %v12545_v29  ;;  %4926 = vmatmul.bf16.gmra.mxu1 %v12546_v62  ;;  %v10908_v14 = vperm.slane %v10903_v1, 0 }
 0x63a   : > { %v10897_v18 = vpack.c.bf16 %v4219_v30, %v4215_v55 }
 0x63b   : > { %v4048_v25 = vpop.f32.mrf.mxu2 }
 0x63c   : > { %12547 = vst [vmem:[#allocation22_spill] sm:$0xff] %v10897_v18  ;;  %v4049_v0 = vadd.f32 %v4048_v25, %v10550_v22  ;;  %v4137_v4 = vpop.f32.mrf.mxu3  ;;  %v12548_v25 = vld [vmem:[#allocation113_spill] sm:$0xff] }
 0x63d   : > { %v3942_v53 = vpop.f32.mrf.mxu0 }
 0x63e   : > { %v4138_v44 = vadd.f32 %v4137_v4, %v4049_v0  ;;  %v3943_v26 = vadd.f32 %v3942_v53, %v3854_v10  ;;  %v4031_v59 = vpop.f32.mrf.mxu1  ;;  %v12549_v0 = vld [vmem:[#allocation109_spill] sm:$0xff]  ;;  %v7910_v4 = vld [vmem:[%s11916_s3 + $0x174] sm:$0xf0] }
 0x640   : > { %v10905_v19 = vadd.f32 %v4031_v59, %v3943_v26  ;;  %v4223_v27 = vmax.f32 %v4138_v44, 0.0 }
 0x643   : > { %v4050_v55 = vpop.f32.mrf.mxu2 }
 0x644   : > { %v4051_v30 = vadd.f32 %v4050_v55, %v10557_v35  ;;  %v4139_v58 = vpop.f32.mrf.mxu3  ;;  %v7437_v35 = vld [vmem:[%s11916_s3 + $0x170] sm:$0xf] }
 0x645   : > { %v4803_v22 = vpop.f32.mrf.mxu0  ;;  %v7438_v53 = vor.u32 %v7910_v4, %v7437_v35 }
 0x646   : > { %v4140_v45 = vadd.f32 %v4139_v58, %v4051_v30  ;;  %v4804_v15 = vadd.f32 %v4803_v22, %v10908_v14  ;;  %v4892_v10 = vpop.f32.mrf.mxu1 }
 0x647   : > { %4972 = vmatpush.bf16.msrb.mxu2 %v7438_v53 }
 0x648   : > { %v4227_v6 = vmax.f32 %v4140_v45, 0.0  ;;  %v10912_v29 = vadd.f32 %v4892_v10, %v4804_v15  ;;  %4092 = vmatmul.bf16.gmra.mxu2 %v12355_v39  ;;  %4842 = vmatmul.bf16.gmra.mxu0 %v12548_v25  ;;  %v7501_v45 = vld [vmem:[%s11916_s3 + $0x1f0] sm:$0xf]  ;;  %v7926_v15 = vld [vmem:[%s11916_s3 + $0x1f4] sm:$0xf0] }
 0x649   : > { %4181 = vmatmul.bf16.gmra.mxu3 %v12356_v2  ;;  %4931 = vmatmul.bf16.gmra.mxu1 %v12549_v0  ;;  %v7502_v10 = vor.u32 %v7926_v15, %v7501_v45 }
 0x64a   : > { %v10924_v44 = vpack.c.bf16 %v4227_v6, %v4223_v27 }
 0x64b   : > { %v4053_v26 = vpop.f32.mrf.mxu2  ;;  %5061 = vmatpush.bf16.msrb.mxu3 %v7502_v10 }
 0x64c   : > { %12550 = vst [vmem:[#allocation42_spill] sm:$0xff] %v10924_v44  ;;  %v4054_v39 = vadd.f32 %v4053_v26, %v10562_v42  ;;  %v4142_v59 = vpop.f32.mrf.mxu3 }
 0x64d   : > { %v4805_v55 = vpop.f32.mrf.mxu0 }
 0x64e   : > { %v4143_v2 = vadd.f32 %v4142_v59, %v4054_v39  ;;  %v4806_v30 = vadd.f32 %v4805_v55, %v10908_v14  ;;  %v4894_v58 = vpop.f32.mrf.mxu1 }
 0x650   : > { %v10928_v22 = vadd.f32 %v4894_v58, %v4806_v30  ;;  %v4231_v39 = vmax.f32 %v4143_v2, 0.0  ;;  %v12551_v30 = vld [vmem:[#allocation114_spill] sm:$0xff]  ;;  %v12552_v58 = vld [vmem:[#allocation111_spill] sm:$0xff] }
 0x653   : > { %v4055_v27 = vpop.f32.mrf.mxu2 }
 0x654   : > { %v4056_v42 = vadd.f32 %v4055_v27, %v10592_v8  ;;  %v4144_v6 = vpop.f32.mrf.mxu3 }
 0x655   : > { %v4808_v35 = vpop.f32.mrf.mxu0 }
 0x656   : > { %v4145_v4 = vadd.f32 %v4144_v6, %v4056_v42  ;;  %v4809_v53 = vadd.f32 %v4808_v35, %v10908_v14  ;;  %v4897_v26 = vpop.f32.mrf.mxu1 }
 0x658   : > { %v4235_v59 = vmax.f32 %v4145_v4, 0.0  ;;  %v10938_v55 = vadd.f32 %v4897_v26, %v4809_v53  ;;  %4097 = vmatmul.bf16.gmra.mxu2 %v12358_v13  ;;  %4847 = vmatmul.bf16.gmra.mxu0 %v12551_v30 }
 0x659   : > { %4186 = vmatmul.bf16.gmra.mxu3 %v12359_v5  ;;  %4936 = vmatmul.bf16.gmra.mxu1 %v12552_v58 }
 0x65a   : > { %v10944_v45 = vpack.c.bf16 %v4235_v59, %v4231_v39 }
 0x65b   : > { %v4058_v8 = vpop.f32.mrf.mxu2 }
 0x65c   : > { %v4059_v15 = vadd.f32 %v4058_v8, %v10621_v38  ;;  %v4147_v10 = vpop.f32.mrf.mxu3  ;;  %v12553_v8 = vld [vmem:[#allocation115_spill] sm:$0xff] }
 0x65d   : > { %v4810_v27 = vpop.f32.mrf.mxu0 }
 0x65e   : > { %v4148_v42 = vadd.f32 %v4147_v10, %v4059_v15  ;;  %v4811_v2 = vadd.f32 %v4810_v27, %v10908_v14  ;;  %v4899_v6 = vpop.f32.mrf.mxu1  ;;  %v12554_v15 = vld [vmem:[#allocation75_spill] sm:$0xff]  ;;  %v7908_v10 = vld [vmem:[%s11916_s3 + $0x164] sm:$0xf0] }
 0x660   : > { %v10948_v35 = vadd.f32 %v4899_v6, %v4811_v2  ;;  %v4239_v58 = vmax.f32 %v4148_v42, 0.0 }
 0x663   : > { %v4060_v13 = vpop.f32.mrf.mxu2 }
 0x664   : > { %v4061_v4 = vadd.f32 %v4060_v13, %v10655_v41  ;;  %v4149_v53 = vpop.f32.mrf.mxu3  ;;  %v7429_v41 = vld [vmem:[%s11916_s3 + $0x160] sm:$0xf] }
 0x665   : > { %v4813_v5 = vpop.f32.mrf.mxu0  ;;  %v7430_v27 = vor.u32 %v7908_v10, %v7429_v41  ;;  %v7922_v10 = vld [vmem:[%s11916_s3 + $0x1d4] sm:$0xf0] }
 0x666   : > { %v4150_v26 = vadd.f32 %v4149_v53, %v4061_v4  ;;  %v4814_v39 = vadd.f32 %v4813_v5, %v10908_v14  ;;  %v4902_v59 = vpop.f32.mrf.mxu1 }
 0x667   : > { %4973 = vmatpush.bf16.msrb.mxu2 %v7430_v27 }
 0x668   : > { %v4243_v30 = vmax.f32 %v4150_v26, 0.0  ;;  %v10952_v38 = vadd.f32 %v4902_v59, %v4814_v39  ;;  %4102 = vmatmul.bf16.gmra.mxu2 %v12361_v24  ;;  %4852 = vmatmul.bf16.gmra.mxu0 %v12553_v8  ;;  %v7493_v24 = vld [vmem:[%s11916_s3 + $0x1e0] sm:$0xf]  ;;  %v7906_v39 = vld [vmem:[%s11916_s3 + $0x154] sm:$0xf0] }
 0x669   : > { %4191 = vmatmul.bf16.gmra.mxu3 %v12362_v34  ;;  %4941 = vmatmul.bf16.gmra.mxu1 %v12554_v15  ;;  %v7924_v34 = vld [vmem:[%s11916_s3 + $0x1e4] sm:$0xf0] }
 0x66a   : > { %v10964_v42 = vpack.c.bf16 %v4243_v30, %v4239_v58  ;;  %v7494_v4 = vor.u32 %v7924_v34, %v7493_v24  ;;  %v7421_v58 = vld [vmem:[%s11916_s3 + $0x150] sm:$0xf]  ;;  %v7413_v24 = vld [vmem:[%s11916_s3 + $0x140] sm:$0xf]  ;;  %v7904_v34 = vld [vmem:[%s11916_s3 + $0x144] sm:$0xf0] }
 0x66b   : > { %v4063_v2 = vpop.f32.mrf.mxu2  ;;  %v7422_v41 = vor.u32 %v7906_v39, %v7421_v58 }
 0x66c   : > { %12555 = vst [vmem:[#allocation24_spill] sm:$0xff] %v10964_v42  ;;  %v4064_v6 = vadd.f32 %v4063_v2, %v10685_v61  ;;  %v4152_v13 = vpop.f32.mrf.mxu3  ;;  %5062 = vmatpush.bf16.msrb.mxu3 %v7494_v4  ;;  %v7485_v61 = vld [vmem:[%s11916_s3 + $0x1d0] sm:$0xf] }
 0x66d   : > { %v4815_v53 = vpop.f32.mrf.mxu0  ;;  %v7486_v27 = vor.u32 %v7922_v10, %v7485_v61  ;;  %4974 = vmatpush.bf16.msrb.mxu2 %v7422_v41  ;;  %v7405_v10 = vld [vmem:[%s11916_s3 + $0x130] sm:$0xf] }
 0x66e   : > { %v4153_v5 = vadd.f32 %v4152_v13, %v4064_v6  ;;  %v4816_v26 = vadd.f32 %v4815_v53, %v10908_v14  ;;  %v4904_v30 = vpop.f32.mrf.mxu1  ;;  %v7477_v6 = vld [vmem:[%s11916_s3 + $0x1c0] sm:$0xf]  ;;  %v7414_v53 = vor.u32 %v7904_v34, %v7413_v24 }
 0x670   : > { %v10983_v59 = vadd.f32 %v4904_v30, %v4816_v26  ;;  %5063 = vmatpush.bf16.msrb.mxu3 %v7486_v27  ;;  %v7920_v26 = vld [vmem:[%s11916_s3 + $0x1c4] sm:$0xf0]  ;;  %v7469_v27 = vld [vmem:[%s11916_s3 + $0x1b0] sm:$0xf] }
 0x671   : > { %v7478_v58 = vor.u32 %v7920_v26, %v7477_v6  ;;  %4975 = vmatpush.bf16.msrb.mxu2 %v7414_v53  ;;  %v12556_v6 = vld [vmem:[#allocation58_spill] sm:$0xff]  ;;  %v12557_v53 = vld [vmem:[#allocation35_spill] sm:$0xff] }
 0x673   : > { %v4065_v2 = vpop.f32.mrf.mxu2 }
 0x674   : > { %v4066_v13 = vadd.f32 %v4065_v2, %v10719_v32  ;;  %v4154_v4 = vpop.f32.mrf.mxu3  ;;  %5064 = vmatpush.bf16.msrb.mxu3 %v7478_v58  ;;  %v7902_v32 = vld [vmem:[%s11916_s3 + $0x134] sm:$0xf0]  ;;  %v4247_v2 = vmax.f32 %v4153_v5, 0.0  ;;  %v7900_v58 = vld [vmem:[%s11916_s3 + $0x124] sm:$0xf0] }
 0x675   : > { %v4818_v30 = vpop.f32.mrf.mxu0 }
 0x676   : > { %v4155_v39 = vadd.f32 %v4154_v4, %v4066_v13  ;;  %v4819_v61 = vadd.f32 %v4818_v30, %v10908_v14  ;;  %v4907_v41 = vpop.f32.mrf.mxu1  ;;  %v7406_v13 = vor.u32 %v7902_v32, %v7405_v10  ;;  %v7918_v4 = vld [vmem:[%s11916_s3 + $0x1b4] sm:$0xf0]  ;;  %v7916_v10 = vld [vmem:[%s11916_s3 + $0x1a4] sm:$0xf0] }
 0x677   : > { %v7470_v26 = vor.u32 %v7918_v4, %v7469_v27  ;;  %v7389_v4 = vld [vmem:[%s11916_s3 + $0x110] sm:$0xf] }
 0x678   : > { %v4251_v24 = vmax.f32 %v4155_v39, 0.0  ;;  %v11011_v34 = vadd.f32 %v4907_v41, %v4819_v61  ;;  %4107 = vmatmul.bf16.gmra.mxu2 %v9210_v40  ;;  %4857 = vmatmul.bf16.gmra.mxu0 %v12556_v6  ;;  %v7397_v40 = vld [vmem:[%s11916_s3 + $0x120] sm:$0xf] }
 0x679   : > { %4196 = vmatmul.bf16.gmra.mxu3 %v9219_v23  ;;  %4946 = vmatmul.bf16.gmra.mxu1 %v12557_v53  ;;  %v7461_v23 = vld [vmem:[%s11916_s3 + $0x1a0] sm:$0xf]  ;;  %v7398_v41 = vor.u32 %v7900_v58, %v7397_v40  ;;  %v7914_v58 = vld [vmem:[%s11916_s3 + $0x194] sm:$0xf0] }
 0x67a   : > { %4976 = vmatpush.bf16.msrb.mxu2 %v7406_v13  ;;  %v11020_v30 = vpack.c.bf16 %v4251_v24, %v4247_v2  ;;  %5065 = vmatpush.bf16.msrb.mxu3 %v7470_v26  ;;  %v7462_v27 = vor.u32 %v7916_v10, %v7461_v23  ;;  %v7453_v26 = vld [vmem:[%s11916_s3 + $0x190] sm:$0xf]  ;;  %v7445_v10 = vld [vmem:[%s11916_s3 + $0x180] sm:$0xf] }
 0x67b   : > { %v4068_v5 = vpop.f32.mrf.mxu2  ;;  %v7454_v23 = vor.u32 %v7914_v58, %v7453_v26 }
 0x67c   : > { %12558 = vst [vmem:[#allocation44_spill] sm:$0xff] %v11020_v30  ;;  %v4069_v39 = vadd.f32 %v4068_v5, %v10749_v43  ;;  %v4157_v61 = vpop.f32.mrf.mxu3  ;;  %v7898_v43 = vld [vmem:[%s11916_s3 + $0x114] sm:$0xf0] }
 0x67d   : > { %v4820_v32 = vpop.f32.mrf.mxu0  ;;  %v7390_v40 = vor.u32 %v7898_v43, %v7389_v4 }
 0x67e   : > { %v4158_v2 = vadd.f32 %v4157_v61, %v4069_v39  ;;  %v4821_v24 = vadd.f32 %v4820_v32, %v10908_v14  ;;  %v4909_v13 = vpop.f32.mrf.mxu1  ;;  %4977 = vmatpush.bf16.msrb.mxu2 %v7398_v41  ;;  %5066 = vmatpush.bf16.msrb.mxu3 %v7462_v27  ;;  %v7381_v61 = vld [vmem:[%s11916_s3 + $0x100] sm:$0xf]  ;;  %v7896_v41 = vld [vmem:[%s11916_s3 + $0x104] sm:$0xf0] }
 0x680   : > { %v11045_v5 = vadd.f32 %v4909_v13, %v4821_v24  ;;  %v7382_v24 = vor.u32 %v7896_v41, %v7381_v61  ;;  %v7912_v13 = vld [vmem:[%s11916_s3 + $0x184] sm:$0xf0]  ;;  %v4255_v61 = vmax.f32 %v4158_v2, 0.0 }
 0x681   : > { %v7446_v43 = vor.u32 %v7912_v13, %v7445_v10  ;;  %v12560_v13 = vld [vmem:[#allocation37_spill] sm:$0xff] }
 0x682   : > { %4978 = vmatpush.bf16.msrb.mxu2 %v7390_v40  ;;  %5067 = vmatpush.bf16.msrb.mxu3 %v7454_v23  ;;  %v7877_v23 = vld [vmem:[%s11916_s3 + $0x74] sm:$0xf] }
 0x683   : > { %v4070_v39 = vpop.f32.mrf.mxu2 }
 0x684   : > { %v4071_v32 = vadd.f32 %v4070_v39, %v10781_v56  ;;  %v4159_v27 = vpop.f32.mrf.mxu3  ;;  %v7311_v56 = vld [vmem:[%s11916_s3 + $0x78] sm:$0xf0]  ;;  %v7893_v39 = vld [vmem:[%s11916_s3 + $0xf4] sm:$0xf] }
 0x685   : > { %v4823_v4 = vpop.f32.mrf.mxu0 }
 0x686   : > { %v4160_v26 = vadd.f32 %v4159_v27, %v4071_v32  ;;  %v4824_v40 = vadd.f32 %v4823_v4, %v10908_v14  ;;  %v4912_v58 = vpop.f32.mrf.mxu1  ;;  %4979 = vmatpush.bf16.msrb.mxu2 %v7382_v24  ;;  %5068 = vmatpush.bf16.msrb.mxu3 %v7446_v43  ;;  %v12559_v32 = vld [vmem:[#allocation63_spill] sm:$0xff]  ;;  %v7314_v27 = vor.u32 %v7877_v23, %v7311_v56  ;;  %v7375_v24 = vld [vmem:[%s11916_s3 + $0xf8] sm:$0xf0] }
 0x687   : > { %v7378_v4 = vor.u32 %v7893_v39, %v7375_v24  ;;  %v7367_v56 = vld [vmem:[%s11916_s3 + $0xe8] sm:$0xf0] }
 0x688   : > { %v4259_v41 = vmax.f32 %v4160_v26, 0.0  ;;  %v11073_v10 = vadd.f32 %v4912_v58, %v4824_v40  ;;  %4112 = vmatmul.bf16.gmra.mxu2 %v9282_v49  ;;  %4862 = vmatmul.bf16.gmra.mxu0 %v12559_v32  ;;  %v7875_v49 = vld [vmem:[%s11916_s3 + $0x64] sm:$0xf]  ;;  %v7303_v26 = vld [vmem:[%s11916_s3 + $0x68] sm:$0xf0] }
 0x689   : > { %4201 = vmatmul.bf16.gmra.mxu3 %v12365_v52  ;;  %4951 = vmatmul.bf16.gmra.mxu1 %v12560_v13  ;;  %v7891_v52 = vld [vmem:[%s11916_s3 + $0xe4] sm:$0xf]  ;;  %v7306_v23 = vor.u32 %v7875_v49, %v7303_v26  ;;  %v7869_v13 = vld [vmem:[%s11916_s3 + $0x34] sm:$0xf] }
 0x68a   : > { %5150 = vmatpush.bf16.msrb.mxu0 %v7314_v27  ;;  %v11082_v43 = vpack.c.bf16 %v4259_v41, %v4255_v61  ;;  %5239 = vmatpush.bf16.msrb.mxu1 %v7378_v4  ;;  %v7370_v61 = vor.u32 %v7891_v52, %v7367_v56  ;;  %v7873_v4 = vld [vmem:[%s11916_s3 + $0x54] sm:$0xf]  ;;  %v7359_v52 = vld [vmem:[%s11916_s3 + $0xd8] sm:$0xf0]  ;;  %v7287_v56 = vld [vmem:[%s11916_s3 + $0x48] sm:$0xf0] }
 0x68b   : > { %v4073_v2 = vpop.f32.mrf.mxu2 }
 0x68c   : > { %12561 = vst [vmem:[#allocation26_spill] sm:$0xff] %v11082_v43  ;;  %v4074_v40 = vadd.f32 %v4073_v2, %v10800_v16  ;;  %v4162_v58 = vpop.f32.mrf.mxu3  ;;  %v7295_v16 = vld [vmem:[%s11916_s3 + $0x58] sm:$0xf0]  ;;  %v7889_v2 = vld [vmem:[%s11916_s3 + $0xd4] sm:$0xf] }
 0x68d   : > { %v4825_v39 = vpop.f32.mrf.mxu0  ;;  %v7298_v26 = vor.u32 %v7873_v4, %v7295_v16  ;;  %v7351_v4 = vld [vmem:[%s11916_s3 + $0xc8] sm:$0xf0] }
 0x68e   : > { %v4163_v41 = vadd.f32 %v4162_v58, %v4074_v40  ;;  %v4826_v27 = vadd.f32 %v4825_v39, %v10908_v14  ;;  %v4914_v24 = vpop.f32.mrf.mxu1  ;;  %5151 = vmatpush.bf16.msrb.mxu0 %v7306_v23  ;;  %5240 = vmatpush.bf16.msrb.mxu1 %v7370_v61  ;;  %v7362_v40 = vor.u32 %v7889_v2, %v7359_v52  ;;  %v7871_v23 = vld [vmem:[%s11916_s3 + $0x44] sm:$0xf] }
 0x68f   : > { %v7887_v39 = vld [vmem:[%s11916_s3 + $0xc4] sm:$0xf] }
 0x690   : > { %v11107_v49 = vadd.f32 %v4914_v24, %v4826_v27  ;;  %v7290_v24 = vor.u32 %v7871_v23, %v7287_v56  ;;  %v7354_v2 = vor.u32 %v7887_v39, %v7351_v4  ;;  %v4263_v23 = vmax.f32 %v4163_v41, 0.0  ;;  %v12563_v4 = vld [vmem:[#allocation39_spill] sm:$0xff] }
 0x692   : > { %5152 = vmatpush.bf16.msrb.mxu0 %v7298_v26  ;;  %5241 = vmatpush.bf16.msrb.mxu1 %v7362_v40 }
 0x693   : > { %v4075_v58 = vpop.f32.mrf.mxu2 }
 0x694   : > { %v4076_v61 = vadd.f32 %v4075_v58, %v10808_v60  ;;  %v4164_v27 = vpop.f32.mrf.mxu3  ;;  %v7279_v60 = vld [vmem:[%s11916_s3 + $0x38] sm:$0xf0]  ;;  %v7885_v58 = vld [vmem:[%s11916_s3 + $0xb4] sm:$0xf] }
 0x695   : > { %v4828_v16 = vpop.f32.mrf.mxu0 }
 0x696   : > { %v4165_v26 = vadd.f32 %v4164_v27, %v4076_v61  ;;  %v4829_v52 = vadd.f32 %v4828_v16, %v10908_v14  ;;  %v4917_v40 = vpop.f32.mrf.mxu1  ;;  %5153 = vmatpush.bf16.msrb.mxu0 %v7290_v24  ;;  %5242 = vmatpush.bf16.msrb.mxu1 %v7354_v2  ;;  %v12562_v61 = vld [vmem:[#allocation64_spill] sm:$0xff]  ;;  %v7282_v27 = vor.u32 %v7869_v13, %v7279_v60  ;;  %v7271_v13 = vld [vmem:[%s11916_s3 + $0x28] sm:$0xf0] }
 0x697   : > { %v7343_v24 = vld [vmem:[%s11916_s3 + $0xb8] sm:$0xf0]  ;;  %v7335_v60 = vld [vmem:[%s11916_s3 + $0xa8] sm:$0xf0] }
 0x698   : > { %v4267_v56 = vmax.f32 %v4165_v26, 0.0  ;;  %v11135_v39 = vadd.f32 %v4917_v40, %v4829_v52  ;;  %4117 = vmatmul.bf16.gmra.mxu2 %v12368_v17  ;;  %4867 = vmatmul.bf16.gmra.mxu0 %v12562_v61  ;;  %v7346_v16 = vor.u32 %v7885_v58, %v7343_v24  ;;  %v7867_v17 = vld [vmem:[%s11916_s3 + $0x24] sm:$0xf] }
 0x699   : > { %4206 = vmatmul.bf16.gmra.mxu3 %v12370_v36  ;;  %4956 = vmatmul.bf16.gmra.mxu1 %v12563_v4  ;;  %v7883_v36 = vld [vmem:[%s11916_s3 + $0xa4] sm:$0xf]  ;;  %v7274_v40 = vor.u32 %v7867_v17, %v7271_v13 }
 0x69a   : > { %5154 = vmatpush.bf16.msrb.mxu0 %v7282_v27  ;;  %v11144_v2 = vpack.c.bf16 %v4267_v56, %v4263_v23  ;;  %5243 = vmatpush.bf16.msrb.mxu1 %v7346_v16  ;;  %v7338_v23 = vor.u32 %v7883_v36, %v7335_v60  ;;  %v7865_v16 = vld [vmem:[%s11916_s3 + $0x14] sm:$0xf]  ;;  %v7327_v36 = vld [vmem:[%s11916_s3 + $0x98] sm:$0xf0]  ;;  %v7255_v60 = vld [vmem:[%s11916_s3 + $0x8] sm:$0xf0] }
 0x69b   : > { %v4078_v41 = vpop.f32.mrf.mxu2 }
 0x69c   : > { %12564 = vst [vmem:[#allocation46_spill] sm:$0xff] %v11144_v2  ;;  %v4079_v26 = vadd.f32 %v4078_v41, %v10811_v20  ;;  %v4167_v52 = vpop.f32.mrf.mxu3  ;;  %v7263_v20 = vld [vmem:[%s11916_s3 + $0x18] sm:$0xf0]  ;;  %v7881_v41 = vld [vmem:[%s11916_s3 + $0x94] sm:$0xf] }
 0x69d   : > { %v4830_v58 = vpop.f32.mrf.mxu0  ;;  %v7266_v13 = vor.u32 %v7865_v16, %v7263_v20  ;;  %v7319_v16 = vld [vmem:[%s11916_s3 + $0x88] sm:$0xf0] }
 0x69e   : > { %v4168_v56 = vadd.f32 %v4167_v52, %v4079_v26  ;;  %v4831_v27 = vadd.f32 %v4830_v58, %v10908_v14  ;;  %v4919_v24 = vpop.f32.mrf.mxu1  ;;  %5155 = vmatpush.bf16.msrb.mxu0 %v7274_v40  ;;  %5244 = vmatpush.bf16.msrb.mxu1 %v7338_v23  ;;  %v7330_v26 = vor.u32 %v7881_v41, %v7327_v36  ;;  %v7863_v40 = vld [vmem:[%s11916_s3 + $0x4] sm:$0xf] }
 0x69f   : > { %v7879_v58 = vld [vmem:[%s11916_s3 + $0x84] sm:$0xf] }
 0x6a0   : > { %v11169_v17 = vadd.f32 %v4919_v24, %v4831_v27  ;;  %v7258_v24 = vor.u32 %v7863_v40, %v7255_v60  ;;  %v7322_v41 = vor.u32 %v7879_v58, %v7319_v16  ;;  %v4271_v4 = vmax.f32 %v4168_v56, 0.0 }
 0x6a2   : > { %12565 = vst [vmem:[#allocation28_spill] sm:$0xff] %v11169_v17  ;;  %5156 = vmatpush.bf16.msrb.mxu0 %v7266_v13  ;;  %5245 = vmatpush.bf16.msrb.mxu1 %v7330_v26  ;;  %v12566_v17 = vld [vmem:[#allocation69_spill] sm:$0xff] }
 0x6a3   : > { %v4080_v52 = vpop.f32.mrf.mxu2 }
 0x6a4   : > { %v4081_v23 = vadd.f32 %v4080_v52, %v10818_v9  ;;  %v4169_v27 = vpop.f32.mrf.mxu3  ;;  %v12567_v9 = vld [vmem:[#allocation120_spill] sm:$0xff] }
 0x6a5   : > { %v4833_v20 = vpop.f32.mrf.mxu0  ;;  %v12568_v52 = vld [vmem:[#allocation116_spill] sm:$0xff] }
 0x6a6   : > { %v4170_v13 = vadd.f32 %v4169_v27, %v4081_v23  ;;  %v4834_v36 = vadd.f32 %v4833_v20, %v10908_v14  ;;  %v4922_v26 = vpop.f32.mrf.mxu1  ;;  %5157 = vmatpush.bf16.msrb.mxu0 %v7258_v24  ;;  %5246 = vmatpush.bf16.msrb.mxu1 %v7322_v41 }
 0x6a8   : > { %v4275_v61 = vmax.f32 %v4170_v13, 0.0  ;;  %v11188_v32 = vadd.f32 %v4922_v26, %v4834_v36  ;;  %4872 = vmatmul.bf16.gmra.mxu0 %v12566_v17  ;;  %4980 = vmatmul.bf16.vlgmr.msrb.gmra.mxu2 %v12567_v9 }
 0x6a9   : > { %4961 = vmatmul.bf16.gmra.mxu1 %v12568_v52  ;;  %5069 = vmatmul.bf16.vlgmr.msrb.gmra.mxu3 %v10897_v18 }
 0x6aa   : > { %v11194_v40 = vpack.c.bf16 %v4275_v61, %v4271_v4 }
 0x6ab   : > { %v4083_v60 = vpop.f32.mrf.mxu2 }
 0x6ac   : > { %12569 = vst [vmem:[#allocation48_spill] sm:$0xff] %v11194_v40  ;;  %v4084_v58 = vadd.f32 %v4083_v60, %v10821_v46  ;;  %v4172_v23 = vpop.f32.mrf.mxu3  ;;  %v12570_v60 = vld [vmem:[#allocation70_spill] sm:$0xff] }
 0x6ad   : > { %v4835_v27 = vpop.f32.mrf.mxu0 }
 0x6ae   : > { %v4173_v24 = vadd.f32 %v4172_v23, %v4084_v58  ;;  %v4836_v56 = vadd.f32 %v4835_v27, %v10908_v14  ;;  %v4924_v16 = vpop.f32.mrf.mxu1  ;;  %v12571_v58 = vld [vmem:[#allocation117_spill] sm:$0xff] }
 0x6b0   : > { %v11198_v20 = vadd.f32 %v4924_v16, %v4836_v56  ;;  %v4279_v18 = vmax.f32 %v4173_v24, 0.0 }
 0x6b3   : > { %v4085_v41 = vpop.f32.mrf.mxu2 }
 0x6b4   : > { %v4086_v13 = vadd.f32 %v4085_v41, %v10828_v50  ;;  %v4174_v36 = vpop.f32.mrf.mxu3 }
 0x6b5   : > { %v4838_v26 = vpop.f32.mrf.mxu0 }
 0x6b6   : > { %v4175_v52 = vadd.f32 %v4174_v36, %v4086_v13  ;;  %v4839_v61 = vadd.f32 %v4838_v26, %v10908_v14  ;;  %v4927_v4 = vpop.f32.mrf.mxu1 }
 0x6b8   : > { %v4283_v9 = vmax.f32 %v4175_v52, 0.0  ;;  %v11202_v46 = vadd.f32 %v4927_v4, %v4839_v61  ;;  %4877 = vmatmul.bf16.gmra.mxu0 %v12570_v60  ;;  %4985 = vmatmul.bf16.gmra.mxu2 %v10208_v57 }
 0x6b9   : > { %4966 = vmatmul.bf16.gmra.mxu1 %v12571_v58  ;;  %5074 = vmatmul.bf16.gmra.mxu3 %v10924_v44 }
 0x6ba   : > { %v11208_v23 = vpack.c.bf16 %v4283_v9, %v4279_v18 }
 0x6bb   : > { %v4088_v50 = vpop.f32.mrf.mxu2 }
 0x6bc   : > { %12572 = vst [vmem:[#allocation30_spill] sm:$0xff] %v11208_v23  ;;  %v4089_v27 = vadd.f32 %v4088_v50, %v10831_v51  ;;  %v4177_v56 = vpop.f32.mrf.mxu3 }
 0x6bd   : > { %v4840_v16 = vpop.f32.mrf.mxu0 }
 0x6be   : > { %v4178_v41 = vadd.f32 %v4177_v56, %v4089_v27  ;;  %v4841_v52 = vadd.f32 %v4840_v16, %v10908_v14  ;;  %v4929_v24 = vpop.f32.mrf.mxu1 }
 0x6c0   : > { %v11212_v13 = vadd.f32 %v4929_v24, %v4841_v52  ;;  %v4287_v44 = vmax.f32 %v4178_v41, 0.0 }
 0x6c3   : > { %v4090_v36 = vpop.f32.mrf.mxu2 }
 0x6c4   : > { %v4091_v26 = vadd.f32 %v4090_v36, %v10838_v12  ;;  %v4179_v61 = vpop.f32.mrf.mxu3 }
 0x6c5   : > { %v4843_v4 = vpop.f32.mrf.mxu0 }
 0x6c6   : > { %v4180_v58 = vadd.f32 %v4179_v61, %v4091_v26  ;;  %v4844_v18 = vadd.f32 %v4843_v4, %v10908_v14  ;;  %v4932_v9 = vpop.f32.mrf.mxu1 }
 0x6c8   : > { %v4291_v57 = vmax.f32 %v4180_v58, 0.0  ;;  %v11216_v51 = vadd.f32 %v4932_v9, %v4844_v18  ;;  %4990 = vmatmul.bf16.gmra.mxu2 %v10256_v47  ;;  %5158 = vmatmul.bf16.vlgmr.msrb.gmra.mxu0 %v12512_v37  ;;  %v12573_v9 = vld [vmem:[#allocation87_spill] sm:$0xff] }
 0x6c9   : > { %5079 = vmatmul.bf16.gmra.mxu3 %v10944_v45  ;;  %5247 = vmatmul.bf16.vlgmr.msrb.gmra.mxu1 %v12514_v3 }
 0x6ca   : > { %v11222_v50 = vpack.c.bf16 %v4291_v57, %v4287_v44 }
 0x6cb   : > { %v4093_v12 = vpop.f32.mrf.mxu2 }
 0x6cc   : > { %v4094_v27 = vadd.f32 %v4093_v12, %v10841_v7  ;;  %v4182_v56 = vpop.f32.mrf.mxu3 }
 0x6cd   : > { %v4845_v16 = vpop.f32.mrf.mxu0 }
 0x6ce   : > { %v4183_v52 = vadd.f32 %v4182_v56, %v4094_v27  ;;  %v4846_v58 = vadd.f32 %v4845_v16, %v10908_v14  ;;  %v4934_v41 = vpop.f32.mrf.mxu1 }
 0x6d0   : > { %v11226_v24 = vadd.f32 %v4934_v41, %v4846_v58  ;;  %v4295_v44 = vmax.f32 %v4183_v52, 0.0 }
 0x6d3   : > { %v4095_v36 = vpop.f32.mrf.mxu2 }
 0x6d4   : > { %v4096_v37 = vadd.f32 %v4095_v36, %v10848_v54  ;;  %v4184_v26 = vpop.f32.mrf.mxu3 }
 0x6d5   : > { %v4848_v61 = vpop.f32.mrf.mxu0 }
 0x6d6   : > { %v4185_v4 = vadd.f32 %v4184_v26, %v4096_v37  ;;  %v4849_v57 = vadd.f32 %v4848_v61, %v10908_v14  ;;  %v4937_v3 = vpop.f32.mrf.mxu1  ;;  %v12574_v26 = vld [vmem:[#allocation14_spill] sm:$0xff] }
 0x6d8   : > { %v4299_v18 = vmax.f32 %v4185_v4, 0.0  ;;  %v11230_v7 = vadd.f32 %v4937_v3, %v4849_v57  ;;  %4995 = vmatmul.bf16.gmra.mxu2 %v12573_v9  ;;  %5163 = vmatmul.bf16.gmra.mxu0 %v12516_v63 }
 0x6d9   : > { %5084 = vmatmul.bf16.gmra.mxu3 %v10964_v42  ;;  %5252 = vmatmul.bf16.gmra.mxu1 %v12518_v11 }
 0x6da   : > { %v11236_v12 = vpack.c.bf16 %v4299_v18, %v4295_v44 }
 0x6db   : > { %v4098_v54 = vpop.f32.mrf.mxu2 }
 0x6dc   : > { %v4099_v27 = vadd.f32 %v4098_v54, %v10851_v28  ;;  %v4187_v56 = vpop.f32.mrf.mxu3  ;;  %v12575_v54 = vld [vmem:[#allocation89_spill] sm:$0xff] }
 0x6dd   : > { %v4850_v16 = vpop.f32.mrf.mxu0 }
 0x6de   : > { %v4188_v58 = vadd.f32 %v4187_v56, %v4099_v27  ;;  %v4851_v52 = vadd.f32 %v4850_v16, %v10908_v14  ;;  %v4939_v41 = vpop.f32.mrf.mxu1  ;;  %v12576_v27 = vld [vmem:[#allocation96_spill] sm:$0xff]  ;;  %v12577_v56 = vld [vmem:[#allocation93_spill] sm:$0xff] }
 0x6e0   : > { %v11240_v36 = vadd.f32 %v4939_v41, %v4851_v52  ;;  %v4303_v44 = vmax.f32 %v4188_v58, 0.0  ;;  %v12579_v41 = vld [vmem:[#allocation16_spill] sm:$0xff] }
 0x6e3   : > { %v4100_v37 = vpop.f32.mrf.mxu2 }
 0x6e4   : > { %v4101_v63 = vadd.f32 %v4100_v37, %v12574_v26  ;;  %v4189_v61 = vpop.f32.mrf.mxu3 }
 0x6e5   : > { %v4853_v4 = vpop.f32.mrf.mxu0 }
 0x6e6   : > { %v4190_v57 = vadd.f32 %v4189_v61, %v4101_v63  ;;  %v4854_v11 = vadd.f32 %v4853_v4, %v10908_v14  ;;  %v4942_v3 = vpop.f32.mrf.mxu1 }
 0x6e8   : > { %v4307_v18 = vmax.f32 %v4190_v57, 0.0  ;;  %v11244_v28 = vadd.f32 %v4942_v3, %v4854_v11  ;;  %5000 = vmatmul.bf16.gmra.mxu2 %v12575_v54  ;;  %5168 = vmatmul.bf16.gmra.mxu0 %v12576_v27  ;;  %v12580_v3 = vld [vmem:[#allocation18_spill] sm:$0xff] }
 0x6e9   : > { %5089 = vmatmul.bf16.gmra.mxu3 %v11020_v30  ;;  %5257 = vmatmul.bf16.gmra.mxu1 %v12577_v56 }
 0x6ea   : > { %v11250_v16 = vpack.c.bf16 %v4307_v18, %v4303_v44 }
 0x6eb   : > { %v4103_v52 = vpop.f32.mrf.mxu2 }
 0x6ec   : > { %12578 = vst [vmem:[#allocation50_spill] sm:$0xff] %v11250_v16  ;;  %v4104_v37 = vadd.f32 %v4103_v52, %v12579_v41  ;;  %v4192_v26 = vpop.f32.mrf.mxu3  ;;  %v12582_v41 = vld [vmem:[#allocation92_spill] sm:$0xff] }
 0x6ed   : > { %v4855_v63 = vpop.f32.mrf.mxu0 }
 0x6ee   : > { %v4193_v61 = vadd.f32 %v4192_v26, %v4104_v37  ;;  %v4856_v58 = vadd.f32 %v4855_v63, %v10908_v14  ;;  %v4944_v4 = vpop.f32.mrf.mxu1  ;;  %v12583_v37 = vld [vmem:[#allocation101_spill] sm:$0xff]  ;;  %v12584_v26 = vld [vmem:[#allocation95_spill] sm:$0xff] }
 0x6f0   : > { %v11254_v57 = vadd.f32 %v4944_v4, %v4856_v58  ;;  %v4311_v56 = vmax.f32 %v4193_v61, 0.0  ;;  %v12585_v4 = vld [vmem:[#allocation20_spill] sm:$0xff] }
 0x6f3   : > { %v4105_v11 = vpop.f32.mrf.mxu2 }
 0x6f4   : > { %v4106_v27 = vadd.f32 %v4105_v11, %v12580_v3  ;;  %v4194_v54 = vpop.f32.mrf.mxu3 }
 0x6f5   : > { %v4858_v30 = vpop.f32.mrf.mxu0 }
 0x6f6   : > { %v4195_v42 = vadd.f32 %v4194_v54, %v4106_v27  ;;  %v4859_v44 = vadd.f32 %v4858_v30, %v10908_v14  ;;  %v4947_v18 = vpop.f32.mrf.mxu1 }
 0x6f8   : > { %v4315_v9 = vmax.f32 %v4195_v42, 0.0  ;;  %v11258_v52 = vadd.f32 %v4947_v18, %v4859_v44  ;;  %5005 = vmatmul.bf16.gmra.mxu2 %v12582_v41  ;;  %5173 = vmatmul.bf16.gmra.mxu0 %v12583_v37 }
 0x6f9   : > { %5094 = vmatmul.bf16.gmra.mxu3 %v11082_v43  ;;  %5262 = vmatmul.bf16.gmra.mxu1 %v12584_v26 }
 0x6fa   : > { %12581 = vst [vmem:[#allocation32_spill] sm:$0xff] %v11258_v52  ;;  %v11264_v63 = vpack.c.bf16 %v4315_v9, %v4311_v56 }
 0x6fb   : > { %v4108_v58 = vpop.f32.mrf.mxu2 }
 0x6fc   : > { %v4109_v54 = vadd.f32 %v4108_v58, %v12585_v4  ;;  %v4197_v11 = vpop.f32.mrf.mxu3  ;;  %v12587_v4 = vld [vmem:[#allocation94_spill] sm:$0xff] }
 0x6fd   : > { %v4860_v30 = vpop.f32.mrf.mxu0 }
 0x6fe   : > { %v4198_v3 = vadd.f32 %v4197_v11, %v4109_v54  ;;  %v4861_v42 = vadd.f32 %v4860_v30, %v10908_v14  ;;  %v4949_v61 = vpop.f32.mrf.mxu1  ;;  %v12588_v54 = vld [vmem:[#allocation105_spill] sm:$0xff]  ;;  %v12589_v11 = vld [vmem:[#allocation98_spill] sm:$0xff] }
 0x700   : > { %v11268_v27 = vadd.f32 %v4949_v61, %v4861_v42  ;;  %v4319_v26 = vmax.f32 %v4198_v3, 0.0  ;;  %v12591_v42 = vld [vmem:[#allocation41_spill] sm:$0xff] }
 0x703   : > { %v4110_v44 = vpop.f32.mrf.mxu2 }
 0x704   : > { %v4111_v18 = vadd.f32 %v4110_v44, %v10878_v21  ;;  %v4199_v37 = vpop.f32.mrf.mxu3 }
 0x705   : > { %v4863_v43 = vpop.f32.mrf.mxu0 }
 0x706   : > { %v4200_v41 = vadd.f32 %v4199_v37, %v4111_v18  ;;  %v4864_v9 = vadd.f32 %v4863_v43, %v10908_v14  ;;  %v4952_v56 = vpop.f32.mrf.mxu1 }
 0x708   : > { %v4323_v52 = vmax.f32 %v4200_v41, 0.0  ;;  %v11272_v58 = vadd.f32 %v4952_v56, %v4864_v9  ;;  %5010 = vmatmul.bf16.gmra.mxu2 %v12587_v4  ;;  %5178 = vmatmul.bf16.gmra.mxu0 %v12588_v54 }
 0x709   : > { %5099 = vmatmul.bf16.gmra.mxu3 %v11144_v2  ;;  %5267 = vmatmul.bf16.gmra.mxu1 %v12589_v11 }
 0x70a   : > { %12586 = vst [vmem:[#allocation52_spill] sm:$0xff] %v11272_v58  ;;  %v11278_v30 = vpack.c.bf16 %v4323_v52, %v4319_v26 }
 0x70b   : > { %v4113_v21 = vpop.f32.mrf.mxu2 }
 0x70c   : > { %12590 = vst [vmem:[#allocation118_spill] sm:$0xff] %v11278_v30  ;;  %v4114_v61 = vadd.f32 %v4113_v21, %v12591_v42  ;;  %v4202_v44 = vpop.f32.mrf.mxu3  ;;  %v12592_v42 = vld [vmem:[#allocation97_spill] sm:$0xff] }
 0x70d   : > { %v4865_v43 = vpop.f32.mrf.mxu0 }
 0x70e   : > { %v4203_v18 = vadd.f32 %v4202_v44, %v4114_v61  ;;  %v4866_v41 = vadd.f32 %v4865_v43, %v10908_v14  ;;  %v4954_v3 = vpop.f32.mrf.mxu1  ;;  %v12593_v61 = vld [vmem:[#allocation107_spill] sm:$0xff]  ;;  %v12594_v44 = vld [vmem:[#allocation100_spill] sm:$0xff] }
 0x710   : > { %v11282_v37 = vadd.f32 %v4954_v3, %v4866_v41  ;;  %v4327_v11 = vmax.f32 %v4203_v18, 0.0 }
 0x713   : > { %v4115_v9 = vpop.f32.mrf.mxu2 }
 0x714   : > { %v4116_v56 = vadd.f32 %v4115_v9, %v10888_v33  ;;  %v4204_v54 = vpop.f32.mrf.mxu3 }
 0x715   : > { %v4868_v2 = vpop.f32.mrf.mxu0 }
 0x716   : > { %v4205_v4 = vadd.f32 %v4204_v54, %v4116_v56  ;;  %v4869_v52 = vadd.f32 %v4868_v2, %v10908_v14  ;;  %v4957_v26 = vpop.f32.mrf.mxu1 }
 0x718   : > { %v4331_v58 = vmax.f32 %v4205_v4, 0.0  ;;  %v11286_v21 = vadd.f32 %v4957_v26, %v4869_v52  ;;  %5015 = vmatmul.bf16.gmra.mxu2 %v12592_v42  ;;  %5183 = vmatmul.bf16.gmra.mxu0 %v12593_v61 }
 0x719   : > { %5104 = vmatmul.bf16.gmra.mxu3 %v11194_v40  ;;  %5272 = vmatmul.bf16.gmra.mxu1 %v12594_v44 }
 0x71a   : > { %v11292_v43 = vpack.c.bf16 %v4331_v58, %v4327_v11 }
 0x71b   : > { %v4118_v33 = vpop.f32.mrf.mxu2 }
 0x71c   : > { %12595 = vst [vmem:[#allocation34_spill] sm:$0xff] %v11292_v43  ;;  %v4119_v41 = vadd.f32 %v4118_v33, %v10891_v48  ;;  %v4207_v3 = vpop.f32.mrf.mxu3  ;;  %v12596_v33 = vld [vmem:[#allocation99_spill] sm:$0xff] }
 0x71d   : > { %v4870_v2 = vpop.f32.mrf.mxu0 }
 0x71e   : > { %v4208_v9 = vadd.f32 %v4207_v3, %v4119_v41  ;;  %v4871_v4 = vadd.f32 %v4870_v2, %v10908_v14  ;;  %v4959_v18 = vpop.f32.mrf.mxu1  ;;  %v12597_v41 = vld [vmem:[#allocation110_spill] sm:$0xff]  ;;  %v12598_v3 = vld [vmem:[#allocation103_spill] sm:$0xff] }
 0x720   : > { %v11296_v56 = vadd.f32 %v4959_v18, %v4871_v4  ;;  %v4335_v44 = vmax.f32 %v4208_v9, 0.0 }
 0x723   : > { %v4120_v54 = vpop.f32.mrf.mxu2 }
 0x724   : > { %v4121_v52 = vadd.f32 %v4120_v54, %v10905_v19  ;;  %v4209_v26 = vpop.f32.mrf.mxu3 }
 0x725   : > { %v4873_v61 = vpop.f32.mrf.mxu0 }
 0x726   : > { %v4210_v40 = vadd.f32 %v4209_v26, %v4121_v52  ;;  %v4874_v58 = vadd.f32 %v4873_v61, %v10908_v14  ;;  %v4962_v11 = vpop.f32.mrf.mxu1 }
 0x728   : > { %v4339_v42 = vmax.f32 %v4210_v40, 0.0  ;;  %v11300_v48 = vadd.f32 %v4962_v11, %v4874_v58  ;;  %5020 = vmatmul.bf16.gmra.mxu2 %v12596_v33  ;;  %5188 = vmatmul.bf16.gmra.mxu0 %v12597_v41 }
 0x729   : > { %5109 = vmatmul.bf16.gmra.mxu3 %v11208_v23  ;;  %5277 = vmatmul.bf16.gmra.mxu1 %v12598_v3 }
 0x72a   : > { %v11306_v2 = vpack.c.bf16 %v4339_v42, %v4335_v44 }
 0x72b   : > { %v4981_v19 = vpop.f32.mrf.mxu2 }
 0x72c   : > { %12599 = vst [vmem:[#allocation54_spill] sm:$0xff] %v11306_v2  ;;  %v4982_v4 = vadd.f32 %v4981_v19, %v10912_v29  ;;  %v5070_v18 = vpop.f32.mrf.mxu3  ;;  %v12600_v19 = vld [vmem:[#allocation102_spill] sm:$0xff] }
 0x72d   : > { %v4875_v54 = vpop.f32.mrf.mxu0 }
 0x72e   : > { %v5071_v52 = vadd.f32 %v5070_v18, %v4982_v4  ;;  %v4876_v40 = vadd.f32 %v4875_v54, %v10908_v14  ;;  %v4964_v9 = vpop.f32.mrf.mxu1 }
 0x730   : > { %v11310_v26 = vadd.f32 %v4964_v9, %v4876_v40  ;;  %v5506_v3 = vmax.f32 %v5071_v52, 0.0 }
 0x733   : > { %v4983_v61 = vpop.f32.mrf.mxu2 }
 0x734   : > { %v4984_v58 = vadd.f32 %v4983_v61, %v10928_v22  ;;  %v5072_v11 = vpop.f32.mrf.mxu3 }
 0x735   : > { %v4878_v41 = vpop.f32.mrf.mxu0 }
 0x736   : > { %v5073_v23 = vadd.f32 %v5072_v11, %v4984_v58  ;;  %v4879_v42 = vadd.f32 %v4878_v41, %v10908_v14  ;;  %v4967_v44 = vpop.f32.mrf.mxu1  ;;  %v11327_v58 = vperm.slane %v10903_v1, 1  ;;  %v7909_v1 = vld [vmem:[%s11916_s3 + $0x174] sm:$0xf] }
 0x738   : > { %v5508_v33 = vmax.f32 %v5073_v23, 0.0  ;;  %v11314_v29 = vadd.f32 %v4967_v44, %v4879_v42  ;;  %5025 = vmatmul.bf16.gmra.mxu2 %v12600_v19  ;;  %5193 = vmatmul.bf16.gmra.mxu0 %v12544_v31 }
 0x739   : > { %5114 = vmatmul.bf16.gmra.mxu3 %v11222_v50  ;;  %5282 = vmatmul.bf16.gmra.mxu1 %v12546_v62 }
 0x73a   : > { %v11320_v4 = vpack.c.bf16 %v5508_v33, %v5506_v3 }
 0x73b   : > { %v4986_v22 = vpop.f32.mrf.mxu2 }
 0x73c   : > { %v4987_v18 = vadd.f32 %v4986_v22, %v10938_v55  ;;  %v5075_v54 = vpop.f32.mrf.mxu3 }
 0x73d   : > { %v4880_v40 = vpop.f32.mrf.mxu0 }
 0x73e   : > { %v5076_v9 = vadd.f32 %v5075_v54, %v4987_v18  ;;  %v4881_v23 = vadd.f32 %v4880_v40, %v10908_v14  ;;  %v4969_v52 = vpop.f32.mrf.mxu1  ;;  %v12601_v14 = vld [vmem:[#allocation104_spill] sm:$0xff] }
 0x740   : > { %v11324_v61 = vadd.f32 %v4969_v52, %v4881_v23  ;;  %v5510_v44 = vmax.f32 %v5076_v9, 0.0 }
 0x743   : > { %v4988_v31 = vpop.f32.mrf.mxu2 }
 0x744   : > { %v4989_v11 = vadd.f32 %v4988_v31, %v10948_v35  ;;  %v5077_v62 = vpop.f32.mrf.mxu3  ;;  %v7439_v35 = vld [vmem:[%s11916_s3 + $0x178] sm:$0xf0] }
 0x745   : > { %v5159_v33 = vpop.f32.mrf.mxu0  ;;  %v7442_v18 = vor.u32 %v7909_v1, %v7439_v35 }
 0x746   : > { %v5078_v41 = vadd.f32 %v5077_v62, %v4989_v11  ;;  %v5160_v42 = vadd.f32 %v5159_v33, %v11327_v58  ;;  %v5248_v55 = vpop.f32.mrf.mxu1  ;;  %v7925_v62 = vld [vmem:[%s11916_s3 + $0x1f4] sm:$0xf]  ;;  %v7503_v33 = vld [vmem:[%s11916_s3 + $0x1f8] sm:$0xf0] }
 0x747   : > { %5328 = vmatpush.bf16.msra.mxu2 %v7442_v18 }
 0x748   : > { %v5512_v3 = vmax.f32 %v5078_v41, 0.0  ;;  %v11331_v22 = vadd.f32 %v5248_v55, %v5160_v42  ;;  %5030 = vmatmul.bf16.gmra.mxu2 %v12601_v14  ;;  %5198 = vmatmul.bf16.gmra.mxu0 %v12548_v25  ;;  %v7506_v41 = vor.u32 %v7925_v62, %v7503_v33 }
 0x749   : > { %5119 = vmatmul.bf16.gmra.mxu3 %v11236_v12  ;;  %5287 = vmatmul.bf16.gmra.mxu1 %v12549_v0 }
 0x74a   : > { %v11343_v54 = vpack.c.bf16 %v5512_v3, %v5510_v44  ;;  %5417 = vmatpush.bf16.msra.mxu3 %v7506_v41 }
 0x74b   : > { %v4991_v40 = vpop.f32.mrf.mxu2 }
 0x74c   : > { %v4992_v9 = vadd.f32 %v4991_v40, %v10952_v38  ;;  %v5080_v23 = vpop.f32.mrf.mxu3 }
 0x74d   : > { %v5161_v25 = vpop.f32.mrf.mxu0 }
 0x74e   : > { %v5081_v52 = vadd.f32 %v5080_v23, %v4992_v9  ;;  %v5162_v0 = vadd.f32 %v5161_v25, %v11327_v58  ;;  %v5250_v31 = vpop.f32.mrf.mxu1  ;;  %v12602_v23 = vld [vmem:[#allocation106_spill] sm:$0xff] }
 0x74f   : > { %v12603_v25 = vld [vmem:[#allocation114_spill] sm:$0xff] }
 0x750   : > { %v11347_v11 = vadd.f32 %v5250_v31, %v5162_v0  ;;  %v5514_v18 = vmax.f32 %v5081_v52, 0.0  ;;  %v12604_v0 = vld [vmem:[#allocation111_spill] sm:$0xff] }
 0x753   : > { %v4993_v42 = vpop.f32.mrf.mxu2 }
 0x754   : > { %v4994_v38 = vadd.f32 %v4993_v42, %v10983_v59  ;;  %v5082_v55 = vpop.f32.mrf.mxu3 }
 0x755   : > { %v5164_v44 = vpop.f32.mrf.mxu0 }
 0x756   : > { %v5083_v3 = vadd.f32 %v5082_v55, %v4994_v38  ;;  %v5165_v1 = vadd.f32 %v5164_v44, %v11327_v58  ;;  %v5253_v35 = vpop.f32.mrf.mxu1 }
 0x758   : > { %v5516_v40 = vmax.f32 %v5083_v3, 0.0  ;;  %v11357_v9 = vadd.f32 %v5253_v35, %v5165_v1  ;;  %5035 = vmatmul.bf16.gmra.mxu2 %v12602_v23  ;;  %5203 = vmatmul.bf16.gmra.mxu0 %v12603_v25 }
 0x759   : > { %5124 = vmatmul.bf16.gmra.mxu3 %v11250_v16  ;;  %5292 = vmatmul.bf16.gmra.mxu1 %v12604_v0 }
 0x75a   : > { %v11363_v31 = vpack.c.bf16 %v5516_v40, %v5514_v18 }
 0x75b   : > { %v4996_v59 = vpop.f32.mrf.mxu2 }
 0x75c   : > { %v4997_v62 = vadd.f32 %v4996_v59, %v11011_v34  ;;  %v5085_v33 = vpop.f32.mrf.mxu3  ;;  %v12605_v59 = vld [vmem:[#allocation6_spill] sm:$0xff] }
 0x75d   : > { %v5166_v41 = vpop.f32.mrf.mxu0 }
 0x75e   : > { %v5086_v42 = vadd.f32 %v5085_v33, %v4997_v62  ;;  %v5167_v52 = vadd.f32 %v5166_v41, %v11327_v58  ;;  %v5255_v38 = vpop.f32.mrf.mxu1  ;;  %v7431_v62 = vld [vmem:[%s11916_s3 + $0x168] sm:$0xf0] }
 0x760   : > { %v11367_v55 = vadd.f32 %v5255_v38, %v5167_v52  ;;  %v5518_v0 = vmax.f32 %v5086_v42, 0.0 }
 0x763   : > { %v4998_v44 = vpop.f32.mrf.mxu2 }
 0x764   : > { %v4999_v3 = vadd.f32 %v4998_v44, %v11045_v5  ;;  %v5087_v1 = vpop.f32.mrf.mxu3  ;;  %v7907_v5 = vld [vmem:[%s11916_s3 + $0x164] sm:$0xf] }
 0x765   : > { %v5169_v35 = vpop.f32.mrf.mxu0  ;;  %v7434_v33 = vor.u32 %v7907_v5, %v7431_v62  ;;  %v7487_v5 = vld [vmem:[%s11916_s3 + $0x1d8] sm:$0xf0] }
 0x766   : > { %v5088_v25 = vadd.f32 %v5087_v1, %v4999_v3  ;;  %v5170_v18 = vadd.f32 %v5169_v35, %v11327_v58  ;;  %v5258_v40 = vpop.f32.mrf.mxu1 }
 0x767   : > { %5329 = vmatpush.bf16.msra.mxu2 %v7434_v33 }
 0x768   : > { %v5520_v16 = vmax.f32 %v5088_v25, 0.0  ;;  %v11371_v34 = vadd.f32 %v5258_v40, %v5170_v18  ;;  %5040 = vmatmul.bf16.gmra.mxu2 %v12605_v59  ;;  %5208 = vmatmul.bf16.gmra.mxu0 %v12553_v8  ;;  %v7923_v8 = vld [vmem:[%s11916_s3 + $0x1e4] sm:$0xf]  ;;  %v7905_v25 = vld [vmem:[%s11916_s3 + $0x154] sm:$0xf] }
 0x769   : > { %5129 = vmatmul.bf16.gmra.mxu3 %v11264_v63  ;;  %5297 = vmatmul.bf16.gmra.mxu1 %v12554_v15  ;;  %v7495_v15 = vld [vmem:[%s11916_s3 + $0x1e8] sm:$0xf0]  ;;  %v7423_v18 = vld [vmem:[%s11916_s3 + $0x158] sm:$0xf0] }
 0x76a   : > { %v11383_v41 = vpack.c.bf16 %v5520_v16, %v5518_v0  ;;  %v7498_v44 = vor.u32 %v7923_v8, %v7495_v15  ;;  %v7426_v0 = vor.u32 %v7905_v25, %v7423_v18  ;;  %v7415_v8 = vld [vmem:[%s11916_s3 + $0x148] sm:$0xf0]  ;;  %v7919_v15 = vld [vmem:[%s11916_s3 + $0x1c4] sm:$0xf] }
 0x76b   : > { %v5001_v42 = vpop.f32.mrf.mxu2 }
 0x76c   : > { %v5002_v52 = vadd.f32 %v5001_v42, %v11073_v10  ;;  %v5090_v38 = vpop.f32.mrf.mxu3  ;;  %5418 = vmatpush.bf16.msra.mxu3 %v7498_v44  ;;  %v7921_v10 = vld [vmem:[%s11916_s3 + $0x1d4] sm:$0xf]  ;;  %5330 = vmatpush.bf16.msra.mxu2 %v7426_v0  ;;  %v7903_v42 = vld [vmem:[%s11916_s3 + $0x144] sm:$0xf] }
 0x76d   : > { %v5171_v3 = vpop.f32.mrf.mxu0  ;;  %v7490_v62 = vor.u32 %v7921_v10, %v7487_v5  ;;  %v7418_v44 = vor.u32 %v7903_v42, %v7415_v8  ;;  %v7901_v0 = vld [vmem:[%s11916_s3 + $0x134] sm:$0xf] }
 0x76e   : > { %v5091_v1 = vadd.f32 %v5090_v38, %v5002_v52  ;;  %v5172_v35 = vadd.f32 %v5171_v3, %v11327_v58  ;;  %v5260_v16 = vpop.f32.mrf.mxu1  ;;  %v7479_v3 = vld [vmem:[%s11916_s3 + $0x1c8] sm:$0xf0]  ;;  %v7917_v5 = vld [vmem:[%s11916_s3 + $0x1b4] sm:$0xf] }
 0x76f   : > { %v12606_v8 = vld [vmem:[#allocation8_spill] sm:$0xff] }
 0x770   : > { %v11402_v40 = vadd.f32 %v5260_v16, %v5172_v35  ;;  %5419 = vmatpush.bf16.msra.mxu3 %v7490_v62  ;;  %v7482_v16 = vor.u32 %v7919_v15, %v7479_v3  ;;  %5331 = vmatpush.bf16.msra.mxu2 %v7418_v44  ;;  %v5522_v62 = vmax.f32 %v5091_v1, 0.0  ;;  %v7899_v3 = vld [vmem:[%s11916_s3 + $0x124] sm:$0xf] }
 0x773   : > { %v5003_v33 = vpop.f32.mrf.mxu2 }
 0x774   : > { %v5004_v52 = vadd.f32 %v5003_v33, %v11107_v49  ;;  %v5092_v38 = vpop.f32.mrf.mxu3  ;;  %5420 = vmatpush.bf16.msra.mxu3 %v7482_v16  ;;  %v7407_v49 = vld [vmem:[%s11916_s3 + $0x138] sm:$0xf0] }
 0x775   : > { %v5174_v35 = vpop.f32.mrf.mxu0  ;;  %v7410_v15 = vor.u32 %v7901_v0, %v7407_v49 }
 0x776   : > { %v5093_v25 = vadd.f32 %v5092_v38, %v5004_v52  ;;  %v5175_v18 = vadd.f32 %v5174_v35, %v11327_v58  ;;  %v5263_v10 = vpop.f32.mrf.mxu1  ;;  %v7471_v52 = vld [vmem:[%s11916_s3 + $0x1b8] sm:$0xf0]  ;;  %v7915_v35 = vld [vmem:[%s11916_s3 + $0x1a4] sm:$0xf] }
 0x777   : > { %v7474_v38 = vor.u32 %v7917_v5, %v7471_v52  ;;  %5332 = vmatpush.bf16.msra.mxu2 %v7410_v15  ;;  %v7913_v15 = vld [vmem:[%s11916_s3 + $0x194] sm:$0xf] }
 0x778   : > { %v5524_v33 = vmax.f32 %v5093_v25, 0.0  ;;  %v11430_v42 = vadd.f32 %v5263_v10, %v5175_v18  ;;  %5045 = vmatmul.bf16.gmra.mxu2 %v12606_v8  ;;  %5213 = vmatmul.bf16.gmra.mxu0 %v12556_v6  ;;  %v7399_v6 = vld [vmem:[%s11916_s3 + $0x128] sm:$0xf0] }
 0x779   : > { %5134 = vmatmul.bf16.gmra.mxu3 %v11278_v30  ;;  %5302 = vmatmul.bf16.gmra.mxu1 %v12557_v53  ;;  %v7402_v25 = vor.u32 %v7899_v3, %v7399_v6  ;;  %v7463_v18 = vld [vmem:[%s11916_s3 + $0x1a8] sm:$0xf0] }
 0x77a   : > { %v11439_v44 = vpack.c.bf16 %v5524_v33, %v5522_v62  ;;  %5421 = vmatpush.bf16.msra.mxu3 %v7474_v38  ;;  %v7466_v0 = vor.u32 %v7915_v35, %v7463_v18  ;;  %v7897_v33 = vld [vmem:[%s11916_s3 + $0x114] sm:$0xf]  ;;  %v7895_v35 = vld [vmem:[%s11916_s3 + $0x104] sm:$0xf] }
 0x77b   : > { %v5006_v1 = vpop.f32.mrf.mxu2  ;;  %5333 = vmatpush.bf16.msra.mxu2 %v7402_v25  ;;  %v12607_v25 = vld [vmem:[#allocation28_spill] sm:$0xff]  ;;  %v12608_v8 = vld [vmem:[#allocation10_spill] sm:$0xff] }
 0x77c   : > { %v5007_v53 = vadd.f32 %v5006_v1, %v11135_v39  ;;  %v5095_v16 = vpop.f32.mrf.mxu3  ;;  %v7391_v39 = vld [vmem:[%s11916_s3 + $0x118] sm:$0xf0] }
 0x77d   : > { %v5176_v10 = vpop.f32.mrf.mxu0  ;;  %v7394_v38 = vor.u32 %v7897_v33, %v7391_v39  ;;  %v7455_v1 = vld [vmem:[%s11916_s3 + $0x198] sm:$0xf0] }
 0x77e   : > { %v5096_v49 = vadd.f32 %v5095_v16, %v5007_v53  ;;  %v5177_v5 = vadd.f32 %v5176_v10, %v11327_v58  ;;  %v5265_v62 = vpop.f32.mrf.mxu1  ;;  %5422 = vmatpush.bf16.msra.mxu3 %v7466_v0  ;;  %v7458_v3 = vor.u32 %v7913_v15, %v7455_v1  ;;  %v7383_v53 = vld [vmem:[%s11916_s3 + $0x108] sm:$0xf0]  ;;  %v7911_v16 = vld [vmem:[%s11916_s3 + $0x184] sm:$0xf] }
 0x77f   : > { %5334 = vmatpush.bf16.msra.mxu2 %v7394_v38  ;;  %v7386_v0 = vor.u32 %v7895_v35, %v7383_v53  ;;  %v7934_v35 = vld [vmem:[%s11918_s5 + $0x38] sm:$0xff] }
 0x780   : > { %v11464_v52 = vadd.f32 %v5265_v62, %v5177_v5  ;;  %v7447_v5 = vld [vmem:[%s11916_s3 + $0x188] sm:$0xf0]  ;;  %v5526_v1 = vmax.f32 %v5096_v49, 0.0  ;;  %v12610_v53 = vld [vmem:[#allocation37_spill] sm:$0xff]  ;;  %5734 = vmatpush.bf16.msra.mxu0 %v7934_v35 }
 0x781   : > { %v7450_v33 = vor.u32 %v7911_v16, %v7447_v5 }
 0x782   : > { %5423 = vmatpush.bf16.msra.mxu3 %v7458_v3 }
 0x783   : > { %v5008_v6 = vpop.f32.mrf.mxu2  ;;  %5335 = vmatpush.bf16.msra.mxu2 %v7386_v0 }
 0x784   : > { %v5009_v18 = vadd.f32 %v5008_v6, %v12607_v25  ;;  %v5097_v10 = vpop.f32.mrf.mxu3  ;;  %v12609_v6 = vld [vmem:[#allocation63_spill] sm:$0xff] }
 0x785   : > { %v5179_v62 = vpop.f32.mrf.mxu0 }
 0x786   : > { %v5098_v39 = vadd.f32 %v5097_v10, %v5009_v18  ;;  %v5180_v15 = vadd.f32 %v5179_v62, %v11327_v58  ;;  %v5268_v38 = vpop.f32.mrf.mxu1  ;;  %5424 = vmatpush.bf16.msra.mxu3 %v7450_v33  ;;  %v7933_v10 = vld [vmem:[%s11918_s5 + $0x30] sm:$0xff]  ;;  %v7932_v33 = vld [vmem:[%s11918_s5 + $0x28] sm:$0xff] }
 0x787   : > { %5735 = vmatpush.bf16.msra.mxu0 %v7933_v10  ;;  %v12612_v10 = vld [vmem:[#allocation64_spill] sm:$0xff] }
 0x788   : > { %v5528_v3 = vmax.f32 %v5098_v39, 0.0  ;;  %v11483_v30 = vadd.f32 %v5268_v38, %v5180_v15  ;;  %5050 = vmatmul.bf16.gmra.mxu2 %v12608_v8  ;;  %5218 = vmatmul.bf16.gmra.mxu0 %v12609_v6  ;;  %v7931_v38 = vld [vmem:[%s11918_s5 + $0x20] sm:$0xff] }
 0x789   : > { %5139 = vmatmul.bf16.gmra.mxu3 %v11292_v43  ;;  %5307 = vmatmul.bf16.gmra.mxu1 %v12610_v53 }
 0x78a   : > { %v11492_v16 = vpack.c.bf16 %v5528_v3, %v5526_v1 }
 0x78b   : > { %v5011_v25 = vpop.f32.mrf.mxu2  ;;  %5736 = vmatpush.bf16.msra.mxu0 %v7932_v33  ;;  %v12613_v33 = vld [vmem:[#allocation39_spill] sm:$0xff] }
 0x78c   : > { %v5012_v49 = vadd.f32 %v5011_v25, %v11188_v32  ;;  %v5100_v18 = vpop.f32.mrf.mxu3 }
 0x78d   : > { %v11498_v0 = vpop.f32.mrf.mxu0 }
 0x78e   : > { %v5101_v5 = vadd.f32 %v5100_v18, %v5012_v49  ;;  %v11500_v62 = vpop.f32.mrf.mxu1  ;;  %v12611_v18 = vld [vmem:[#allocation12_spill] sm:$0xff] }
 0x78f   : > { %5737 = vmatpush.bf16.msra.mxu0 %v7931_v38  ;;  %v7929_v38 = vld [vmem:[%s11918_s5 + $0x10] sm:$0xff] }
 0x790   : > { %v5530_v53 = vmax.f32 %v5101_v5, 0.0 }
 0x793   : > { %v5013_v39 = vpop.f32.mrf.mxu2 }
 0x794   : > { %v5014_v15 = vadd.f32 %v5013_v39, %v11198_v20  ;;  %v5102_v32 = vpop.f32.mrf.mxu3  ;;  %v7930_v20 = vld [vmem:[%s11918_s5 + $0x18] sm:$0xff] }
 0x795   : > { %v5184_v1 = vpop.f32.mrf.mxu0  ;;  %5738 = vmatpush.bf16.msra.mxu0 %v7930_v20 }
 0x796   : > { %v5103_v3 = vadd.f32 %v5102_v32, %v5014_v15  ;;  %v5185_v6 = vadd.f32 %v5184_v1, %v11327_v58  ;;  %v5273_v35 = vpop.f32.mrf.mxu1 }
 0x798   : > { %v5532_v25 = vmax.f32 %v5103_v3, 0.0  ;;  %v11510_v49 = vadd.f32 %v5273_v35, %v5185_v6  ;;  %5055 = vmatmul.bf16.gmra.mxu2 %v12611_v18  ;;  %5223 = vmatmul.bf16.gmra.mxu0 %v12612_v10  ;;  %v7928_v35 = vld [vmem:[%s11918_s5 + $0x8] sm:$0xff]  ;;  %v7927_v10 = vld [vmem:[%s11918_s5] sm:$0xff] }
 0x799   : > { %5144 = vmatmul.bf16.gmra.mxu3 %v11306_v2  ;;  %5312 = vmatmul.bf16.gmra.mxu1 %v12613_v33 }
 0x79a   : > { %v11519_v39 = vpack.c.bf16 %v5532_v25, %v5530_v53  ;;  %5739 = vmatpush.bf16.msra.mxu0 %v7929_v38 }
 0x79b   : > { %v5016_v15 = vpop.f32.mrf.mxu2 }
 0x79c   : > { %v5017_v5 = vadd.f32 %v5016_v15, %v11202_v46  ;;  %v5105_v32 = vpop.f32.mrf.mxu3 }
 0x79d   : > { %v11525_v1 = vpop.f32.mrf.mxu0 }
 0x79e   : > { %v5106_v3 = vadd.f32 %v5105_v32, %v5017_v5  ;;  %v11527_v6 = vpop.f32.mrf.mxu1  ;;  %5740 = vmatpush.bf16.msra.mxu0 %v7928_v35  ;;  %v12615_v35 = vld [vmem:[#allocation120_spill] sm:$0xff] }
 0x7a0   : > { %v5534_v32 = vmax.f32 %v5106_v3, 0.0 }
 0x7a2   : > { %5741 = vmatpush.bf16.msra.mxu0 %v7927_v10 }
 0x7a3   : > { %v5018_v53 = vpop.f32.mrf.mxu2 }
 0x7a4   : > { %v5019_v25 = vadd.f32 %v5018_v53, %v11212_v13  ;;  %v5107_v46 = vpop.f32.mrf.mxu3  ;;  %v12616_v13 = vld [vmem:[#allocation116_spill] sm:$0xff]  ;;  %v12617_v53 = vld [vmem:[#allocation22_spill] sm:$0xff] }
 0x7a5   : > { %v5189_v20 = vpop.f32.mrf.mxu0 }
 0x7a6   : > { %v5108_v33 = vadd.f32 %v5107_v46, %v5019_v25  ;;  %v5190_v15 = vadd.f32 %v5189_v20, %v11327_v58  ;;  %v5278_v5 = vpop.f32.mrf.mxu1 }
 0x7a8   : > { %v5536_v38 = vmax.f32 %v5108_v33, 0.0  ;;  %v11537_v2 = vadd.f32 %v5278_v5, %v5190_v15  ;;  %5228 = vmatmul.bf16.gmra.mxu0 %v12566_v17  ;;  %5336 = vmatmul.bf16.vlgmr.msra.gmra.mxu2 %v12615_v35 }
 0x7a9   : > { %5317 = vmatmul.bf16.gmra.mxu1 %v12616_v13  ;;  %5425 = vmatmul.bf16.vlgmr.msra.gmra.mxu3 %v12617_v53 }
 0x7aa   : > { %12614 = vst [vmem:[#allocation36_spill] sm:$0xff] %v11537_v2  ;;  %v11543_v18 = vpack.c.bf16 %v5536_v38, %v5534_v32 }
 0x7ab   : > { %v5021_v43 = vpop.f32.mrf.mxu2 }
 0x7ac   : > { %v5022_v25 = vadd.f32 %v5021_v43, %v11216_v51  ;;  %v5110_v46 = vpop.f32.mrf.mxu3  ;;  %v12619_v51 = vld [vmem:[#allocation85_spill] sm:$0xff] }
 0x7ad   : > { %v11546_v20 = vpop.f32.mrf.mxu0  ;;  %v12620_v43 = vld [vmem:[#allocation117_spill] sm:$0xff] }
 0x7ae   : > { %v5111_v3 = vadd.f32 %v5110_v46, %v5022_v25  ;;  %v11548_v10 = vpop.f32.mrf.mxu1  ;;  %v12621_v25 = vld [vmem:[#allocation42_spill] sm:$0xff] }
 0x7b0   : > { %v5538_v32 = vmax.f32 %v5111_v3, 0.0 }
 0x7b3   : > { %v5023_v33 = vpop.f32.mrf.mxu2 }
 0x7b4   : > { %v5024_v17 = vadd.f32 %v5023_v33, %v11226_v24  ;;  %v5112_v15 = vpop.f32.mrf.mxu3 }
 0x7b5   : > { %v5194_v5 = vpop.f32.mrf.mxu0 }
 0x7b6   : > { %v5113_v35 = vadd.f32 %v5112_v15, %v5024_v17  ;;  %v5195_v13 = vadd.f32 %v5194_v5, %v11327_v58  ;;  %v5283_v53 = vpop.f32.mrf.mxu1 }
 0x7b8   : > { %v5540_v38 = vmax.f32 %v5113_v35, 0.0  ;;  %v11552_v2 = vadd.f32 %v5283_v53, %v5195_v13  ;;  %5233 = vmatmul.bf16.gmra.mxu0 %v12570_v60  ;;  %5341 = vmatmul.bf16.gmra.mxu2 %v12619_v51 }
 0x7b9   : > { %5322 = vmatmul.bf16.gmra.mxu1 %v12620_v43  ;;  %5430 = vmatmul.bf16.gmra.mxu3 %v12621_v25 }
 0x7ba   : > { %12618 = vst [vmem:[#allocation56_spill] sm:$0xff] %v11552_v2  ;;  %v11558_v46 = vpack.c.bf16 %v5540_v38, %v5538_v32 }
 0x7bb   : > { %v5026_v24 = vpop.f32.mrf.mxu2 }
 0x7bc   : > { %v5027_v33 = vadd.f32 %v5026_v24, %v11230_v7  ;;  %v5115_v17 = vpop.f32.mrf.mxu3 }
 0x7bd   : > { %v11561_v15 = vpop.f32.mrf.mxu0 }
 0x7be   : > { %v5116_v3 = vadd.f32 %v5115_v17, %v5027_v33  ;;  %v11563_v5 = vpop.f32.mrf.mxu1 }
 0x7c0   : > { %v5542_v32 = vmax.f32 %v5116_v3, 0.0 }
 0x7c3   : > { %v5028_v35 = vpop.f32.mrf.mxu2 }
 0x7c4   : > { %v5029_v60 = vadd.f32 %v5028_v35, %v11240_v36  ;;  %v5117_v13 = vpop.f32.mrf.mxu3 }
 0x7c5   : > { %v5199_v53 = vpop.f32.mrf.mxu0 }
 0x7c6   : > { %v5118_v51 = vadd.f32 %v5117_v13, %v5029_v60  ;;  %v5200_v43 = vadd.f32 %v5199_v53, %v11327_v58  ;;  %v5288_v25 = vpop.f32.mrf.mxu1 }
 0x7c8   : > { %v5544_v38 = vmax.f32 %v5118_v51, 0.0  ;;  %v11567_v2 = vadd.f32 %v5288_v25, %v5200_v43  ;;  %5346 = vmatmul.bf16.gmra.mxu2 %v10256_v47  ;;  %5742 = vmatmul.bf16.vlgmr.msra.gmra.mxu0 %v11320_v4 }
 0x7c9   : > { %5435 = vmatmul.bf16.gmra.mxu3 %v10944_v45 }
 0x7ca   : > { %v11572_v7 = vpack.c.bf16 %v5544_v38, %v5542_v32  ;;  %v12624_v38 = vld [vmem:[#allocation24_spill] sm:$0xff] }
 0x7cb   : > { %v5031_v24 = vpop.f32.mrf.mxu2 }
 0x7cc   : > { %v5032_v36 = vadd.f32 %v5031_v24, %v11244_v28  ;;  %v5120_v33 = vpop.f32.mrf.mxu3  ;;  %v12623_v28 = vld [vmem:[#allocation87_spill] sm:$0xff] }
 0x7cd   : > { %v11575_v17 = vpop.f32.mrf.mxu0 }
 0x7ce   : > { %v5121_v35 = vadd.f32 %v5120_v33, %v5032_v36  ;;  %v11577_v60 = vpop.f32.mrf.mxu1 }
 0x7d0   : > { %v5546_v43 = vmax.f32 %v5121_v35, 0.0  ;;  %v7942_v35 = vld [vmem:[%s11918_s5 + $0x78] sm:$0xff] }
 0x7d1   : > { %5823 = vmatpush.bf16.msra.mxu1 %v7942_v35 }
 0x7d3   : > { %v5033_v3 = vpop.f32.mrf.mxu2 }
 0x7d4   : > { %v5034_v13 = vadd.f32 %v5033_v3, %v11254_v57  ;;  %v5122_v53 = vpop.f32.mrf.mxu3  ;;  %v12625_v57 = vld [vmem:[#allocation32_spill] sm:$0xff] }
 0x7d5   : > { %v5204_v47 = vpop.f32.mrf.mxu0 }
 0x7d6   : > { %v5123_v51 = vadd.f32 %v5122_v53, %v5034_v13  ;;  %v5205_v4 = vadd.f32 %v5204_v47, %v11327_v58  ;;  %v5293_v45 = vpop.f32.mrf.mxu1 }
 0x7d8   : > { %v5548_v25 = vmax.f32 %v5123_v51, 0.0  ;;  %v11581_v32 = vadd.f32 %v5293_v45, %v5205_v4  ;;  %5351 = vmatmul.bf16.gmra.mxu2 %v12623_v28  ;;  %5747 = vmatmul.bf16.gmra.mxu0 %v11343_v54 }
 0x7d9   : > { %5440 = vmatmul.bf16.gmra.mxu3 %v12624_v38 }
 0x7da   : > { %12622 = vst [vmem:[#allocation119_spill] sm:$0xff] %v11581_v32  ;;  %v11586_v24 = vpack.c.bf16 %v5548_v25, %v5546_v43 }
 0x7db   : > { %v5036_v36 = vpop.f32.mrf.mxu2 }
 0x7dc   : > { %v5037_v33 = vadd.f32 %v5036_v36, %v12625_v57  ;;  %v5125_v3 = vpop.f32.mrf.mxu3 }
 0x7dd   : > { %v11589_v13 = vpop.f32.mrf.mxu0 }
 0x7de   : > { %v5126_v53 = vadd.f32 %v5125_v3, %v5037_v33  ;;  %v11591_v47 = vpop.f32.mrf.mxu1  ;;  %v12628_v33 = vld [vmem:[#allocation89_spill] sm:$0xff]  ;;  %v12629_v3 = vld [vmem:[#allocation44_spill] sm:$0xff] }
 0x7df   : > { %12626 = vst [vmem:[#allocation38_spill] sm:$0xff] %v11591_v47 }
 0x7e0   : > { %v5550_v38 = vmax.f32 %v5126_v53, 0.0 }
 0x7e3   : > { %v5038_v51 = vpop.f32.mrf.mxu2 }
 0x7e4   : > { %v5039_v54 = vadd.f32 %v5038_v51, %v11268_v27  ;;  %v5127_v4 = vpop.f32.mrf.mxu3  ;;  %v12630_v27 = vld [vmem:[#allocation52_spill] sm:$0xff] }
 0x7e5   : > { %v5209_v45 = vpop.f32.mrf.mxu0 }
 0x7e6   : > { %v5128_v43 = vadd.f32 %v5127_v4, %v5039_v54  ;;  %v5210_v25 = vadd.f32 %v5209_v45, %v11327_v58  ;;  %v5298_v28 = vpop.f32.mrf.mxu1 }
 0x7e8   : > { %v5552_v36 = vmax.f32 %v5128_v43, 0.0  ;;  %v11598_v57 = vadd.f32 %v5298_v28, %v5210_v25  ;;  %5356 = vmatmul.bf16.gmra.mxu2 %v12628_v33  ;;  %5752 = vmatmul.bf16.gmra.mxu0 %v11363_v31 }
 0x7e9   : > { %5445 = vmatmul.bf16.gmra.mxu3 %v12629_v3 }
 0x7ea   : > { %12627 = vst [vmem:[#allocation59_spill] sm:$0xff] %v11598_v57  ;;  %v11603_v35 = vpack.c.bf16 %v5552_v36, %v5550_v38 }
 0x7eb   : > { %v5041_v47 = vpop.f32.mrf.mxu2 }
 0x7ec   : > { %v5042_v51 = vadd.f32 %v5041_v47, %v12630_v27  ;;  %v5130_v32 = vpop.f32.mrf.mxu3  ;;  %v12631_v47 = vld [vmem:[#allocation92_spill] sm:$0xff] }
 0x7ed   : > { %v11606_v54 = vpop.f32.mrf.mxu0 }
 0x7ee   : > { %v5131_v4 = vadd.f32 %v5130_v32, %v5042_v51  ;;  %v11608_v45 = vpop.f32.mrf.mxu1  ;;  %v12632_v32 = vld [vmem:[#allocation26_spill] sm:$0xff] }
 0x7f0   : > { %v5554_v38 = vmax.f32 %v5131_v4, 0.0  ;;  %v7941_v4 = vld [vmem:[%s11918_s5 + $0x70] sm:$0xff] }
 0x7f1   : > { %5824 = vmatpush.bf16.msra.mxu1 %v7941_v4  ;;  %v12635_v4 = vld [vmem:[#allocation46_spill] sm:$0xff] }
 0x7f3   : > { %v5043_v53 = vpop.f32.mrf.mxu2 }
 0x7f4   : > { %v5044_v43 = vadd.f32 %v5043_v53, %v11282_v37  ;;  %v5132_v25 = vpop.f32.mrf.mxu3 }
 0x7f5   : > { %v5214_v28 = vpop.f32.mrf.mxu0 }
 0x7f6   : > { %v5133_v33 = vadd.f32 %v5132_v25, %v5044_v43  ;;  %v5215_v31 = vadd.f32 %v5214_v28, %v11327_v58  ;;  %v5303_v3 = vpop.f32.mrf.mxu1 }
 0x7f8   : > { %v5556_v36 = vmax.f32 %v5133_v33, 0.0  ;;  %v11612_v57 = vadd.f32 %v5303_v3, %v5215_v31  ;;  %5361 = vmatmul.bf16.gmra.mxu2 %v12631_v47  ;;  %5757 = vmatmul.bf16.gmra.mxu0 %v11383_v41  ;;  %v7940_v3 = vld [vmem:[%s11918_s5 + $0x68] sm:$0xff] }
 0x7f9   : > { %5450 = vmatmul.bf16.gmra.mxu3 %v12632_v32  ;;  %5825 = vmatpush.bf16.msra.mxu1 %v7940_v3  ;;  %v7938_v3 = vld [vmem:[%s11918_s5 + $0x58] sm:$0xff] }
 0x7fa   : > { %v11617_v27 = vpack.c.bf16 %v5556_v36, %v5554_v38 }
 0x7fb   : > { %v5046_v51 = vpop.f32.mrf.mxu2 }
 0x7fc   : > { %v5047_v37 = vadd.f32 %v5046_v51, %v11286_v21  ;;  %v5135_v53 = vpop.f32.mrf.mxu3 }
 0x7fd   : > { %v11620_v43 = vpop.f32.mrf.mxu0 }
 0x7fe   : > { %v5136_v25 = vadd.f32 %v5135_v53, %v5047_v37  ;;  %v11622_v28 = vpop.f32.mrf.mxu1  ;;  %v12634_v53 = vld [vmem:[#allocation94_spill] sm:$0xff] }
 0x800   : > { %v5558_v32 = vmax.f32 %v5136_v25, 0.0 }
 0x803   : > { %v5048_v33 = vpop.f32.mrf.mxu2 }
 0x804   : > { %v5049_v41 = vadd.f32 %v5048_v33, %v11296_v56  ;;  %v5137_v31 = vpop.f32.mrf.mxu3  ;;  %v7939_v56 = vld [vmem:[%s11918_s5 + $0x60] sm:$0xff] }
 0x805   : > { %v5219_v21 = vpop.f32.mrf.mxu0  ;;  %5826 = vmatpush.bf16.msra.mxu1 %v7939_v56 }
 0x806   : > { %v5138_v38 = vadd.f32 %v5137_v31, %v5049_v41  ;;  %v5220_v36 = vadd.f32 %v5219_v21, %v11327_v58  ;;  %v5308_v47 = vpop.f32.mrf.mxu1 }
 0x808   : > { %v5560_v51 = vmax.f32 %v5138_v38, 0.0  ;;  %v11632_v37 = vadd.f32 %v5308_v47, %v5220_v36  ;;  %5366 = vmatmul.bf16.gmra.mxu2 %v12634_v53  ;;  %5762 = vmatmul.bf16.gmra.mxu0 %v11439_v44  ;;  %v7937_v36 = vld [vmem:[%s11918_s5 + $0x50] sm:$0xff] }
 0x809   : > { %5455 = vmatmul.bf16.gmra.mxu3 %v12635_v4  ;;  %5827 = vmatpush.bf16.msra.mxu1 %v7938_v3 }
 0x80a   : > { %12633 = vst [vmem:[#allocation40_spill] sm:$0xff] %v11632_v37  ;;  %v11640_v33 = vpack.c.bf16 %v5560_v51, %v5558_v32  ;;  %v7936_v51 = vld [vmem:[%s11918_s5 + $0x48] sm:$0xff] }
 0x80b   : > { %v5051_v41 = vpop.f32.mrf.mxu2 }
 0x80c   : > { %v5052_v31 = vadd.f32 %v5051_v41, %v11300_v48  ;;  %v5140_v25 = vpop.f32.mrf.mxu3 }
 0x80d   : > { %v11646_v21 = vpop.f32.mrf.mxu0  ;;  %5828 = vmatpush.bf16.msra.mxu1 %v7937_v36  ;;  %v12639_v36 = vld [vmem:[#allocation48_spill] sm:$0xff] }
 0x80e   : > { %v5141_v44 = vadd.f32 %v5140_v25, %v5052_v31  ;;  %v11648_v38 = vpop.f32.mrf.mxu1 }
 0x80f   : > { %12636 = vst [vmem:[#allocation61_spill] sm:$0xff] %v11648_v38  ;;  %v12638_v38 = vld [vmem:[#allocation97_spill] sm:$0xff] }
 0x810   : > { %v5562_v31 = vmax.f32 %v5141_v44, 0.0 }
 0x811   : > { %5829 = vmatpush.bf16.msra.mxu1 %v7936_v51 }
 0x813   : > { %v5053_v47 = vpop.f32.mrf.mxu2 }
 0x814   : > { %v5054_v32 = vadd.f32 %v5053_v47, %v11310_v26  ;;  %v5142_v48 = vpop.f32.mrf.mxu3  ;;  %v7935_v26 = vld [vmem:[%s11918_s5 + $0x40] sm:$0xff] }
 0x815   : > { %v5224_v53 = vpop.f32.mrf.mxu0  ;;  %5830 = vmatpush.bf16.msra.mxu1 %v7935_v26 }
 0x816   : > { %v5143_v56 = vadd.f32 %v5142_v48, %v5054_v32  ;;  %v5225_v4 = vadd.f32 %v5224_v53, %v11327_v58  ;;  %v5313_v41 = vpop.f32.mrf.mxu1 }
 0x818   : > { %v5564_v25 = vmax.f32 %v5143_v56, 0.0  ;;  %v11658_v3 = vadd.f32 %v5313_v41, %v5225_v4  ;;  %5371 = vmatmul.bf16.gmra.mxu2 %v12638_v38  ;;  %5767 = vmatmul.bf16.gmra.mxu0 %v11492_v16 }
 0x819   : > { %5460 = vmatmul.bf16.gmra.mxu3 %v12639_v36 }
 0x81a   : > { %12637 = vst [vmem:[#allocation7_spill] sm:$0xff] %v11658_v3  ;;  %v11666_v47 = vpack.c.bf16 %v5564_v25, %v5562_v31 }
 0x81b   : > { %v5056_v32 = vpop.f32.mrf.mxu2 }
 0x81c   : > { %v5057_v48 = vadd.f32 %v5056_v32, %v11314_v29  ;;  %v5145_v44 = vpop.f32.mrf.mxu3  ;;  %v12641_v29 = vld [vmem:[#allocation99_spill] sm:$0xff]  ;;  %v12642_v32 = vld [vmem:[#allocation30_spill] sm:$0xff] }
 0x81d   : > { %v11669_v51 = vpop.f32.mrf.mxu0 }
 0x81e   : > { %v5146_v53 = vadd.f32 %v5145_v44, %v5057_v48  ;;  %v11671_v56 = vpop.f32.mrf.mxu1 }
 0x820   : > { %v5566_v31 = vmax.f32 %v5146_v53, 0.0 }
 0x823   : > { %v5058_v38 = vpop.f32.mrf.mxu2 }
 0x824   : > { %v5059_v16 = vadd.f32 %v5058_v38, %v11324_v61  ;;  %v5147_v4 = vpop.f32.mrf.mxu3 }
 0x825   : > { %v5229_v41 = vpop.f32.mrf.mxu0 }
 0x826   : > { %v5148_v3 = vadd.f32 %v5147_v4, %v5059_v16  ;;  %v5230_v36 = vadd.f32 %v5229_v41, %v11327_v58  ;;  %v5318_v26 = vpop.f32.mrf.mxu1 }
 0x828   : > { %v5568_v25 = vmax.f32 %v5148_v3, 0.0  ;;  %v11675_v37 = vadd.f32 %v5318_v26, %v5230_v36  ;;  %5376 = vmatmul.bf16.gmra.mxu2 %v12641_v29  ;;  %5772 = vmatmul.bf16.gmra.mxu0 %v11519_v39 }
 0x829   : > { %5465 = vmatmul.bf16.gmra.mxu3 %v12642_v32 }
 0x82a   : > { %12640 = vst [vmem:[#allocation65_spill] sm:$0xff] %v11675_v37  ;;  %v11680_v48 = vpack.c.bf16 %v5568_v25, %v5566_v31 }
 0x82b   : > { %v5337_v44 = vpop.f32.mrf.mxu2 }
 0x82c   : > { %v5426_v61 = vpop.f32.mrf.mxu3  ;;  %v5338_v4 = vadd.f32 %v5337_v44, %v11331_v22 }
 0x82d   : > { %v11682_v38 = vpop.f32.mrf.mxu0 }
 0x82e   : > { %v11684_v16 = vpop.f32.mrf.mxu1  ;;  %v5427_v3 = vadd.f32 %v5426_v61, %v5338_v4 }
 0x830   : > { %v5507_v31 = vmax.f32 %v5427_v3, 0.0 }
 0x833   : > { %v5339_v53 = vpop.f32.mrf.mxu2 }
 0x834   : > { %v5340_v41 = vadd.f32 %v5339_v53, %v11347_v11  ;;  %v5428_v36 = vpop.f32.mrf.mxu3 }
 0x835   : > { %v5234_v26 = vpop.f32.mrf.mxu0 }
 0x836   : > { %v5429_v29 = vadd.f32 %v5428_v36, %v5340_v41  ;;  %v5235_v39 = vadd.f32 %v5234_v26, %v11327_v58  ;;  %v5323_v32 = vpop.f32.mrf.mxu1 }
 0x838   : > { %v5509_v25 = vmax.f32 %v5429_v29, 0.0  ;;  %v11689_v37 = vadd.f32 %v5323_v32, %v5235_v39  ;;  %5381 = vmatmul.bf16.gmra.mxu2 %v12600_v19  ;;  %5777 = vmatmul.bf16.gmra.mxu0 %v11543_v18 }
 0x839   : > { %5470 = vmatmul.bf16.gmra.mxu3 %v11222_v50 }
 0x83a   : > { %v5571_v22 = vpack.c.bf16 %v5509_v25, %v5507_v31 }
 0x83b   : > { %v5342_v44 = vpop.f32.mrf.mxu2 }
 0x83c   : > { %v5431_v61 = vpop.f32.mrf.mxu3  ;;  %5831 = vmatmul.bf16.vlgmr.msra.gmra.mxu1 %v5571_v22  ;;  %v5343_v11 = vadd.f32 %v5342_v44, %v11357_v9 }
 0x83e   : > { %v5432_v53 = vadd.f32 %v5431_v61, %v5343_v11 }
 0x840   : > { %v5511_v26 = vmax.f32 %v5432_v53, 0.0 }
 0x843   : > { %v5344_v4 = vpop.f32.mrf.mxu2 }
 0x844   : > { %v5345_v41 = vadd.f32 %v5344_v4, %v11367_v55  ;;  %v5433_v3 = vpop.f32.mrf.mxu3 }
 0x846   : > { %v5434_v36 = vadd.f32 %v5433_v3, %v5345_v41  ;;  %v11706_v3 = vpop.f32.mrf.mxu0 }
 0x848   : > { %v5513_v29 = vmax.f32 %v5434_v36, 0.0  ;;  %5386 = vmatmul.bf16.gmra.mxu2 %v12601_v14  ;;  %5782 = vmatmul.bf16.gmra.mxu0 %v11558_v46  ;;  %v12643_v14 = vld [vmem:[#allocation50_spill] sm:$0xff] }
 0x849   : > { %5475 = vmatmul.bf16.gmra.mxu3 %v11236_v12 }
 0x84a   : > { %v5573_v50 = vpack.c.bf16 %v5513_v29, %v5511_v26 }
 0x84b   : > { %v5347_v19 = vpop.f32.mrf.mxu2 }
 0x84c   : > { %v5436_v18 = vpop.f32.mrf.mxu3  ;;  %5836 = vmatmul.bf16.gmra.mxu1 %v5573_v50  ;;  %v5348_v9 = vadd.f32 %v5347_v19, %v11371_v34 }
 0x84e   : > { %v5437_v32 = vadd.f32 %v5436_v18, %v5348_v9  ;;  %v11715_v19 = vpop.f32.mrf.mxu0 }
 0x850   : > { %v5515_v22 = vmax.f32 %v5437_v32, 0.0 }
 0x853   : > { %v5349_v39 = vpop.f32.mrf.mxu2 }
 0x854   : > { %v5350_v55 = vadd.f32 %v5349_v39, %v11402_v40  ;;  %v5438_v31 = vpop.f32.mrf.mxu3 }
 0x856   : > { %v5439_v25 = vadd.f32 %v5438_v31, %v5350_v55  ;;  %v12644_v55 = vld [vmem:[#allocation8_spill] sm:$0xff]  ;;  %v12645_v31 = vld [vmem:[#allocation118_spill] sm:$0xff] }
 0x858   : > { %v5517_v44 = vmax.f32 %v5439_v25, 0.0  ;;  %5391 = vmatmul.bf16.gmra.mxu2 %v12602_v23  ;;  %5787 = vmatmul.bf16.gmra.mxu0 %v11572_v7 }
 0x859   : > { %5480 = vmatmul.bf16.gmra.mxu3 %v12643_v14 }
 0x85a   : > { %v5575_v12 = vpack.c.bf16 %v5517_v44, %v5515_v22  ;;  %v5187_v22 = vadd.f32 %v11525_v1, %v11327_v58 }
 0x85b   : > { %v5352_v46 = vpop.f32.mrf.mxu2 }
 0x85c   : > { %v5441_v61 = vpop.f32.mrf.mxu3  ;;  %5841 = vmatmul.bf16.gmra.mxu1 %v5575_v12  ;;  %v5353_v34 = vadd.f32 %v5352_v46, %v11430_v42  ;;  %v5182_v42 = vadd.f32 %v11498_v0, %v11327_v58  ;;  %v5276_v14 = vadd.f32 %v11527_v6, %v5187_v22  ;;  %v5192_v6 = vadd.f32 %v11546_v20, %v11327_v58 }
 0x85e   : > { %v5442_v4 = vadd.f32 %v5441_v61, %v5353_v34  ;;  %v5271_v50 = vadd.f32 %v11500_v62, %v5182_v42 }
 0x860   : > { %v5519_v36 = vmax.f32 %v5442_v4, 0.0 }
 0x863   : > { %v5354_v11 = vpop.f32.mrf.mxu2 }
 0x864   : > { %v5355_v40 = vadd.f32 %v5354_v11, %v11464_v52  ;;  %v5443_v53 = vpop.f32.mrf.mxu3 }
 0x866   : > { %v5444_v41 = vadd.f32 %v5443_v53, %v5355_v40  ;;  %v12646_v53 = vld [vmem:[#allocation34_spill] sm:$0xff] }
 0x868   : > { %v5521_v23 = vmax.f32 %v5444_v41, 0.0  ;;  %5396 = vmatmul.bf16.gmra.mxu2 %v12605_v59  ;;  %5792 = vmatmul.bf16.gmra.mxu0 %v11586_v24 }
 0x869   : > { %5485 = vmatmul.bf16.gmra.mxu3 %v11264_v63 }
 0x86a   : > { %v5577_v7 = vpack.c.bf16 %v5521_v23, %v5519_v36  ;;  %v12647_v23 = vld [vmem:[#allocation36_spill] sm:$0xff] }
 0x86b   : > { %v5357_v26 = vpop.f32.mrf.mxu2 }
 0x86c   : > { %v5446_v29 = vpop.f32.mrf.mxu3  ;;  %5846 = vmatmul.bf16.gmra.mxu1 %v5577_v7  ;;  %v5358_v52 = vadd.f32 %v5357_v26, %v11483_v30  ;;  %v11720_v30 = vpop.f32.mrf.mxu0  ;;  %v5281_v26 = vadd.f32 %v11548_v10, %v5192_v6  ;;  %v5197_v10 = vadd.f32 %v11561_v15, %v11327_v58  ;;  %v5202_v15 = vadd.f32 %v11575_v17, %v11327_v58 }
 0x86e   : > { %v5447_v9 = vadd.f32 %v5446_v29, %v5358_v52 }
 0x870   : > { %v5523_v32 = vmax.f32 %v5447_v9, 0.0  ;;  %v12648_v9 = vld [vmem:[#allocation12_spill] sm:$0xff] }
 0x873   : > { %v5359_v18 = vpop.f32.mrf.mxu2 }
 0x874   : > { %v5360_v59 = vadd.f32 %v5359_v18, %v5271_v50  ;;  %v5448_v39 = vpop.f32.mrf.mxu3 }
 0x876   : > { %v5449_v24 = vadd.f32 %v5448_v39, %v5360_v59  ;;  %v12649_v59 = vld [vmem:[#allocation54_spill] sm:$0xff] }
 0x878   : > { %v5525_v63 = vmax.f32 %v5449_v24, 0.0  ;;  %5401 = vmatmul.bf16.gmra.mxu2 %v12644_v55  ;;  %5797 = vmatmul.bf16.gmra.mxu0 %v11603_v35  ;;  %v11726_v35 = vpop.f32.mrf.mxu0 }
 0x879   : > { %5490 = vmatmul.bf16.gmra.mxu3 %v12645_v31  ;;  %v5286_v31 = vadd.f32 %v11563_v5, %v5197_v10 }
 0x87a   : > { %v5579_v0 = vpack.c.bf16 %v5525_v63, %v5523_v32  ;;  %v12650_v63 = vld [vmem:[#allocation56_spill] sm:$0xff] }
 0x87b   : > { %v5362_v25 = vpop.f32.mrf.mxu2 }
 0x87c   : > { %v5451_v62 = vpop.f32.mrf.mxu3  ;;  %5851 = vmatmul.bf16.gmra.mxu1 %v5579_v0  ;;  %v5363_v44 = vadd.f32 %v5362_v25, %v11510_v49 }
 0x87e   : > { %v5452_v46 = vadd.f32 %v5451_v62, %v5363_v44 }
 0x880   : > { %v5527_v4 = vmax.f32 %v5452_v46, 0.0  ;;  %v11733_v36 = vpop.f32.mrf.mxu0 }
 0x883   : > { %v5364_v12 = vpop.f32.mrf.mxu2 }
 0x884   : > { %v5365_v61 = vadd.f32 %v5364_v12, %v5276_v14  ;;  %v5453_v34 = vpop.f32.mrf.mxu3 }
 0x886   : > { %v5454_v11 = vadd.f32 %v5453_v34, %v5365_v61 }
 0x888   : > { %v5529_v40 = vmax.f32 %v5454_v11, 0.0  ;;  %5406 = vmatmul.bf16.gmra.mxu2 %v12608_v8  ;;  %5802 = vmatmul.bf16.gmra.mxu0 %v11617_v27  ;;  %v11740_v20 = vpop.f32.mrf.mxu0 }
 0x889   : > { %5495 = vmatmul.bf16.gmra.mxu3 %v12646_v53 }
 0x88a   : > { %v5581_v1 = vpack.c.bf16 %v5529_v40, %v5527_v4  ;;  %v11754_v4 = vpop.f32.mrf.mxu1  ;;  %v5291_v40 = vadd.f32 %v11577_v60, %v5202_v15  ;;  %v12653_v15 = vld [vmem:[#allocation59_spill] sm:$0xff] }
 0x88b   : > { %v5367_v41 = vpop.f32.mrf.mxu2 }
 0x88c   : > { %v5456_v49 = vpop.f32.mrf.mxu3  ;;  %5856 = vmatmul.bf16.gmra.mxu1 %v5581_v1  ;;  %v5368_v7 = vadd.f32 %v5367_v41, %v12647_v23 }
 0x88e   : > { %v5457_v42 = vadd.f32 %v5456_v49, %v5368_v7 }
 0x890   : > { %v5531_v50 = vmax.f32 %v5457_v42, 0.0  ;;  %v11746_v25 = vpop.f32.mrf.mxu0 }
 0x893   : > { %v5369_v29 = vpop.f32.mrf.mxu2 }
 0x894   : > { %v5370_v8 = vadd.f32 %v5369_v29, %v5281_v26  ;;  %v5458_v52 = vpop.f32.mrf.mxu3 }
 0x896   : > { %v5459_v27 = vadd.f32 %v5458_v52, %v5370_v8  ;;  %v5207_v52 = vadd.f32 %v11589_v13, %v11327_v58 }
 0x898   : > { %v5533_v18 = vmax.f32 %v5459_v27, 0.0  ;;  %5411 = vmatmul.bf16.gmra.mxu2 %v12648_v9  ;;  %5807 = vmatmul.bf16.gmra.mxu0 %v11640_v33  ;;  %v11751_v11 = vpop.f32.mrf.mxu0  ;;  %v12652_v9 = vld [vmem:[#allocation38_spill] sm:$0xff] }
 0x899   : > { %5500 = vmatmul.bf16.gmra.mxu3 %v12649_v59  ;;  %v5296_v59 = vadd.f32 %v12652_v9, %v5207_v52 }
 0x89a   : > { %v5583_v39 = vpack.c.bf16 %v5533_v18, %v5531_v50  ;;  %v12651_v50 = vld [vmem:[#allocation119_spill] sm:$0xff] }
 0x89b   : > { %v5372_v24 = vpop.f32.mrf.mxu2 }
 0x89c   : > { %v5461_v32 = vpop.f32.mrf.mxu3  ;;  %5861 = vmatmul.bf16.gmra.mxu1 %v5583_v39  ;;  %v5373_v55 = vadd.f32 %v5372_v24, %v12650_v63 }
 0x89e   : > { %v5462_v62 = vadd.f32 %v5461_v32, %v5373_v55 }
 0x8a0   : > { %v5535_v14 = vmax.f32 %v5462_v62, 0.0  ;;  %v11764_v23 = vpop.f32.mrf.mxu0 }
 0x8a3   : > { %v5374_v0 = vpop.f32.mrf.mxu2 }
 0x8a4   : > { %v5375_v33 = vadd.f32 %v5374_v0, %v5286_v31  ;;  %v5463_v22 = vpop.f32.mrf.mxu3 }
 0x8a6   : > { %v5464_v44 = vadd.f32 %v5463_v22, %v5375_v33 }
 0x8a8   : > { %v5537_v12 = vmax.f32 %v5464_v44, 0.0  ;;  %5812 = vmatmul.bf16.gmra.mxu0 %v11666_v47  ;;  %v11760_v47 = vld [vmem:[%s11919_s6] ss:$0 sm:$0xff]  ;;  %v11775_v62 = vpop.f32.mrf.mxu0 }
 0x8a9   : > { %v5744_v17 = vadd.f32 %v11760_v47, %v11715_v19  ;;  %v5746_v27 = vadd.f32 %v11760_v47, %v11720_v30  ;;  %v5749_v13 = vadd.f32 %v11760_v47, %v11726_v35 }
 0x8aa   : > { %v5585_v46 = vpack.c.bf16 %v5537_v12, %v5535_v14 }
 0x8ab   : > { %v5377_v61 = vpop.f32.mrf.mxu2 }
 0x8ac   : > { %v5466_v34 = vpop.f32.mrf.mxu3  ;;  %5866 = vmatmul.bf16.gmra.mxu1 %v5585_v46  ;;  %v5378_v5 = vadd.f32 %v5377_v61, %v11567_v2  ;;  %v5212_v61 = vadd.f32 %v11606_v54, %v11327_v58  ;;  %v5754_v54 = vadd.f32 %v11760_v47, %v11740_v20 }
 0x8ae   : > { %v5467_v1 = vadd.f32 %v5466_v34, %v5378_v5  ;;  %v5751_v34 = vadd.f32 %v11760_v47, %v11733_v36  ;;  %v5301_v35 = vadd.f32 %v11608_v45, %v5212_v61  ;;  %v5761_v61 = vadd.f32 %v11760_v47, %v11764_v23 }
 0x8b0   : > { %v5539_v2 = vmax.f32 %v5467_v1, 0.0 }
 0x8b3   : > { %v5379_v53 = vpop.f32.mrf.mxu2 }
 0x8b4   : > { %v5380_v41 = vadd.f32 %v5379_v53, %v5291_v40  ;;  %v5468_v49 = vpop.f32.mrf.mxu3  ;;  %v11784_v40 = vpop.f32.mrf.mxu0 }
 0x8b6   : > { %v5469_v6 = vadd.f32 %v5468_v49, %v5380_v41 }
 0x8b8   : > { %v5541_v7 = vmax.f32 %v5469_v6, 0.0  ;;  %5817 = vmatmul.bf16.gmra.mxu0 %v11680_v48 }
 0x8b9   : > { %v5832_v60 = vpop.f32.mrf.mxu1 }
 0x8ba   : > { %v5587_v26 = vpack.c.bf16 %v5541_v7, %v5539_v2  ;;  %v5833_v29 = vadd.f32 %v5832_v60, %v5744_v17 }
 0x8bb   : > { %v5382_v42 = vpop.f32.mrf.mxu2 }
 0x8bc   : > { %v5471_v8 = vpop.f32.mrf.mxu3  ;;  %5871 = vmatmul.bf16.gmra.mxu1 %v5587_v26  ;;  %v5383_v19 = vadd.f32 %v5382_v42, %v12651_v50  ;;  %v5912_v48 = vmax.f32 %v5833_v29, 0.0 }
 0x8be   : > { %v5472_v32 = vadd.f32 %v5471_v8, %v5383_v19  ;;  %v5217_v19 = vadd.f32 %v11620_v43, %v11327_v58  ;;  %v5759_v43 = vadd.f32 %v11760_v47, %v11751_v11  ;;  %v12655_v11 = vld [vmem:[#allocation61_spill] sm:$0xff] }
 0x8c0   : > { %v5543_v30 = vmax.f32 %v5472_v32, 0.0  ;;  %v5306_v20 = vadd.f32 %v11622_v28, %v5217_v19  ;;  %v5766_v19 = vadd.f32 %v11760_v47, %v11784_v40 }
 0x8c1   : > { %v5834_v18 = vpop.f32.mrf.mxu1 }
 0x8c2   : > { %v5835_v39 = vadd.f32 %v5834_v18, %v5746_v27  ;;  %v11791_v27 = vpop.f32.mrf.mxu0  ;;  %v5756_v18 = vadd.f32 %v11760_v47, %v11746_v25 }
 0x8c3   : > { %v5384_v24 = vpop.f32.mrf.mxu2 }
 0x8c4   : > { %v5913_v10 = vmax.f32 %v5835_v39, 0.0  ;;  %v5385_v63 = vadd.f32 %v5384_v24, %v5296_v59  ;;  %v5473_v55 = vpop.f32.mrf.mxu3 }
 0x8c6   : > { %v5474_v31 = vadd.f32 %v5473_v55, %v5385_v63  ;;  %v11773_v0 = vpack.c.bf16 %v5913_v10, %v5912_v48 }
 0x8c8   : > { %v5545_v33 = vmax.f32 %v5474_v31, 0.0 }
 0x8c9   : > { %v5837_v22 = vpop.f32.mrf.mxu1 }
 0x8ca   : > { %v5589_v44 = vpack.c.bf16 %v5545_v33, %v5543_v30  ;;  %v5838_v14 = vadd.f32 %v5837_v22, %v5749_v13  ;;  %v11799_v31 = vpop.f32.mrf.mxu0 }
 0x8cb   : > { %v5387_v12 = vpop.f32.mrf.mxu2 }
 0x8cc   : > { %v5476_v46 = vpop.f32.mrf.mxu3  ;;  %5876 = vmatmul.bf16.gmra.mxu1 %v5589_v44  ;;  %v5388_v5 = vadd.f32 %v5387_v12, %v12653_v15  ;;  %v5914_v49 = vmax.f32 %v5838_v14, 0.0  ;;  %v5222_v12 = vadd.f32 %v11646_v21, %v11327_v58  ;;  %v5764_v21 = vadd.f32 %v11760_v47, %v11775_v62 }
 0x8ce   : > { %v5477_v6 = vadd.f32 %v5476_v46, %v5388_v5 }
 0x8d0   : > { %v5547_v36 = vmax.f32 %v5477_v6, 0.0 }
 0x8d1   : > { %v5839_v53 = vpop.f32.mrf.mxu1 }
 0x8d2   : > { %v5840_v1 = vadd.f32 %v5839_v53, %v5751_v34  ;;  %v11807_v46 = vpop.f32.mrf.mxu0  ;;  %v12654_v34 = vld [vmem:[#allocation40_spill] sm:$0xff]  ;;  %v5311_v53 = vadd.f32 %v12655_v11, %v5222_v12 }
 0x8d3   : > { %v5389_v41 = vpop.f32.mrf.mxu2 }
 0x8d4   : > { %v5915_v17 = vmax.f32 %v5840_v1, 0.0  ;;  %v5390_v2 = vadd.f32 %v5389_v41, %v5301_v35  ;;  %v5478_v7 = vpop.f32.mrf.mxu3 }
 0x8d6   : > { %v5479_v60 = vadd.f32 %v5478_v7, %v5390_v2  ;;  %v11787_v26 = vpack.c.bf16 %v5915_v17, %v5914_v49 }
 0x8d8   : > { %v5549_v29 = vmax.f32 %v5479_v60, 0.0 }
 0x8d9   : > { %v5842_v42 = vpop.f32.mrf.mxu1 }
 0x8da   : > { %v5591_v8 = vpack.c.bf16 %v5549_v29, %v5547_v36  ;;  %v5843_v52 = vadd.f32 %v5842_v42, %v5754_v54  ;;  %v11817_v36 = vpop.f32.mrf.mxu0 }
 0x8db   : > { %v5392_v45 = vpop.f32.mrf.mxu2 }
 0x8dc   : > { %v5481_v50 = vpop.f32.mrf.mxu3  ;;  %5881 = vmatmul.bf16.gmra.mxu1 %v5591_v8  ;;  %v5393_v9 = vadd.f32 %v5392_v45, %v11612_v57  ;;  %v5916_v48 = vmax.f32 %v5843_v52, 0.0 }
 0x8de   : > { %v5482_v32 = vadd.f32 %v5481_v50, %v5393_v9  ;;  %v5227_v50 = vadd.f32 %v11669_v51, %v11327_v58 }
 0x8e0   : > { %v5551_v25 = vmax.f32 %v5482_v32, 0.0  ;;  %v5316_v62 = vadd.f32 %v11671_v56, %v5227_v50 }
 0x8e1   : > { %v5844_v59 = vpop.f32.mrf.mxu1 }
 0x8e2   : > { %v5845_v39 = vadd.f32 %v5844_v59, %v5756_v18  ;;  %v12656_v18 = vld [vmem:[#allocation7_spill] sm:$0xff] }
 0x8e3   : > { %v5394_v24 = vpop.f32.mrf.mxu2 }
 0x8e4   : > { %v5917_v10 = vmax.f32 %v5845_v39, 0.0  ;;  %v5395_v63 = vadd.f32 %v5394_v24, %v5306_v20  ;;  %v5483_v55 = vpop.f32.mrf.mxu3  ;;  %v5778_v39 = vpop.f32.mrf.mxu0 }
 0x8e6   : > { %v5484_v13 = vadd.f32 %v5483_v55, %v5395_v63  ;;  %v11801_v30 = vpack.c.bf16 %v5917_v10, %v5916_v48 }
 0x8e8   : > { %v5553_v57 = vmax.f32 %v5484_v13, 0.0 }
 0x8e9   : > { %v5847_v33 = vpop.f32.mrf.mxu1 }
 0x8ea   : > { %v5593_v22 = vpack.c.bf16 %v5553_v57, %v5551_v25  ;;  %v5848_v28 = vadd.f32 %v5847_v33, %v5759_v43 }
 0x8eb   : > { %v5397_v44 = vpop.f32.mrf.mxu2 }
 0x8ec   : > { %v5486_v14 = vpop.f32.mrf.mxu3  ;;  %5886 = vmatmul.bf16.gmra.mxu1 %v5593_v22  ;;  %v5398_v15 = vadd.f32 %v5397_v44, %v12654_v34  ;;  %v5918_v41 = vmax.f32 %v5848_v28, 0.0  ;;  %v5780_v56 = vpop.f32.mrf.mxu0  ;;  %v5232_v28 = vadd.f32 %v11682_v38, %v11327_v58  ;;  %v12657_v44 = vld [vmem:[#allocation65_spill] sm:$0xff]  ;;  %v5237_v38 = vadd.f32 %v11706_v3, %v11327_v58 }
 0x8ed   : > { %v5781_v58 = vadd.f32 %v11760_v47, %v5780_v56 }
 0x8ee   : > { %v5487_v49 = vadd.f32 %v5486_v14, %v5398_v15 }
 0x8f0   : > { %v5555_v54 = vmax.f32 %v5487_v49, 0.0 }
 0x8f1   : > { %v5849_v5 = vpop.f32.mrf.mxu1 }
 0x8f2   : > { %v5850_v35 = vadd.f32 %v5849_v5, %v5761_v61  ;;  %v5321_v61 = vadd.f32 %v11684_v16, %v5232_v28 }
 0x8f3   : > { %v5399_v1 = vpop.f32.mrf.mxu2 }
 0x8f4   : > { %v5919_v6 = vmax.f32 %v5850_v35, 0.0  ;;  %v5400_v17 = vadd.f32 %v5399_v1, %v5311_v53  ;;  %v5488_v2 = vpop.f32.mrf.mxu3  ;;  %v5783_v35 = vpop.f32.mrf.mxu0 }
 0x8f6   : > { %v5489_v7 = vadd.f32 %v5488_v2, %v5400_v17  ;;  %v11813_v60 = vpack.c.bf16 %v5919_v6, %v5918_v41 }
 0x8f8   : > { %v5557_v23 = vmax.f32 %v5489_v7, 0.0 }
 0x8f9   : > { %v5852_v29 = vpop.f32.mrf.mxu1 }
 0x8fa   : > { %v5595_v42 = vpack.c.bf16 %v5557_v23, %v5555_v54  ;;  %v5853_v8 = vadd.f32 %v5852_v29, %v5764_v21  ;;  %v5326_v54 = vadd.f32 %v11754_v4, %v5237_v38  ;;  %v5776_v4 = vadd.f32 %v11760_v47, %v11817_v36 }
 0x8fb   : > { %v5402_v52 = vpop.f32.mrf.mxu2  ;;  %v5769_v36 = vadd.f32 %v11760_v47, %v11791_v27 }
 0x8fc   : > { %v5491_v45 = vpop.f32.mrf.mxu3  ;;  %5891 = vmatmul.bf16.gmra.mxu1 %v5595_v42  ;;  %v5403_v9 = vadd.f32 %v5402_v52, %v12656_v18  ;;  %v5920_v48 = vmax.f32 %v5853_v8, 0.0  ;;  %v5785_v21 = vpop.f32.mrf.mxu0 }
 0x8fe   : > { %v5492_v32 = vadd.f32 %v5491_v45, %v5403_v9 }
 0x900   : > { %v5559_v51 = vmax.f32 %v5492_v32, 0.0  ;;  %v5774_v32 = vadd.f32 %v11760_v47, %v11807_v46  ;;  %v5786_v46 = vadd.f32 %v11760_v47, %v5785_v21 }
 0x901   : > { %v5854_v59 = vpop.f32.mrf.mxu1 }
 0x902   : > { %v5855_v20 = vadd.f32 %v5854_v59, %v5766_v19  ;;  %v5779_v59 = vadd.f32 %v11760_v47, %v5778_v39 }
 0x903   : > { %v5404_v24 = vpop.f32.mrf.mxu2 }
 0x904   : > { %v5921_v10 = vmax.f32 %v5855_v20, 0.0  ;;  %v5405_v63 = vadd.f32 %v5404_v24, %v5316_v62  ;;  %v5493_v55 = vpop.f32.mrf.mxu3  ;;  %v5788_v9 = vpop.f32.mrf.mxu0 }
 0x906   : > { %v11825_v13 = vpack.c.bf16 %v5921_v10, %v5920_v48  ;;  %v5494_v43 = vadd.f32 %v5493_v55, %v5405_v63  ;;  %v5784_v55 = vadd.f32 %v11760_v47, %v5783_v35  ;;  %v5789_v35 = vadd.f32 %v11760_v47, %v5788_v9 }
 0x908   : > { %v5561_v25 = vmax.f32 %v5494_v43, 0.0 }
 0x909   : > { %v11827_v57 = vpop.f32.mrf.mxu1 }
 0x90a   : > { %v5597_v40 = vpack.c.bf16 %v5561_v25, %v5559_v51 }
 0x90b   : > { %v5407_v33 = vpop.f32.mrf.mxu2 }
 0x90c   : > { %v5496_v22 = vpop.f32.mrf.mxu3  ;;  %5896 = vmatmul.bf16.gmra.mxu1 %v5597_v40  ;;  %v5408_v14 = vadd.f32 %v5407_v33, %v12657_v44  ;;  %v5790_v48 = vpop.f32.mrf.mxu0  ;;  %v5771_v40 = vadd.f32 %v11760_v47, %v11799_v31  ;;  %v5858_v44 = vadd.f32 %v11827_v57, %v5769_v36 }
 0x90e   : > { %v5497_v15 = vadd.f32 %v5496_v22, %v5408_v14 }
 0x910   : > { %v5563_v1 = vmax.f32 %v5497_v15, 0.0  ;;  %v5922_v15 = vmax.f32 %v5858_v44, 0.0 }
 0x911   : > { %v5859_v12 = vpop.f32.mrf.mxu1 }
 0x912   : > { %v5860_v22 = vadd.f32 %v5859_v12, %v5771_v40 }
 0x913   : > { %v5409_v34 = vpop.f32.mrf.mxu2 }
 0x914   : > { %v5410_v5 = vadd.f32 %v5409_v34, %v5321_v61  ;;  %v5498_v11 = vpop.f32.mrf.mxu3  ;;  %v5793_v28 = vpop.f32.mrf.mxu0  ;;  %v5923_v61 = vmax.f32 %v5860_v22, 0.0 }
 0x916   : > { %v5499_v53 = vadd.f32 %v5498_v11, %v5410_v5 }
 0x918   : > { %v5565_v41 = vmax.f32 %v5499_v53, 0.0  ;;  %v5949_v53 = vpack.c.bf16 %v5923_v61, %v5922_v15 }
 0x919   : > { %v5862_v49 = vpop.f32.mrf.mxu1 }
 0x91a   : > { %v5599_v6 = vpack.c.bf16 %v5565_v41, %v5563_v1  ;;  %v5863_v43 = vadd.f32 %v5862_v49, %v5774_v32  ;;  %v5791_v41 = vadd.f32 %v11760_v47, %v5790_v48 }
 0x91b   : > { %v5412_v17 = vpop.f32.mrf.mxu2 }
 0x91c   : > { %v5501_v2 = vpop.f32.mrf.mxu3  ;;  %5901 = vmatmul.bf16.gmra.mxu1 %v5599_v6  ;;  %v5413_v7 = vadd.f32 %v5412_v17, %v11689_v37  ;;  %v5924_v33 = vmax.f32 %v5863_v43, 0.0  ;;  %v5795_v27 = vpop.f32.mrf.mxu0 }
 0x91e   : > { %v5502_v29 = vadd.f32 %v5501_v2, %v5413_v7  ;;  %v5794_v7 = vadd.f32 %v11760_v47, %v5793_v28 }
 0x920   : > { %v5567_v45 = vmax.f32 %v5502_v29, 0.0 }
 0x921   : > { %v5864_v16 = vpop.f32.mrf.mxu1 }
 0x922   : > { %v5865_v10 = vadd.f32 %v5864_v16, %v5776_v4 }
 0x923   : > { %v5414_v23 = vpop.f32.mrf.mxu2 }
 0x924   : > { %v5415_v42 = vadd.f32 %v5414_v23, %v5326_v54  ;;  %v5503_v8 = vpop.f32.mrf.mxu3  ;;  %v5925_v51 = vmax.f32 %v5865_v10, 0.0  ;;  %v5798_v6 = vpop.f32.mrf.mxu0  ;;  %v5796_v23 = vadd.f32 %v11760_v47, %v5795_v27 }
 0x926   : > { %v5504_v52 = vadd.f32 %v5503_v8, %v5415_v42  ;;  %v5950_v56 = vpack.c.bf16 %v5925_v51, %v5924_v33 }
 0x928   : > { %v5569_v50 = vmax.f32 %v5504_v52, 0.0 }
 0x929   : > { %v5867_v19 = vpop.f32.mrf.mxu1 }
 0x92a   : > { %v5601_v18 = vpack.c.bf16 %v5569_v50, %v5567_v45  ;;  %v5868_v37 = vadd.f32 %v5867_v19, %v5779_v59  ;;  %v5799_v50 = vadd.f32 %v11760_v47, %v5798_v6 }
 0x92c   : > { %5906 = vmatmul.bf16.gmra.mxu1 %v5601_v18  ;;  %v5926_v20 = vmax.f32 %v5868_v37, 0.0  ;;  %v5800_v54 = vpop.f32.mrf.mxu0 }
 0x92d   : > { %v5801_v18 = vadd.f32 %v11760_v47, %v5800_v54  ;;  %v5987_v54 = vld [vmem:[#allocation2] sm:$0x1] }
 0x931   : > { %v5869_v3 = vpop.f32.mrf.mxu1 }
 0x932   : > { %v5870_v62 = vadd.f32 %v5869_v3, %v5781_v58 }
 0x934   : > { %v5927_v24 = vmax.f32 %v5870_v62, 0.0  ;;  %v5803_v45 = vpop.f32.mrf.mxu0 }
 0x935   : > { %v5804_v62 = vadd.f32 %v11760_v47, %v5803_v45 }
 0x936   : > { %v5951_v63 = vpack.c.bf16 %v5927_v24, %v5926_v20 }
 0x938   : > { %5961 = vmatpush.bf16.xpose.msrb.mxu2 %v5951_v63 }
 0x939   : > { %v5872_v39 = vpop.f32.mrf.mxu1 }
 0x93a   : > { %v5873_v25 = vadd.f32 %v5872_v39, %v5784_v55 }
 0x93c   : > { %v5928_v5 = vmax.f32 %v5873_v25, 0.0  ;;  %v5805_v9 = vpop.f32.mrf.mxu0 }
 0x93d   : > { %v5806_v48 = vadd.f32 %v11760_v47, %v5805_v9 }
 0x940   : > { %5962 = vmatpush.bf16.xpose.msrb.mxu2 %v5950_v56 }
 0x941   : > { %v5874_v14 = vpop.f32.mrf.mxu1 }
 0x942   : > { %v5875_v34 = vadd.f32 %v5874_v14, %v5786_v46 }
 0x944   : > { %v5929_v11 = vmax.f32 %v5875_v34, 0.0  ;;  %v5808_v24 = vpop.f32.mrf.mxu0 }
 0x946   : > { %v11850_v31 = vpack.c.bf16 %v5929_v11, %v5928_v5 }
 0x948   : > { %5963 = vmatpush.bf16.xpose.msrb.mxu2 %v5949_v53 }
 0x949   : > { %v5877_v12 = vpop.f32.mrf.mxu1 }
 0x94a   : > { %v5878_v1 = vadd.f32 %v5877_v12, %v5789_v35 }
 0x94c   : > { %v5930_v17 = vmax.f32 %v5878_v1, 0.0  ;;  %v5810_v55 = vpop.f32.mrf.mxu0 }
 0x94d   : > { %v5811_v1 = vadd.f32 %v11760_v47, %v5810_v55 }
 0x950   : > { %5964 = vmatpush.bf16.xpose.msrb.mxu2 %v11825_v13 }
 0x951   : > { %v5879_v57 = vpop.f32.mrf.mxu1 }
 0x952   : > { %v5880_v49 = vadd.f32 %v5879_v57, %v5791_v41  ;;  %v5809_v57 = vadd.f32 %v11760_v47, %v5808_v24 }
 0x954   : > { %v5931_v2 = vmax.f32 %v5880_v49, 0.0  ;;  %v5813_v39 = vpop.f32.mrf.mxu0 }
 0x955   : > { %v5814_v11 = vadd.f32 %v11760_v47, %v5813_v39 }
 0x956   : > { %v11855_v38 = vpack.c.bf16 %v5931_v2, %v5930_v17 }
 0x958   : > { %5965 = vmatpush.bf16.xpose.msrb.mxu2 %v11813_v60 }
 0x959   : > { %v5882_v21 = vpop.f32.mrf.mxu1 }
 0x95a   : > { %v5883_v16 = vadd.f32 %v5882_v21, %v5794_v7 }
 0x95c   : > { %v5932_v42 = vmax.f32 %v5883_v16, 0.0  ;;  %v5815_v25 = vpop.f32.mrf.mxu0  ;;  %v5960_v16 = vld [vmem:[%s11920_s7] sm:$0xf] }
 0x95d   : > { %v5816_v34 = vadd.f32 %v11760_v47, %v5815_v25 }
 0x960   : > { %5966 = vmatpush.bf16.xpose.msrb.mxu2 %v11801_v30 }
 0x961   : > { %v5884_v29 = vpop.f32.mrf.mxu1 }
 0x962   : > { %v5885_v13 = vadd.f32 %v5884_v29, %v5796_v23  ;;  %v8076_v23 = vmov 0  }
 0x963   : > { %8000 = vset.pattern.permute.xlu0 %v8076_v23 }
 0x964   : > { %v5933_v8 = vmax.f32 %v5885_v13, 0.0  ;;  %v5818_v36 = vpop.f32.mrf.mxu0  ;;  %5990 = vperm.xlu0 %8000, %v5987_v54  }
 0x965   : > { %v5819_v28 = vadd.f32 %v11760_v47, %v5818_v36 }
 0x966   : > { %v11861_v52 = vpack.c.bf16 %v5933_v8, %v5932_v42 }
 0x968   : > { %5967 = vmatpush.bf16.xpose.msrb.mxu2 %v11787_v26 }
 0x969   : > { %v5887_v19 = vpop.f32.mrf.mxu1 }
 0x96a   : > { %v5888_v60 = vadd.f32 %v5887_v19, %v5799_v50 }
 0x96c   : > { %v5934_v58 = vmax.f32 %v5888_v60, 0.0  ;;  %v5820_v56 = vpop.f32.mrf.mxu0 }
 0x96d   : > { %v5821_v46 = vadd.f32 %v11760_v47, %v5820_v56 }
 0x970   : > { %5968 = vmatpush.bf16.xpose.msrb.mxu2 %v11773_v0 }
 0x971   : > { %v5889_v59 = vpop.f32.mrf.mxu1 }
 0x972   : > { %v5890_v30 = vadd.f32 %v5889_v59, %v5801_v18 }
 0x974   : > { %v5935_v37 = vmax.f32 %v5890_v30, 0.0 }
 0x976   : > { %v5955_v3 = vpack.c.bf16 %v5935_v37, %v5934_v58  ;;  %v6012_v58 = vlaneseq }
 0x977   : > { %5969 = vmatmul.bf16.vlgmr.msrb.gmra.mxu2 %v5960_v16 }
 0x978   : > { %vm6014_vm1 = vcmp.lt.s32.totalorder %v6012_v58, 256 }
 0x979   : > { %v5892_v4 = vpop.f32.mrf.mxu1 }
 0x97a   : > { %v5893_v20 = vadd.f32 %v5892_v4, %v5804_v62 }
 0x97c   : > { %v5936_v10 = vmax.f32 %v5893_v20, 0.0 }
 0x981   : > { %v5894_v26 = vpop.f32.mrf.mxu1 }
 0x982   : > { %v5895_v32 = vadd.f32 %v5894_v26, %v5806_v48 }
 0x984   : > { %v5937_v63 = vmax.f32 %v5895_v32, 0.0 }
 0x986   : > { %v5956_v43 = vpack.c.bf16 %v5937_v63, %v5936_v10 }
 0x989   : > { %v5897_v0 = vpop.f32.mrf.mxu1 }
 0x98a   : > { %v5898_v17 = vadd.f32 %v5897_v0, %v5809_v57 }
 0x98c   : > { %v5938_v7 = vmax.f32 %v5898_v17, 0.0 }
 0x991   : > { %v5899_v51 = vpop.f32.mrf.mxu1 }
 0x992   : > { %v5900_v49 = vadd.f32 %v5899_v51, %v5811_v1 }
 0x994   : > { %v5939_v2 = vmax.f32 %v5900_v49, 0.0 }
 0x996   : > { %v5957_v21 = vpack.c.bf16 %v5939_v2, %v5938_v7 }
 0x999   : > { %v5902_v40 = vpop.f32.mrf.mxu1 }
 0x99a   : > { %v5903_v27 = vadd.f32 %v5902_v40, %v5814_v11 }
 0x99c   : > { %v5940_v41 = vmax.f32 %v5903_v27, 0.0 }
 0x9a1   : > { %v5904_v33 = vpop.f32.mrf.mxu1 }
 0x9a2   : > { %v5905_v53 = vadd.f32 %v5904_v33, %v5816_v34 }
 0x9a4   : > { %v5941_v12 = vmax.f32 %v5905_v53, 0.0 }
 0x9a6   : > { %v5958_v6 = vpack.c.bf16 %v5941_v12, %v5940_v41 }
 0x9a9   : > { %v5907_v22 = vpop.f32.mrf.mxu1 }
 0x9aa   : > { %v5908_v44 = vadd.f32 %v5907_v22, %v5819_v28 }
 0x9ac   : > { %v5942_v15 = vmax.f32 %v5908_v44, 0.0 }
 0x9b1   : > { %v5909_v14 = vpop.f32.mrf.mxu1 }
 0x9b2   : > { %v5910_v61 = vadd.f32 %v5909_v14, %v5821_v46 }
 0x9b4   : > { %v5943_v5 = vmax.f32 %v5910_v61, 0.0 }
 0x9b6   : > { %v5959_v35 = vpack.c.bf16 %v5943_v5, %v5942_v15 }
 0x9b8   : > { %5974 = vmatpush.bf16.xpose.msrb.mxu3 %v5959_v35 }
 0x9c0   : > { %5975 = vmatpush.bf16.xpose.msrb.mxu3 %v5958_v6 }
 0x9c8   : > { %5976 = vmatpush.bf16.xpose.msrb.mxu3 %v5957_v21 }
 0x9d0   : > { %5977 = vmatpush.bf16.xpose.msrb.mxu3 %v5956_v43 }
 0x9d6   : > { %v5991_v13 = vpop.permute.xlu0 %5990 }
 0x9d7   : > { %v5993_v42 = vperm.slane %v5991_v13, 0 }
 0x9d8   : > { %5978 = vmatpush.bf16.xpose.msrb.mxu3 %v5955_v3 }
 0x9e0   : > { %5979 = vmatpush.bf16.xpose.msrb.mxu3 %v11861_v52 }
 0x9e8   : > { %5980 = vmatpush.bf16.xpose.msrb.mxu3 %v11855_v38 }
 0x9f0   : > { %5981 = vmatpush.bf16.xpose.msrb.mxu3 %v11850_v31 }
 0x9f7   : > { %5982 = vmatmul.bf16.vlgmr.msrb.gmra.mxu3 %v5960_v16 }
 0x9fa   : > { %v5970_v47 = vpop.f32.mrf.mxu2 }
 0x9fb   : > { %v5994_v8 = vadd.f32 %v5993_v42, %v5970_v47 }
 0x9fd   : > { %v5996_v45 = vsub.f32 0.0, %v5994_v8 }
 0x9ff   : > { %v5998_v60 = vmul.f32 1.442695, %v5996_v45 }
 0xa01   : > { %8002 = vpow2.f32 %v5998_v60 }
 0xa02   : > { %v5972_v29 = vpop.f32.mrf.mxu2 }
 0xa07   : > { %v8003_v38 = vpop.eup %8002 }
 0xa08   : > { %v6002_v59 = vadd.f32 1.0, %v8003_v38 }
 0xa7a   : > { %v5983_v50 = vpop.f32.mrf.mxu3 }
 0xa7b   : > { %v5995_v19 = vadd.f32 %v5993_v42, %v5983_v50 }
 0xa7d   : > { %v5997_v18 = vsub.f32 0.0, %v5995_v19 }
 0xa7f   : > { %v6000_v9 = vmul.f32 1.442695, %v5997_v18 }
 0xa81   : > { %8004 = vpow2.f32 %v6000_v9 }
 0xa82   : > { %v5985_v52 = vpop.f32.mrf.mxu3 }
 0xa87   : > { %v8005_v31 = vpop.eup %8004 }
 0xa88   : > { %v6003_v30 = vadd.f32 1.0, %v8005_v31 }
 0xa8a   : > { %8006 = vrcp.f32 %v6003_v30 }
 0xa8b   : > { %8008 = vrcp.f32 %v6002_v59 }
 0xa90   : > { %v8007_v37 = vpop.eup %8006 }
 0xa91   : > { %v6008_v3 = vrot.slane %v8007_v37, 7  ;;  %v8009_v62 = vpop.eup %8008 }
 0xa93   : > { %v6010_v4 = vsel %vm6009_vm0, %v8009_v62, %v6008_v3 }
 0xa94   : > { %6016 = vst.msk [vmem:[%s330_s15] sm:$0x3] %vm6014_vm1, %v6010_v4 }
 0xa95   : > { %8039 = shalt.err (!%p8036_p3)
}
 0xa96   : > { %7960 = dma.vmem_to_hbm [thread:$0]  (%p8168_p5), %s6031_s18, 32, %s6033_s10, %s6018_s8  }
 0xa97 PF: > { %p7966_p4 = scmp.ge.s32.totalorder %s8074_s14, 2  ;;  %s6044_s25 = sand.u32 1, %s8062_s11  }
 0xa98   : > { %s6045_s28 = scalar_lea.sflag [#allocation4], %s6044_s25 }
 0xa99   : > { %p7963_p7 = pnand %p7966_p4, %p8172_p6 }
 0xa9b   : > { %p7964_p8 = pneg %p7963_p7 }
 0xa9d   : > { %8057 = dma.done.wait (%p7964_p8), %s6045_s28, 32  }
 0xa9e   : > { %8059 = vsyncadd (%p7964_p8), %s6045_s28, 4294967264  ;;  %p21_p9 = scmp.ge.s32.totalorder %s8155_s16, 4   ;;  %s12658_s11 = smov %s8066_s12 }
 0xa9f   : > { %s12659_s12 = smov %s8070_s13  ;;  %s12660_s13 = smov %s8166_s19 }
 0xaa0   : > { %s12661_s14 = smov %s8155_s16  ;;  %23 = sbr.rel (!%p21_p9) target bundleno = 6 (0x6), region = 91 }
 0xaa5   :  { %6051 = vsyncpa [#allocation4], 1 }
 0xaa6   :  { %6053 = vsyncpa [#allocation4 + $0x1], 1 }

</bundles_post_ra>
